<compile_context>
chip_gen: v7x
topology: tpu7x:2x2x1
jax: 0.10.0
libtpu: 0.0.40
codegen_flags: <defaults>
</compile_context>

<pallas_src>
import jax
import jax.numpy as jnp
from jax import lax
from jax.experimental import pallas as pl
from jax.experimental.pallas import tpu as pltpu

IMG_H = 330
IMG_W = 370
IN_SIZE = IMG_H * IMG_W                  # 122100
H1, H2, OUT = 128, 64, 5

TK = 30720                               # fc1 K tile (bf16 w1 tile = 7.5 MiB)
KP = ((IN_SIZE + TK - 1) // TK) * TK     # 122880 = 4 * TK
NK = KP // TK                            # 4 grid steps
assert KP % TK == 0


def _mlp_kernel(x_ref, w1_ref, b1_ref, w2_ref, b2_ref, w3_ref, b3_ref,
                o_ref, acc_ref):
    """K-tiled fc1 (bf16 MXU, f32 accum) with fc2/fc3 fused on the last step."""
    k = pl.program_id(0)

    @pl.when(k == 0)
    def _():
        acc_ref[...] = jnp.zeros_like(acc_ref)

    # The last K tile is ragged (IN_SIZE % TK != 0): the tail of the x block is
    # undefined VMEM contents, so mask it to 0 (w1 is zero-padded there, but
    # garbage * 0 could be NaN).  bf16 cast done in-kernel (no XLA round trip).
    valid = IN_SIZE - k * TK
    col = lax.broadcasted_iota(jnp.int32, x_ref.shape, 1)
    xb = jnp.where(col < valid, x_ref[...], 0.0).astype(jnp.bfloat16)

    acc_ref[...] += jnp.dot(xb, w1_ref[...], preferred_element_type=jnp.float32)

    @pl.when(k == pl.num_programs(0) - 1)
    def _():
        h1 = acc_ref[...] + b1_ref[...]                                     # (B, H1)
        h2 = jnp.dot(h1, w2_ref[...], preferred_element_type=jnp.float32) + b2_ref[...]
        y = jnp.dot(h2, w3_ref[...], preferred_element_type=jnp.float32) + b3_ref[...]
        o_ref[...] = y.astype(o_ref.dtype)


def init_params(key):
    """Deterministic nn.Linear-style init: U(-1/sqrt(fan_in), 1/sqrt(fan_in))."""
    ks = jax.random.split(key, 6)

    def lin(kw, kb, fan_in, fan_out):
        bound = 1.0 / jnp.sqrt(jnp.float32(fan_in))
        w = jax.random.uniform(kw, (fan_in, fan_out), jnp.float32, -bound, bound)
        b = jax.random.uniform(kb, (fan_out,), jnp.float32, -bound, bound)
        return w, b

    w1, b1 = lin(ks[0], ks[1], IN_SIZE, H1)
    w2, b2 = lin(ks[2], ks[3], H1, H2)
    w3, b3 = lin(ks[4], ks[5], H2, OUT)
    return (w1, b1, w2, b2, w3, b3)


def prepare_params(params):
    """One-time param prep (hoisted out of the per-call forward):
    pad w1 along K and cast to bf16; reshape biases to lane-major rows."""
    w1, b1, w2, b2, w3, b3 = params
    w1p = jnp.pad(w1, ((0, KP - IN_SIZE), (0, 0))).astype(jnp.bfloat16)
    return (w1p,
            b1.reshape(1, H1).astype(jnp.float32),
            w2.astype(jnp.float32),
            b2.reshape(1, H2).astype(jnp.float32),
            w3.astype(jnp.float32),
            b3.reshape(1, OUT).astype(jnp.float32))


@jax.jit
def weather_classifier_forward(x, prepared):
    """x: (B, IMG_H, IMG_W) float32 -> logits (B, 5) float32."""
    w1p, b1r, w2, b2r, w3, b3r = prepared
    B = x.shape[0]
    xf = x.reshape(B, IN_SIZE)           # metadata-only reshape, stays f32

    cost = pl.CostEstimate(
        flops=2 * B * KP * H1 + 2 * B * H1 * H2 + 2 * B * H2 * OUT,
        transcendentals=0,
        bytes_accessed=(KP * H1 * 2                        # w1 bf16 (dominant)
                        + B * IN_SIZE * 4                   # x f32
                        + (H1 * H2 + H2 * OUT + H1 + H2 + OUT) * 4
                        + B * OUT * 4))

    logits = pl.pallas_call(
        _mlp_kernel,
        out_shape=jax.ShapeDtypeStruct((B, OUT), jnp.float32),
        grid_spec=pltpu.PrefetchScalarGridSpec(
            num_scalar_prefetch=0,
            grid=(NK,),
            in_specs=[
                pl.BlockSpec((B, TK), lambda k: (0, k)),     # x (ragged last tile)
                pl.BlockSpec((TK, H1), lambda k: (k, 0)),    # w1 (streamed)
                pl.BlockSpec((1, H1), lambda k: (0, 0)),     # b1 (resident)
                pl.BlockSpec((H1, H2), lambda k: (0, 0)),    # w2 (resident)
                pl.BlockSpec((1, H2), lambda k: (0, 0)),     # b2 (resident)
                pl.BlockSpec((H2, OUT), lambda k: (0, 0)),   # w3 (resident)
                pl.BlockSpec((1, OUT), lambda k: (0, 0)),    # b3 (resident)
            ],
            out_specs=pl.BlockSpec((B, OUT), lambda k: (0, 0)),
            scratch_shapes=[pltpu.VMEM((B, H1), jnp.float32)],
        ),
        compiler_params=pltpu.CompilerParams(
            dimension_semantics=("arbitrary",),
            vmem_limit_bytes=40 * 1024 * 1024),
        cost_estimate=cost,
    )(xf, w1p, b1r, w2, b2r, w3, b3r)
    return logits


def _reference_forward(x, params):
    """Original-module semantics in f32 (highest precision)."""
    w1, b1, w2, b2, w3, b3 = params
    xf = x.reshape(x.shape[0], -1)
    h1 = jnp.dot(xf, w1, precision=lax.Precision.HIGHEST) + b1
    h2 = jnp.dot(h1, w2, precision=lax.Precision.HIGHEST) + b2
    return jnp.dot(h2, w3, precision=lax.Precision.HIGHEST) + b3


def _reference_forward_bf16(x, params):
    """Same rounding of x/w1 as the kernel (bf16 fc1 inputs, f32 accumulation)."""
    w1, b1, w2, b2, w3, b3 = params
    xf = x.reshape(x.shape[0], -1).astype(jnp.bfloat16).astype(jnp.float32)
    w1b = w1.astype(jnp.bfloat16).astype(jnp.float32)
    h1 = jnp.dot(xf, w1b, precision=lax.Precision.HIGHEST) + b1
    h2 = jnp.dot(h1, w2, precision=lax.Precision.HIGHEST) + b2
    return jnp.dot(h2, w3, precision=lax.Precision.HIGHEST) + b3


if __name__ == "__main__":
    key = jax.random.PRNGKey(0)
    k_x, k_p = jax.random.split(key)

    B = 2
    x = jax.random.normal(k_x, (B, IMG_H, IMG_W), dtype=jnp.float32)
    params = init_params(k_p)
    prepared = prepare_params(params)    # one-time: pad + bf16-cast w1, reshape biases

    y = weather_classifier_forward(x, prepared)
    y = jax.block_until_ready(y)
    assert y.shape == (B, OUT)
    assert bool(jnp.all(jnp.isfinite(y)))

    # Tight-ish check vs a reference that applies the same bf16 rounding to x / w1.
    y_bf = _reference_forward_bf16(x, params)
    assert jnp.allclose(y, y_bf, atol=1e-2, rtol=1e-2), (y, y_bf)

    # Looser check vs the full-f32 original-module semantics.
    y_ref = _reference_forward(x, params)
    assert jnp.allclose(y, y_ref, atol=3e-2, rtol=3e-2), (y, y_ref)

    print("KERNEL_OK")
</pallas_src>

<mosaic_0001>
module attributes {stable_mosaic.version = 11 : i64} {
  func.func @_mlp_kernel(%arg0: i32, %arg1: memref<2x30720xf32, #tpu.memory_space<vmem>>, %arg2: memref<30720x128xbf16, #tpu.memory_space<vmem>>, %arg3: memref<1x128xf32, #tpu.memory_space<vmem>>, %arg4: memref<128x64xf32, #tpu.memory_space<vmem>>, %arg5: memref<1x64xf32, #tpu.memory_space<vmem>>, %arg6: memref<64x5xf32, #tpu.memory_space<vmem>>, %arg7: memref<1x5xf32, #tpu.memory_space<vmem>>, %arg8: memref<2x5xf32, #tpu.memory_space<vmem>>, %arg9: memref<2x128xf32, #tpu.memory_space<vmem>>) attributes {dimension_semantics = [#tpu.dimension_semantics<arbitrary>], iteration_bounds = array<i64: 4>, scalar_prefetch = 0 : i64, scratch_operands = 1 : i64, tpu.core_type = #tpu.core_type<tc>, window_params = [{transform_indices = @transform_0, window_bounds = array<i64: 2, 30720>}, {transform_indices = @transform_1, window_bounds = array<i64: 30720, 128>}, {pipeline_mode = #tpu.pipeline_mode<synchronous>, transform_indices = @transform_2, window_bounds = array<i64: 1, 128>}, {pipeline_mode = #tpu.pipeline_mode<synchronous>, transform_indices = @transform_3, window_bounds = array<i64: 128, 64>}, {pipeline_mode = #tpu.pipeline_mode<synchronous>, transform_indices = @transform_4, window_bounds = array<i64: 1, 64>}, {pipeline_mode = #tpu.pipeline_mode<synchronous>, transform_indices = @transform_5, window_bounds = array<i64: 64, 5>}, {pipeline_mode = #tpu.pipeline_mode<synchronous>, transform_indices = @transform_6, window_bounds = array<i64: 1, 5>}, {pipeline_mode = #tpu.pipeline_mode<synchronous>, transform_indices = @transform_7, window_bounds = array<i64: 2, 5>}]} {
    %c0_i32 = arith.constant 0 : i32
    %0 = arith.cmpi eq, %arg0, %c0_i32 : i32
    %1 = arith.extui %0 : i1 to i32
    %c0_i32_0 = arith.constant 0 : i32
    %2 = arith.cmpi ne, %1, %c0_i32_0 : i32
    scf.if %2 {
      %cst_10 = arith.constant 0.000000e+00 : f32
      %20 = vector.broadcast %cst_10 : f32 to vector<2x128xf32>
      %c0_11 = arith.constant 0 : index
      %c0_12 = arith.constant 0 : index
      %21 = vector.load %arg9[%c0_11, %c0_12] : memref<2x128xf32, #tpu.memory_space<vmem>>, vector<2x128xf32>
      tpu.vector_store %arg9[%c0_11, %c0_12], %20 {strides = array<i32>} : memref<2x128xf32, #tpu.memory_space<vmem>>, vector<2x128xf32>,
    } else {
    }
    %c30720_i32 = arith.constant 30720 : i32
    %3 = arith.muli %arg0, %c30720_i32 : i32
    %c122100_i32 = arith.constant 122100 : i32
    %4 = arith.subi %c122100_i32, %3 : i32
    %5 = tpu.iota {dimensions = array<i32: 1>} : vector<2x30720xi32>
    %6 = vector.broadcast %4 : i32 to vector<2x30720xi32>
    %7 = arith.cmpi slt, %5, %6 : vector<2x30720xi32>
    %c0 = arith.constant 0 : index
    %c0_1 = arith.constant 0 : index
    %8 = vector.load %arg1[%c0, %c0_1] : memref<2x30720xf32, #tpu.memory_space<vmem>>, vector<2x30720xf32>
    %cst = arith.constant 0.000000e+00 : f32
    %9 = vector.broadcast %cst : f32 to vector<2x30720xf32>
    %10 = arith.select %7, %8, %9 : vector<2x30720xi1>, vector<2x30720xf32>
    %11 = arith.truncf %10 : vector<2x30720xf32> to vector<2x30720xbf16>
    %c0_2 = arith.constant 0 : index
    %c0_3 = arith.constant 0 : index
    %12 = vector.load %arg9[%c0_2, %c0_3] : memref<2x128xf32, #tpu.memory_space<vmem>>, vector<2x128xf32>
    %c0_4 = arith.constant 0 : index
    %c0_5 = arith.constant 0 : index
    %13 = vector.load %arg2[%c0_4, %c0_5] : memref<30720x128xbf16, #tpu.memory_space<vmem>>, vector<30720x128xbf16>
    %cst_6 = arith.constant dense<0.000000e+00> : vector<2x128xf32>
    %14 = tpu.matmul %11, %13, %cst_6 {dimension_numbers = #tpu.dot_dimension_numbers<[1], [0], [0], [1], [0, 0, 1, 1], [], []>} : vector<2x30720xbf16>, vector<30720x128xbf16>, vector<2x128xf32> -> vector<2x128xf32>
    %15 = arith.addf %12, %14 : vector<2x128xf32>
    %c0_7 = arith.constant 0 : index
    %c0_8 = arith.constant 0 : index
    %16 = vector.load %arg9[%c0_7, %c0_8] : memref<2x128xf32, #tpu.memory_space<vmem>>, vector<2x128xf32>
    tpu.vector_store %arg9[%c0_7, %c0_8], %15 {strides = array<i32>} : memref<2x128xf32, #tpu.memory_space<vmem>>, vector<2x128xf32>,
    %c3_i32 = arith.constant 3 : i32
    %17 = arith.cmpi eq, %arg0, %c3_i32 : i32
    %18 = arith.extui %17 : i1 to i32
    %c0_i32_9 = arith.constant 0 : i32
    %19 = arith.cmpi ne, %18, %c0_i32_9 : i32
    scf.if %19 {
      %c0_10 = arith.constant 0 : index
      %c0_11 = arith.constant 0 : index
      %20 = vector.load %arg9[%c0_10, %c0_11] : memref<2x128xf32, #tpu.memory_space<vmem>>, vector<2x128xf32>
      %c0_12 = arith.constant 0 : index
      %c0_13 = arith.constant 0 : index
      %21 = vector.load %arg3[%c0_12, %c0_13] : memref<1x128xf32, #tpu.memory_space<vmem>>, vector<1x128xf32>
      %22 = vector.broadcast %21 : vector<1x128xf32> to vector<2x128xf32>
      %23 = arith.addf %20, %22 : vector<2x128xf32>
      %c0_14 = arith.constant 0 : index
      %c0_15 = arith.constant 0 : index
      %24 = vector.load %arg4[%c0_14, %c0_15] : memref<128x64xf32, #tpu.memory_space<vmem>>, vector<128x64xf32>
      %cst_16 = arith.constant dense<0.000000e+00> : vector<2x64xf32>
      %25 = tpu.matmul %23, %24, %cst_16 {dimension_numbers = #tpu.dot_dimension_numbers<[1], [0], [0], [1], [0, 0, 1, 1], [], []>} : vector<2x128xf32>, vector<128x64xf32>, vector<2x64xf32> -> vector<2x64xf32>
      %c0_17 = arith.constant 0 : index
      %c0_18 = arith.constant 0 : index
      %26 = vector.load %arg5[%c0_17, %c0_18] : memref<1x64xf32, #tpu.memory_space<vmem>>, vector<1x64xf32>
      %27 = vector.broadcast %26 : vector<1x64xf32> to vector<2x64xf32>
      %28 = arith.addf %25, %27 : vector<2x64xf32>
      %c0_19 = arith.constant 0 : index
      %c0_20 = arith.constant 0 : index
      %29 = vector.load %arg6[%c0_19, %c0_20] : memref<64x5xf32, #tpu.memory_space<vmem>>, vector<64x5xf32>
      %cst_21 = arith.constant dense<0.000000e+00> : vector<2x5xf32>
      %30 = tpu.matmul %28, %29, %cst_21 {dimension_numbers = #tpu.dot_dimension_numbers<[1], [0], [0], [1], [0, 0, 1, 1], [], []>} : vector<2x64xf32>, vector<64x5xf32>, vector<2x5xf32> -> vector<2x5xf32>
      %c0_22 = arith.constant 0 : index
      %c0_23 = arith.constant 0 : index
      %31 = vector.load %arg7[%c0_22, %c0_23] : memref<1x5xf32, #tpu.memory_space<vmem>>, vector<1x5xf32>
      %32 = vector.broadcast %31 : vector<1x5xf32> to vector<2x5xf32>
      %33 = arith.addf %30, %32 : vector<2x5xf32>
      %c0_24 = arith.constant 0 : index
      %c0_25 = arith.constant 0 : index
      %34 = vector.load %arg8[%c0_24, %c0_25] : memref<2x5xf32, #tpu.memory_space<vmem>>, vector<2x5xf32>
      tpu.vector_store %arg8[%c0_24, %c0_25], %33 {strides = array<i32>} : memref<2x5xf32, #tpu.memory_space<vmem>>, vector<2x5xf32>,
    } else {
    }
    return
  }
  func.func @transform_0(%arg0: i32) -> (i32, i32) {
    %c0_i32 = arith.constant 0 : i32
    %c0_i32_0 = arith.constant 0 : i32
    return %c0_i32, %arg0 : i32, i32
  }
  func.func @transform_1(%arg0: i32) -> (i32, i32) {
    %c0_i32 = arith.constant 0 : i32
    %c0_i32_0 = arith.constant 0 : i32
    return %arg0, %c0_i32 : i32, i32
  }
  func.func @transform_2(%arg0: i32) -> (i32, i32) {
    %c0_i32 = arith.constant 0 : i32
    %c0_i32_0 = arith.constant 0 : i32
    %c0_i32_1 = arith.constant 0 : i32
    return %c0_i32, %c0_i32_0 : i32, i32
  }
  func.func @transform_3(%arg0: i32) -> (i32, i32) {
    %c0_i32 = arith.constant 0 : i32
    %c0_i32_0 = arith.constant 0 : i32
    %c0_i32_1 = arith.constant 0 : i32
    return %c0_i32, %c0_i32_0 : i32, i32
  }
  func.func @transform_4(%arg0: i32) -> (i32, i32) {
    %c0_i32 = arith.constant 0 : i32
    %c0_i32_0 = arith.constant 0 : i32
    %c0_i32_1 = arith.constant 0 : i32
    return %c0_i32, %c0_i32_0 : i32, i32
  }
  func.func @transform_5(%arg0: i32) -> (i32, i32) {
    %c0_i32 = arith.constant 0 : i32
    %c0_i32_0 = arith.constant 0 : i32
    %c0_i32_1 = arith.constant 0 : i32
    return %c0_i32, %c0_i32_0 : i32, i32
  }
  func.func @transform_6(%arg0: i32) -> (i32, i32) {
    %c0_i32 = arith.constant 0 : i32
    %c0_i32_0 = arith.constant 0 : i32
    %c0_i32_1 = arith.constant 0 : i32
    return %c0_i32, %c0_i32_0 : i32, i32
  }
  func.func @transform_7(%arg0: i32) -> (i32, i32) {
    %c0_i32 = arith.constant 0 : i32
    %c0_i32_0 = arith.constant 0 : i32
    %c0_i32_1 = arith.constant 0 : i32
    return %c0_i32, %c0_i32_0 : i32, i32
  }
}

</mosaic_0001>

<bundles_post_ra>
// kernel: weather_classifier_forward.1
= control target key start
LH: loop header
LB: loop body
LE: loop exit
PB: predicated region body
PF: predicated region fallthrough
CT: control target
= control target key end

     0   :  { %12 = vsyncpa [#allocation4], 0  ;;  %s35348_s0 = inlined_call_operand.vmem [shape: f32[2,122100], index: 0, kind: input, shape index: {}]   ;;  %s35349_s1 = inlined_call_operand.hbm [shape: bf16[122880,128], index: 1, kind: input, shape index: {}]   ;;  %s35350_s2 = inlined_call_operand.hbm [shape: f32[1,128], index: 2, kind: input, shape index: {}]   ;;  %s35351_s3 = inlined_call_operand.vmem [shape: f32[128,64], index: 3, kind: input, shape index: {}]   ;;  %s35352_s4 = inlined_call_operand.hbm [shape: f32[1,64], index: 4, kind: input, shape index: {}]   ;;  %s35353_s5 = inlined_call_operand.vmem [shape: f32[64,5], index: 5, kind: input, shape index: {}]   ;;  %s35354_s6 = inlined_call_operand.hbm [shape: f32[1,5], index: 6, kind: input, shape index: {}]   ;;  %s35355_s7 = inlined_call_operand.hbm [shape: f32[2,5], index: 7, kind: output, shape index: {}]  }
   0x1   :  { %14 = vsyncpa [#allocation4 + $0x1], 0 }
   0x2   :  { %15 = vsyncpa [#allocation7], 0 }
   0x3   :  { %16 = vsyncpa [#allocation10], 0 }
   0x4   :  { %17 = vsyncpa [#allocation5], 0  ;;  %s30899_s24 = smov 0   ;;  %s30901_s25 = smov 0  }
   0x5   :  { %s30903_s26 = smov 0   ;;  %s30905_s27 = smov 0  }
   0x6 LB: > { %s30918_s28 = sadd.s32 4294967295, %s30845_s27   ;;  %p69_p0 = scmp.ne.s32.totalorder %s30837_s25, %s30833_s24  ;;  %s30845_s27 = sphi %s30905_s27, %s35838_s27   ;;  %s30841_s26 = sphi %s30903_s26, %s35837_s26   ;;  %s30837_s25 = sphi %s30901_s25, %s35836_s25   ;;  %s30833_s24 = sphi %s30899_s24, %s35835_s24  }
   0x7   : > { %p35356_p1 = scmp.eq.s32.totalorder %s30918_s28, 0  ;;  %p23175_p2 = scmp.ge.s32.totalorder %s30845_s27, 1 }
   0x8   : > { %p206_p3 = scmp.lt.s32.totalorder %s30845_s27, 5  ;;  %s30847_s8 = smov [#allocation6]  }
   0x9   : > { %p30927_p5 = por %p35356_p1, %p69_p0  ;;  %s219_s9 = sshll.u32 %s30847_s8, 4  ;;  %s220_s9 = int_to_ptr.vmem [resolvable:$true] %s219_s9 }
   0xa   : > { %p30931_p6 = pnand %p23175_p2, %p206_p3  ;;  %s30848_s10 = smov [#allocation8]  }
   0xb   : > { %s35359_s29 = scalar_select %p30927_p5, 1, 0 }
   0xc   : > { %s35360_s30 = scalar_select %p30931_p6, 1, 0 }
   0xd   : > { %p28613_p7 = pneg %p30931_p6  ;;  %s233_s11 = sshll.u32 %s30848_s10, 4  ;;  %s30943_s11 = int_to_ptr.vmem [resolvable:$true] %s233_s11 }
   0xe   : > { %s30849_s13 = smov [#allocation9]   ;;  %s30659_s17 = scalar_lea.hbm %s35350_s2, 16 }
   0xf   : > { %p30939_p8 = pnand %p28613_p7, %p35356_p1  ;;  %s247_s14 = sshll.u32 %s30849_s13, 4  ;;  %s30945_s14 = int_to_ptr.vmem [resolvable:$true] %s247_s14 }
  0x10   : > { %p30660_p9 = scmp.ne.s32.totalorder %s35350_s2, %s30659_s17  ;;  %p30666_p13 = scmp.lt.u32.totalorder %s30659_s17, %s35350_s2 }
  0x11   : > { %p30955_p10 = pneg %p30939_p8 }
  0x13   : > { %p30662_p11 = pnand %p30955_p10, %p30660_p9 }
  0x15   : > { %p30663_p12 = pneg %p30662_p11 }
  0x17   : > { %p30668_p0 = pnand %p30666_p13, %p30663_p12 }
  0x19   : > { %30671 = shalt.err (!%p30668_p0)
}
  0x1a   : > { %s30672_s23 = scalar_lea.vmem %s220_s9, 16  ;;  %s30679_s24 = scalar_lea.vmem %s220_s9, 32 }
  0x1b   : > { %p30673_p2 = scmp.ne.s32.totalorder %s220_s9, %s30672_s23  ;;  %p30680_p4 = scmp.lt.s32.totalorder %s220_s9, %s220_s9 }
  0x1c   : > { %p30681_p1 = scmp.lt.s32.totalorder %s30679_s24, %s30672_s23 }
  0x1d   : > { %p30675_p3 = pnand %p30673_p2, %p30955_p10 }
  0x1e   : > { %p30682_p5 = por %p30681_p1, %p30680_p4 }
  0x1f   : > { %p30676_p7 = pneg %p30675_p3 }
  0x21   : > { %p30683_p6 = pnand %p30682_p5, %p30676_p7 }
  0x23   : > { %30686 = shalt.err (!%p30683_p6)
}
  0x24   : > { %28616 = dma.hbm_to_vmem [thread:$0]  (!%p30939_p8), %s35350_s2, 16, %s220_s9, [#allocation7]  }
  0x25   : > { %s30687_s16 = scalar_lea.hbm %s35352_s4, 16 }
  0x26   : > { %p30688_p9 = scmp.ne.s32.totalorder %s35352_s4, %s30687_s16  ;;  %p30694_p4 = scmp.lt.u32.totalorder %s30687_s16, %s35352_s4 }
  0x28   : > { %p30690_p11 = pnand %p30688_p9, %p30955_p10 }
  0x2a   : > { %p30691_p1 = pneg %p30690_p11 }
  0x2c   : > { %p30696_p5 = pnand %p30694_p4, %p30691_p1 }
  0x2e   : > { %30699 = shalt.err (!%p30696_p5)
}
  0x2f   : > { %s30700_s9 = scalar_lea.vmem %s30943_s11, 16  ;;  %s30707_s22 = scalar_lea.vmem %s30943_s11, 32 }
  0x30   : > { %p30701_p6 = scmp.ne.s32.totalorder %s30943_s11, %s30700_s9  ;;  %p30708_p0 = scmp.lt.s32.totalorder %s30943_s11, %s30943_s11 }
  0x31   : > { %p30709_p2 = scmp.lt.s32.totalorder %s30707_s22, %s30700_s9 }
  0x32   : > { %p30703_p12 = pnand %p30701_p6, %p30955_p10 }
  0x33   : > { %p30710_p3 = por %p30709_p2, %p30708_p0 }
  0x34   : > { %p30704_p13 = pneg %p30703_p12 }
  0x36   : > { %p30711_p7 = pnand %p30710_p3, %p30704_p13 }
  0x38   : > { %30714 = shalt.err (!%p30711_p7)
}
  0x39   : > { %28619 = dma.hbm_to_vmem [thread:$0]  (!%p30939_p8), %s35352_s4, 16, %s30943_s11, [#allocation7]  }
  0x3a   : > { %s30715_s13 = scalar_lea.hbm %s35354_s6, 16 }
  0x3b   : > { %p30716_p9 = scmp.ne.s32.totalorder %s35354_s6, %s30715_s13  ;;  %p30722_p4 = scmp.lt.u32.totalorder %s30715_s13, %s35354_s6 }
  0x3d   : > { %p30718_p11 = pnand %p30716_p9, %p30955_p10 }
  0x3f   : > { %p30719_p1 = pneg %p30718_p11 }
  0x41   : > { %p30724_p5 = pnand %p30722_p4, %p30719_p1 }
  0x43   : > { %30727 = shalt.err (!%p30724_p5)
}
  0x44   : > { %s30728_s11 = scalar_lea.vmem %s30945_s14, 16  ;;  %s30735_s19 = scalar_lea.vmem %s30945_s14, 32 }
  0x45   : > { %p30729_p6 = scmp.ne.s32.totalorder %s30945_s14, %s30728_s11  ;;  %p30736_p0 = scmp.lt.s32.totalorder %s30945_s14, %s30945_s14 }
  0x46   : > { %p30737_p2 = scmp.lt.s32.totalorder %s30735_s19, %s30728_s11 }
  0x47   : > { %p30731_p12 = pnand %p30729_p6, %p30955_p10 }
  0x48   : > { %p30738_p3 = por %p30737_p2, %p30736_p0 }
  0x49   : > { %p30732_p13 = pneg %p30731_p12 }
  0x4b   : > { %p30739_p7 = pnand %p30738_p3, %p30732_p13 }
  0x4d   : > { %30742 = shalt.err (!%p30739_p7)
}
  0x4e   : > { %28622 = dma.hbm_to_vmem [thread:$0]  (!%p30939_p8), %s35354_s6, 16, %s30945_s14, [#allocation10]  }
  0x4f   : > { %s31020_s20 = sadd.s32 1, %s30845_s27   ;;  %s56_s12 = sadd.s32 1, %s30841_s26 }
  0x50   : > { %s53_s22 = ssub.s32 %s30845_s27, %s31020_s20  ;;  %p63_p9 = scmp.ne.s32.totalorder %s30841_s26, %s30837_s25 }
  0x51   : > { %p54_p10 = scmp.eq.s32.totalorder %s53_s22, 0  ;;  %p64_p11 = scmp.eq.s32.totalorder %s30845_s27, 0 }
  0x52   : > { %p28630_p1 = scmp.lt.s32.totalorder %s30845_s27, 4  ;;  %s275_s24 = sand.u32 1, %s30841_s26  }
  0x53   : > { %s31030_s23 = scalar_select %p54_p10, %s30841_s26, %s56_s12  }
  0x54   : > { %p65_p4 = por %p64_p11, %p63_p9  ;;  %s28593_s8 = smul.u32 15360, %s275_s24 }
  0x55   : > { %s25836_s10 = smul.u32 245760, %s30845_s27  ;;  %s31045_s27 = scalar_lea.sflag [#allocation4], %s275_s24 }
  0x56   : > { %p31034_p5 = pnand %p28630_p1, %p65_p4  ;;  %s279_s17 = scalar_lea.vmem [#allocation3], %s28593_s8 }
  0x57   : > { %s31041_s16 = scalar_lea.hbm %s35349_s1, %s25836_s10  ;;  %s286_s18 = sshll.u32 %s279_s17, 4  ;;  %s31043_s18 = int_to_ptr.vmem [resolvable:$true] %s286_s18 }
  0x58   : > { %s30743_s11 = scalar_lea.hbm %s31041_s16, 245760  ;;  %p30745_p6 = pneg %p31034_p5 }
  0x59   : > { %p30744_p8 = scmp.ne.s32.totalorder %s31041_s16, %s30743_s11  ;;  %s30748_s9 = scalar_lea.hbm %s35349_s1, 983040 }
  0x5a   : > { %p30749_p0 = scmp.lt.u32.totalorder %s31041_s16, %s35349_s1  ;;  %p30750_p2 = scmp.lt.u32.totalorder %s30748_s9, %s30743_s11 }
  0x5b   : > { %p30746_p12 = pnand %p30745_p6, %p30744_p8  ;;  %p30752_p7 = scmp.lt.u32.totalorder %s30743_s11, %s31041_s16 }
  0x5c   : > { %p30751_p3 = por %p30750_p2, %p30749_p0 }
  0x5d   : > { %p30747_p13 = pneg %p30746_p12 }
  0x5e   : > { %p30753_p10 = por %p30752_p7, %p30751_p3 }
  0x60   : > { %p30754_p9 = pnand %p30753_p10, %p30747_p13 }
  0x62   : > { %30757 = shalt.err (!%p30754_p9)
}
  0x63   : > { %s30758_s24 = scalar_lea.vmem %s31043_s18, 245760  ;;  %s30850_s8 = smov [#allocation3]  }
  0x64   : > { %p30759_p11 = scmp.ne.s32.totalorder %s31043_s18, %s30758_s24  ;;  %s30763_s10 = sshll.u32 %s30850_s8, 4  ;;  %s30764_s10 = int_to_ptr.vmem [resolvable:$false] %s30763_s10 }
  0x65   : > { %s30765_s14 = scalar_lea.vmem %s30764_s10, 491520  ;;  %p30766_p8 = scmp.lt.s32.totalorder %s31043_s18, %s30764_s10 }
  0x66   : > { %p30761_p1 = pnand %p30759_p11, %p30745_p6  ;;  %p30767_p12 = scmp.lt.s32.totalorder %s30765_s14, %s30758_s24 }
  0x68   : > { %p30762_p4 = pneg %p30761_p1  ;;  %p30768_p0 = por %p30767_p12, %p30766_p8 }
  0x6a   : > { %p30769_p2 = pnand %p30768_p0, %p30762_p4 }
  0x6c   : > { %30772 = shalt.err (!%p30769_p2)
}
  0x6d   : > { %s30851_s15 = smov 64   ;;  %s30852_s17 = smov 4  }
  0x6e   : > { %28626 = dma.hbm_to_vmem [thread:$0]  (!%p31034_p5), %s31041_s16, 245760, %s31043_s18, %s31045_s27, %s30851_s15, %s30851_s15, %s30852_s17  }
  0x6f   : > { %p35364_p6 = scmp.ne.s32.totalorder %s35360_s30, 0 }
  0x70   : > { %s300_s11 = sand.u32 (!%p35364_p6), 1, %s30837_s25   ;;  %p35365_p13 = scmp.ne.s32.totalorder (!%p35364_p6), %s35359_s29, 0 }
  0x71   : > { %298 = sbr.rel (%p35364_p6) target bundleno = 2761 (0xac9), region = 48  ;;  %s301_s21 = scalar_lea.sflag (!%p35364_p6), [#allocation4], %s300_s11 }
  0x72   : > { %s28594_s19 = smul.u32 (!%p35364_p6), 15360, %s300_s11 }
  0x74   : > { %s31076_s9 = scalar_lea.vmem (!%p35364_p6), [#allocation3], %s28594_s19 }
  0x78   : > { %30816 = dma.done.wait (%p35365_p13), %s301_s21, 245760  }
  0x79   : > { %30818 = vsyncadd (%p35365_p13), %s301_s21, 4294721536  ;;  %p35366_p3 = scmp.eq.s32.totalorder %s30918_s28, 0 }
  0x7b   : > { %30820 = dma.done.wait (%p35366_p3), [#allocation7], 32   ;;  %p35367_p5 = pmov %p35366_p3 }
  0x7c   : > { %p35368_p7 = pmov %p35366_p3 }
  0x7d   : > { %30822 = vsyncadd (%p35367_p5), [#allocation7], 4294967264 }
  0x7e   : > { %30824 = dma.done.wait (%p35368_p7), [#allocation10], 16   ;;  %p35369_p10 = pmov %p35366_p3 }
  0x7f   : > { %s351_s30 = smul.u32 240, %s30918_s28  ;;  %p35370_p11 = scmp.ne.s32.totalorder %s30918_s28, 0 }
  0x80   : > { %30826 = vsyncadd (%p35369_p10), [#allocation10], 4294967280  ;;  %v30853_v0 = vmov (!%p35370_p11), 0.0  }
  0x81   : > { %p356_p9 = scmp.lt.s32.totalorder %s351_s30, 953  ;;  %370 = sbr.rel (%p35370_p11) target bundleno = 136 (0x88), region = 68  ;;  %371 = vst [vmem:[#allocation2] sm:$0x3] (!%p35370_p11), %v30853_v0 }
  0x83   : > { %s35840_s30 = smov (!%p356_p9, %s351_s30), 953 }
  0x84   : > { %s23185_s13 = sshll.u32 %s35840_s30, 1 }
  0x85   : > { %s31094_s18 = scalar_lea.vmem %s35348_s0, %s23185_s13 }
  0x88 PF: > { %v28679_v1 = vld [vmem:[%s31076_s9 + $0x40] sm:$0xff]   ;;  %v28683_v5 = vld [vmem:[%s31076_s9 + $0x48] sm:$0xff]   ;;  %v28687_v9 = vld [vmem:[%s31076_s9 + $0x50] sm:$0xff]   ;;  %s372_s27 = smul.u32 30720, %s30918_s28  ;;  %v374_v26 = vlaneseq  ;;  %v30854_v39 = vmov 1983009808  }
  0x89   : > { %v28680_v2 = vld [vmem:[%s31076_s9 + $0xc0] sm:$0xff]   ;;  %25837 = vmatprep.subr.bf16.mxu0 %v28679_v1  ;;  %v28684_v6 = vld [vmem:[%s31076_s9 + $0xc8] sm:$0xff]   ;;  %v28688_v10 = vld [vmem:[%s31076_s9 + $0xd0] sm:$0xff]   ;;  %v978_v40 = vunpack.c.l.s4 %v30854_v39  ;;  %p25827_p1 = scmp.ne.s32.totalorder %s30918_s28, 3 }
  0x8a   : > { %v28681_v3 = vld [vmem:[%s31076_s9] sm:$0xff]   ;;  %25859 = vmatprep.subr.bf16.mxu1 %v28680_v2  ;;  %v28685_v7 = vld [vmem:[%s31076_s9 + $0x8] sm:$0xff]   ;;  %v28689_v11 = vld [vmem:[%s31076_s9 + $0x10] sm:$0xff]   ;;  %v31126_v29 = vand.u32 127, %v374_v26  ;;  %s373_s22 = ssub.s32 122100, %s372_s27  ;;  %v981_v41 = vshrl.u32 %v374_v26, 7 }
  0x8b   : > { %v28682_v4 = vld [vmem:[%s31076_s9 + $0x80] sm:$0xff]   ;;  %25838 = vmatpush3.bf16.msra.mxu0 %v28681_v3  ;;  %v28686_v8 = vld [vmem:[%s31076_s9 + $0x88] sm:$0xff]   ;;  %v28690_v12 = vld [vmem:[%s31076_s9 + $0x90] sm:$0xff]   ;;  %v31134_v36 = vstv %s373_s22  ;;  %v979_v44 = vunpack.c.0.s8 %v978_v40 }
  0x8c   : > { %25860 = vmatpush3.bf16.msra.mxu1 %v28682_v4  ;;  %25839 = vmatprep.subr.bf16.mxu0 %v28683_v5  ;;  %v28691_v13 = vld [vmem:[%s31076_s9 + $0x58] sm:$0xff]   ;;  %v28695_v17 = vld [vmem:[%s31076_s9 + $0x60] sm:$0xff]   ;;  %v28699_v21 = vld [vmem:[%s31076_s9 + $0x68] sm:$0xff]   ;;  %v376_v34 = vadd.s32 128, %v31126_v29  ;;  %v378_v37 = vadd.s32 384, %v31126_v29  ;;  %v377_v42 = vadd.s32 256, %v31126_v29  ;;  %vm616_vm2 = vcmp.lt.s32.totalorder %v31126_v29, %v31134_v36 }
  0x8d   : > { %25861 = vmatprep.subr.bf16.mxu1 %v28684_v6  ;;  %v28692_v14 = vld [vmem:[%s31076_s9 + $0xd8] sm:$0xff]   ;;  %v28696_v18 = vld [vmem:[%s31076_s9 + $0xe0] sm:$0xff]   ;;  %v28700_v22 = vld [vmem:[%s31076_s9 + $0xe8] sm:$0xff]   ;;  %v31145_v47 = vsub.s32 %v979_v44, %v981_v41 }
  0x8e   : > { %v28693_v15 = vld [vmem:[%s31076_s9 + $0x18] sm:$0xff]   ;;  %v28697_v19 = vld [vmem:[%s31076_s9 + $0x20] sm:$0xff]   ;;  %v28701_v23 = vld [vmem:[%s31076_s9 + $0x28] sm:$0xff]   ;;  %vm617_vm0 = vcmp.lt.s32.totalorder %v376_v34, %v31134_v36  ;;  %vm619_vm1 = vcmp.lt.s32.totalorder %v378_v37, %v31134_v36  ;;  %vm618_vm4 = vcmp.lt.s32.totalorder %v377_v42, %v31134_v36 }
  0x8f   : > { %25840 = vmatpush3.bf16.msra.mxu0 %v28685_v7  ;;  %v28694_v16 = vld [vmem:[%s31076_s9 + $0x98] sm:$0xff]   ;;  %v28698_v20 = vld [vmem:[%s31076_s9 + $0xa0] sm:$0xff]   ;;  %v28702_v24 = vld [vmem:[%s31076_s9 + $0xa8] sm:$0xff]  }
  0x90   : > { %25862 = vmatpush3.bf16.msra.mxu1 %v28686_v8  ;;  %25841 = vmatprep.subr.bf16.mxu0 %v28687_v9  ;;  %v28703_v25 = vld [vmem:[%s31076_s9 + $0x70] sm:$0xff]   ;;  %v28707_v31 = vld [vmem:[%s31076_s9 + $0x78] sm:$0xff]   ;;  %v28712_v43 = vld [vmem:[%s31076_s9 + $0x140] sm:$0xff]  }
  0x91   : > { %25863 = vmatprep.subr.bf16.mxu1 %v28688_v10  ;;  %v28704_v27 = vld [vmem:[%s31076_s9 + $0xf0] sm:$0xff]   ;;  %v28708_v32 = vld [vmem:[%s31076_s9 + $0xf8] sm:$0xff]   ;;  %v28713_v46 = vld [vmem:[%s31076_s9 + $0x1c0] sm:$0xff]  }
  0x92   : > { %v28705_v28 = vld [vmem:[%s31076_s9 + $0x30] sm:$0xff]   ;;  %v28709_v33 = vld [vmem:[%s31076_s9 + $0x38] sm:$0xff]   ;;  %vm31147_vm3 = vmpackc.low %vm617_vm0, %vm617_vm0 }
  0x93   : > { %25842 = vmatpush3.bf16.msra.mxu0 %v28689_v11  ;;  %v28706_v30 = vld [vmem:[%s31076_s9 + $0xb0] sm:$0xff]   ;;  %v28710_v35 = vld [vmem:[%s31076_s9 + $0xb8] sm:$0xff]   ;;  %vm31152_vm5 = vmpackc.low %vm619_vm1, %vm619_vm1 }
  0x94   : > { %25864 = vmatpush3.bf16.msra.mxu1 %v28690_v12  ;;  %25843 = vmatprep.subr.bf16.mxu0 %v28691_v13  ;;  %v856_v38 = vld [vmem:[%s31094_s18] sm:$0xff]  ;;  %vm25110_vm6 = vmpackc.low %vm616_vm2, %vm616_vm2  ;;  %v28716_v60 = vld [vmem:[%s31076_s9 + $0x148] sm:$0xff]  }
  0x95   : > { %25865 = vmatprep.subr.bf16.mxu1 %v28692_v14  ;;  %v976_v45 = vcombine.high %v856_v38, %v856_v38  ;;  %v983_v50 = vrot.slane %v856_v38, %v31145_v47  ;;  %vm25116_vm7 = vmpackc.low %vm618_vm4, %vm618_vm4  ;;  %v28714_v54 = vld [vmem:[%s31076_s9 + $0x100] sm:$0xff]   ;;  %v28717_v61 = vld [vmem:[%s31076_s9 + $0x1c8] sm:$0xff]  }
  0x96   : > { %v28715_v57 = vld [vmem:[%s31076_s9 + $0x180] sm:$0xff]   ;;  %v28718_v62 = vld [vmem:[%s31076_s9 + $0x108] sm:$0xff]   ;;  %v28720_v0 = vld [vmem:[%s31076_s9 + $0x150] sm:$0xff]  }
  0x97   : > { %25844 = vmatpush3.bf16.msra.mxu0 %v28693_v15  ;;  %v990_v51 = vrot.slane %v976_v45, %v31145_v47  ;;  %v991_v52 = vcombine.high %v983_v50, %v983_v50  ;;  %v25111_v55 = vpack.c.bf16 %v983_v50, %v983_v50  ;;  %v28719_v63 = vld [vmem:[%s31076_s9 + $0x188] sm:$0xff]   ;;  %v28721_v1 = vld [vmem:[%s31076_s9 + $0x1d0] sm:$0xff]   ;;  %v28724_v4 = vld [vmem:[%s31076_s9 + $0x158] sm:$0xff]   ;;  %v380_v15 = vadd.s32 640, %v31126_v29 }
  0x98   : > { %25866 = vmatpush3.bf16.msra.mxu1 %v28694_v16  ;;  %25845 = vmatprep.subr.bf16.mxu0 %v28695_v17  ;;  %v28722_v2 = vld [vmem:[%s31076_s9 + $0x110] sm:$0xff]   ;;  %v28725_v5 = vld [vmem:[%s31076_s9 + $0x1d8] sm:$0xff]   ;;  %v28728_v8 = vld [vmem:[%s31076_s9 + $0x160] sm:$0xff]   ;;  %v382_v17 = vadd.s32 896, %v31126_v29 }
  0x99   : > { %25867 = vmatprep.subr.bf16.mxu1 %v28696_v18  ;;  %v992_v53 = vcombine.high %v990_v51, %v990_v51  ;;  %v25117_v56 = vpack.c.bf16 %v990_v51, %v990_v51  ;;  %v25108_v58 = vpack.c.bf16 %v991_v52, %v991_v52  ;;  %v28723_v3 = vld [vmem:[%s31076_s9 + $0x190] sm:$0xff]   ;;  %v28726_v6 = vld [vmem:[%s31076_s9 + $0x118] sm:$0xff]   ;;  %v28729_v9 = vld [vmem:[%s31076_s9 + $0x1e0] sm:$0xff]   ;;  %vm621_vm8 = vcmp.lt.s32.totalorder %v380_v15, %v31134_v36 }
  0x9a   : > { %v28727_v7 = vld [vmem:[%s31076_s9 + $0x198] sm:$0xff]   ;;  %v28730_v10 = vld [vmem:[%s31076_s9 + $0x120] sm:$0xff]   ;;  %v28732_v12 = vld [vmem:[%s31076_s9 + $0x168] sm:$0xff]   ;;  %vm623_vm9 = vcmp.lt.s32.totalorder %v382_v17, %v31134_v36 }
  0x9b   : > { %25846 = vmatpush3.bf16.msra.mxu0 %v28697_v19  ;;  %v25114_v59 = vpack.c.bf16 %v992_v53, %v992_v53  ;;  %25109 = vmatprep.mubr.msk.bf16.mxu0 %vm31147_vm3, %v25108_v58  ;;  %v28731_v11 = vld [vmem:[%s31076_s9 + $0x1a0] sm:$0xff]   ;;  %v28733_v13 = vld [vmem:[%s31076_s9 + $0x1e8] sm:$0xff]   ;;  %v28736_v18 = vld [vmem:[%s31076_s9 + $0x170] sm:$0xff]   ;;  %v379_v19 = vadd.s32 512, %v31126_v29 }
  0x9c   : > { %25868 = vmatpush3.bf16.msra.mxu1 %v28698_v20  ;;  %25847 = vmatprep.subr.bf16.mxu0 %v28699_v21  ;;  %v28734_v14 = vld [vmem:[%s31076_s9 + $0x128] sm:$0xff]   ;;  %v28737_v20 = vld [vmem:[%s31076_s9 + $0x1f0] sm:$0xff]   ;;  %vm31202_vm11 = vmpackc.low %vm621_vm8, %vm621_vm8 }
  0x9d   : > { %25869 = vmatprep.subr.bf16.mxu1 %v28700_v22  ;;  %25115 = vmatprep.mubr.msk.bf16.mxu1 %vm31152_vm5, %v25114_v59  ;;  %v28735_v16 = vld [vmem:[%s31076_s9 + $0x1a8] sm:$0xff]   ;;  %v381_v22 = vadd.s32 768, %v31126_v29  ;;  %v28739_v26 = vld [vmem:[%s31076_s9 + $0x1b0] sm:$0xff]   ;;  %vm620_vm10 = vcmp.lt.s32.totalorder %v379_v19, %v31134_v36  ;;  %v28743_v34 = vld [vmem:[%s31076_s9 + $0x1b8] sm:$0xff]  }
  0x9e   : > { %v857_v21 = vld [vmem:[%s31094_s18 + $0x8] sm:$0xff]  ;;  %vm25125_vm12 = vmpackc.low %vm623_vm9, %vm623_vm9  ;;  %v28753_v51 = vld [vmem:[%s31076_s9 + $0x250] sm:$0xff]  }
  0x9f   : > { %25848 = vmatpush3.bf16.msra.mxu0 %v28701_v23  ;;  %v28738_v23 = vld [vmem:[%s31076_s9 + $0x130] sm:$0xff]   ;;  %vm622_vm13 = vcmp.lt.s32.totalorder %v381_v22, %v31134_v36  ;;  %vm31210_vm14 = vmpackc.low %vm620_vm10, %vm620_vm10  ;;  %v28745_v39 = vld [vmem:[%s31076_s9 + $0x240] sm:$0xff]  }
  0xa0   : > { %25870 = vmatpush3.bf16.msra.mxu1 %v28702_v24  ;;  %25849 = vmatprep.subr.bf16.mxu0 %v28703_v25  ;;  %v1000_v24 = vrot.slane %v857_v21, %v31145_v47  ;;  %v993_v25 = vcombine.high %v857_v21, %v857_v21  ;;  %v28746_v40 = vld [vmem:[%s31076_s9 + $0x2c0] sm:$0xff]   ;;  %vm25128_vm15 = vmpackc.low %vm622_vm13, %vm622_vm13  ;;  %v28750_v48 = vld [vmem:[%s31076_s9 + $0x2c8] sm:$0xff]  }
  0xa1   : > { %25871 = vmatprep.subr.bf16.mxu1 %v28704_v27  ;;  %v28740_v27 = vld [vmem:[%s31076_s9 + $0x178] sm:$0xff]   ;;  %v28747_v42 = vld [vmem:[%s31076_s9 + $0x200] sm:$0xff]   ;;  %v28751_v49 = vld [vmem:[%s31076_s9 + $0x208] sm:$0xff]  }
  0xa2   : > { %v28748_v45 = vld [vmem:[%s31076_s9 + $0x280] sm:$0xff]   ;;  %v28752_v50 = vld [vmem:[%s31076_s9 + $0x288] sm:$0xff]   ;;  %v28754_v52 = vld [vmem:[%s31076_s9 + $0x2d0] sm:$0xff]  }
  0xa3   : > { %25850 = vmatpush3.bf16.msra.mxu0 %v28705_v28  ;;  %v28741_v28 = vld [vmem:[%s31076_s9 + $0x1f8] sm:$0xff]   ;;  %v28755_v53 = vld [vmem:[%s31076_s9 + $0x210] sm:$0xff]   ;;  %v28761_v59 = vld [vmem:[%s31076_s9 + $0x260] sm:$0xff]  }
  0xa4   : > { %25872 = vmatpush3.bf16.msra.mxu1 %v28706_v30  ;;  %25851 = vmatprep.subr.bf16.mxu0 %v28707_v31  ;;  %v1008_v30 = vcombine.high %v1000_v24, %v1000_v24  ;;  %v28760_v58 = vld [vmem:[%s31076_s9 + $0x298] sm:$0xff]   ;;  %v28785_v38 = vld [vmem:[%s31076_s9 + $0x388] sm:$0xff]   ;;  %v28813_v15 = vld [vmem:[%s31076_s9 + $0x400] sm:$0xff]  }
  0xa5   : > { %25873 = vmatprep.subr.bf16.mxu1 %v28708_v32  ;;  %v1007_v32 = vrot.slane %v993_v25, %v31145_v47  ;;  %v28775_v17 = vld [vmem:[%s31076_s9 + $0x238] sm:$0xff]   ;;  %v28814_v19 = vld [vmem:[%s31076_s9 + $0x480] sm:$0xff]  }
  0xa7   : > { %25852 = vmatpush3.bf16.msra.mxu0 %v28709_v33  ;;  %v28742_v33 = vld [vmem:[%s31076_s9 + $0x138] sm:$0xff]   ;;  %v1009_v37 = vcombine.high %v1007_v32, %v1007_v32  ;;  %v25129_v44 = vpack.c.bf16 %v1007_v32, %v1007_v32 }
  0xa8   : > { %25874 = vmatpush3.bf16.msra.mxu1 %v28710_v35  ;;  %25881 = vmatprep.subr.bf16.mxu0 %v28712_v43  ;;  %v25120_v35 = vpack.c.bf16 %v1008_v30, %v1008_v30  ;;  %v25123_v43 = vpack.c.bf16 %v1000_v24, %v1000_v24  ;;  %v28817_v24 = vld [vmem:[%s31076_s9 + $0x408] sm:$0xff]  }
  0xa9   : > { %25903 = vmatprep.subr.bf16.mxu1 %v28713_v46  ;;  %v25126_v41 = vpack.c.bf16 %v1009_v37, %v1009_v37  ;;  %v28749_v46 = vld [vmem:[%s31076_s9 + $0x248] sm:$0xff]  }
  0xaa   : > { %25112 = vmatmul.mubr.msk.bf16.vlgmr.msra.gmra.mrb[0].mxu0 %vm25110_vm6, %v25111_v55  ;;  %v28757_v55 = vld [vmem:[%s31076_s9 + $0x258] sm:$0xff]   ;;  %v28784_v37 = vld [vmem:[%s31076_s9 + $0x308] sm:$0xff]  }
  0xab   : > { %25118 = vmatmul.mubr.msk.bf16.vlgmr.msra.gmra.mrb[0].mxu1 %vm25116_vm7, %v25117_v56  ;;  %25882 = vmatpush3.bf16.msra.mxu0 %v28714_v54  ;;  %v28756_v54 = vld [vmem:[%s31076_s9 + $0x290] sm:$0xff]   ;;  %v28758_v56 = vld [vmem:[%s31076_s9 + $0x2d8] sm:$0xff]  }
  0xac   : > { %25904 = vmatpush3.bf16.msra.mxu1 %v28715_v57  ;;  %25883 = vmatprep.subr.bf16.mxu0 %v28716_v60  ;;  %v28759_v57 = vld [vmem:[%s31076_s9 + $0x218] sm:$0xff]   ;;  %v28762_v60 = vld [vmem:[%s31076_s9 + $0x2e0] sm:$0xff]  }
  0xad   : > { %25905 = vmatprep.subr.bf16.mxu1 %v28717_v61  ;;  %25121 = vmatprep.mubr.msk.bf16.mxu0 %vm31202_vm11, %v25120_v35  ;;  %v28763_v61 = vld [vmem:[%s31076_s9 + $0x220] sm:$0xff]   ;;  %v28783_v35 = vld [vmem:[%s31076_s9 + $0x3c8] sm:$0xff]  }
  0xae   : > { %25127 = vmatprep.mubr.msk.bf16.mxu1 %vm25125_vm12, %v25126_v41  ;;  %v28788_v41 = vld [vmem:[%s31076_s9 + $0x310] sm:$0xff]  }
  0xaf   : > { %25884 = vmatpush3.bf16.msra.mxu0 %v28718_v62  ;;  %v28764_v62 = vld [vmem:[%s31076_s9 + $0x2a0] sm:$0xff]  }
  0xb0   : > { %25906 = vmatpush3.bf16.msra.mxu1 %v28719_v63  ;;  %25885 = vmatprep.subr.bf16.mxu0 %v28720_v0  ;;  %v28765_v63 = vld [vmem:[%s31076_s9 + $0x268] sm:$0xff]  }
  0xb1   : > { %25907 = vmatprep.subr.bf16.mxu1 %v28721_v1  ;;  %v28766_v0 = vld [vmem:[%s31076_s9 + $0x2e8] sm:$0xff]  }
  0xb2   : > { %v28767_v1 = vld [vmem:[%s31076_s9 + $0x228] sm:$0xff]  }
  0xb3   : > { %25886 = vmatpush3.bf16.msra.mxu0 %v28722_v2  ;;  %v384_v2 = vadd.s32 1152, %v31126_v29 }
  0xb4   : > { %25908 = vmatpush3.bf16.msra.mxu1 %v28723_v3  ;;  %25887 = vmatprep.subr.bf16.mxu0 %v28724_v4  ;;  %v28768_v3 = vld [vmem:[%s31076_s9 + $0x2a8] sm:$0xff]   ;;  %v386_v4 = vadd.s32 1408, %v31126_v29 }
  0xb5   : > { %25909 = vmatprep.subr.bf16.mxu1 %v28725_v5  ;;  %v28769_v5 = vld [vmem:[%s31076_s9 + $0x270] sm:$0xff]   ;;  %vm625_vm0 = vcmp.lt.s32.totalorder %v384_v2, %v31134_v36  ;;  %v28808_v2 = vld [vmem:[%s31076_s9 + $0x338] sm:$0xff]  }
  0xb6   : > { %vm627_vm1 = vcmp.lt.s32.totalorder %v386_v4, %v31134_v36  ;;  %vm31257_vm3 = vmpackc.low %vm625_vm0, %vm625_vm0  ;;  %v859_v4 = vld [vmem:[%s31094_s18 + $0x18] sm:$0xff] }
  0xb7   : > { %25888 = vmatpush3.bf16.msra.mxu0 %v28726_v6  ;;  %v383_v6 = vadd.s32 1024, %v31126_v29  ;;  %vm31264_vm5 = vmpackc.low %vm627_vm1, %vm627_vm1 }
  0xb8   : > { %25910 = vmatpush3.bf16.msra.mxu1 %v28727_v7  ;;  %25889 = vmatprep.subr.bf16.mxu0 %v28728_v8  ;;  %v28770_v7 = vld [vmem:[%s31076_s9 + $0x2f0] sm:$0xff]   ;;  %v385_v8 = vadd.s32 1280, %v31126_v29 }
  0xb9   : > { %25911 = vmatprep.subr.bf16.mxu1 %v28729_v9  ;;  %v28771_v9 = vld [vmem:[%s31076_s9 + $0x230] sm:$0xff]   ;;  %vm624_vm2 = vcmp.lt.s32.totalorder %v383_v6, %v31134_v36  ;;  %v1034_v6 = vrot.slane %v859_v4, %v31145_v47 }
  0xba   : > { %vm626_vm4 = vcmp.lt.s32.totalorder %v385_v8, %v31134_v36  ;;  %vm31269_vm6 = vmpackc.low %vm624_vm2, %vm624_vm2 }
  0xbb   : > { %25890 = vmatpush3.bf16.msra.mxu0 %v28730_v10  ;;  %v28772_v10 = vld [vmem:[%s31076_s9 + $0x2b0] sm:$0xff]   ;;  %vm31274_vm7 = vmpackc.low %vm626_vm4, %vm626_vm4 }
  0xbc   : > { %25912 = vmatpush3.bf16.msra.mxu1 %v28731_v11  ;;  %25891 = vmatprep.subr.bf16.mxu0 %v28732_v12  ;;  %v28773_v11 = vld [vmem:[%s31076_s9 + $0x278] sm:$0xff]  }
  0xbd   : > { %25913 = vmatprep.subr.bf16.mxu1 %v28733_v13  ;;  %v28774_v12 = vld [vmem:[%s31076_s9 + $0x2f8] sm:$0xff]   ;;  %v858_v13 = vld [vmem:[%s31094_s18 + $0x10] sm:$0xff] }
  0xbf   : > { %25892 = vmatpush3.bf16.msra.mxu0 %v28734_v14  ;;  %v1017_v14 = vrot.slane %v858_v13, %v31145_v47 }
  0xc0   : > { %25914 = vmatpush3.bf16.msra.mxu1 %v28735_v16  ;;  %25893 = vmatprep.subr.bf16.mxu0 %v28736_v18  ;;  %v1010_v16 = vcombine.high %v858_v13, %v858_v13  ;;  %v28776_v18 = vld [vmem:[%s31076_s9 + $0x2b8] sm:$0xff]   ;;  %v28850_v13 = vld [vmem:[%s31076_s9 + $0x508] sm:$0xff]  }
  0xc1   : > { %25915 = vmatprep.subr.bf16.mxu1 %v28737_v20  ;;  %v1025_v20 = vcombine.high %v1017_v14, %v1017_v14  ;;  %v25135_v31 = vpack.c.bf16 %v1017_v14, %v1017_v14  ;;  %v28812_v14 = vld [vmem:[%s31076_s9 + $0x4c0] sm:$0xff]  }
  0xc2   : > { %v1024_v21 = vrot.slane %v1010_v16, %v31145_v47 }
  0xc3   : > { %25894 = vmatpush3.bf16.msra.mxu0 %v28738_v23  ;;  %v28778_v23 = vld [vmem:[%s31076_s9 + $0x340] sm:$0xff]   ;;  %v25132_v25 = vpack.c.bf16 %v1025_v20, %v1025_v20 }
  0xc4   : > { %25916 = vmatpush3.bf16.msra.mxu1 %v28739_v26  ;;  %25895 = vmatprep.subr.bf16.mxu0 %v28740_v27  ;;  %v1026_v26 = vcombine.high %v1024_v21, %v1024_v21  ;;  %v28779_v27 = vld [vmem:[%s31076_s9 + $0x3c0] sm:$0xff]   ;;  %v25141_v32 = vpack.c.bf16 %v1024_v21, %v1024_v21  ;;  %v28815_v21 = vld [vmem:[%s31076_s9 + $0x448] sm:$0xff]  }
  0xc5   : > { %25917 = vmatprep.subr.bf16.mxu1 %v28741_v28  ;;  %v28780_v28 = vld [vmem:[%s31076_s9 + $0x300] sm:$0xff]  }
  0xc6   : > { %v25138_v30 = vpack.c.bf16 %v1026_v26, %v1026_v26  ;;  %v28819_v26 = vld [vmem:[%s31076_s9 + $0x450] sm:$0xff]  }
  0xc7   : > { %25896 = vmatpush3.bf16.msra.mxu0 %v28742_v33  ;;  %v28781_v33 = vld [vmem:[%s31076_s9 + $0x380] sm:$0xff]  }
  0xc8   : > { %25918 = vmatpush3.bf16.msra.mxu1 %v28743_v34  ;;  %25925 = vmatprep.subr.bf16.mxu0 %v28745_v39  ;;  %v28782_v34 = vld [vmem:[%s31076_s9 + $0x348] sm:$0xff]   ;;  %v28786_v39 = vld [vmem:[%s31076_s9 + $0x350] sm:$0xff]  }
  0xc9   : > { %25947 = vmatprep.subr.bf16.mxu1 %v28746_v40  ;;  %v28787_v40 = vld [vmem:[%s31076_s9 + $0x3d0] sm:$0xff]  }
  0xca   : > { %25124 = vmatmul.mubr.msk.bf16.vlgmr.msra.gmra.mrb[4].mxu0 %vm31210_vm14, %v25123_v43  ;;  %v28790_v43 = vld [vmem:[%s31076_s9 + $0x358] sm:$0xff]  }
  0xcb   : > { %25130 = vmatmul.mubr.msk.bf16.vlgmr.msra.gmra.mrb[4].mxu1 %vm25128_vm15, %v25129_v44  ;;  %25926 = vmatpush3.bf16.msra.mxu0 %v28747_v42  ;;  %v28789_v42 = vld [vmem:[%s31076_s9 + $0x390] sm:$0xff]   ;;  %v28791_v44 = vld [vmem:[%s31076_s9 + $0x3d8] sm:$0xff]  }
  0xcc   : > { %25948 = vmatpush3.bf16.msra.mxu1 %v28748_v45  ;;  %25927 = vmatprep.subr.bf16.mxu0 %v28749_v46  ;;  %v28792_v45 = vld [vmem:[%s31076_s9 + $0x318] sm:$0xff]  }
  0xcd   : > { %25949 = vmatprep.subr.bf16.mxu1 %v28750_v48  ;;  %25133 = vmatprep.mubr.msk.bf16.mxu0 %vm31257_vm3, %v25132_v25  ;;  %v28793_v46 = vld [vmem:[%s31076_s9 + $0x398] sm:$0xff]   ;;  %v28794_v48 = vld [vmem:[%s31076_s9 + $0x360] sm:$0xff]   ;;  %v28818_v25 = vld [vmem:[%s31076_s9 + $0x488] sm:$0xff]  }
  0xce   : > { %25139 = vmatprep.mubr.msk.bf16.mxu1 %vm31264_vm5, %v25138_v30  ;;  %v28822_v30 = vld [vmem:[%s31076_s9 + $0x490] sm:$0xff]  }
  0xcf   : > { %25928 = vmatpush3.bf16.msra.mxu0 %v28751_v49  ;;  %v28795_v49 = vld [vmem:[%s31076_s9 + $0x3e0] sm:$0xff]  }
  0xd0   : > { %25950 = vmatpush3.bf16.msra.mxu1 %v28752_v50  ;;  %25929 = vmatprep.subr.bf16.mxu0 %v28753_v51  ;;  %v28796_v50 = vld [vmem:[%s31076_s9 + $0x320] sm:$0xff]  }
  0xd1   : > { %25951 = vmatprep.subr.bf16.mxu1 %v28754_v52  ;;  %v28797_v51 = vld [vmem:[%s31076_s9 + $0x3a0] sm:$0xff]   ;;  %v28798_v52 = vld [vmem:[%s31076_s9 + $0x368] sm:$0xff]  }
  0xd3   : > { %25930 = vmatpush3.bf16.msra.mxu0 %v28755_v53  ;;  %v28799_v53 = vld [vmem:[%s31076_s9 + $0x3e8] sm:$0xff]  }
  0xd4   : > { %25952 = vmatpush3.bf16.msra.mxu1 %v28756_v54  ;;  %25931 = vmatprep.subr.bf16.mxu0 %v28757_v55  ;;  %v28800_v54 = vld [vmem:[%s31076_s9 + $0x328] sm:$0xff]  }
  0xd5   : > { %25953 = vmatprep.subr.bf16.mxu1 %v28758_v56  ;;  %v28801_v55 = vld [vmem:[%s31076_s9 + $0x3a8] sm:$0xff]   ;;  %v388_v56 = vadd.s32 1664, %v31126_v29 }
  0xd7   : > { %25932 = vmatpush3.bf16.msra.mxu0 %v28759_v57  ;;  %v28802_v57 = vld [vmem:[%s31076_s9 + $0x370] sm:$0xff]   ;;  %vm629_vm8 = vcmp.lt.s32.totalorder %v388_v56, %v31134_v36  ;;  %v28842_v56 = vld [vmem:[%s31076_s9 + $0x4b8] sm:$0xff]  }
  0xd8   : > { %25954 = vmatpush3.bf16.msra.mxu1 %v28760_v58  ;;  %25933 = vmatprep.subr.bf16.mxu0 %v28761_v59  ;;  %v390_v58 = vadd.s32 1920, %v31126_v29  ;;  %v28803_v59 = vld [vmem:[%s31076_s9 + $0x3f0] sm:$0xff]   ;;  %vm31325_vm11 = vmpackc.low %vm629_vm8, %vm629_vm8 }
  0xd9   : > { %25955 = vmatprep.subr.bf16.mxu1 %v28762_v60  ;;  %v387_v60 = vadd.s32 1536, %v31126_v29 }
  0xda   : > { %vm631_vm9 = vcmp.lt.s32.totalorder %v390_v58, %v31134_v36 }
  0xdb   : > { %25934 = vmatpush3.bf16.msra.mxu0 %v28763_v61  ;;  %v28804_v61 = vld [vmem:[%s31076_s9 + $0x330] sm:$0xff]   ;;  %vm628_vm10 = vcmp.lt.s32.totalorder %v387_v60, %v31134_v36  ;;  %vm31331_vm13 = vmpackc.low %vm631_vm9, %vm631_vm9 }
  0xdc   : > { %25956 = vmatpush3.bf16.msra.mxu1 %v28764_v62  ;;  %25935 = vmatprep.subr.bf16.mxu0 %v28765_v63  ;;  %v389_v62 = vadd.s32 1792, %v31126_v29  ;;  %v28805_v63 = vld [vmem:[%s31076_s9 + $0x3b0] sm:$0xff]   ;;  %vm31336_vm14 = vmpackc.low %vm628_vm10, %vm628_vm10 }
  0xdd   : > { %25957 = vmatprep.subr.bf16.mxu1 %v28766_v0  ;;  %v28806_v0 = vld [vmem:[%s31076_s9 + $0x378] sm:$0xff]  }
  0xde   : > { %vm630_vm12 = vcmp.lt.s32.totalorder %v389_v62, %v31134_v36  ;;  %v28844_v62 = vld [vmem:[%s31076_s9 + $0x540] sm:$0xff]  }
  0xdf   : > { %25936 = vmatpush3.bf16.msra.mxu0 %v28767_v1  ;;  %v28807_v1 = vld [vmem:[%s31076_s9 + $0x3f8] sm:$0xff]   ;;  %vm31341_vm15 = vmpackc.low %vm630_vm12, %vm630_vm12 }
  0xe0   : > { %25958 = vmatpush3.bf16.msra.mxu1 %v28768_v3  ;;  %25937 = vmatprep.subr.bf16.mxu0 %v28769_v5  ;;  %v28809_v3 = vld [vmem:[%s31076_s9 + $0x3b8] sm:$0xff]  }
  0xe1   : > { %25959 = vmatprep.subr.bf16.mxu1 %v28770_v7  ;;  %v1027_v7 = vcombine.high %v859_v4, %v859_v4  ;;  %v28885_v4 = vld [vmem:[%s31076_s9 + $0x650] sm:$0xff]  }
  0xe3   : > { %25938 = vmatpush3.bf16.msra.mxu0 %v28771_v9  ;;  %v28811_v9 = vld [vmem:[%s31076_s9 + $0x440] sm:$0xff]  }
  0xe4   : > { %25960 = vmatpush3.bf16.msra.mxu1 %v28772_v10  ;;  %25939 = vmatprep.subr.bf16.mxu0 %v28773_v11  ;;  %v1042_v11 = vcombine.high %v1034_v6, %v1034_v6 }
  0xe5   : > { %25961 = vmatprep.subr.bf16.mxu1 %v28774_v12  ;;  %v1041_v12 = vrot.slane %v1027_v7, %v31145_v47  ;;  %v28846_v7 = vld [vmem:[%s31076_s9 + $0x500] sm:$0xff]  }
  0xe6   : > { %v25144_v16 = vpack.c.bf16 %v1042_v11, %v1042_v11  ;;  %v28848_v11 = vld [vmem:[%s31076_s9 + $0x548] sm:$0xff]  }
  0xe7   : > { %25940 = vmatpush3.bf16.msra.mxu0 %v28775_v17  ;;  %v1043_v17 = vcombine.high %v1041_v12, %v1041_v12  ;;  %v25153_v20 = vpack.c.bf16 %v1041_v12, %v1041_v12  ;;  %v28849_v12 = vld [vmem:[%s31076_s9 + $0x5c8] sm:$0xff]  }
  0xe8   : > { %25962 = vmatpush3.bf16.msra.mxu1 %v28776_v18  ;;  %25969 = vmatprep.subr.bf16.mxu0 %v28778_v23  ;;  %v25147_v18 = vpack.c.bf16 %v1034_v6, %v1034_v6  ;;  %v28816_v23 = vld [vmem:[%s31076_s9 + $0x4c8] sm:$0xff]  }
  0xe9   : > { %25991 = vmatprep.subr.bf16.mxu1 %v28779_v27  ;;  %v25150_v22 = vpack.c.bf16 %v1043_v17, %v1043_v17  ;;  %v28820_v27 = vld [vmem:[%s31076_s9 + $0x4d0] sm:$0xff]  }
  0xea   : > { %25136 = vmatmul.mubr.msk.bf16.vlgmr.msra.gmra.mrb[8].mxu0 %vm31269_vm6, %v25135_v31  ;;  %v28823_v31 = vld [vmem:[%s31076_s9 + $0x458] sm:$0xff]   ;;  %v28854_v17 = vld [vmem:[%s31076_s9 + $0x510] sm:$0xff]  }
  0xeb   : > { %25142 = vmatmul.mubr.msk.bf16.vlgmr.msra.gmra.mrb[8].mxu1 %vm31274_vm7, %v25141_v32  ;;  %25970 = vmatpush3.bf16.msra.mxu0 %v28780_v28  ;;  %v28821_v28 = vld [vmem:[%s31076_s9 + $0x410] sm:$0xff]   ;;  %v28824_v32 = vld [vmem:[%s31076_s9 + $0x4d8] sm:$0xff]  }
  0xec   : > { %25992 = vmatpush3.bf16.msra.mxu1 %v28781_v33  ;;  %25971 = vmatprep.subr.bf16.mxu0 %v28782_v34  ;;  %v28825_v33 = vld [vmem:[%s31076_s9 + $0x418] sm:$0xff]  }
  0xed   : > { %25993 = vmatprep.subr.bf16.mxu1 %v28783_v35  ;;  %25145 = vmatprep.mubr.msk.bf16.mxu0 %vm31325_vm11, %v25144_v16  ;;  %v28826_v34 = vld [vmem:[%s31076_s9 + $0x498] sm:$0xff]   ;;  %v28827_v35 = vld [vmem:[%s31076_s9 + $0x460] sm:$0xff]   ;;  %v28853_v16 = vld [vmem:[%s31076_s9 + $0x5d0] sm:$0xff]  }
  0xee   : > { %25151 = vmatprep.mubr.msk.bf16.mxu1 %vm31331_vm13, %v25150_v22  ;;  %v28859_v22 = vld [vmem:[%s31076_s9 + $0x598] sm:$0xff]  }
  0xef   : > { %25972 = vmatpush3.bf16.msra.mxu0 %v28784_v37  ;;  %v28828_v37 = vld [vmem:[%s31076_s9 + $0x4e0] sm:$0xff]  }
  0xf0   : > { %25994 = vmatpush3.bf16.msra.mxu1 %v28785_v38  ;;  %25973 = vmatprep.subr.bf16.mxu0 %v28786_v39  ;;  %v28829_v38 = vld [vmem:[%s31076_s9 + $0x420] sm:$0xff]  }
  0xf1   : > { %25995 = vmatprep.subr.bf16.mxu1 %v28787_v40  ;;  %v28830_v39 = vld [vmem:[%s31076_s9 + $0x4a0] sm:$0xff]   ;;  %v28831_v40 = vld [vmem:[%s31076_s9 + $0x468] sm:$0xff]  }
  0xf3   : > { %25974 = vmatpush3.bf16.msra.mxu0 %v28788_v41  ;;  %v28832_v41 = vld [vmem:[%s31076_s9 + $0x4e8] sm:$0xff]  }
  0xf4   : > { %25996 = vmatpush3.bf16.msra.mxu1 %v28789_v42  ;;  %25975 = vmatprep.subr.bf16.mxu0 %v28790_v43  ;;  %v28833_v42 = vld [vmem:[%s31076_s9 + $0x428] sm:$0xff]  }
  0xf5   : > { %25997 = vmatprep.subr.bf16.mxu1 %v28791_v44  ;;  %v28834_v43 = vld [vmem:[%s31076_s9 + $0x4a8] sm:$0xff]   ;;  %v28835_v44 = vld [vmem:[%s31076_s9 + $0x470] sm:$0xff]  }
  0xf7   : > { %25976 = vmatpush3.bf16.msra.mxu0 %v28792_v45  ;;  %v28836_v45 = vld [vmem:[%s31076_s9 + $0x4f0] sm:$0xff]  }
  0xf8   : > { %25998 = vmatpush3.bf16.msra.mxu1 %v28793_v46  ;;  %25977 = vmatprep.subr.bf16.mxu0 %v28794_v48  ;;  %v392_v46 = vadd.s32 2176, %v31126_v29  ;;  %v28837_v48 = vld [vmem:[%s31076_s9 + $0x430] sm:$0xff]  }
  0xf9   : > { %25999 = vmatprep.subr.bf16.mxu1 %v28795_v49  ;;  %v394_v49 = vadd.s32 2432, %v31126_v29 }
  0xfa   : > { %vm633_vm0 = vcmp.lt.s32.totalorder %v392_v46, %v31134_v36  ;;  %v28912_v46 = vld [vmem:[%s31076_s9 + $0x700] sm:$0xff]  }
  0xfb   : > { %25978 = vmatpush3.bf16.msra.mxu0 %v28796_v50  ;;  %v28838_v50 = vld [vmem:[%s31076_s9 + $0x4b0] sm:$0xff]   ;;  %vm635_vm1 = vcmp.lt.s32.totalorder %v394_v49, %v31134_v36  ;;  %vm31393_vm3 = vmpackc.low %vm633_vm0, %vm633_vm0 }
  0xfc   : > { %26000 = vmatpush3.bf16.msra.mxu1 %v28797_v51  ;;  %25979 = vmatprep.subr.bf16.mxu0 %v28798_v52  ;;  %v391_v51 = vadd.s32 2048, %v31126_v29  ;;  %v28839_v52 = vld [vmem:[%s31076_s9 + $0x478] sm:$0xff]   ;;  %vm31398_vm5 = vmpackc.low %vm635_vm1, %vm635_vm1 }
  0xfd   : > { %26001 = vmatprep.subr.bf16.mxu1 %v28799_v53  ;;  %v393_v53 = vadd.s32 2304, %v31126_v29 }
  0xfe   : > { %vm632_vm2 = vcmp.lt.s32.totalorder %v391_v51, %v31134_v36 }
  0xff   : > { %25980 = vmatpush3.bf16.msra.mxu0 %v28800_v54  ;;  %v28840_v54 = vld [vmem:[%s31076_s9 + $0x4f8] sm:$0xff]   ;;  %vm634_vm4 = vcmp.lt.s32.totalorder %v393_v53, %v31134_v36  ;;  %vm31404_vm6 = vmpackc.low %vm632_vm2, %vm632_vm2 }
 0x100   : > { %26002 = vmatpush3.bf16.msra.mxu1 %v28801_v55  ;;  %25981 = vmatprep.subr.bf16.mxu0 %v28802_v57  ;;  %v28841_v55 = vld [vmem:[%s31076_s9 + $0x438] sm:$0xff]   ;;  %vm31409_vm7 = vmpackc.low %vm634_vm4, %vm634_vm4 }
 0x101   : > { %26003 = vmatprep.subr.bf16.mxu1 %v28803_v59  ;;  %v860_v57 = vld [vmem:[%s31094_s18 + $0x20] sm:$0xff] }
 0x102   : > { %v1051_v58 = vrot.slane %v860_v57, %v31145_v47  ;;  %v1044_v60 = vcombine.high %v860_v57, %v860_v57 }
 0x103   : > { %25982 = vmatpush3.bf16.msra.mxu0 %v28804_v61  ;;  %v28880_v61 = vld [vmem:[%s31076_s9 + $0x680] sm:$0xff]  }
 0x104   : > { %26004 = vmatpush3.bf16.msra.mxu1 %v28805_v63  ;;  %25983 = vmatprep.subr.bf16.mxu0 %v28806_v0  ;;  %v1059_v63 = vcombine.high %v1051_v58, %v1051_v58  ;;  %v1058_v0 = vrot.slane %v1044_v60, %v31145_v47 }
 0x105   : > { %26005 = vmatprep.subr.bf16.mxu1 %v28807_v1  ;;  %v28882_v1 = vld [vmem:[%s31076_s9 + $0x6c8] sm:$0xff]  }
 0x106   : > { %v25156_v5 = vpack.c.bf16 %v1059_v63, %v1059_v63  ;;  %v1060_v6 = vcombine.high %v1058_v0, %v1058_v0  ;;  %v25165_v8 = vpack.c.bf16 %v1058_v0, %v1058_v0  ;;  %v28881_v63 = vld [vmem:[%s31076_s9 + $0x648] sm:$0xff]  }
 0x107   : > { %25984 = vmatpush3.bf16.msra.mxu0 %v28808_v2  ;;  %v28845_v2 = vld [vmem:[%s31076_s9 + $0x5c0] sm:$0xff]  }
 0x108   : > { %26006 = vmatpush3.bf16.msra.mxu1 %v28809_v3  ;;  %26013 = vmatprep.subr.bf16.mxu0 %v28811_v9  ;;  %v25159_v3 = vpack.c.bf16 %v1051_v58, %v1051_v58  ;;  %v28847_v9 = vld [vmem:[%s31076_s9 + $0x580] sm:$0xff]   ;;  %v25162_v10 = vpack.c.bf16 %v1060_v6, %v1060_v6  ;;  %v28887_v6 = vld [vmem:[%s31076_s9 + $0x610] sm:$0xff]  }
 0x109   : > { %26035 = vmatprep.subr.bf16.mxu1 %v28812_v14  ;;  %v28851_v14 = vld [vmem:[%s31076_s9 + $0x588] sm:$0xff]   ;;  %v28879_v58 = vld [vmem:[%s31076_s9 + $0x600] sm:$0xff]  }
 0x10a   : > { %25148 = vmatmul.mubr.msk.bf16.vlgmr.msra.gmra.mrb[12].mxu0 %vm31336_vm14, %v25147_v18  ;;  %v28855_v18 = vld [vmem:[%s31076_s9 + $0x590] sm:$0xff]  }
 0x10b   : > { %25154 = vmatmul.mubr.msk.bf16.vlgmr.msra.gmra.mrb[12].mxu1 %vm31341_vm15, %v25153_v20  ;;  %26014 = vmatpush3.bf16.msra.mxu0 %v28813_v15  ;;  %v28852_v15 = vld [vmem:[%s31076_s9 + $0x550] sm:$0xff]   ;;  %v28857_v20 = vld [vmem:[%s31076_s9 + $0x5d8] sm:$0xff]  }
 0x10c   : > { %26036 = vmatpush3.bf16.msra.mxu1 %v28814_v19  ;;  %26015 = vmatprep.subr.bf16.mxu0 %v28815_v21  ;;  %v28856_v19 = vld [vmem:[%s31076_s9 + $0x558] sm:$0xff]  }
 0x10d   : > { %26037 = vmatprep.subr.bf16.mxu1 %v28816_v23  ;;  %25157 = vmatprep.mubr.msk.bf16.mxu0 %vm31393_vm3, %v25156_v5  ;;  %v28858_v21 = vld [vmem:[%s31076_s9 + $0x518] sm:$0xff]   ;;  %v28860_v23 = vld [vmem:[%s31076_s9 + $0x560] sm:$0xff]   ;;  %v28886_v5 = vld [vmem:[%s31076_s9 + $0x6d0] sm:$0xff]  }
 0x10e   : > { %25163 = vmatprep.mubr.msk.bf16.mxu1 %vm31398_vm5, %v25162_v10  ;;  %v28891_v10 = vld [vmem:[%s31076_s9 + $0x618] sm:$0xff]  }
 0x10f   : > { %26016 = vmatpush3.bf16.msra.mxu0 %v28817_v24  ;;  %v28861_v24 = vld [vmem:[%s31076_s9 + $0x5e0] sm:$0xff]  }
 0x110   : > { %26038 = vmatpush3.bf16.msra.mxu1 %v28818_v25  ;;  %26017 = vmatprep.subr.bf16.mxu0 %v28819_v26  ;;  %v28862_v25 = vld [vmem:[%s31076_s9 + $0x520] sm:$0xff]  }
 0x111   : > { %26039 = vmatprep.subr.bf16.mxu1 %v28820_v27  ;;  %v28863_v26 = vld [vmem:[%s31076_s9 + $0x5a0] sm:$0xff]   ;;  %v28864_v27 = vld [vmem:[%s31076_s9 + $0x568] sm:$0xff]  }
 0x113   : > { %26018 = vmatpush3.bf16.msra.mxu0 %v28821_v28  ;;  %v28865_v28 = vld [vmem:[%s31076_s9 + $0x5e8] sm:$0xff]  }
 0x114   : > { %26040 = vmatpush3.bf16.msra.mxu1 %v28822_v30  ;;  %26019 = vmatprep.subr.bf16.mxu0 %v28823_v31  ;;  %v28866_v30 = vld [vmem:[%s31076_s9 + $0x528] sm:$0xff]  }
 0x115   : > { %26041 = vmatprep.subr.bf16.mxu1 %v28824_v32  ;;  %v28867_v31 = vld [vmem:[%s31076_s9 + $0x5a8] sm:$0xff]   ;;  %v28868_v32 = vld [vmem:[%s31076_s9 + $0x570] sm:$0xff]  }
 0x117   : > { %26020 = vmatpush3.bf16.msra.mxu0 %v28825_v33  ;;  %v396_v33 = vadd.s32 2688, %v31126_v29 }
 0x118   : > { %26042 = vmatpush3.bf16.msra.mxu1 %v28826_v34  ;;  %26021 = vmatprep.subr.bf16.mxu0 %v28827_v35  ;;  %v28869_v34 = vld [vmem:[%s31076_s9 + $0x5f0] sm:$0xff]   ;;  %v398_v35 = vadd.s32 2944, %v31126_v29 }
 0x119   : > { %26043 = vmatprep.subr.bf16.mxu1 %v28828_v37  ;;  %v28870_v37 = vld [vmem:[%s31076_s9 + $0x530] sm:$0xff]   ;;  %vm637_vm8 = vcmp.lt.s32.totalorder %v396_v33, %v31134_v36 }
 0x11a   : > { %vm639_vm9 = vcmp.lt.s32.totalorder %v398_v35, %v31134_v36  ;;  %vm31459_vm11 = vmpackc.low %vm637_vm8, %vm637_vm8  ;;  %v862_v33 = vld [vmem:[%s31094_s18 + $0x30] sm:$0xff] }
 0x11b   : > { %26022 = vmatpush3.bf16.msra.mxu0 %v28829_v38  ;;  %v395_v38 = vadd.s32 2560, %v31126_v29  ;;  %vm31465_vm13 = vmpackc.low %vm639_vm9, %vm639_vm9  ;;  %v1085_v35 = vrot.slane %v862_v33, %v31145_v47 }
 0x11c   : > { %26044 = vmatpush3.bf16.msra.mxu1 %v28830_v39  ;;  %26023 = vmatprep.subr.bf16.mxu0 %v28831_v40  ;;  %v28871_v39 = vld [vmem:[%s31076_s9 + $0x5b0] sm:$0xff]   ;;  %v397_v40 = vadd.s32 2816, %v31126_v29 }
 0x11d   : > { %26045 = vmatprep.subr.bf16.mxu1 %v28832_v41  ;;  %v28872_v41 = vld [vmem:[%s31076_s9 + $0x578] sm:$0xff]   ;;  %vm636_vm10 = vcmp.lt.s32.totalorder %v395_v38, %v31134_v36 }
 0x11e   : > { %vm638_vm12 = vcmp.lt.s32.totalorder %v397_v40, %v31134_v36  ;;  %vm31469_vm14 = vmpackc.low %vm636_vm10, %vm636_vm10 }
 0x11f   : > { %26024 = vmatpush3.bf16.msra.mxu0 %v28833_v42  ;;  %v28873_v42 = vld [vmem:[%s31076_s9 + $0x5f8] sm:$0xff]   ;;  %vm31475_vm15 = vmpackc.low %vm638_vm12, %vm638_vm12 }
 0x120   : > { %26046 = vmatpush3.bf16.msra.mxu1 %v28834_v43  ;;  %26025 = vmatprep.subr.bf16.mxu0 %v28835_v44  ;;  %v28874_v43 = vld [vmem:[%s31076_s9 + $0x538] sm:$0xff]  }
 0x121   : > { %26047 = vmatprep.subr.bf16.mxu1 %v28836_v45  ;;  %v28875_v44 = vld [vmem:[%s31076_s9 + $0x5b8] sm:$0xff]   ;;  %v861_v45 = vld [vmem:[%s31094_s18 + $0x28] sm:$0xff] }
 0x122   : > { %v1061_v49 = vcombine.high %v861_v45, %v861_v45 }
 0x123   : > { %26026 = vmatpush3.bf16.msra.mxu0 %v28837_v48  ;;  %v1068_v48 = vrot.slane %v861_v45, %v31145_v47  ;;  %v25183_v45 = vpack.c.bf16 %v1085_v35, %v1085_v35 }
 0x124   : > { %26048 = vmatpush3.bf16.msra.mxu1 %v28838_v50  ;;  %26027 = vmatprep.subr.bf16.mxu0 %v28839_v52  ;;  %v28877_v52 = vld [vmem:[%s31076_s9 + $0x640] sm:$0xff]  }
 0x125   : > { %26049 = vmatprep.subr.bf16.mxu1 %v28840_v54  ;;  %v1076_v53 = vcombine.high %v1068_v48, %v1068_v48  ;;  %v1075_v54 = vrot.slane %v1061_v49, %v31145_v47  ;;  %v25171_v57 = vpack.c.bf16 %v1068_v48, %v1068_v48  ;;  %v28913_v50 = vld [vmem:[%s31076_s9 + $0x780] sm:$0xff]  }
 0x127   : > { %26028 = vmatpush3.bf16.msra.mxu0 %v28841_v55  ;;  %v25168_v59 = vpack.c.bf16 %v1076_v53, %v1076_v53  ;;  %v1077_v60 = vcombine.high %v1075_v54, %v1075_v54  ;;  %v28916_v55 = vld [vmem:[%s31076_s9 + $0x708] sm:$0xff]  }
 0x128   : > { %26050 = vmatpush3.bf16.msra.mxu1 %v28842_v56  ;;  %26057 = vmatprep.subr.bf16.mxu0 %v28844_v62  ;;  %v28878_v56 = vld [vmem:[%s31076_s9 + $0x6c0] sm:$0xff]   ;;  %v25177_v62 = vpack.c.bf16 %v1075_v54, %v1075_v54  ;;  %v28915_v54 = vld [vmem:[%s31076_s9 + $0x7c8] sm:$0xff]  }
 0x129   : > { %26079 = vmatprep.subr.bf16.mxu1 %v28845_v2  ;;  %v25174_v0 = vpack.c.bf16 %v1077_v60, %v1077_v60  ;;  %v28883_v2 = vld [vmem:[%s31076_s9 + $0x608] sm:$0xff]   ;;  %v28921_v60 = vld [vmem:[%s31076_s9 + $0x790] sm:$0xff]  }
 0x12a   : > { %25160 = vmatmul.mubr.msk.bf16.vlgmr.msra.gmra.mrb[16].mxu0 %vm31404_vm6, %v25159_v3  ;;  %v28884_v3 = vld [vmem:[%s31076_s9 + $0x688] sm:$0xff]  }
 0x12b   : > { %26058 = vmatpush3.bf16.msra.mxu0 %v28846_v7  ;;  %25166 = vmatmul.mubr.msk.bf16.vlgmr.msra.gmra.mrb[16].mxu1 %vm31409_vm7, %v25165_v8  ;;  %v28888_v7 = vld [vmem:[%s31076_s9 + $0x690] sm:$0xff]   ;;  %v28889_v8 = vld [vmem:[%s31076_s9 + $0x658] sm:$0xff]  }
 0x12c   : > { %26059 = vmatprep.subr.bf16.mxu0 %v28848_v11  ;;  %26080 = vmatpush3.bf16.msra.mxu1 %v28847_v9  ;;  %v28890_v9 = vld [vmem:[%s31076_s9 + $0x6d8] sm:$0xff]  }
 0x12d   : > { %26081 = vmatprep.subr.bf16.mxu1 %v28849_v12  ;;  %25169 = vmatprep.mubr.msk.bf16.mxu0 %vm31459_vm11, %v25168_v59  ;;  %v28892_v11 = vld [vmem:[%s31076_s9 + $0x698] sm:$0xff]   ;;  %v28893_v12 = vld [vmem:[%s31076_s9 + $0x660] sm:$0xff]   ;;  %v28920_v59 = vld [vmem:[%s31076_s9 + $0x710] sm:$0xff]  }
 0x12e   : > { %25175 = vmatprep.mubr.msk.bf16.mxu1 %vm31465_vm13, %v25174_v0  ;;  %v28925_v0 = vld [vmem:[%s31076_s9 + $0x798] sm:$0xff]  }
 0x12f   : > { %26060 = vmatpush3.bf16.msra.mxu0 %v28850_v13  ;;  %v28894_v13 = vld [vmem:[%s31076_s9 + $0x6e0] sm:$0xff]  }
 0x130   : > { %26061 = vmatprep.subr.bf16.mxu0 %v28852_v15  ;;  %26082 = vmatpush3.bf16.msra.mxu1 %v28851_v14  ;;  %v28895_v14 = vld [vmem:[%s31076_s9 + $0x620] sm:$0xff]  }
 0x131   : > { %26083 = vmatprep.subr.bf16.mxu1 %v28853_v16  ;;  %v28896_v15 = vld [vmem:[%s31076_s9 + $0x6a0] sm:$0xff]   ;;  %v28897_v16 = vld [vmem:[%s31076_s9 + $0x668] sm:$0xff]  }
 0x133   : > { %26062 = vmatpush3.bf16.msra.mxu0 %v28854_v17  ;;  %v28898_v17 = vld [vmem:[%s31076_s9 + $0x6e8] sm:$0xff]  }
 0x134   : > { %26063 = vmatprep.subr.bf16.mxu0 %v28856_v19  ;;  %26084 = vmatpush3.bf16.msra.mxu1 %v28855_v18  ;;  %v28899_v18 = vld [vmem:[%s31076_s9 + $0x628] sm:$0xff]  }
 0x135   : > { %26085 = vmatprep.subr.bf16.mxu1 %v28857_v20  ;;  %v28900_v19 = vld [vmem:[%s31076_s9 + $0x6a8] sm:$0xff]   ;;  %v28901_v20 = vld [vmem:[%s31076_s9 + $0x670] sm:$0xff]  }
 0x137   : > { %26064 = vmatpush3.bf16.msra.mxu0 %v28858_v21  ;;  %v28902_v21 = vld [vmem:[%s31076_s9 + $0x6f0] sm:$0xff]  }
 0x138   : > { %26065 = vmatprep.subr.bf16.mxu0 %v28860_v23  ;;  %26086 = vmatpush3.bf16.msra.mxu1 %v28859_v22  ;;  %v400_v22 = vadd.s32 3200, %v31126_v29  ;;  %v28903_v23 = vld [vmem:[%s31076_s9 + $0x630] sm:$0xff]  }
 0x139   : > { %26087 = vmatprep.subr.bf16.mxu1 %v28861_v24  ;;  %v402_v24 = vadd.s32 3456, %v31126_v29 }
 0x13a   : > { %vm641_vm0 = vcmp.lt.s32.totalorder %v400_v22, %v31134_v36  ;;  %v28934_v22 = vld [vmem:[%s31076_s9 + $0x770] sm:$0xff]  }
 0x13b   : > { %26066 = vmatpush3.bf16.msra.mxu0 %v28862_v25  ;;  %v28904_v25 = vld [vmem:[%s31076_s9 + $0x6b0] sm:$0xff]   ;;  %vm643_vm1 = vcmp.lt.s32.totalorder %v402_v24, %v31134_v36  ;;  %vm31526_vm3 = vmpackc.low %vm641_vm0, %vm641_vm0 }
 0x13c   : > { %26067 = vmatprep.subr.bf16.mxu0 %v28864_v27  ;;  %26088 = vmatpush3.bf16.msra.mxu1 %v28863_v26  ;;  %v399_v26 = vadd.s32 3072, %v31126_v29  ;;  %v28905_v27 = vld [vmem:[%s31076_s9 + $0x678] sm:$0xff]   ;;  %vm31532_vm5 = vmpackc.low %vm643_vm1, %vm643_vm1  ;;  %v28935_v24 = vld [vmem:[%s31076_s9 + $0x7f0] sm:$0xff]  }
 0x13d   : > { %26089 = vmatprep.subr.bf16.mxu1 %v28865_v28  ;;  %v401_v28 = vadd.s32 3328, %v31126_v29 }
 0x13e   : > { %vm640_vm2 = vcmp.lt.s32.totalorder %v399_v26, %v31134_v36  ;;  %v28936_v26 = vld [vmem:[%s31076_s9 + $0x730] sm:$0xff]  }
 0x13f   : > { %26068 = vmatpush3.bf16.msra.mxu0 %v28866_v30  ;;  %v28906_v30 = vld [vmem:[%s31076_s9 + $0x6f8] sm:$0xff]   ;;  %vm642_vm4 = vcmp.lt.s32.totalorder %v401_v28, %v31134_v36  ;;  %vm31537_vm6 = vmpackc.low %vm640_vm2, %vm640_vm2  ;;  %v413_v28 = vadd.s32 4864, %v31126_v29 }
 0x140   : > { %26069 = vmatprep.subr.bf16.mxu0 %v28868_v32  ;;  %26090 = vmatpush3.bf16.msra.mxu1 %v28867_v31  ;;  %v28907_v31 = vld [vmem:[%s31076_s9 + $0x638] sm:$0xff]   ;;  %vm31542_vm7 = vmpackc.low %vm642_vm4, %vm642_vm4 }
 0x141   : > { %26091 = vmatprep.subr.bf16.mxu1 %v28869_v34  ;;  %v28908_v32 = vld [vmem:[%s31076_s9 + $0x6b8] sm:$0xff]  }
 0x142   : > { %v28941_v34 = vld [vmem:[%s31076_s9 + $0x7b8] sm:$0xff]  }
 0x143   : > { %26070 = vmatpush3.bf16.msra.mxu0 %v28870_v37  ;;  %v1078_v37 = vcombine.high %v862_v33, %v862_v33  ;;  %v28940_v33 = vld [vmem:[%s31076_s9 + $0x738] sm:$0xff]  }
 0x144   : > { %26071 = vmatprep.subr.bf16.mxu0 %v28872_v41  ;;  %26092 = vmatpush3.bf16.msra.mxu1 %v28871_v39  ;;  %v28910_v39 = vld [vmem:[%s31076_s9 + $0x740] sm:$0xff]   ;;  %v1093_v41 = vcombine.high %v1085_v35, %v1085_v35  ;;  %v863_v35 = vld [vmem:[%s31094_s18 + $0x38] sm:$0xff] }
 0x145   : > { %26093 = vmatprep.subr.bf16.mxu1 %v28873_v42  ;;  %v1092_v42 = vrot.slane %v1078_v37, %v31145_v47  ;;  %v1102_v38 = vrot.slane %v863_v35, %v31145_v47 }
 0x146   : > { %v25180_v48 = vpack.c.bf16 %v1093_v41, %v1093_v41  ;;  %v28943_v41 = vld [vmem:[%s31076_s9 + $0x840] sm:$0xff]  }
 0x147   : > { %26072 = vmatpush3.bf16.msra.mxu0 %v28874_v43  ;;  %v1094_v49 = vcombine.high %v1092_v42, %v1092_v42  ;;  %v25189_v51 = vpack.c.bf16 %v1092_v42, %v1092_v42  ;;  %v1110_v42 = vcombine.high %v1102_v38, %v1102_v38 }
 0x148   : > { %26101 = vmatprep.subr.bf16.mxu0 %v28877_v52  ;;  %26094 = vmatpush3.bf16.msra.mxu1 %v28875_v44  ;;  %v28911_v44 = vld [vmem:[%s31076_s9 + $0x7c0] sm:$0xff]   ;;  %v28914_v52 = vld [vmem:[%s31076_s9 + $0x748] sm:$0xff]  }
 0x149   : > { %26123 = vmatprep.subr.bf16.mxu1 %v28878_v56  ;;  %v25186_v53 = vpack.c.bf16 %v1094_v49, %v1094_v49  ;;  %v28917_v56 = vld [vmem:[%s31076_s9 + $0x788] sm:$0xff]  }
 0x14a   : > { %25172 = vmatmul.mubr.msk.bf16.vlgmr.msra.gmra.mrb[20].mxu0 %vm31469_vm14, %v25171_v57  ;;  %v28918_v57 = vld [vmem:[%s31076_s9 + $0x750] sm:$0xff]  }
 0x14b   : > { %26102 = vmatpush3.bf16.msra.mxu0 %v28879_v58  ;;  %25178 = vmatmul.mubr.msk.bf16.vlgmr.msra.gmra.mrb[20].mxu1 %vm31475_vm15, %v25177_v62  ;;  %v28919_v58 = vld [vmem:[%s31076_s9 + $0x7d0] sm:$0xff]   ;;  %v28923_v62 = vld [vmem:[%s31076_s9 + $0x7d8] sm:$0xff]  }
 0x14c   : > { %26103 = vmatprep.subr.bf16.mxu0 %v28881_v63  ;;  %26124 = vmatpush3.bf16.msra.mxu1 %v28880_v61  ;;  %v28922_v61 = vld [vmem:[%s31076_s9 + $0x758] sm:$0xff]  }
 0x14d   : > { %26125 = vmatprep.subr.bf16.mxu1 %v28882_v1  ;;  %25181 = vmatprep.mubr.msk.bf16.mxu0 %vm31526_vm3, %v25180_v48  ;;  %v28924_v63 = vld [vmem:[%s31076_s9 + $0x718] sm:$0xff]   ;;  %v28926_v1 = vld [vmem:[%s31076_s9 + $0x760] sm:$0xff]   ;;  %v25192_v48 = vpack.c.bf16 %v1110_v42, %v1110_v42 }
 0x14e   : > { %25187 = vmatprep.mubr.msk.bf16.mxu1 %vm31532_vm5, %v25186_v53 }
 0x14f   : > { %26104 = vmatpush3.bf16.msra.mxu0 %v28883_v2  ;;  %v28927_v2 = vld [vmem:[%s31076_s9 + $0x7e0] sm:$0xff]  }
 0x150   : > { %26105 = vmatprep.subr.bf16.mxu0 %v28885_v4  ;;  %26126 = vmatpush3.bf16.msra.mxu1 %v28884_v3  ;;  %v28928_v3 = vld [vmem:[%s31076_s9 + $0x720] sm:$0xff]   ;;  %v404_v4 = vadd.s32 3712, %v31126_v29 }
 0x151   : > { %26127 = vmatprep.subr.bf16.mxu1 %v28886_v5  ;;  %v28929_v5 = vld [vmem:[%s31076_s9 + $0x7a0] sm:$0xff]  }
 0x152   : > { %vm645_vm8 = vcmp.lt.s32.totalorder %v404_v4, %v31134_v36  ;;  %v408_v4 = vadd.s32 4224, %v31126_v29 }
 0x153   : > { %26106 = vmatpush3.bf16.msra.mxu0 %v28887_v6  ;;  %v406_v6 = vadd.s32 3968, %v31126_v29  ;;  %vm31589_vm10 = vmpackc.low %vm645_vm8, %vm645_vm8 }
 0x154   : > { %26107 = vmatprep.subr.bf16.mxu0 %v28889_v8  ;;  %26128 = vmatpush3.bf16.msra.mxu1 %v28888_v7  ;;  %v28930_v7 = vld [vmem:[%s31076_s9 + $0x768] sm:$0xff]   ;;  %v403_v8 = vadd.s32 3584, %v31126_v29  ;;  %vm649_vm0 = vcmp.lt.s32.totalorder %v408_v4, %v31134_v36  ;;  %v412_v4 = vadd.s32 4736, %v31126_v29 }
 0x155   : > { %26129 = vmatprep.subr.bf16.mxu1 %v28890_v9  ;;  %vm647_vm9 = vcmp.lt.s32.totalorder %v406_v6, %v31134_v36  ;;  %vm31657_vm1 = vmpackc.low %vm649_vm0, %vm649_vm0 }
 0x156   : > { %vm644_vm11 = vcmp.lt.s32.totalorder %v403_v8, %v31134_v36  ;;  %vm31596_vm12 = vmpackc.low %vm647_vm9, %vm647_vm9  ;;  %v28963_v8 = vld [vmem:[%s31076_s9 + $0x868] sm:$0xff]   ;;  %vm653_vm8 = vcmp.lt.s32.totalorder %v412_v4, %v31134_v36 }
 0x157   : > { %26108 = vmatpush3.bf16.msra.mxu0 %v28891_v10  ;;  %vm31604_vm14 = vmpackc.low %vm644_vm11, %vm644_vm11 }
 0x158   : > { %26109 = vmatprep.subr.bf16.mxu0 %v28893_v12  ;;  %26130 = vmatpush3.bf16.msra.mxu1 %v28892_v11  ;;  %v28931_v11 = vld [vmem:[%s31076_s9 + $0x7e8] sm:$0xff]   ;;  %vm31728_vm9 = vmpackc.low %vm653_vm8, %vm653_vm8 }
 0x159   : > { %26131 = vmatprep.subr.bf16.mxu1 %v28894_v13  ;;  %v28932_v12 = vld [vmem:[%s31076_s9 + $0x728] sm:$0xff]  }
 0x15b   : > { %26110 = vmatpush3.bf16.msra.mxu0 %v28895_v14 }
 0x15c   : > { %26111 = vmatprep.subr.bf16.mxu0 %v28897_v16  ;;  %26132 = vmatpush3.bf16.msra.mxu1 %v28896_v15 }
 0x15d   : > { %26133 = vmatprep.subr.bf16.mxu1 %v28898_v17 }
 0x15f   : > { %26112 = vmatpush3.bf16.msra.mxu0 %v28899_v18 }
 0x160   : > { %26113 = vmatprep.subr.bf16.mxu0 %v28901_v20  ;;  %26134 = vmatpush3.bf16.msra.mxu1 %v28900_v19  ;;  %v28933_v19 = vld [vmem:[%s31076_s9 + $0x7a8] sm:$0xff]  }
 0x161   : > { %26135 = vmatprep.subr.bf16.mxu1 %v28902_v21 }
 0x163   : > { %26114 = vmatpush3.bf16.msra.mxu0 %v28903_v23 }
 0x164   : > { %26115 = vmatprep.subr.bf16.mxu0 %v28905_v27  ;;  %26136 = vmatpush3.bf16.msra.mxu1 %v28904_v25  ;;  %v405_v25 = vadd.s32 3840, %v31126_v29  ;;  %v28937_v27 = vld [vmem:[%s31076_s9 + $0x7b0] sm:$0xff]  }
 0x165   : > { %26137 = vmatprep.subr.bf16.mxu1 %v28906_v30  ;;  %v28938_v30 = vld [vmem:[%s31076_s9 + $0x778] sm:$0xff]  }
 0x166   : > { %vm646_vm13 = vcmp.lt.s32.totalorder %v405_v25, %v31134_v36  ;;  %v410_v25 = vadd.s32 4480, %v31126_v29 }
 0x167   : > { %26116 = vmatpush3.bf16.msra.mxu0 %v28907_v31  ;;  %v28939_v31 = vld [vmem:[%s31076_s9 + $0x7f8] sm:$0xff]   ;;  %vm31609_vm15 = vmpackc.low %vm646_vm13, %vm646_vm13 }
 0x168   : > { %26145 = vmatprep.subr.bf16.mxu0 %v28910_v39  ;;  %26138 = vmatpush3.bf16.msra.mxu1 %v28908_v32  ;;  %v1095_v39 = vcombine.high %v863_v35, %v863_v35  ;;  %v28972_v32 = vld [vmem:[%s31076_s9 + $0x8f8] sm:$0xff]   ;;  %vm651_vm2 = vcmp.lt.s32.totalorder %v410_v25, %v31134_v36  ;;  %v29000_v25 = vld [vmem:[%s31076_s9 + $0x970] sm:$0xff]  }
 0x169   : > { %26167 = vmatprep.subr.bf16.mxu1 %v28911_v44  ;;  %v28944_v44 = vld [vmem:[%s31076_s9 + $0x8c0] sm:$0xff]   ;;  %vm31671_vm5 = vmpackc.low %vm651_vm2, %vm651_vm2 }
 0x16a   : > { %25184 = vmatmul.mubr.msk.bf16.vlgmr.msra.gmra.mrb[24].mxu0 %vm31537_vm6, %v25183_v45  ;;  %v1109_v43 = vrot.slane %v1095_v39, %v31145_v47  ;;  %v25195_v45 = vpack.c.bf16 %v1102_v38, %v1102_v38  ;;  %v864_v35 = vld [vmem:[%s31094_s18 + $0x40] sm:$0xff] }
 0x16b   : > { %26146 = vmatpush3.bf16.msra.mxu0 %v28912_v46  ;;  %25190 = vmatmul.mubr.msk.bf16.vlgmr.msra.gmra.mrb[24].mxu1 %vm31542_vm7, %v25189_v51  ;;  %v28945_v46 = vld [vmem:[%s31076_s9 + $0x800] sm:$0xff]   ;;  %v1119_v37 = vrot.slane %v864_v35, %v31145_v47  ;;  %v1112_v38 = vcombine.high %v864_v35, %v864_v35  ;;  %v29007_v35 = vld [vmem:[%s31076_s9 + $0x9b8] sm:$0xff]  }
 0x16c   : > { %26147 = vmatprep.subr.bf16.mxu0 %v28914_v52  ;;  %26168 = vmatpush3.bf16.msra.mxu1 %v28913_v50  ;;  %v1111_v49 = vcombine.high %v1109_v43, %v1109_v43  ;;  %v28946_v50 = vld [vmem:[%s31076_s9 + $0x880] sm:$0xff]   ;;  %v25201_v51 = vpack.c.bf16 %v1109_v43, %v1109_v43  ;;  %v28947_v52 = vld [vmem:[%s31076_s9 + $0x848] sm:$0xff]  }
 0x16d   : > { %26169 = vmatprep.subr.bf16.mxu1 %v28915_v54  ;;  %25193 = vmatprep.mubr.msk.bf16.mxu0 %vm31589_vm10, %v25192_v48  ;;  %v28948_v54 = vld [vmem:[%s31076_s9 + $0x8c8] sm:$0xff]   ;;  %v1127_v42 = vcombine.high %v1119_v37, %v1119_v37  ;;  %v1126_v43 = vrot.slane %v1112_v38, %v31145_v47  ;;  %v28978_v48 = vld [vmem:[%s31076_s9 + $0x900] sm:$0xff]  }
 0x16e   : > { %v25198_v53 = vpack.c.bf16 %v1111_v49, %v1111_v49 }
 0x16f   : > { %26148 = vmatpush3.bf16.msra.mxu0 %v28916_v55  ;;  %v28949_v55 = vld [vmem:[%s31076_s9 + $0x808] sm:$0xff]   ;;  %v25204_v49 = vpack.c.bf16 %v1127_v42, %v1127_v42  ;;  %v29042_v42 = vld [vmem:[%s31076_s9 + $0xb40] sm:$0xff]  }
 0x170   : > { %26149 = vmatprep.subr.bf16.mxu0 %v28918_v57  ;;  %26170 = vmatpush3.bf16.msra.mxu1 %v28917_v56  ;;  %v28950_v56 = vld [vmem:[%s31076_s9 + $0x888] sm:$0xff]   ;;  %v28951_v57 = vld [vmem:[%s31076_s9 + $0x850] sm:$0xff]  }
 0x171   : > { %26171 = vmatprep.subr.bf16.mxu1 %v28919_v58  ;;  %25199 = vmatprep.mubr.msk.bf16.mxu1 %vm31596_vm12, %v25198_v53  ;;  %v28952_v58 = vld [vmem:[%s31076_s9 + $0x8d0] sm:$0xff]   ;;  %v28980_v53 = vld [vmem:[%s31076_s9 + $0x948] sm:$0xff]   ;;  %vm654_vm12 = vcmp.lt.s32.totalorder %v413_v28, %v31134_v36 }
 0x172   : > { %v29036_v28 = vld [vmem:[%s31076_s9 + $0xab0] sm:$0xff]  }
 0x173   : > { %26150 = vmatpush3.bf16.msra.mxu0 %v28920_v59  ;;  %v28953_v59 = vld [vmem:[%s31076_s9 + $0x810] sm:$0xff]  }
 0x174   : > { %26151 = vmatprep.subr.bf16.mxu0 %v28922_v61  ;;  %26172 = vmatpush3.bf16.msra.mxu1 %v28921_v60  ;;  %v28954_v60 = vld [vmem:[%s31076_s9 + $0x890] sm:$0xff]   ;;  %v28955_v61 = vld [vmem:[%s31076_s9 + $0x858] sm:$0xff]  }
 0x175   : > { %26173 = vmatprep.subr.bf16.mxu1 %v28923_v62  ;;  %v28956_v62 = vld [vmem:[%s31076_s9 + $0x8d8] sm:$0xff]  }
 0x177   : > { %26152 = vmatpush3.bf16.msra.mxu0 %v28924_v63  ;;  %v28957_v63 = vld [vmem:[%s31076_s9 + $0x818] sm:$0xff]  }
 0x178   : > { %26153 = vmatprep.subr.bf16.mxu0 %v28926_v1  ;;  %26174 = vmatpush3.bf16.msra.mxu1 %v28925_v0  ;;  %v28958_v0 = vld [vmem:[%s31076_s9 + $0x898] sm:$0xff]   ;;  %v28959_v1 = vld [vmem:[%s31076_s9 + $0x860] sm:$0xff]  }
 0x179   : > { %26175 = vmatprep.subr.bf16.mxu1 %v28927_v2  ;;  %v28960_v2 = vld [vmem:[%s31076_s9 + $0x8e0] sm:$0xff]  }
 0x17b   : > { %26154 = vmatpush3.bf16.msra.mxu0 %v28928_v3  ;;  %v28961_v3 = vld [vmem:[%s31076_s9 + $0x820] sm:$0xff]  }
 0x17c   : > { %26155 = vmatprep.subr.bf16.mxu0 %v28930_v7  ;;  %26176 = vmatpush3.bf16.msra.mxu1 %v28929_v5  ;;  %v28962_v5 = vld [vmem:[%s31076_s9 + $0x8a0] sm:$0xff]  }
 0x17d   : > { %v25853_v9 = vpop.f32.mrb[0].mxu0  ;;  %26177 = vmatprep.subr.bf16.mxu1 %v28931_v11 }
 0x17e   : > { %v25875_v10 = vpop.f32.mrb[0].mxu1  ;;  %v25854_v13 = vpop.f32.mrb[1].mxu0 }
 0x17f   : > { %v25876_v14 = vpop.f32.mrb[1].mxu1  ;;  %v25855_v15 = vadd.f32 %v25854_v13, %v25853_v9  ;;  %v25856_v17 = vpop.f32.mrb[2].mxu0  ;;  %26156 = vmatpush3.bf16.msra.mxu0 %v28932_v12  ;;  %v28964_v13 = vld [vmem:[%s31076_s9 + $0x8e8] sm:$0xff]  }
 0x180   : > { %v25877_v16 = vadd.f32 %v25876_v14, %v25875_v10  ;;  %v25878_v18 = vpop.f32.mrb[2].mxu1  ;;  %v25857_v20 = vpop.f32.mrb[3].mxu0  ;;  %26157 = vmatprep.subr.bf16.mxu0 %v28934_v22  ;;  %26178 = vmatpush3.bf16.msra.mxu1 %v28933_v19 }
 0x181   : > { %v25879_v21 = vpop.f32.mrb[3].mxu1  ;;  %26179 = vmatprep.subr.bf16.mxu1 %v28935_v24  ;;  %v28966_v18 = vld [vmem:[%s31076_s9 + $0x8a8] sm:$0xff]   ;;  %v28968_v24 = vld [vmem:[%s31076_s9 + $0x8f0] sm:$0xff]  }
 0x182   : > { %v31581_v23 = vadd.f32 %v25877_v16, %v25855_v15  ;;  %v28965_v16 = vld [vmem:[%s31076_s9 + $0x828] sm:$0xff]   ;;  %v28967_v21 = vld [vmem:[%s31076_s9 + $0x870] sm:$0xff]  }
 0x183   : > { %26158 = vmatpush3.bf16.msra.mxu0 %v28936_v26  ;;  %v28969_v26 = vld [vmem:[%s31076_s9 + $0x830] sm:$0xff]  }
 0x184   : > { %26159 = vmatprep.subr.bf16.mxu0 %v28938_v30  ;;  %26180 = vmatpush3.bf16.msra.mxu1 %v28937_v27  ;;  %v28970_v27 = vld [vmem:[%s31076_s9 + $0x8b0] sm:$0xff]   ;;  %v409_v30 = vadd.s32 4352, %v31126_v29 }
 0x185   : > { %26181 = vmatprep.subr.bf16.mxu1 %v28939_v31  ;;  %v28971_v31 = vld [vmem:[%s31076_s9 + $0x878] sm:$0xff]  }
 0x186   : > { %vm650_vm4 = vcmp.lt.s32.totalorder %v409_v30, %v31134_v36  ;;  %v29003_v30 = vld [vmem:[%s31076_s9 + $0x9b0] sm:$0xff]  }
 0x187   : > { %26160 = vmatpush3.bf16.msra.mxu0 %v28940_v33  ;;  %v28973_v33 = vld [vmem:[%s31076_s9 + $0x838] sm:$0xff]   ;;  %vm31681_vm7 = vmpackc.low %vm650_vm4, %vm650_vm4 }
 0x188   : > { %26189 = vmatprep.subr.bf16.mxu0 %v28943_v41  ;;  %26182 = vmatpush3.bf16.msra.mxu1 %v28941_v34  ;;  %v28974_v34 = vld [vmem:[%s31076_s9 + $0x8b8] sm:$0xff]   ;;  %v28976_v41 = vld [vmem:[%s31076_s9 + $0x940] sm:$0xff]  }
 0x189   : > { %26211 = vmatprep.subr.bf16.mxu1 %v28944_v44 }
 0x18a   : > { %25196 = vmatmul.mubr.msk.bf16.vlgmr.msra.gmra.mrb[28].mxu0 %vm31604_vm14, %v25195_v45  ;;  %v28977_v45 = vld [vmem:[%s31076_s9 + $0x9c0] sm:$0xff]  }
 0x18b   : > { %26190 = vmatpush3.bf16.msra.mxu0 %v28945_v46  ;;  %25202 = vmatmul.mubr.msk.bf16.vlgmr.msra.gmra.mrb[28].mxu1 %vm31609_vm15, %v25201_v51  ;;  %v25207_v46 = vpack.c.bf16 %v1119_v37, %v1119_v37  ;;  %v28979_v51 = vld [vmem:[%s31076_s9 + $0x980] sm:$0xff]   ;;  %vm31749_vm15 = vmpackc.low %vm654_vm12, %vm654_vm12 }
 0x18c   : > { %26191 = vmatprep.subr.bf16.mxu0 %v28947_v52  ;;  %26212 = vmatpush3.bf16.msra.mxu1 %v28946_v50  ;;  %v1128_v50 = vcombine.high %v1126_v43, %v1126_v43  ;;  %v25213_v52 = vpack.c.bf16 %v1126_v43, %v1126_v43  ;;  %v865_v37 = vld [vmem:[%s31094_s18 + $0x48] sm:$0xff] }
 0x18d   : > { %26213 = vmatprep.subr.bf16.mxu1 %v28948_v54  ;;  %25205 = vmatprep.mubr.msk.bf16.mxu0 %vm31657_vm1, %v25204_v49  ;;  %v1136_v39 = vrot.slane %v865_v37, %v31145_v47  ;;  %v1129_v40 = vcombine.high %v865_v37, %v865_v37  ;;  %v29009_v43 = vld [vmem:[%s31076_s9 + $0xa40] sm:$0xff]   ;;  %v866_v37 = vld [vmem:[%s31094_s18 + $0x50] sm:$0xff] }
 0x18e   : > { %v25210_v54 = vpack.c.bf16 %v1128_v50, %v1128_v50  ;;  %v29011_v49 = vld [vmem:[%s31076_s9 + $0xa00] sm:$0xff]   ;;  %v1153_v38 = vrot.slane %v866_v37, %v31145_v47 }
 0x18f   : > { %26192 = vmatpush3.bf16.msra.mxu0 %v28949_v55  ;;  %v28981_v55 = vld [vmem:[%s31076_s9 + $0x9c8] sm:$0xff]   ;;  %v1144_v44 = vcombine.high %v1136_v39, %v1136_v39 }
 0x190   : > { %26193 = vmatprep.subr.bf16.mxu0 %v28951_v57  ;;  %26214 = vmatpush3.bf16.msra.mxu1 %v28950_v56  ;;  %v28982_v56 = vld [vmem:[%s31076_s9 + $0x908] sm:$0xff]  }
 0x191   : > { %26215 = vmatprep.subr.bf16.mxu1 %v28952_v58  ;;  %25211 = vmatprep.mubr.msk.bf16.mxu1 %vm31671_vm5, %v25210_v54  ;;  %v28983_v57 = vld [vmem:[%s31076_s9 + $0x988] sm:$0xff]   ;;  %v28984_v58 = vld [vmem:[%s31076_s9 + $0x950] sm:$0xff]   ;;  %v25216_v50 = vpack.c.bf16 %v1144_v44, %v1144_v44 }
 0x192   : > { %v29013_v54 = vld [vmem:[%s31076_s9 + $0xa48] sm:$0xff]  }
 0x193   : > { %26194 = vmatpush3.bf16.msra.mxu0 %v28953_v59  ;;  %v28985_v59 = vld [vmem:[%s31076_s9 + $0x9d0] sm:$0xff]  }
 0x194   : > { %26195 = vmatprep.subr.bf16.mxu0 %v28955_v61  ;;  %26216 = vmatpush3.bf16.msra.mxu1 %v28954_v60  ;;  %v28986_v60 = vld [vmem:[%s31076_s9 + $0x910] sm:$0xff]  }
 0x195   : > { %26217 = vmatprep.subr.bf16.mxu1 %v28956_v62  ;;  %v28987_v61 = vld [vmem:[%s31076_s9 + $0x990] sm:$0xff]   ;;  %v28988_v62 = vld [vmem:[%s31076_s9 + $0x958] sm:$0xff]  }
 0x197   : > { %26196 = vmatpush3.bf16.msra.mxu0 %v28957_v63  ;;  %v28989_v63 = vld [vmem:[%s31076_s9 + $0x9d8] sm:$0xff]  }
 0x198   : > { %26197 = vmatprep.subr.bf16.mxu0 %v28959_v1  ;;  %26218 = vmatpush3.bf16.msra.mxu1 %v28958_v0  ;;  %v28990_v0 = vld [vmem:[%s31076_s9 + $0x918] sm:$0xff]  }
 0x199   : > { %26219 = vmatprep.subr.bf16.mxu1 %v28960_v2  ;;  %v28991_v1 = vld [vmem:[%s31076_s9 + $0x998] sm:$0xff]   ;;  %v28992_v2 = vld [vmem:[%s31076_s9 + $0x960] sm:$0xff]  }
 0x19b   : > { %26198 = vmatpush3.bf16.msra.mxu0 %v28961_v3  ;;  %v28993_v3 = vld [vmem:[%s31076_s9 + $0x9e0] sm:$0xff]  }
 0x19c   : > { %26199 = vmatprep.subr.bf16.mxu0 %v28963_v8  ;;  %26220 = vmatpush3.bf16.msra.mxu1 %v28962_v5  ;;  %v28994_v5 = vld [vmem:[%s31076_s9 + $0x920] sm:$0xff]  }
 0x19d   : > { %v25897_v6 = vpop.f32.mrb[4].mxu0  ;;  %26221 = vmatprep.subr.bf16.mxu1 %v28964_v13  ;;  %v28996_v13 = vld [vmem:[%s31076_s9 + $0x968] sm:$0xff]  }
 0x19e   : > { %v25919_v7 = vpop.f32.mrb[4].mxu1  ;;  %v25898_v9 = vpop.f32.mrb[5].mxu0 }
 0x19f   : > { %v25920_v10 = vpop.f32.mrb[5].mxu1  ;;  %v25899_v11 = vadd.f32 %v25898_v9, %v25897_v6  ;;  %v25900_v14 = vpop.f32.mrb[6].mxu0  ;;  %26200 = vmatpush3.bf16.msra.mxu0 %v28965_v16 }
 0x1a0   : > { %v25921_v12 = vadd.f32 %v25920_v10, %v25919_v7  ;;  %v25922_v15 = vpop.f32.mrb[6].mxu1  ;;  %v25901_v19 = vpop.f32.mrb[7].mxu0  ;;  %26201 = vmatprep.subr.bf16.mxu0 %v28967_v21  ;;  %26222 = vmatpush3.bf16.msra.mxu1 %v28966_v18  ;;  %v28995_v7 = vld [vmem:[%s31076_s9 + $0x9a0] sm:$0xff]   ;;  %v28998_v18 = vld [vmem:[%s31076_s9 + $0x928] sm:$0xff]  }
 0x1a1   : > { %v18192_v17 = vadd.f32 %v25899_v11, %v31581_v23  ;;  %v25923_v20 = vpop.f32.mrb[7].mxu1  ;;  %v407_v23 = vadd.s32 4096, %v31126_v29  ;;  %26223 = vmatprep.subr.bf16.mxu1 %v28968_v24  ;;  %v28997_v15 = vld [vmem:[%s31076_s9 + $0x9e8] sm:$0xff]  }
 0x1a2   : > { %v28999_v20 = vld [vmem:[%s31076_s9 + $0x9a8] sm:$0xff]  }
 0x1a3   : > { %v31650_v22 = vadd.f32 %v25921_v12, %v18192_v17  ;;  %vm648_vm3 = vcmp.lt.s32.totalorder %v407_v23, %v31134_v36  ;;  %26202 = vmatpush3.bf16.msra.mxu0 %v28969_v26  ;;  %v414_v26 = vadd.s32 4992, %v31126_v29  ;;  %v29001_v23 = vld [vmem:[%s31076_s9 + $0x9f0] sm:$0xff]  }
 0x1a4   : > { %26203 = vmatprep.subr.bf16.mxu0 %v28971_v31  ;;  %26224 = vmatpush3.bf16.msra.mxu1 %v28970_v27  ;;  %vm31675_vm6 = vmpackc.low %vm648_vm3, %vm648_vm3  ;;  %v29002_v27 = vld [vmem:[%s31076_s9 + $0x930] sm:$0xff]   ;;  %v29037_v31 = vld [vmem:[%s31076_s9 + $0xa78] sm:$0xff]  }
 0x1a5   : > { %26225 = vmatprep.subr.bf16.mxu1 %v28972_v32  ;;  %v29004_v32 = vld [vmem:[%s31076_s9 + $0x978] sm:$0xff]   ;;  %vm655_vm10 = vcmp.lt.s32.totalorder %v414_v26, %v31134_v36  ;;  %v29033_v26 = vld [vmem:[%s31076_s9 + $0xa70] sm:$0xff]  }
 0x1a6   : > { %vm31740_vm13 = vmpackc.low %vm655_vm10, %vm655_vm10 }
 0x1a7   : > { %26204 = vmatpush3.bf16.msra.mxu0 %v28973_v33  ;;  %v29005_v33 = vld [vmem:[%s31076_s9 + $0x9f8] sm:$0xff]  }
 0x1a8   : > { %26233 = vmatprep.subr.bf16.mxu0 %v28976_v41  ;;  %26226 = vmatpush3.bf16.msra.mxu1 %v28974_v34  ;;  %v29006_v34 = vld [vmem:[%s31076_s9 + $0x938] sm:$0xff]  }
 0x1a9   : > { %26255 = vmatprep.subr.bf16.mxu1 %v28977_v45  ;;  %v1143_v45 = vrot.slane %v1129_v40, %v31145_v47  ;;  %v1146_v40 = vcombine.high %v866_v37, %v866_v37  ;;  %v29073_v37 = vld [vmem:[%s31076_s9 + $0xbb8] sm:$0xff]  }
 0x1aa   : > { %25208 = vmatmul.mubr.msk.bf16.vlgmr.msra.gmra.mrb[32].mxu0 %vm31675_vm6, %v25207_v46  ;;  %v29010_v46 = vld [vmem:[%s31076_s9 + $0xac0] sm:$0xff]  }
 0x1ab   : > { %26234 = vmatpush3.bf16.msra.mxu0 %v28978_v48  ;;  %25214 = vmatmul.mubr.msk.bf16.vlgmr.msra.gmra.mrb[32].mxu1 %vm31681_vm7, %v25213_v52  ;;  %v25219_v48 = vpack.c.bf16 %v1136_v39, %v1136_v39  ;;  %v29012_v52 = vld [vmem:[%s31076_s9 + $0xa80] sm:$0xff]   ;;  %v1160_v44 = vrot.slane %v1146_v40, %v31145_v47 }
 0x1ac   : > { %26235 = vmatprep.subr.bf16.mxu0 %v28980_v53  ;;  %26256 = vmatpush3.bf16.msra.mxu1 %v28979_v51  ;;  %v1145_v51 = vcombine.high %v1143_v45, %v1143_v45  ;;  %v25225_v53 = vpack.c.bf16 %v1143_v45, %v1143_v45  ;;  %v868_v39 = vld [vmem:[%s31094_s18 + $0x60] sm:$0xff] }
 0x1ad   : > { %26257 = vmatprep.subr.bf16.mxu1 %v28981_v55  ;;  %25217 = vmatprep.mubr.msk.bf16.mxu0 %vm31728_vm9, %v25216_v50 }
 0x1ae   : > { %v25222_v55 = vpack.c.bf16 %v1145_v51, %v1145_v51  ;;  %v1162_v51 = vcombine.high %v1160_v44, %v1160_v44 }
 0x1af   : > { %26236 = vmatpush3.bf16.msra.mxu0 %v28982_v56  ;;  %v29014_v56 = vld [vmem:[%s31076_s9 + $0xac8] sm:$0xff]  }
 0x1b0   : > { %26237 = vmatprep.subr.bf16.mxu0 %v28984_v58  ;;  %26258 = vmatpush3.bf16.msra.mxu1 %v28983_v57  ;;  %v29015_v57 = vld [vmem:[%s31076_s9 + $0xa08] sm:$0xff]  }
 0x1b1   : > { %26259 = vmatprep.subr.bf16.mxu1 %v28985_v59  ;;  %25223 = vmatprep.mubr.msk.bf16.mxu1 %vm31740_vm13, %v25222_v55  ;;  %v29016_v58 = vld [vmem:[%s31076_s9 + $0xa88] sm:$0xff]   ;;  %v29017_v59 = vld [vmem:[%s31076_s9 + $0xa50] sm:$0xff]   ;;  %v25234_v55 = vpack.c.bf16 %v1162_v51, %v1162_v51  ;;  %v29077_v51 = vld [vmem:[%s31076_s9 + $0xc00] sm:$0xff]  }
 0x1b3   : > { %26238 = vmatpush3.bf16.msra.mxu0 %v28986_v60  ;;  %v29018_v60 = vld [vmem:[%s31076_s9 + $0xad0] sm:$0xff]  }
 0x1b4   : > { %26239 = vmatprep.subr.bf16.mxu0 %v28988_v62  ;;  %26260 = vmatpush3.bf16.msra.mxu1 %v28987_v61  ;;  %v29019_v61 = vld [vmem:[%s31076_s9 + $0xa10] sm:$0xff]  }
 0x1b5   : > { %26261 = vmatprep.subr.bf16.mxu1 %v28989_v63  ;;  %v29020_v62 = vld [vmem:[%s31076_s9 + $0xa90] sm:$0xff]   ;;  %v29021_v63 = vld [vmem:[%s31076_s9 + $0xa58] sm:$0xff]  }
 0x1b7   : > { %26240 = vmatpush3.bf16.msra.mxu0 %v28990_v0  ;;  %v29022_v0 = vld [vmem:[%s31076_s9 + $0xad8] sm:$0xff]  }
 0x1b8   : > { %26241 = vmatprep.subr.bf16.mxu0 %v28992_v2  ;;  %26262 = vmatpush3.bf16.msra.mxu1 %v28991_v1  ;;  %v29023_v1 = vld [vmem:[%s31076_s9 + $0xa18] sm:$0xff]  }
 0x1b9   : > { %26263 = vmatprep.subr.bf16.mxu1 %v28993_v3  ;;  %v29024_v2 = vld [vmem:[%s31076_s9 + $0xa98] sm:$0xff]   ;;  %v29025_v3 = vld [vmem:[%s31076_s9 + $0xa60] sm:$0xff]  }
 0x1bb   : > { %26242 = vmatpush3.bf16.msra.mxu0 %v28994_v5  ;;  %v29026_v5 = vld [vmem:[%s31076_s9 + $0xae0] sm:$0xff]  }
 0x1bc   : > { %26243 = vmatprep.subr.bf16.mxu0 %v28996_v13  ;;  %26264 = vmatpush3.bf16.msra.mxu1 %v28995_v7  ;;  %v29027_v7 = vld [vmem:[%s31076_s9 + $0xa20] sm:$0xff]   ;;  %v29029_v13 = vld [vmem:[%s31076_s9 + $0xa68] sm:$0xff]  }
 0x1bd   : > { %v25941_v6 = vpop.f32.mrb[8].mxu0  ;;  %26265 = vmatprep.subr.bf16.mxu1 %v28997_v15 }
 0x1be   : > { %v25963_v8 = vpop.f32.mrb[8].mxu1  ;;  %v25942_v9 = vpop.f32.mrb[9].mxu0 }
 0x1bf   : > { %v25964_v10 = vpop.f32.mrb[9].mxu1  ;;  %v25943_v11 = vadd.f32 %v25942_v9, %v25941_v6  ;;  %v25944_v14 = vpop.f32.mrb[10].mxu0  ;;  %26244 = vmatpush3.bf16.msra.mxu0 %v28998_v18  ;;  %v29028_v9 = vld [vmem:[%s31076_s9 + $0xaa0] sm:$0xff]   ;;  %v29031_v18 = vld [vmem:[%s31076_s9 + $0xa28] sm:$0xff]  }
 0x1c0   : > { %v25965_v12 = vadd.f32 %v25964_v10, %v25963_v8  ;;  %v25966_v16 = vpop.f32.mrb[10].mxu1  ;;  %v25945_v19 = vpop.f32.mrb[11].mxu0  ;;  %26245 = vmatprep.subr.bf16.mxu0 %v29000_v25  ;;  %26266 = vmatpush3.bf16.msra.mxu1 %v28999_v20 }
 0x1c1   : > { %v18272_v17 = vadd.f32 %v25943_v11, %v31650_v22  ;;  %v25967_v21 = vpop.f32.mrb[11].mxu1  ;;  %v411_v22 = vadd.s32 4608, %v31126_v29  ;;  %26267 = vmatprep.subr.bf16.mxu1 %v29001_v23  ;;  %v29030_v16 = vld [vmem:[%s31076_s9 + $0xae8] sm:$0xff]   ;;  %v29034_v23 = vld [vmem:[%s31076_s9 + $0xaf0] sm:$0xff]  }
 0x1c2   : > { %v29032_v21 = vld [vmem:[%s31076_s9 + $0xaa8] sm:$0xff]  }
 0x1c3   : > { %v31718_v24 = vadd.f32 %v25965_v12, %v18272_v17  ;;  %vm652_vm11 = vcmp.lt.s32.totalorder %v411_v22, %v31134_v36  ;;  %26246 = vmatpush3.bf16.msra.mxu0 %v29002_v27  ;;  %v29035_v22 = vld [vmem:[%s31076_s9 + $0xa30] sm:$0xff]   ;;  %v418_v27 = vadd.s32 5504, %v31126_v29 }
 0x1c4   : > { %26247 = vmatprep.subr.bf16.mxu0 %v29004_v32  ;;  %26268 = vmatpush3.bf16.msra.mxu1 %v29003_v30  ;;  %vm31745_vm14 = vmpackc.low %vm652_vm11, %vm652_vm11  ;;  %v415_v30 = vadd.s32 5120, %v31126_v29  ;;  %v417_v32 = vadd.s32 5376, %v31126_v29 }
 0x1c5   : > { %26269 = vmatprep.subr.bf16.mxu1 %v29005_v33  ;;  %v29038_v33 = vld [vmem:[%s31076_s9 + $0xaf8] sm:$0xff]   ;;  %vm659_vm1 = vcmp.lt.s32.totalorder %v418_v27, %v31134_v36  ;;  %v422_v27 = vadd.s32 6016, %v31126_v29 }
 0x1c6   : > { %vm656_vm2 = vcmp.lt.s32.totalorder %v415_v30, %v31134_v36  ;;  %vm658_vm4 = vcmp.lt.s32.totalorder %v417_v32, %v31134_v36  ;;  %vm31811_vm5 = vmpackc.low %vm659_vm1, %vm659_vm1  ;;  %v419_v30 = vadd.s32 5632, %v31126_v29  ;;  %v421_v32 = vadd.s32 5888, %v31126_v29 }
 0x1c7   : > { %26248 = vmatpush3.bf16.msra.mxu0 %v29006_v34  ;;  %v29039_v34 = vld [vmem:[%s31076_s9 + $0xa38] sm:$0xff]   ;;  %vm31817_vm6 = vmpackc.low %vm656_vm2, %vm656_vm2  ;;  %vm663_vm9 = vcmp.lt.s32.totalorder %v422_v27, %v31134_v36  ;;  %v424_v27 = vadd.s32 6272, %v31126_v29 }
 0x1c8   : > { %26277 = vmatprep.subr.bf16.mxu0 %v29009_v43  ;;  %26270 = vmatpush3.bf16.msra.mxu1 %v29007_v35  ;;  %v29040_v35 = vld [vmem:[%s31076_s9 + $0xab8] sm:$0xff]   ;;  %v1161_v43 = vcombine.high %v1153_v38, %v1153_v38  ;;  %vm31822_vm7 = vmpackc.low %vm658_vm4, %vm658_vm4  ;;  %vm660_vm10 = vcmp.lt.s32.totalorder %v419_v30, %v31134_v36  ;;  %vm662_vm12 = vcmp.lt.s32.totalorder %v421_v32, %v31134_v36  ;;  %v426_v30 = vadd.s32 6528, %v31126_v29 }
 0x1c9   : > { %26299 = vmatprep.subr.bf16.mxu1 %v29010_v46  ;;  %v29043_v46 = vld [vmem:[%s31076_s9 + $0xbc0] sm:$0xff]   ;;  %vm31881_vm13 = vmpackc.low %vm663_vm9, %vm663_vm9  ;;  %v423_v32 = vadd.s32 6144, %v31126_v29 }
 0x1ca   : > { %25220 = vmatmul.mubr.msk.bf16.vlgmr.msra.gmra.mrb[36].mxu0 %vm31745_vm14, %v25219_v48  ;;  %v25231_v48 = vpack.c.bf16 %v1153_v38, %v1153_v38  ;;  %v25228_v50 = vpack.c.bf16 %v1161_v43, %v1161_v43  ;;  %v867_v38 = vld [vmem:[%s31094_s18 + $0x58] sm:$0xff]  ;;  %vm31885_vm14 = vmpackc.low %vm660_vm10, %vm660_vm10  ;;  %vm667_vm1 = vcmp.lt.s32.totalorder %v426_v30, %v31134_v36 }
 0x1cb   : > { %26278 = vmatpush3.bf16.msra.mxu0 %v29011_v49  ;;  %25226 = vmatmul.mubr.msk.bf16.vlgmr.msra.gmra.mrb[36].mxu1 %vm31749_vm15, %v25225_v53  ;;  %v25237_v53 = vpack.c.bf16 %v1160_v44, %v1160_v44  ;;  %v1170_v40 = vrot.slane %v867_v38, %v31145_v47  ;;  %v1163_v41 = vcombine.high %v867_v38, %v867_v38  ;;  %v29075_v44 = vld [vmem:[%s31076_s9 + $0xc40] sm:$0xff]   ;;  %vm31891_vm15 = vmpackc.low %vm662_vm12, %vm662_vm12  ;;  %v29106_v38 = vld [vmem:[%s31076_s9 + $0xcb8] sm:$0xff]  }
 0x1cc   : > { %26279 = vmatprep.subr.bf16.mxu0 %v29013_v54  ;;  %26300 = vmatpush3.bf16.msra.mxu1 %v29012_v52  ;;  %v29044_v52 = vld [vmem:[%s31076_s9 + $0xb00] sm:$0xff]   ;;  %vm664_vm2 = vcmp.lt.s32.totalorder %v423_v32, %v31134_v36  ;;  %v29134_v30 = vld [vmem:[%s31076_s9 + $0xd30] sm:$0xff]  }
 0x1cd   : > { %26301 = vmatprep.subr.bf16.mxu1 %v29014_v56  ;;  %v29045_v54 = vld [vmem:[%s31076_s9 + $0xb80] sm:$0xff]   ;;  %v29046_v56 = vld [vmem:[%s31076_s9 + $0xb48] sm:$0xff]   ;;  %25235 = vmatprep.mubr.msk.bf16.mxu1 %vm31811_vm5, %v25234_v55  ;;  %v1178_v45 = vcombine.high %v1170_v40, %v1170_v40  ;;  %vm31951_vm5 = vmpackc.low %vm667_vm1, %vm667_vm1 }
 0x1ce   : > { %v29076_v49 = vld [vmem:[%s31076_s9 + $0xcc0] sm:$0xff]   ;;  %v29135_v32 = vld [vmem:[%s31076_s9 + $0xdb0] sm:$0xff]  }
 0x1cf   : > { %26280 = vmatpush3.bf16.msra.mxu0 %v29015_v57  ;;  %v29047_v57 = vld [vmem:[%s31076_s9 + $0xbc8] sm:$0xff]  }
 0x1d0   : > { %26281 = vmatprep.subr.bf16.mxu0 %v29017_v59  ;;  %26302 = vmatpush3.bf16.msra.mxu1 %v29016_v58  ;;  %v29048_v58 = vld [vmem:[%s31076_s9 + $0xb08] sm:$0xff]  }
 0x1d1   : > { %26303 = vmatprep.subr.bf16.mxu1 %v29018_v60  ;;  %v29049_v59 = vld [vmem:[%s31076_s9 + $0xb88] sm:$0xff]   ;;  %v29050_v60 = vld [vmem:[%s31076_s9 + $0xb50] sm:$0xff]  }
 0x1d3   : > { %26282 = vmatpush3.bf16.msra.mxu0 %v29019_v61  ;;  %v29051_v61 = vld [vmem:[%s31076_s9 + $0xbd0] sm:$0xff]  }
 0x1d4   : > { %26283 = vmatprep.subr.bf16.mxu0 %v29021_v63  ;;  %26304 = vmatpush3.bf16.msra.mxu1 %v29020_v62  ;;  %v29052_v62 = vld [vmem:[%s31076_s9 + $0xb10] sm:$0xff]  }
 0x1d5   : > { %26305 = vmatprep.subr.bf16.mxu1 %v29022_v0  ;;  %v29053_v63 = vld [vmem:[%s31076_s9 + $0xb90] sm:$0xff]   ;;  %v29054_v0 = vld [vmem:[%s31076_s9 + $0xb58] sm:$0xff]  }
 0x1d7   : > { %26284 = vmatpush3.bf16.msra.mxu0 %v29023_v1  ;;  %v29055_v1 = vld [vmem:[%s31076_s9 + $0xbd8] sm:$0xff]  }
 0x1d8   : > { %26285 = vmatprep.subr.bf16.mxu0 %v29025_v3  ;;  %26306 = vmatpush3.bf16.msra.mxu1 %v29024_v2  ;;  %v29056_v2 = vld [vmem:[%s31076_s9 + $0xb18] sm:$0xff]  }
 0x1d9   : > { %26307 = vmatprep.subr.bf16.mxu1 %v29026_v5 }
 0x1db   : > { %26286 = vmatpush3.bf16.msra.mxu0 %v29027_v7 }
 0x1dc   : > { %26287 = vmatprep.subr.bf16.mxu0 %v29029_v13  ;;  %26308 = vmatpush3.bf16.msra.mxu1 %v29028_v9  ;;  %v29059_v9 = vld [vmem:[%s31076_s9 + $0xbe0] sm:$0xff]  }
 0x1dd   : > { %v25985_v4 = vpop.f32.mrb[12].mxu0  ;;  %26309 = vmatprep.subr.bf16.mxu1 %v29030_v16 }
 0x1de   : > { %v26007_v6 = vpop.f32.mrb[12].mxu1  ;;  %v25986_v8 = vpop.f32.mrb[13].mxu0 }
 0x1df   : > { %v25987_v10 = vadd.f32 %v25986_v8, %v25985_v4  ;;  %v26008_v11 = vpop.f32.mrb[13].mxu1  ;;  %v25988_v14 = vpop.f32.mrb[14].mxu0  ;;  %26288 = vmatpush3.bf16.msra.mxu0 %v29031_v18  ;;  %v29057_v4 = vld [vmem:[%s31076_s9 + $0xb98] sm:$0xff]   ;;  %v29062_v18 = vld [vmem:[%s31076_s9 + $0xb68] sm:$0xff]  }
 0x1e0   : > { %v26009_v12 = vadd.f32 %v26008_v11, %v26007_v6  ;;  %v26010_v17 = vpop.f32.mrb[14].mxu1  ;;  %v25989_v19 = vpop.f32.mrb[15].mxu0  ;;  %26289 = vmatprep.subr.bf16.mxu0 %v29033_v26  ;;  %26310 = vmatpush3.bf16.msra.mxu1 %v29032_v21  ;;  %v29058_v6 = vld [vmem:[%s31076_s9 + $0xb60] sm:$0xff]   ;;  %v29063_v21 = vld [vmem:[%s31076_s9 + $0xbe8] sm:$0xff]  }
 0x1e1   : > { %v18352_v15 = vadd.f32 %v25987_v10, %v31718_v24  ;;  %v26011_v25 = vpop.f32.mrb[15].mxu1  ;;  %v416_v24 = vadd.s32 5248, %v31126_v29  ;;  %26311 = vmatprep.subr.bf16.mxu1 %v29034_v23  ;;  %v29060_v11 = vld [vmem:[%s31076_s9 + $0xb20] sm:$0xff]   ;;  %v29065_v26 = vld [vmem:[%s31076_s9 + $0xba8] sm:$0xff]   ;;  %v29066_v23 = vld [vmem:[%s31076_s9 + $0xb70] sm:$0xff]  }
 0x1e3   : > { %v31786_v20 = vadd.f32 %v26009_v12, %v18352_v15  ;;  %vm657_vm0 = vcmp.lt.s32.totalorder %v416_v24, %v31134_v36  ;;  %26290 = vmatpush3.bf16.msra.mxu0 %v29035_v22  ;;  %v29061_v15 = vld [vmem:[%s31076_s9 + $0xba0] sm:$0xff]   ;;  %v420_v24 = vadd.s32 5760, %v31126_v29  ;;  %v29067_v22 = vld [vmem:[%s31076_s9 + $0xbf0] sm:$0xff]  }
 0x1e4   : > { %26291 = vmatprep.subr.bf16.mxu0 %v29037_v31  ;;  %vm31806_vm3 = vmpackc.low %vm657_vm0, %vm657_vm0  ;;  %26312 = vmatpush3.bf16.msra.mxu1 %v29036_v28  ;;  %v29068_v28 = vld [vmem:[%s31076_s9 + $0xb30] sm:$0xff]   ;;  %vm665_vm0 = vcmp.lt.s32.totalorder %v424_v27, %v31134_v36 }
 0x1e5   : > { %26313 = vmatprep.subr.bf16.mxu1 %v29038_v33  ;;  %25229 = vmatprep.mubr.msk.bf16.mxu0 %vm31806_vm3, %v25228_v50  ;;  %v29069_v31 = vld [vmem:[%s31076_s9 + $0xbb0] sm:$0xff]   ;;  %v29070_v33 = vld [vmem:[%s31076_s9 + $0xb78] sm:$0xff]   ;;  %vm661_vm8 = vcmp.lt.s32.totalorder %v420_v24, %v31134_v36  ;;  %v25243_v50 = vpack.c.bf16 %v1170_v40, %v1170_v40  ;;  %vm31945_vm3 = vmpackc.low %vm665_vm0, %vm665_vm0 }
 0x1e6   : > { %vm31875_vm11 = vmpackc.low %vm661_vm8, %vm661_vm8  ;;  %v29099_v24 = vld [vmem:[%s31076_s9 + $0xc70] sm:$0xff]   ;;  %v869_v40 = vld [vmem:[%s31094_s18 + $0x68] sm:$0xff] }
 0x1e7   : > { %26292 = vmatpush3.bf16.msra.mxu0 %v29039_v34  ;;  %v29071_v34 = vld [vmem:[%s31076_s9 + $0xbf8] sm:$0xff]   ;;  %v29133_v27 = vld [vmem:[%s31076_s9 + $0xdf0] sm:$0xff]   ;;  %v1197_v43 = vcombine.high %v869_v40, %v869_v40 }
 0x1e8   : > { %26321 = vmatprep.subr.bf16.mxu0 %v29042_v42  ;;  %26314 = vmatpush3.bf16.msra.mxu1 %v29040_v35  ;;  %v29072_v35 = vld [vmem:[%s31076_s9 + $0xb38] sm:$0xff]   ;;  %v1180_v42 = vcombine.high %v868_v39, %v868_v39 }
 0x1e9   : > { %26343 = vmatprep.subr.bf16.mxu1 %v29043_v46  ;;  %v1177_v46 = vrot.slane %v1163_v41, %v31145_v47  ;;  %v1187_v41 = vrot.slane %v868_v39, %v31145_v47  ;;  %v29139_v39 = vld [vmem:[%s31076_s9 + $0xdb8] sm:$0xff]  }
 0x1ea   : > { %25232 = vmatmul.mubr.msk.bf16.vlgmr.msra.gmra.mrb[40].mxu0 %vm31817_vm6, %v25231_v48  ;;  %vm31956_vm6 = vmpackc.low %vm664_vm2, %vm664_vm2  ;;  %v1194_v48 = vrot.slane %v1180_v42, %v31145_v47  ;;  %v871_v42 = vld [vmem:[%s31094_s18 + $0x78] sm:$0xff] }
 0x1eb   : > { %26322 = vmatpush3.bf16.msra.mxu0 %v29044_v52  ;;  %25238 = vmatmul.mubr.msk.bf16.vlgmr.msra.gmra.mrb[40].mxu1 %vm31822_vm7, %v25237_v53  ;;  %v25240_v52 = vpack.c.bf16 %v1178_v45, %v1178_v45  ;;  %v1179_v53 = vcombine.high %v1177_v46, %v1177_v46  ;;  %v25249_v55 = vpack.c.bf16 %v1177_v46, %v1177_v46  ;;  %v29141_v45 = vld [vmem:[%s31076_s9 + $0xe40] sm:$0xff]  }
 0x1ec   : > { %26323 = vmatprep.subr.bf16.mxu0 %v29046_v56  ;;  %26344 = vmatpush3.bf16.msra.mxu1 %v29045_v54  ;;  %v29078_v54 = vld [vmem:[%s31076_s9 + $0xc80] sm:$0xff]   ;;  %v29079_v56 = vld [vmem:[%s31076_s9 + $0xc48] sm:$0xff]   ;;  %v1195_v46 = vcombine.high %v1187_v41, %v1187_v41 }
 0x1ed   : > { %26345 = vmatprep.subr.bf16.mxu1 %v29047_v57  ;;  %25241 = vmatprep.mubr.msk.bf16.mxu0 %vm31875_vm11, %v25240_v52  ;;  %v25246_v57 = vpack.c.bf16 %v1179_v53, %v1179_v53  ;;  %v29110_v52 = vld [vmem:[%s31076_s9 + $0xd00] sm:$0xff]  }
 0x1ee   : > { %v25252_v53 = vpack.c.bf16 %v1195_v46, %v1195_v46 }
 0x1ef   : > { %26324 = vmatpush3.bf16.msra.mxu0 %v29048_v58  ;;  %v29080_v58 = vld [vmem:[%s31076_s9 + $0xcc8] sm:$0xff]   ;;  %25247 = vmatprep.mubr.msk.bf16.mxu1 %vm31881_vm13, %v25246_v57 }
 0x1f0   : > { %26325 = vmatprep.subr.bf16.mxu0 %v29050_v60  ;;  %26346 = vmatpush3.bf16.msra.mxu1 %v29049_v59  ;;  %v29081_v59 = vld [vmem:[%s31076_s9 + $0xc08] sm:$0xff]  }
 0x1f1   : > { %26347 = vmatprep.subr.bf16.mxu1 %v29051_v61  ;;  %v29082_v60 = vld [vmem:[%s31076_s9 + $0xc88] sm:$0xff]   ;;  %v29083_v61 = vld [vmem:[%s31076_s9 + $0xc50] sm:$0xff]  }
 0x1f2   : > { %v29112_v57 = vld [vmem:[%s31076_s9 + $0xd48] sm:$0xff]  }
 0x1f3   : > { %26326 = vmatpush3.bf16.msra.mxu0 %v29052_v62  ;;  %v29084_v62 = vld [vmem:[%s31076_s9 + $0xcd0] sm:$0xff]  }
 0x1f4   : > { %26327 = vmatprep.subr.bf16.mxu0 %v29054_v0  ;;  %26348 = vmatpush3.bf16.msra.mxu1 %v29053_v63  ;;  %v29085_v63 = vld [vmem:[%s31076_s9 + $0xc10] sm:$0xff]  }
 0x1f5   : > { %26349 = vmatprep.subr.bf16.mxu1 %v29055_v1  ;;  %v29086_v0 = vld [vmem:[%s31076_s9 + $0xc90] sm:$0xff]   ;;  %v29087_v1 = vld [vmem:[%s31076_s9 + $0xc58] sm:$0xff]  }
 0x1f7   : > { %26328 = vmatpush3.bf16.msra.mxu0 %v29056_v2  ;;  %v29088_v2 = vld [vmem:[%s31076_s9 + $0xcd8] sm:$0xff]  }
 0x1f8   : > { %26329 = vmatprep.subr.bf16.mxu0 %v29058_v6  ;;  %26350 = vmatpush3.bf16.msra.mxu1 %v29057_v4  ;;  %v29090_v4 = vld [vmem:[%s31076_s9 + $0xc98] sm:$0xff]   ;;  %v29091_v6 = vld [vmem:[%s31076_s9 + $0xc60] sm:$0xff]  }
 0x1f9   : > { %26351 = vmatprep.subr.bf16.mxu1 %v29059_v9 }
 0x1fb   : > { %26330 = vmatpush3.bf16.msra.mxu0 %v29060_v11  ;;  %v29093_v11 = vld [vmem:[%s31076_s9 + $0xc20] sm:$0xff]  }
 0x1fc   : > { %26331 = vmatprep.subr.bf16.mxu0 %v29062_v18  ;;  %26352 = vmatpush3.bf16.msra.mxu1 %v29061_v15  ;;  %v29095_v18 = vld [vmem:[%s31076_s9 + $0xc68] sm:$0xff]  }
 0x1fd   : > { %v26029_v3 = vpop.f32.mrb[16].mxu0  ;;  %26353 = vmatprep.subr.bf16.mxu1 %v29063_v21 }
 0x1fe   : > { %v26030_v5 = vpop.f32.mrb[17].mxu0  ;;  %v26051_v7 = vpop.f32.mrb[16].mxu1 }
 0x1ff   : > { %v26031_v8 = vadd.f32 %v26030_v5, %v26029_v3  ;;  %v26052_v10 = vpop.f32.mrb[17].mxu1  ;;  %v26032_v14 = vpop.f32.mrb[18].mxu0  ;;  %v29089_v3 = vld [vmem:[%s31076_s9 + $0xc18] sm:$0xff]  }
 0x200   : > { %v26053_v13 = vadd.f32 %v26052_v10, %v26051_v7  ;;  %v26054_v16 = vpop.f32.mrb[18].mxu1  ;;  %v26033_v19 = vpop.f32.mrb[19].mxu0  ;;  %26354 = vmatpush3.bf16.msra.mxu1 %v29065_v26  ;;  %v29097_v26 = vld [vmem:[%s31076_s9 + $0xc28] sm:$0xff]  }
 0x201   : > { %v18432_v12 = vadd.f32 %v26031_v8, %v31786_v20  ;;  %v26055_v25 = vpop.f32.mrb[19].mxu1  ;;  %v29064_v20 = vld [vmem:[%s31076_s9 + $0xb28] sm:$0xff]   ;;  %26355 = vmatprep.subr.bf16.mxu1 %v29067_v22  ;;  %v29092_v8 = vld [vmem:[%s31076_s9 + $0xce0] sm:$0xff]   ;;  %v29100_v22 = vld [vmem:[%s31076_s9 + $0xcf0] sm:$0xff]  }
 0x202   : > { %26332 = vmatpush3.bf16.msra.mxu0 %v29064_v20  ;;  %v29096_v25 = vld [vmem:[%s31076_s9 + $0xce8] sm:$0xff]  }
 0x203   : > { %v31853_v17 = vadd.f32 %v26053_v13, %v18432_v12  ;;  %26333 = vmatprep.subr.bf16.mxu0 %v29066_v23  ;;  %v29094_v13 = vld [vmem:[%s31076_s9 + $0xca0] sm:$0xff]  }
 0x204   : > { %26356 = vmatpush3.bf16.msra.mxu1 %v29069_v31  ;;  %v29102_v31 = vld [vmem:[%s31076_s9 + $0xcb0] sm:$0xff]  }
 0x205   : > { %26357 = vmatprep.subr.bf16.mxu1 %v29071_v34  ;;  %v425_v34 = vadd.s32 6400, %v31126_v29 }
 0x206   : > { %26334 = vmatpush3.bf16.msra.mxu0 %v29068_v28  ;;  %v29101_v28 = vld [vmem:[%s31076_s9 + $0xc30] sm:$0xff]  }
 0x207   : > { %26335 = vmatprep.subr.bf16.mxu0 %v29070_v33  ;;  %v29103_v33 = vld [vmem:[%s31076_s9 + $0xc78] sm:$0xff]   ;;  %vm666_vm4 = vcmp.lt.s32.totalorder %v425_v34, %v31134_v36 }
 0x208   : > { %26358 = vmatpush3.bf16.msra.mxu1 %v29073_v37  ;;  %v29105_v37 = vld [vmem:[%s31076_s9 + $0xc38] sm:$0xff]   ;;  %vm31961_vm7 = vmpackc.low %vm666_vm4, %vm666_vm4 }
 0x209   : > { %26387 = vmatprep.subr.bf16.mxu1 %v29076_v49  ;;  %v29136_v34 = vld [vmem:[%s31076_s9 + $0xd78] sm:$0xff]  }
 0x20a   : > { %26336 = vmatpush3.bf16.msra.mxu0 %v29072_v35  ;;  %v29104_v35 = vld [vmem:[%s31076_s9 + $0xcf8] sm:$0xff]  }
 0x20b   : > { %26365 = vmatprep.subr.bf16.mxu0 %v29075_v44  ;;  %25250 = vmatmul.mubr.msk.bf16.vlgmr.msra.gmra.mrb[44].mxu1 %vm31891_vm15, %v25249_v55  ;;  %v29108_v44 = vld [vmem:[%s31076_s9 + $0xd40] sm:$0xff]  }
 0x20c   : > { %26388 = vmatpush3.bf16.msra.mxu1 %v29078_v54  ;;  %v1196_v54 = vcombine.high %v1194_v48, %v1194_v48  ;;  %v29111_v55 = vld [vmem:[%s31076_s9 + $0xd80] sm:$0xff]  }
 0x20d   : > { %25244 = vmatmul.mubr.msk.bf16.vlgmr.msra.gmra.mrb[44].mxu0 %vm31885_vm14, %v25243_v50  ;;  %26389 = vmatprep.subr.bf16.mxu1 %v29080_v58  ;;  %v29109_v50 = vld [vmem:[%s31076_s9 + $0xdc0] sm:$0xff]  }
 0x20e   : > { %26366 = vmatpush3.bf16.msra.mxu0 %v29077_v51  ;;  %v25255_v51 = vpack.c.bf16 %v1187_v41, %v1187_v41  ;;  %25253 = vmatprep.mubr.msk.bf16.mxu0 %vm31945_vm3, %v25252_v53  ;;  %v25258_v58 = vpack.c.bf16 %v1196_v54, %v1196_v54  ;;  %v1204_v41 = vrot.slane %v869_v40, %v31145_v47  ;;  %v29172_v40 = vld [vmem:[%s31076_s9 + $0xeb8] sm:$0xff]  }
 0x20f   : > { %26367 = vmatprep.subr.bf16.mxu0 %v29079_v56  ;;  %v25261_v56 = vpack.c.bf16 %v1194_v48, %v1194_v48  ;;  %v1211_v48 = vrot.slane %v1197_v43, %v31145_v47 }
 0x210   : > { %26390 = vmatpush3.bf16.msra.mxu1 %v29082_v60  ;;  %v29114_v60 = vld [vmem:[%s31076_s9 + $0xd08] sm:$0xff]   ;;  %25259 = vmatprep.mubr.msk.bf16.mxu1 %vm31951_vm5, %v25258_v58  ;;  %v1212_v46 = vcombine.high %v1204_v41, %v1204_v41 }
 0x211   : > { %26391 = vmatprep.subr.bf16.mxu1 %v29084_v62  ;;  %v29116_v62 = vld [vmem:[%s31076_s9 + $0xd50] sm:$0xff]   ;;  %v1213_v54 = vcombine.high %v1211_v48, %v1211_v48 }
 0x212   : > { %26368 = vmatpush3.bf16.msra.mxu0 %v29081_v59  ;;  %v29113_v59 = vld [vmem:[%s31076_s9 + $0xdc8] sm:$0xff]   ;;  %v25264_v53 = vpack.c.bf16 %v1212_v46, %v1212_v46 }
 0x213   : > { %26369 = vmatprep.subr.bf16.mxu0 %v29083_v61  ;;  %v29115_v61 = vld [vmem:[%s31076_s9 + $0xd88] sm:$0xff]   ;;  %v25270_v58 = vpack.c.bf16 %v1213_v54, %v1213_v54  ;;  %v29176_v54 = vld [vmem:[%s31076_s9 + $0xf00] sm:$0xff]  }
 0x214   : > { %26392 = vmatpush3.bf16.msra.mxu1 %v29086_v0  ;;  %v29118_v0 = vld [vmem:[%s31076_s9 + $0xd10] sm:$0xff]  }
 0x215   : > { %26393 = vmatprep.subr.bf16.mxu1 %v29088_v2  ;;  %v29120_v2 = vld [vmem:[%s31076_s9 + $0xd58] sm:$0xff]  }
 0x216   : > { %26370 = vmatpush3.bf16.msra.mxu0 %v29085_v63  ;;  %v29117_v63 = vld [vmem:[%s31076_s9 + $0xdd0] sm:$0xff]  }
 0x217   : > { %26371 = vmatprep.subr.bf16.mxu0 %v29087_v1  ;;  %v29119_v1 = vld [vmem:[%s31076_s9 + $0xd90] sm:$0xff]  }
 0x218   : > { %26394 = vmatpush3.bf16.msra.mxu1 %v29090_v4  ;;  %v29122_v4 = vld [vmem:[%s31076_s9 + $0xd18] sm:$0xff]  }
 0x219   : > { %26395 = vmatprep.subr.bf16.mxu1 %v29092_v8 }
 0x21a   : > { %26372 = vmatpush3.bf16.msra.mxu0 %v29089_v3  ;;  %v29121_v3 = vld [vmem:[%s31076_s9 + $0xdd8] sm:$0xff]  }
 0x21b   : > { %26373 = vmatprep.subr.bf16.mxu0 %v29091_v6 }
 0x21c   : > { %26396 = vmatpush3.bf16.msra.mxu1 %v29094_v13 }
 0x21d   : > { %v26073_v5 = vpop.f32.mrb[20].mxu0  ;;  %26397 = vmatprep.subr.bf16.mxu1 %v29096_v25 }
 0x21e   : > { %v26074_v7 = vpop.f32.mrb[21].mxu0  ;;  %v26095_v9 = vpop.f32.mrb[20].mxu1  ;;  %26374 = vmatpush3.bf16.msra.mxu0 %v29093_v11 }
 0x21f   : > { %v26075_v10 = vadd.f32 %v26074_v7, %v26073_v5  ;;  %v26096_v12 = vpop.f32.mrb[21].mxu1  ;;  %v26076_v16 = vpop.f32.mrb[22].mxu0  ;;  %26375 = vmatprep.subr.bf16.mxu0 %v29095_v18  ;;  %v29123_v5 = vld [vmem:[%s31076_s9 + $0xd98] sm:$0xff]   ;;  %v29124_v7 = vld [vmem:[%s31076_s9 + $0xd60] sm:$0xff]  }
 0x220   : > { %v26097_v15 = vadd.f32 %v26096_v12, %v26095_v9  ;;  %v26098_v19 = vpop.f32.mrb[22].mxu1  ;;  %v26077_v20 = vpop.f32.mrb[23].mxu0  ;;  %v29125_v9 = vld [vmem:[%s31076_s9 + $0xde0] sm:$0xff]  }
 0x221   : > { %v18512_v14 = vadd.f32 %v26075_v10, %v31853_v17  ;;  %v26099_v23 = vpop.f32.mrb[23].mxu1  ;;  %v29098_v17 = vld [vmem:[%s31076_s9 + $0xca8] sm:$0xff]   ;;  %v29126_v12 = vld [vmem:[%s31076_s9 + $0xd20] sm:$0xff]  }
 0x222   : > { %26376 = vmatpush3.bf16.msra.mxu0 %v29097_v26  ;;  %26398 = vmatpush3.bf16.msra.mxu1 %v29098_v17  ;;  %v29128_v19 = vld [vmem:[%s31076_s9 + $0xd68] sm:$0xff]  }
 0x223   : > { %v31924_v21 = vadd.f32 %v26097_v15, %v18512_v14  ;;  %26377 = vmatprep.subr.bf16.mxu0 %v29099_v24  ;;  %26399 = vmatprep.subr.bf16.mxu1 %v29100_v22  ;;  %v29127_v14 = vld [vmem:[%s31076_s9 + $0xda0] sm:$0xff]   ;;  %v29129_v26 = vld [vmem:[%s31076_s9 + $0xde8] sm:$0xff]   ;;  %v29132_v22 = vld [vmem:[%s31076_s9 + $0xd70] sm:$0xff]  }
 0x224   : > { %v29130_v17 = vld [vmem:[%s31076_s9 + $0xd28] sm:$0xff]  }
 0x226   : > { %26378 = vmatpush3.bf16.msra.mxu0 %v29101_v28  ;;  %26400 = vmatpush3.bf16.msra.mxu1 %v29102_v31  ;;  %v428_v28 = vadd.s32 6784, %v31126_v29  ;;  %v430_v31 = vadd.s32 7040, %v31126_v29 }
 0x227   : > { %26379 = vmatprep.subr.bf16.mxu0 %v29103_v33  ;;  %26401 = vmatprep.subr.bf16.mxu1 %v29104_v35  ;;  %v427_v33 = vadd.s32 6656, %v31126_v29  ;;  %v429_v35 = vadd.s32 6912, %v31126_v29 }
 0x228   : > { %vm669_vm8 = vcmp.lt.s32.totalorder %v428_v28, %v31134_v36  ;;  %vm671_vm9 = vcmp.lt.s32.totalorder %v430_v31, %v31134_v36  ;;  %v432_v28 = vadd.s32 7296, %v31126_v29  ;;  %v434_v31 = vadd.s32 7552, %v31126_v29 }
 0x229   : > { %vm668_vm10 = vcmp.lt.s32.totalorder %v427_v33, %v31134_v36  ;;  %vm32016_vm11 = vmpackc.low %vm669_vm8, %vm669_vm8  ;;  %vm670_vm12 = vcmp.lt.s32.totalorder %v429_v35, %v31134_v36  ;;  %v431_v33 = vadd.s32 7168, %v31126_v29  ;;  %v433_v35 = vadd.s32 7424, %v31126_v29 }
 0x22a   : > { %26380 = vmatpush3.bf16.msra.mxu0 %v29105_v37  ;;  %26402 = vmatpush3.bf16.msra.mxu1 %v29106_v38  ;;  %v29137_v37 = vld [vmem:[%s31076_s9 + $0xdf8] sm:$0xff]   ;;  %vm32021_vm13 = vmpackc.low %vm671_vm9, %vm671_vm9  ;;  %vm673_vm0 = vcmp.lt.s32.totalorder %v432_v28, %v31134_v36  ;;  %vm675_vm1 = vcmp.lt.s32.totalorder %v434_v31, %v31134_v36  ;;  %v29198_v28 = vld [vmem:[%s31076_s9 + $0xf70] sm:$0xff]   ;;  %v436_v31 = vadd.s32 7808, %v31126_v29 }
 0x22b   : > { %26409 = vmatprep.subr.bf16.mxu0 %v29108_v44  ;;  %26431 = vmatprep.subr.bf16.mxu1 %v29109_v50  ;;  %v29138_v38 = vld [vmem:[%s31076_s9 + $0xd38] sm:$0xff]   ;;  %vm32027_vm14 = vmpackc.low %vm668_vm10, %vm668_vm10  ;;  %v29142_v50 = vld [vmem:[%s31076_s9 + $0xec0] sm:$0xff]   ;;  %vm672_vm2 = vcmp.lt.s32.totalorder %v431_v33, %v31134_v36  ;;  %vm674_vm4 = vcmp.lt.s32.totalorder %v433_v35, %v31134_v36  ;;  %v438_v33 = vadd.s32 8064, %v31126_v29  ;;  %v435_v35 = vadd.s32 7680, %v31126_v29 }
 0x22c   : > { %vm32032_vm15 = vmpackc.low %vm670_vm12, %vm670_vm12  ;;  %vm677_vm8 = vcmp.lt.s32.totalorder %v436_v31, %v31134_v36  ;;  %v29232_v31 = vld [vmem:[%s31076_s9 + $0x10f0] sm:$0xff]  }
 0x22d   : > { %25256 = vmatmul.mubr.msk.bf16.vlgmr.msra.gmra.mrb[48].mxu0 %vm31956_vm6, %v25255_v51  ;;  %25262 = vmatmul.mubr.msk.bf16.vlgmr.msra.gmra.mrb[48].mxu1 %vm31961_vm7, %v25261_v56  ;;  %v25267_v51 = vpack.c.bf16 %v1204_v41, %v1204_v41  ;;  %v25273_v56 = vpack.c.bf16 %v1211_v48, %v1211_v48  ;;  %v870_v41 = vld [vmem:[%s31094_s18 + $0x70] sm:$0xff]  ;;  %vm32085_vm3 = vmpackc.low %vm673_vm0, %vm673_vm0  ;;  %v29174_v48 = vld [vmem:[%s31076_s9 + $0xf40] sm:$0xff]   ;;  %vm679_vm9 = vcmp.lt.s32.totalorder %v438_v33, %v31134_v36 }
 0x22e   : > { %26410 = vmatpush3.bf16.msra.mxu0 %v29110_v52  ;;  %26432 = vmatpush3.bf16.msra.mxu1 %v29111_v55  ;;  %v29143_v55 = vld [vmem:[%s31076_s9 + $0xe00] sm:$0xff]   ;;  %v1221_v43 = vrot.slane %v870_v41, %v31145_v47  ;;  %v1214_v44 = vcombine.high %v870_v41, %v870_v41  ;;  %vm32091_vm5 = vmpackc.low %vm675_vm1, %vm675_vm1  ;;  %v29205_v41 = vld [vmem:[%s31076_s9 + $0xfb8] sm:$0xff]   ;;  %vm676_vm10 = vcmp.lt.s32.totalorder %v435_v35, %v31134_v36 }
 0x22f   : > { %26411 = vmatprep.subr.bf16.mxu0 %v29112_v57  ;;  %26433 = vmatprep.subr.bf16.mxu1 %v29113_v59  ;;  %v29144_v57 = vld [vmem:[%s31076_s9 + $0xe80] sm:$0xff]   ;;  %v29145_v59 = vld [vmem:[%s31076_s9 + $0xe48] sm:$0xff]   ;;  %vm32095_vm6 = vmpackc.low %vm672_vm2, %vm672_vm2 }
 0x230   : > { %25265 = vmatprep.mubr.msk.bf16.mxu0 %vm32016_vm11, %v25264_v53  ;;  %25271 = vmatprep.mubr.msk.bf16.mxu1 %vm32021_vm13, %v25270_v58  ;;  %v1229_v49 = vcombine.high %v1221_v43, %v1221_v43  ;;  %vm32101_vm7 = vmpackc.low %vm674_vm4, %vm674_vm4  ;;  %v29175_v52 = vld [vmem:[%s31076_s9 + $0xfc0] sm:$0xff]   ;;  %v25279_v53 = vpack.c.bf16 %v1221_v43, %v1221_v43  ;;  %v29233_v33 = vld [vmem:[%s31076_s9 + $0x1030] sm:$0xff]  }
 0x231   : > { %vm32155_vm11 = vmpackc.low %vm677_vm8, %vm677_vm8  ;;  %v29234_v35 = vld [vmem:[%s31076_s9 + $0x10b0] sm:$0xff]   ;;  %v872_v43 = vld [vmem:[%s31094_s18 + $0x80] sm:$0xff] }
 0x232   : > { %26412 = vmatpush3.bf16.msra.mxu0 %v29114_v60  ;;  %26434 = vmatpush3.bf16.msra.mxu1 %v29115_v61  ;;  %v29146_v60 = vld [vmem:[%s31076_s9 + $0xec8] sm:$0xff]   ;;  %vm32161_vm13 = vmpackc.low %vm679_vm9, %vm679_vm9  ;;  %v1248_v46 = vcombine.high %v872_v43, %v872_v43 }
 0x233   : > { %26413 = vmatprep.subr.bf16.mxu0 %v29116_v62  ;;  %26435 = vmatprep.subr.bf16.mxu1 %v29117_v63  ;;  %v29147_v61 = vld [vmem:[%s31076_s9 + $0xe08] sm:$0xff]   ;;  %v29149_v63 = vld [vmem:[%s31076_s9 + $0xe50] sm:$0xff]  }
 0x234   : > { %v29148_v62 = vld [vmem:[%s31076_s9 + $0xe88] sm:$0xff]  }
 0x236   : > { %26414 = vmatpush3.bf16.msra.mxu0 %v29118_v0  ;;  %26436 = vmatpush3.bf16.msra.mxu1 %v29119_v1  ;;  %v29150_v0 = vld [vmem:[%s31076_s9 + $0xed0] sm:$0xff]  }
 0x237   : > { %26415 = vmatprep.subr.bf16.mxu0 %v29120_v2  ;;  %26437 = vmatprep.subr.bf16.mxu1 %v29121_v3  ;;  %v29151_v1 = vld [vmem:[%s31076_s9 + $0xe10] sm:$0xff]   ;;  %v29153_v3 = vld [vmem:[%s31076_s9 + $0xe58] sm:$0xff]  }
 0x238   : > { %v29152_v2 = vld [vmem:[%s31076_s9 + $0xe90] sm:$0xff]  }
 0x23a   : > { %26416 = vmatpush3.bf16.msra.mxu0 %v29122_v4  ;;  %26438 = vmatpush3.bf16.msra.mxu1 %v29123_v5  ;;  %v29154_v4 = vld [vmem:[%s31076_s9 + $0xed8] sm:$0xff]  }
 0x23b   : > { %26417 = vmatprep.subr.bf16.mxu0 %v29124_v7  ;;  %26439 = vmatprep.subr.bf16.mxu1 %v29125_v9  ;;  %v29155_v5 = vld [vmem:[%s31076_s9 + $0xe18] sm:$0xff]  }
 0x23d   : > { %v26117_v6 = vpop.f32.mrb[24].mxu0 }
 0x23e   : > { %v26118_v8 = vpop.f32.mrb[25].mxu0  ;;  %v26139_v10 = vpop.f32.mrb[24].mxu1  ;;  %26418 = vmatpush3.bf16.msra.mxu0 %v29126_v12  ;;  %26440 = vmatpush3.bf16.msra.mxu1 %v29127_v14 }
 0x23f   : > { %v26119_v11 = vadd.f32 %v26118_v8, %v26117_v6  ;;  %v26140_v13 = vpop.f32.mrb[25].mxu1  ;;  %v26120_v18 = vpop.f32.mrb[26].mxu0  ;;  %26419 = vmatprep.subr.bf16.mxu0 %v29128_v19  ;;  %26441 = vmatprep.subr.bf16.mxu1 %v29129_v26  ;;  %v29156_v6 = vld [vmem:[%s31076_s9 + $0xe98] sm:$0xff]   ;;  %v29157_v8 = vld [vmem:[%s31076_s9 + $0xe60] sm:$0xff]  }
 0x240   : > { %v26141_v16 = vadd.f32 %v26140_v13, %v26139_v10  ;;  %v26142_v25 = vpop.f32.mrb[26].mxu1  ;;  %v26121_v23 = vpop.f32.mrb[27].mxu0  ;;  %v29158_v10 = vld [vmem:[%s31076_s9 + $0xee0] sm:$0xff]  }
 0x241   : > { %v18592_v15 = vadd.f32 %v26119_v11, %v31924_v21  ;;  %v26143_v24 = vpop.f32.mrb[27].mxu1  ;;  %v29131_v21 = vld [vmem:[%s31076_s9 + $0xda8] sm:$0xff]   ;;  %v29159_v13 = vld [vmem:[%s31076_s9 + $0xe20] sm:$0xff]  }
 0x242   : > { %26420 = vmatpush3.bf16.msra.mxu0 %v29130_v17  ;;  %26442 = vmatpush3.bf16.msra.mxu1 %v29131_v21  ;;  %v29161_v25 = vld [vmem:[%s31076_s9 + $0xe68] sm:$0xff]  }
 0x243   : > { %v31994_v20 = vadd.f32 %v26141_v16, %v18592_v15  ;;  %26421 = vmatprep.subr.bf16.mxu0 %v29132_v22  ;;  %26443 = vmatprep.subr.bf16.mxu1 %v29133_v27  ;;  %v29160_v15 = vld [vmem:[%s31076_s9 + $0xea0] sm:$0xff]   ;;  %v29162_v17 = vld [vmem:[%s31076_s9 + $0xee8] sm:$0xff]   ;;  %v29165_v27 = vld [vmem:[%s31076_s9 + $0xe70] sm:$0xff]  }
 0x244   : > { %v29163_v21 = vld [vmem:[%s31076_s9 + $0xe28] sm:$0xff]  }
 0x246   : > { %26422 = vmatpush3.bf16.msra.mxu0 %v29134_v30  ;;  %26444 = vmatpush3.bf16.msra.mxu1 %v29135_v32  ;;  %v29166_v30 = vld [vmem:[%s31076_s9 + $0xef0] sm:$0xff]  }
 0x247   : > { %26423 = vmatprep.subr.bf16.mxu0 %v29136_v34  ;;  %26445 = vmatprep.subr.bf16.mxu1 %v29137_v37  ;;  %v29167_v32 = vld [vmem:[%s31076_s9 + $0xe30] sm:$0xff]   ;;  %v29169_v37 = vld [vmem:[%s31076_s9 + $0xe78] sm:$0xff]  }
 0x248   : > { %v29168_v34 = vld [vmem:[%s31076_s9 + $0xeb0] sm:$0xff]  }
 0x24a   : > { %26424 = vmatpush3.bf16.msra.mxu0 %v29138_v38  ;;  %26446 = vmatpush3.bf16.msra.mxu1 %v29139_v39  ;;  %v29170_v38 = vld [vmem:[%s31076_s9 + $0xef8] sm:$0xff]  }
 0x24b   : > { %26453 = vmatprep.subr.bf16.mxu0 %v29141_v45  ;;  %26475 = vmatprep.subr.bf16.mxu1 %v29142_v50  ;;  %v29171_v39 = vld [vmem:[%s31076_s9 + $0xe38] sm:$0xff]   ;;  %v1228_v50 = vrot.slane %v1214_v44, %v31145_v47  ;;  %v1238_v44 = vrot.slane %v871_v42, %v31145_v47  ;;  %v1231_v45 = vcombine.high %v871_v42, %v871_v42 }
 0x24c   : > { %v29238_v42 = vld [vmem:[%s31076_s9 + $0x10b8] sm:$0xff]  }
 0x24d   : > { %25268 = vmatmul.mubr.msk.bf16.vlgmr.msra.gmra.mrb[52].mxu0 %vm32027_vm14, %v25267_v51  ;;  %25274 = vmatmul.mubr.msk.bf16.vlgmr.msra.gmra.mrb[52].mxu1 %vm32032_vm15, %v25273_v56  ;;  %v1230_v56 = vcombine.high %v1228_v50, %v1228_v50  ;;  %v25285_v58 = vpack.c.bf16 %v1228_v50, %v1228_v50  ;;  %vm32166_vm14 = vmpackc.low %vm676_vm10, %vm676_vm10  ;;  %v1246_v50 = vcombine.high %v1238_v44, %v1238_v44 }
 0x24e   : > { %26454 = vmatpush3.bf16.msra.mxu0 %v29143_v55  ;;  %26476 = vmatpush3.bf16.msra.mxu1 %v29144_v57  ;;  %v25276_v55 = vpack.c.bf16 %v1229_v49, %v1229_v49  ;;  %v29177_v57 = vld [vmem:[%s31076_s9 + $0xf80] sm:$0xff]   ;;  %v1245_v51 = vrot.slane %v1231_v45, %v31145_v47  ;;  %v874_v45 = vld [vmem:[%s31094_s18 + $0x90] sm:$0xff] }
 0x24f   : > { %26455 = vmatprep.subr.bf16.mxu0 %v29145_v59  ;;  %26477 = vmatprep.subr.bf16.mxu1 %v29146_v60  ;;  %v29178_v59 = vld [vmem:[%s31076_s9 + $0xf48] sm:$0xff]   ;;  %v25282_v60 = vpack.c.bf16 %v1230_v56, %v1230_v56  ;;  %v25288_v56 = vpack.c.bf16 %v1246_v50, %v1246_v50  ;;  %v29240_v49 = vld [vmem:[%s31076_s9 + $0x1140] sm:$0xff]  }
 0x250   : > { %25277 = vmatprep.mubr.msk.bf16.mxu0 %vm32085_vm3, %v25276_v55  ;;  %v29209_v55 = vld [vmem:[%s31076_s9 + $0x1000] sm:$0xff]  }
 0x251   : > { %25283 = vmatprep.mubr.msk.bf16.mxu1 %vm32091_vm5, %v25282_v60  ;;  %v29211_v60 = vld [vmem:[%s31076_s9 + $0x1048] sm:$0xff]  }
 0x252   : > { %26456 = vmatpush3.bf16.msra.mxu0 %v29147_v61  ;;  %26478 = vmatpush3.bf16.msra.mxu1 %v29148_v62  ;;  %v29179_v61 = vld [vmem:[%s31076_s9 + $0xfc8] sm:$0xff]  }
 0x253   : > { %26457 = vmatprep.subr.bf16.mxu0 %v29149_v63  ;;  %26479 = vmatprep.subr.bf16.mxu1 %v29150_v0  ;;  %v29180_v62 = vld [vmem:[%s31076_s9 + $0xf08] sm:$0xff]   ;;  %v29182_v0 = vld [vmem:[%s31076_s9 + $0xf50] sm:$0xff]  }
 0x254   : > { %v29181_v63 = vld [vmem:[%s31076_s9 + $0xf88] sm:$0xff]  }
 0x256   : > { %26458 = vmatpush3.bf16.msra.mxu0 %v29151_v1  ;;  %26480 = vmatpush3.bf16.msra.mxu1 %v29152_v2  ;;  %v29183_v1 = vld [vmem:[%s31076_s9 + $0xfd0] sm:$0xff]  }
 0x257   : > { %26459 = vmatprep.subr.bf16.mxu0 %v29153_v3  ;;  %26481 = vmatprep.subr.bf16.mxu1 %v29154_v4  ;;  %v29184_v2 = vld [vmem:[%s31076_s9 + $0xf10] sm:$0xff]   ;;  %v29186_v4 = vld [vmem:[%s31076_s9 + $0xf58] sm:$0xff]  }
 0x258   : > { %v29185_v3 = vld [vmem:[%s31076_s9 + $0xf90] sm:$0xff]  }
 0x25a   : > { %26460 = vmatpush3.bf16.msra.mxu0 %v29155_v5  ;;  %26482 = vmatpush3.bf16.msra.mxu1 %v29156_v6  ;;  %v29187_v5 = vld [vmem:[%s31076_s9 + $0xfd8] sm:$0xff]  }
 0x25b   : > { %26461 = vmatprep.subr.bf16.mxu0 %v29157_v8  ;;  %26483 = vmatprep.subr.bf16.mxu1 %v29158_v10  ;;  %v29188_v6 = vld [vmem:[%s31076_s9 + $0xf18] sm:$0xff]  }
 0x25d   : > { %v26161_v7 = vpop.f32.mrb[28].mxu0 }
 0x25e   : > { %v26162_v9 = vpop.f32.mrb[29].mxu0  ;;  %v26183_v11 = vpop.f32.mrb[28].mxu1  ;;  %26462 = vmatpush3.bf16.msra.mxu0 %v29159_v13  ;;  %26484 = vmatpush3.bf16.msra.mxu1 %v29160_v15 }
 0x25f   : > { %v26163_v12 = vadd.f32 %v26162_v9, %v26161_v7  ;;  %v26184_v14 = vpop.f32.mrb[29].mxu1  ;;  %v26164_v19 = vpop.f32.mrb[30].mxu0  ;;  %26463 = vmatprep.subr.bf16.mxu0 %v29161_v25  ;;  %26485 = vmatprep.subr.bf16.mxu1 %v29162_v17  ;;  %v29189_v7 = vld [vmem:[%s31076_s9 + $0xf98] sm:$0xff]   ;;  %v29190_v9 = vld [vmem:[%s31076_s9 + $0xf60] sm:$0xff]  }
 0x260   : > { %v26185_v18 = vadd.f32 %v26184_v14, %v26183_v11  ;;  %v26186_v26 = vpop.f32.mrb[30].mxu1  ;;  %v26165_v24 = vpop.f32.mrb[31].mxu0  ;;  %v29191_v11 = vld [vmem:[%s31076_s9 + $0xfe0] sm:$0xff]  }
 0x261   : > { %v18672_v16 = vadd.f32 %v26163_v12, %v31994_v20  ;;  %v26187_v22 = vpop.f32.mrb[31].mxu1  ;;  %v29164_v20 = vld [vmem:[%s31076_s9 + $0xea8] sm:$0xff]   ;;  %v29192_v14 = vld [vmem:[%s31076_s9 + $0xf20] sm:$0xff]  }
 0x262   : > { %26464 = vmatpush3.bf16.msra.mxu0 %v29163_v21  ;;  %26486 = vmatpush3.bf16.msra.mxu1 %v29164_v20  ;;  %v29194_v26 = vld [vmem:[%s31076_s9 + $0xf68] sm:$0xff]  }
 0x263   : > { %v32064_v23 = vadd.f32 %v26185_v18, %v18672_v16  ;;  %26465 = vmatprep.subr.bf16.mxu0 %v29165_v27  ;;  %26487 = vmatprep.subr.bf16.mxu1 %v29166_v30  ;;  %v29193_v16 = vld [vmem:[%s31076_s9 + $0xfa0] sm:$0xff]   ;;  %v29195_v21 = vld [vmem:[%s31076_s9 + $0xfe8] sm:$0xff]   ;;  %v29199_v30 = vld [vmem:[%s31076_s9 + $0xff0] sm:$0xff]  }
 0x264   : > { %v29196_v20 = vld [vmem:[%s31076_s9 + $0xf28] sm:$0xff]  }
 0x266   : > { %26466 = vmatpush3.bf16.msra.mxu0 %v29167_v32  ;;  %26488 = vmatpush3.bf16.msra.mxu1 %v29168_v34  ;;  %v29200_v32 = vld [vmem:[%s31076_s9 + $0xf30] sm:$0xff]  }
 0x267   : > { %26467 = vmatprep.subr.bf16.mxu0 %v29169_v37  ;;  %26489 = vmatprep.subr.bf16.mxu1 %v29170_v38  ;;  %v29201_v34 = vld [vmem:[%s31076_s9 + $0xfb0] sm:$0xff]   ;;  %v29202_v37 = vld [vmem:[%s31076_s9 + $0xf78] sm:$0xff]   ;;  %v437_v38 = vadd.s32 7936, %v31126_v29 }
 0x269   : > { %vm678_vm12 = vcmp.lt.s32.totalorder %v437_v38, %v31134_v36  ;;  %v29235_v38 = vld [vmem:[%s31076_s9 + $0x1078] sm:$0xff]  }
 0x26a   : > { %26468 = vmatpush3.bf16.msra.mxu0 %v29171_v39  ;;  %26490 = vmatpush3.bf16.msra.mxu1 %v29172_v40  ;;  %v29203_v39 = vld [vmem:[%s31076_s9 + $0xff8] sm:$0xff]   ;;  %vm32171_vm15 = vmpackc.low %vm678_vm12, %vm678_vm12 }
 0x26b   : > { %26497 = vmatprep.subr.bf16.mxu0 %v29174_v48  ;;  %26519 = vmatprep.subr.bf16.mxu1 %v29175_v52  ;;  %v29204_v40 = vld [vmem:[%s31076_s9 + $0xf38] sm:$0xff]   ;;  %v29207_v48 = vld [vmem:[%s31076_s9 + $0x1040] sm:$0xff]  }
 0x26d   : > { %25280 = vmatmul.mubr.msk.bf16.vlgmr.msra.gmra.mrb[56].mxu0 %vm32095_vm6, %v25279_v53  ;;  %25286 = vmatmul.mubr.msk.bf16.vlgmr.msra.gmra.mrb[56].mxu1 %vm32101_vm7, %v25285_v58  ;;  %v29208_v53 = vld [vmem:[%s31076_s9 + $0x10c0] sm:$0xff]  }
 0x26e   : > { %26498 = vmatpush3.bf16.msra.mxu0 %v29176_v54  ;;  %26520 = vmatpush3.bf16.msra.mxu1 %v29177_v57  ;;  %v25291_v54 = vpack.c.bf16 %v1238_v44, %v1238_v44  ;;  %v1247_v57 = vcombine.high %v1245_v51, %v1245_v51  ;;  %v29210_v58 = vld [vmem:[%s31076_s9 + $0x1080] sm:$0xff]   ;;  %v1255_v44 = vrot.slane %v872_v43, %v31145_v47  ;;  %v29271_v43 = vld [vmem:[%s31076_s9 + $0x11b8] sm:$0xff]  }
 0x26f   : > { %26499 = vmatprep.subr.bf16.mxu0 %v29178_v59  ;;  %26521 = vmatprep.subr.bf16.mxu1 %v29179_v61  ;;  %v25297_v59 = vpack.c.bf16 %v1245_v51, %v1245_v51  ;;  %v1262_v51 = vrot.slane %v1248_v46, %v31145_v47 }
 0x270   : > { %25289 = vmatprep.mubr.msk.bf16.mxu0 %vm32155_vm11, %v25288_v56  ;;  %v25294_v61 = vpack.c.bf16 %v1247_v57, %v1247_v57  ;;  %v1263_v50 = vcombine.high %v1255_v44, %v1255_v44 }
 0x271   : > { %v1264_v57 = vcombine.high %v1262_v51, %v1262_v51 }
 0x272   : > { %26500 = vmatpush3.bf16.msra.mxu0 %v29180_v62  ;;  %26522 = vmatpush3.bf16.msra.mxu1 %v29181_v63  ;;  %v29212_v62 = vld [vmem:[%s31076_s9 + $0x10c8] sm:$0xff]   ;;  %v25300_v56 = vpack.c.bf16 %v1263_v50, %v1263_v50 }
 0x273   : > { %26501 = vmatprep.subr.bf16.mxu0 %v29182_v0  ;;  %26523 = vmatprep.subr.bf16.mxu1 %v29183_v1  ;;  %v29213_v63 = vld [vmem:[%s31076_s9 + $0x1008] sm:$0xff]   ;;  %v29215_v1 = vld [vmem:[%s31076_s9 + $0x1050] sm:$0xff]  }
 0x274   : > { %25295 = vmatprep.mubr.msk.bf16.mxu1 %vm32161_vm13, %v25294_v61  ;;  %v29214_v0 = vld [vmem:[%s31076_s9 + $0x1088] sm:$0xff]   ;;  %v25306_v61 = vpack.c.bf16 %v1264_v57, %v1264_v57  ;;  %v29275_v57 = vld [vmem:[%s31076_s9 + $0x1200] sm:$0xff]  }
 0x276   : > { %26502 = vmatpush3.bf16.msra.mxu0 %v29184_v2  ;;  %26524 = vmatpush3.bf16.msra.mxu1 %v29185_v3  ;;  %v29216_v2 = vld [vmem:[%s31076_s9 + $0x10d0] sm:$0xff]  }
 0x277   : > { %26503 = vmatprep.subr.bf16.mxu0 %v29186_v4  ;;  %26525 = vmatprep.subr.bf16.mxu1 %v29187_v5  ;;  %v29217_v3 = vld [vmem:[%s31076_s9 + $0x1010] sm:$0xff]   ;;  %v29219_v5 = vld [vmem:[%s31076_s9 + $0x1058] sm:$0xff]  }
 0x278   : > { %v29218_v4 = vld [vmem:[%s31076_s9 + $0x1090] sm:$0xff]  }
 0x27a   : > { %26504 = vmatpush3.bf16.msra.mxu0 %v29188_v6  ;;  %26526 = vmatpush3.bf16.msra.mxu1 %v29189_v7  ;;  %v29220_v6 = vld [vmem:[%s31076_s9 + $0x10d8] sm:$0xff]  }
 0x27b   : > { %26505 = vmatprep.subr.bf16.mxu0 %v29190_v9  ;;  %26527 = vmatprep.subr.bf16.mxu1 %v29191_v11  ;;  %v29221_v7 = vld [vmem:[%s31076_s9 + $0x1018] sm:$0xff]  }
 0x27d   : > { %v26205_v8 = vpop.f32.mrb[32].mxu0 }
 0x27e   : > { %v26206_v10 = vpop.f32.mrb[33].mxu0  ;;  %v26227_v12 = vpop.f32.mrb[32].mxu1  ;;  %26506 = vmatpush3.bf16.msra.mxu0 %v29192_v14  ;;  %26528 = vmatpush3.bf16.msra.mxu1 %v29193_v16 }
 0x27f   : > { %v26207_v13 = vadd.f32 %v26206_v10, %v26205_v8  ;;  %v26228_v15 = vpop.f32.mrb[33].mxu1  ;;  %v26208_v25 = vpop.f32.mrb[34].mxu0  ;;  %26507 = vmatprep.subr.bf16.mxu0 %v29194_v26  ;;  %26529 = vmatprep.subr.bf16.mxu1 %v29195_v21  ;;  %v29222_v8 = vld [vmem:[%s31076_s9 + $0x1098] sm:$0xff]   ;;  %v29223_v10 = vld [vmem:[%s31076_s9 + $0x1060] sm:$0xff]  }
 0x280   : > { %v26229_v19 = vadd.f32 %v26228_v15, %v26227_v12  ;;  %v26230_v17 = vpop.f32.mrb[34].mxu1  ;;  %v26209_v22 = vpop.f32.mrb[35].mxu0  ;;  %v29224_v12 = vld [vmem:[%s31076_s9 + $0x10e0] sm:$0xff]  }
 0x281   : > { %v18752_v18 = vadd.f32 %v26207_v13, %v32064_v23  ;;  %v26231_v27 = vpop.f32.mrb[35].mxu1  ;;  %v29197_v23 = vld [vmem:[%s31076_s9 + $0xfa8] sm:$0xff]   ;;  %v29225_v15 = vld [vmem:[%s31076_s9 + $0x1020] sm:$0xff]  }
 0x282   : > { %26508 = vmatpush3.bf16.msra.mxu0 %v29196_v20  ;;  %26530 = vmatpush3.bf16.msra.mxu1 %v29197_v23  ;;  %v29227_v17 = vld [vmem:[%s31076_s9 + $0x1068] sm:$0xff]  }
 0x283   : > { %v32134_v24 = vadd.f32 %v26229_v19, %v18752_v18  ;;  %26509 = vmatprep.subr.bf16.mxu0 %v29198_v28  ;;  %26531 = vmatprep.subr.bf16.mxu1 %v29199_v30  ;;  %v29226_v18 = vld [vmem:[%s31076_s9 + $0x10a0] sm:$0xff]   ;;  %v29228_v20 = vld [vmem:[%s31076_s9 + $0x10e8] sm:$0xff]   ;;  %v29231_v30 = vld [vmem:[%s31076_s9 + $0x1070] sm:$0xff]  }
 0x284   : > { %v29229_v23 = vld [vmem:[%s31076_s9 + $0x1028] sm:$0xff]  }
 0x286   : > { %26510 = vmatpush3.bf16.msra.mxu0 %v29200_v32  ;;  %26532 = vmatpush3.bf16.msra.mxu1 %v29201_v34  ;;  %v440_v32 = vadd.s32 8320, %v31126_v29  ;;  %v442_v34 = vadd.s32 8576, %v31126_v29 }
 0x287   : > { %26511 = vmatprep.subr.bf16.mxu0 %v29202_v37  ;;  %26533 = vmatprep.subr.bf16.mxu1 %v29203_v39  ;;  %v439_v37 = vadd.s32 8192, %v31126_v29  ;;  %v441_v39 = vadd.s32 8448, %v31126_v29 }
 0x288   : > { %vm681_vm0 = vcmp.lt.s32.totalorder %v440_v32, %v31134_v36  ;;  %vm683_vm1 = vcmp.lt.s32.totalorder %v442_v34, %v31134_v36  ;;  %v444_v32 = vadd.s32 8832, %v31126_v29  ;;  %v446_v34 = vadd.s32 9088, %v31126_v29 }
 0x289   : > { %vm680_vm2 = vcmp.lt.s32.totalorder %v439_v37, %v31134_v36  ;;  %vm32226_vm3 = vmpackc.low %vm681_vm0, %vm681_vm0  ;;  %vm682_vm4 = vcmp.lt.s32.totalorder %v441_v39, %v31134_v36  ;;  %v443_v37 = vadd.s32 8704, %v31126_v29  ;;  %v445_v39 = vadd.s32 8960, %v31126_v29 }
 0x28a   : > { %26512 = vmatpush3.bf16.msra.mxu0 %v29204_v40  ;;  %26534 = vmatpush3.bf16.msra.mxu1 %v29205_v41  ;;  %v29236_v40 = vld [vmem:[%s31076_s9 + $0x10f8] sm:$0xff]   ;;  %vm32231_vm5 = vmpackc.low %vm683_vm1, %vm683_vm1  ;;  %vm685_vm8 = vcmp.lt.s32.totalorder %v444_v32, %v31134_v36  ;;  %vm687_vm9 = vcmp.lt.s32.totalorder %v446_v34, %v31134_v36  ;;  %v29297_v32 = vld [vmem:[%s31076_s9 + $0x1270] sm:$0xff]   ;;  %v448_v34 = vadd.s32 9344, %v31126_v29 }
 0x28b   : > { %26541 = vmatprep.subr.bf16.mxu0 %v29207_v48  ;;  %26563 = vmatprep.subr.bf16.mxu1 %v29208_v53  ;;  %v29237_v41 = vld [vmem:[%s31076_s9 + $0x1038] sm:$0xff]   ;;  %vm32237_vm6 = vmpackc.low %vm680_vm2, %vm680_vm2  ;;  %v29241_v53 = vld [vmem:[%s31076_s9 + $0x11c0] sm:$0xff]   ;;  %vm684_vm10 = vcmp.lt.s32.totalorder %v443_v37, %v31134_v36  ;;  %vm686_vm12 = vcmp.lt.s32.totalorder %v445_v39, %v31134_v36  ;;  %v450_v37 = vadd.s32 9600, %v31126_v29  ;;  %v447_v39 = vadd.s32 9216, %v31126_v29 }
 0x28c   : > { %vm32242_vm7 = vmpackc.low %vm682_vm4, %vm682_vm4  ;;  %vm689_vm0 = vcmp.lt.s32.totalorder %v448_v34, %v31134_v36  ;;  %v29331_v34 = vld [vmem:[%s31076_s9 + $0x13f0] sm:$0xff]  }
 0x28d   : > { %25292 = vmatmul.mubr.msk.bf16.vlgmr.msra.gmra.mrb[60].mxu0 %vm32166_vm14, %v25291_v54  ;;  %25298 = vmatmul.mubr.msk.bf16.vlgmr.msra.gmra.mrb[60].mxu1 %vm32171_vm15, %v25297_v59  ;;  %v25303_v54 = vpack.c.bf16 %v1255_v44, %v1255_v44  ;;  %v25309_v59 = vpack.c.bf16 %v1262_v51, %v1262_v51  ;;  %v873_v44 = vld [vmem:[%s31094_s18 + $0x88] sm:$0xff]  ;;  %vm32295_vm11 = vmpackc.low %vm685_vm8, %vm685_vm8  ;;  %vm691_vm1 = vcmp.lt.s32.totalorder %v450_v37, %v31134_v36  ;;  %v29332_v37 = vld [vmem:[%s31076_s9 + $0x1330] sm:$0xff]  }
 0x28e   : > { %26542 = vmatpush3.bf16.msra.mxu0 %v29209_v55  ;;  %26564 = vmatpush3.bf16.msra.mxu1 %v29210_v58  ;;  %v29242_v58 = vld [vmem:[%s31076_s9 + $0x1100] sm:$0xff]   ;;  %v1272_v46 = vrot.slane %v873_v44, %v31145_v47  ;;  %v1265_v48 = vcombine.high %v873_v44, %v873_v44  ;;  %vm32301_vm13 = vmpackc.low %vm687_vm9, %vm687_vm9  ;;  %v29304_v44 = vld [vmem:[%s31076_s9 + $0x12b8] sm:$0xff]   ;;  %vm688_vm2 = vcmp.lt.s32.totalorder %v447_v39, %v31134_v36 }
 0x28f   : > { %26543 = vmatprep.subr.bf16.mxu0 %v29211_v60  ;;  %26565 = vmatprep.subr.bf16.mxu1 %v29212_v62  ;;  %v29243_v60 = vld [vmem:[%s31076_s9 + $0x1180] sm:$0xff]   ;;  %v29244_v62 = vld [vmem:[%s31076_s9 + $0x1148] sm:$0xff]   ;;  %vm32305_vm14 = vmpackc.low %vm684_vm10, %vm684_vm10 }
 0x290   : > { %25301 = vmatprep.mubr.msk.bf16.mxu0 %vm32226_vm3, %v25300_v56  ;;  %25307 = vmatprep.mubr.msk.bf16.mxu1 %vm32231_vm5, %v25306_v61  ;;  %v29273_v51 = vld [vmem:[%s31076_s9 + $0x1240] sm:$0xff]   ;;  %v1280_v52 = vcombine.high %v1272_v46, %v1272_v46  ;;  %vm32311_vm15 = vmpackc.low %vm686_vm12, %vm686_vm12  ;;  %v25315_v56 = vpack.c.bf16 %v1272_v46, %v1272_v46  ;;  %v29333_v39 = vld [vmem:[%s31076_s9 + $0x13b0] sm:$0xff]  }
 0x291   : > { %v29274_v55 = vld [vmem:[%s31076_s9 + $0x12c0] sm:$0xff]   ;;  %vm32365_vm3 = vmpackc.low %vm689_vm0, %vm689_vm0  ;;  %v875_v46 = vld [vmem:[%s31094_s18 + $0x98] sm:$0xff] }
 0x292   : > { %26544 = vmatpush3.bf16.msra.mxu0 %v29213_v63  ;;  %26566 = vmatpush3.bf16.msra.mxu1 %v29214_v0  ;;  %v29245_v63 = vld [vmem:[%s31076_s9 + $0x11c8] sm:$0xff]   ;;  %vm32371_vm5 = vmpackc.low %vm691_vm1, %vm691_vm1  ;;  %v1299_v50 = vcombine.high %v875_v46, %v875_v46 }
 0x293   : > { %26545 = vmatprep.subr.bf16.mxu0 %v29215_v1  ;;  %26567 = vmatprep.subr.bf16.mxu1 %v29216_v2  ;;  %v29246_v0 = vld [vmem:[%s31076_s9 + $0x1108] sm:$0xff]   ;;  %v29248_v2 = vld [vmem:[%s31076_s9 + $0x1150] sm:$0xff]  }
 0x294   : > { %v29247_v1 = vld [vmem:[%s31076_s9 + $0x1188] sm:$0xff]  }
 0x296   : > { %26546 = vmatpush3.bf16.msra.mxu0 %v29217_v3  ;;  %26568 = vmatpush3.bf16.msra.mxu1 %v29218_v4  ;;  %v29249_v3 = vld [vmem:[%s31076_s9 + $0x11d0] sm:$0xff]  }
 0x297   : > { %26547 = vmatprep.subr.bf16.mxu0 %v29219_v5  ;;  %26569 = vmatprep.subr.bf16.mxu1 %v29220_v6  ;;  %v29250_v4 = vld [vmem:[%s31076_s9 + $0x1110] sm:$0xff]   ;;  %v29252_v6 = vld [vmem:[%s31076_s9 + $0x1158] sm:$0xff]  }
 0x298   : > { %v29251_v5 = vld [vmem:[%s31076_s9 + $0x1190] sm:$0xff]  }
 0x29a   : > { %26548 = vmatpush3.bf16.msra.mxu0 %v29221_v7  ;;  %26570 = vmatpush3.bf16.msra.mxu1 %v29222_v8  ;;  %v29253_v7 = vld [vmem:[%s31076_s9 + $0x11d8] sm:$0xff]  }
 0x29b   : > { %26549 = vmatprep.subr.bf16.mxu0 %v29223_v10  ;;  %26571 = vmatprep.subr.bf16.mxu1 %v29224_v12  ;;  %v29254_v8 = vld [vmem:[%s31076_s9 + $0x1118] sm:$0xff]   ;;  %v29256_v12 = vld [vmem:[%s31076_s9 + $0x1160] sm:$0xff]  }
 0x29c   : > { %v29255_v10 = vld [vmem:[%s31076_s9 + $0x1198] sm:$0xff]  }
 0x29d   : > { %v26249_v9 = vpop.f32.mrb[36].mxu0 }
 0x29e   : > { %v26250_v11 = vpop.f32.mrb[37].mxu0  ;;  %v26271_v13 = vpop.f32.mrb[36].mxu1  ;;  %26550 = vmatpush3.bf16.msra.mxu0 %v29225_v15  ;;  %26572 = vmatpush3.bf16.msra.mxu1 %v29226_v18  ;;  %v29257_v15 = vld [vmem:[%s31076_s9 + $0x11e0] sm:$0xff]  }
 0x29f   : > { %v26251_v14 = vadd.f32 %v26250_v11, %v26249_v9  ;;  %v26272_v16 = vpop.f32.mrb[37].mxu1  ;;  %v26252_v26 = vpop.f32.mrb[38].mxu0  ;;  %26551 = vmatprep.subr.bf16.mxu0 %v29227_v17  ;;  %26573 = vmatprep.subr.bf16.mxu1 %v29228_v20  ;;  %v29258_v18 = vld [vmem:[%s31076_s9 + $0x1120] sm:$0xff]  }
 0x2a0   : > { %v26273_v25 = vadd.f32 %v26272_v16, %v26271_v13  ;;  %v26274_v21 = vpop.f32.mrb[38].mxu1  ;;  %v26253_v27 = vpop.f32.mrb[39].mxu0  ;;  %v29259_v17 = vld [vmem:[%s31076_s9 + $0x11a0] sm:$0xff]  }
 0x2a1   : > { %v18832_v19 = vadd.f32 %v26251_v14, %v32134_v24  ;;  %v26275_v28 = vpop.f32.mrb[39].mxu1  ;;  %v29230_v24 = vld [vmem:[%s31076_s9 + $0x10a8] sm:$0xff]  }
 0x2a2   : > { %26552 = vmatpush3.bf16.msra.mxu0 %v29229_v23  ;;  %26574 = vmatpush3.bf16.msra.mxu1 %v29230_v24  ;;  %v29260_v27 = vld [vmem:[%s31076_s9 + $0x1168] sm:$0xff]  }
 0x2a3   : > { %v32204_v22 = vadd.f32 %v26273_v25, %v18832_v19  ;;  %26553 = vmatprep.subr.bf16.mxu0 %v29231_v30  ;;  %26575 = vmatprep.subr.bf16.mxu1 %v29232_v31  ;;  %v29261_v28 = vld [vmem:[%s31076_s9 + $0x11e8] sm:$0xff]   ;;  %v29264_v31 = vld [vmem:[%s31076_s9 + $0x1170] sm:$0xff]  }
 0x2a4   : > { %v29263_v30 = vld [vmem:[%s31076_s9 + $0x11a8] sm:$0xff]  }
 0x2a6   : > { %26554 = vmatpush3.bf16.msra.mxu0 %v29233_v33  ;;  %26576 = vmatpush3.bf16.msra.mxu1 %v29234_v35  ;;  %v29265_v33 = vld [vmem:[%s31076_s9 + $0x11f0] sm:$0xff]  }
 0x2a7   : > { %26555 = vmatprep.subr.bf16.mxu0 %v29235_v38  ;;  %26577 = vmatprep.subr.bf16.mxu1 %v29236_v40  ;;  %v29266_v35 = vld [vmem:[%s31076_s9 + $0x1130] sm:$0xff]   ;;  %v29268_v40 = vld [vmem:[%s31076_s9 + $0x1178] sm:$0xff]  }
 0x2a8   : > { %v29267_v38 = vld [vmem:[%s31076_s9 + $0x11b0] sm:$0xff]  }
 0x2aa   : > { %26556 = vmatpush3.bf16.msra.mxu0 %v29237_v41  ;;  %26578 = vmatpush3.bf16.msra.mxu1 %v29238_v42  ;;  %v29269_v41 = vld [vmem:[%s31076_s9 + $0x11f8] sm:$0xff]  }
 0x2ab   : > { %26585 = vmatprep.subr.bf16.mxu0 %v29240_v49  ;;  %26607 = vmatprep.subr.bf16.mxu1 %v29241_v53  ;;  %v29270_v42 = vld [vmem:[%s31076_s9 + $0x1138] sm:$0xff]   ;;  %v1279_v53 = vrot.slane %v1265_v48, %v31145_v47  ;;  %v1289_v48 = vrot.slane %v874_v45, %v31145_v47  ;;  %v1282_v49 = vcombine.high %v874_v45, %v874_v45 }
 0x2ac   : > { %v29337_v45 = vld [vmem:[%s31076_s9 + $0x13b8] sm:$0xff]  }
 0x2ad   : > { %25304 = vmatmul.mubr.msk.bf16.vlgmr.msra.gmra.mrb[64].mxu0 %vm32237_vm6, %v25303_v54  ;;  %25310 = vmatmul.mubr.msk.bf16.vlgmr.msra.gmra.mrb[64].mxu1 %vm32242_vm7, %v25309_v59  ;;  %v1281_v59 = vcombine.high %v1279_v53, %v1279_v53  ;;  %v25321_v61 = vpack.c.bf16 %v1279_v53, %v1279_v53  ;;  %vm32376_vm6 = vmpackc.low %vm688_vm2, %vm688_vm2  ;;  %v1297_v53 = vcombine.high %v1289_v48, %v1289_v48 }
 0x2ae   : > { %26586 = vmatpush3.bf16.msra.mxu0 %v29242_v58  ;;  %26608 = vmatpush3.bf16.msra.mxu1 %v29243_v60  ;;  %v25312_v58 = vpack.c.bf16 %v1280_v52, %v1280_v52  ;;  %v29276_v60 = vld [vmem:[%s31076_s9 + $0x1280] sm:$0xff]   ;;  %v1296_v54 = vrot.slane %v1282_v49, %v31145_v47 }
 0x2af   : > { %26587 = vmatprep.subr.bf16.mxu0 %v29244_v62  ;;  %26609 = vmatprep.subr.bf16.mxu1 %v29245_v63  ;;  %v29277_v62 = vld [vmem:[%s31076_s9 + $0x1248] sm:$0xff]   ;;  %v25318_v63 = vpack.c.bf16 %v1281_v59, %v1281_v59  ;;  %v25324_v59 = vpack.c.bf16 %v1297_v53, %v1297_v53  ;;  %v29339_v52 = vld [vmem:[%s31076_s9 + $0x1440] sm:$0xff]  }
 0x2b0   : > { %25313 = vmatprep.mubr.msk.bf16.mxu0 %vm32295_vm11, %v25312_v58  ;;  %v29308_v58 = vld [vmem:[%s31076_s9 + $0x1300] sm:$0xff]  }
 0x2b1   : > { %25319 = vmatprep.mubr.msk.bf16.mxu1 %vm32301_vm13, %v25318_v63  ;;  %v29310_v63 = vld [vmem:[%s31076_s9 + $0x1348] sm:$0xff]  }
 0x2b2   : > { %26588 = vmatpush3.bf16.msra.mxu0 %v29246_v0  ;;  %26610 = vmatpush3.bf16.msra.mxu1 %v29247_v1  ;;  %v29278_v0 = vld [vmem:[%s31076_s9 + $0x12c8] sm:$0xff]  }
 0x2b3   : > { %26589 = vmatprep.subr.bf16.mxu0 %v29248_v2  ;;  %26611 = vmatprep.subr.bf16.mxu1 %v29249_v3  ;;  %v29279_v1 = vld [vmem:[%s31076_s9 + $0x1208] sm:$0xff]   ;;  %v29281_v3 = vld [vmem:[%s31076_s9 + $0x1250] sm:$0xff]  }
 0x2b4   : > { %v29280_v2 = vld [vmem:[%s31076_s9 + $0x1288] sm:$0xff]  }
 0x2b5   : > { %v877_v49 = vld [vmem:[%s31094_s18 + $0xa8] sm:$0xff] }
 0x2b6   : > { %26590 = vmatpush3.bf16.msra.mxu0 %v29250_v4  ;;  %26612 = vmatpush3.bf16.msra.mxu1 %v29251_v5  ;;  %v29282_v4 = vld [vmem:[%s31076_s9 + $0x12d0] sm:$0xff]  }
 0x2b7   : > { %26591 = vmatprep.subr.bf16.mxu0 %v29252_v6  ;;  %26613 = vmatprep.subr.bf16.mxu1 %v29253_v7  ;;  %v29283_v5 = vld [vmem:[%s31076_s9 + $0x1210] sm:$0xff]   ;;  %v29285_v7 = vld [vmem:[%s31076_s9 + $0x1258] sm:$0xff]  }
 0x2b8   : > { %v29284_v6 = vld [vmem:[%s31076_s9 + $0x1290] sm:$0xff]  }
 0x2ba   : > { %26592 = vmatpush3.bf16.msra.mxu0 %v29254_v8  ;;  %26614 = vmatpush3.bf16.msra.mxu1 %v29255_v10  ;;  %v29286_v8 = vld [vmem:[%s31076_s9 + $0x12d8] sm:$0xff]  }
 0x2bb   : > { %26593 = vmatprep.subr.bf16.mxu0 %v29256_v12  ;;  %26615 = vmatprep.subr.bf16.mxu1 %v29257_v15  ;;  %v29288_v10 = vld [vmem:[%s31076_s9 + $0x1298] sm:$0xff]   ;;  %v29289_v12 = vld [vmem:[%s31076_s9 + $0x1260] sm:$0xff]  }
 0x2bd   : > { %v26293_v9 = vpop.f32.mrb[40].mxu0 }
 0x2be   : > { %v26294_v11 = vpop.f32.mrb[41].mxu0  ;;  %v26315_v13 = vpop.f32.mrb[40].mxu1  ;;  %26594 = vmatpush3.bf16.msra.mxu0 %v29258_v18  ;;  %26616 = vmatpush3.bf16.msra.mxu1 %v29259_v17  ;;  %v29291_v18 = vld [vmem:[%s31076_s9 + $0x1220] sm:$0xff]  }
 0x2bf   : > { %v26295_v14 = vadd.f32 %v26294_v11, %v26293_v9  ;;  %v26316_v16 = vpop.f32.mrb[41].mxu1  ;;  %v26296_v26 = vpop.f32.mrb[42].mxu0  ;;  %26595 = vmatprep.subr.bf16.mxu0 %v29260_v27  ;;  %26617 = vmatprep.subr.bf16.mxu1 %v29261_v28  ;;  %v29287_v9 = vld [vmem:[%s31076_s9 + $0x1218] sm:$0xff]   ;;  %v29293_v27 = vld [vmem:[%s31076_s9 + $0x1268] sm:$0xff]  }
 0x2c0   : > { %v26317_v25 = vadd.f32 %v26316_v16, %v26315_v13  ;;  %v26318_v21 = vpop.f32.mrb[42].mxu1  ;;  %v26297_v23 = vpop.f32.mrb[43].mxu0 }
 0x2c1   : > { %v18912_v19 = vadd.f32 %v26295_v14, %v32204_v22  ;;  %v26319_v24 = vpop.f32.mrb[43].mxu1  ;;  %v29262_v22 = vld [vmem:[%s31076_s9 + $0x1128] sm:$0xff]   ;;  %v29290_v14 = vld [vmem:[%s31076_s9 + $0x12e0] sm:$0xff]  }
 0x2c2   : > { %26596 = vmatpush3.bf16.msra.mxu0 %v29262_v22  ;;  %26618 = vmatpush3.bf16.msra.mxu1 %v29263_v30  ;;  %v29294_v24 = vld [vmem:[%s31076_s9 + $0x12e8] sm:$0xff]  }
 0x2c3   : > { %v32273_v20 = vadd.f32 %v26317_v25, %v18912_v19  ;;  %26597 = vmatprep.subr.bf16.mxu0 %v29264_v31  ;;  %26619 = vmatprep.subr.bf16.mxu1 %v29265_v33  ;;  %v29292_v25 = vld [vmem:[%s31076_s9 + $0x12a0] sm:$0xff]   ;;  %v29295_v30 = vld [vmem:[%s31076_s9 + $0x1228] sm:$0xff]   ;;  %v29298_v33 = vld [vmem:[%s31076_s9 + $0x12f0] sm:$0xff]  }
 0x2c6   : > { %26598 = vmatpush3.bf16.msra.mxu0 %v29266_v35  ;;  %26620 = vmatpush3.bf16.msra.mxu1 %v29267_v38  ;;  %v29299_v35 = vld [vmem:[%s31076_s9 + $0x1230] sm:$0xff]  }
 0x2c7   : > { %26599 = vmatprep.subr.bf16.mxu0 %v29268_v40  ;;  %26621 = vmatprep.subr.bf16.mxu1 %v29269_v41  ;;  %v29300_v38 = vld [vmem:[%s31076_s9 + $0x12b0] sm:$0xff]   ;;  %v29301_v40 = vld [vmem:[%s31076_s9 + $0x1278] sm:$0xff]   ;;  %v449_v41 = vadd.s32 9472, %v31126_v29 }
 0x2c9   : > { %vm690_vm4 = vcmp.lt.s32.totalorder %v449_v41, %v31134_v36  ;;  %v29334_v41 = vld [vmem:[%s31076_s9 + $0x1378] sm:$0xff]  }
 0x2ca   : > { %26600 = vmatpush3.bf16.msra.mxu0 %v29270_v42  ;;  %26622 = vmatpush3.bf16.msra.mxu1 %v29271_v43  ;;  %v29302_v42 = vld [vmem:[%s31076_s9 + $0x12f8] sm:$0xff]   ;;  %vm32381_vm7 = vmpackc.low %vm690_vm4, %vm690_vm4 }
 0x2cb   : > { %26629 = vmatprep.subr.bf16.mxu0 %v29273_v51  ;;  %26651 = vmatprep.subr.bf16.mxu1 %v29274_v55  ;;  %v29303_v43 = vld [vmem:[%s31076_s9 + $0x1238] sm:$0xff]   ;;  %v29306_v51 = vld [vmem:[%s31076_s9 + $0x1340] sm:$0xff]  }
 0x2cd   : > { %25316 = vmatmul.mubr.msk.bf16.vlgmr.msra.gmra.mrb[68].mxu0 %vm32305_vm14, %v25315_v56  ;;  %25322 = vmatmul.mubr.msk.bf16.vlgmr.msra.gmra.mrb[68].mxu1 %vm32311_vm15, %v25321_v61  ;;  %v29307_v56 = vld [vmem:[%s31076_s9 + $0x13c0] sm:$0xff]  }
 0x2ce   : > { %26630 = vmatpush3.bf16.msra.mxu0 %v29275_v57  ;;  %26652 = vmatpush3.bf16.msra.mxu1 %v29276_v60  ;;  %v25327_v57 = vpack.c.bf16 %v1289_v48, %v1289_v48  ;;  %v1298_v60 = vcombine.high %v1296_v54, %v1296_v54  ;;  %v29309_v61 = vld [vmem:[%s31076_s9 + $0x1380] sm:$0xff]   ;;  %v1306_v48 = vrot.slane %v875_v46, %v31145_v47  ;;  %v29370_v46 = vld [vmem:[%s31076_s9 + $0x14b8] sm:$0xff]  }
 0x2cf   : > { %26631 = vmatprep.subr.bf16.mxu0 %v29277_v62  ;;  %26653 = vmatprep.subr.bf16.mxu1 %v29278_v0  ;;  %v25333_v62 = vpack.c.bf16 %v1296_v54, %v1296_v54  ;;  %v1313_v54 = vrot.slane %v1299_v50, %v31145_v47 }
 0x2d0   : > { %25325 = vmatprep.mubr.msk.bf16.mxu0 %vm32365_vm3, %v25324_v59  ;;  %v25330_v0 = vpack.c.bf16 %v1298_v60, %v1298_v60  ;;  %v1314_v53 = vcombine.high %v1306_v48, %v1306_v48 }
 0x2d1   : > { %v1315_v60 = vcombine.high %v1313_v54, %v1313_v54 }
 0x2d2   : > { %26632 = vmatpush3.bf16.msra.mxu0 %v29279_v1  ;;  %26654 = vmatpush3.bf16.msra.mxu1 %v29280_v2  ;;  %v29311_v1 = vld [vmem:[%s31076_s9 + $0x13c8] sm:$0xff]   ;;  %v25336_v59 = vpack.c.bf16 %v1314_v53, %v1314_v53 }
 0x2d3   : > { %26633 = vmatprep.subr.bf16.mxu0 %v29281_v3  ;;  %26655 = vmatprep.subr.bf16.mxu1 %v29282_v4  ;;  %v29312_v2 = vld [vmem:[%s31076_s9 + $0x1308] sm:$0xff]   ;;  %v29314_v4 = vld [vmem:[%s31076_s9 + $0x1350] sm:$0xff]  }
 0x2d4   : > { %25331 = vmatprep.mubr.msk.bf16.mxu1 %vm32371_vm5, %v25330_v0  ;;  %v29313_v3 = vld [vmem:[%s31076_s9 + $0x1388] sm:$0xff]   ;;  %v25342_v0 = vpack.c.bf16 %v1315_v60, %v1315_v60  ;;  %v29374_v60 = vld [vmem:[%s31076_s9 + $0x1500] sm:$0xff]  }
 0x2d6   : > { %26634 = vmatpush3.bf16.msra.mxu0 %v29283_v5  ;;  %26656 = vmatpush3.bf16.msra.mxu1 %v29284_v6  ;;  %v29315_v5 = vld [vmem:[%s31076_s9 + $0x13d0] sm:$0xff]  }
 0x2d7   : > { %26635 = vmatprep.subr.bf16.mxu0 %v29285_v7  ;;  %26657 = vmatprep.subr.bf16.mxu1 %v29286_v8  ;;  %v29316_v6 = vld [vmem:[%s31076_s9 + $0x1310] sm:$0xff]   ;;  %v29318_v8 = vld [vmem:[%s31076_s9 + $0x1358] sm:$0xff]  }
 0x2d8   : > { %v29317_v7 = vld [vmem:[%s31076_s9 + $0x1390] sm:$0xff]  }
 0x2da   : > { %26636 = vmatpush3.bf16.msra.mxu0 %v29287_v9  ;;  %26658 = vmatpush3.bf16.msra.mxu1 %v29288_v10  ;;  %v29319_v9 = vld [vmem:[%s31076_s9 + $0x13d8] sm:$0xff]  }
 0x2db   : > { %26637 = vmatprep.subr.bf16.mxu0 %v29289_v12  ;;  %26659 = vmatprep.subr.bf16.mxu1 %v29290_v14  ;;  %v29320_v10 = vld [vmem:[%s31076_s9 + $0x1318] sm:$0xff]  }
 0x2de   : > { %v26359_v15 = vpop.f32.mrb[44].mxu1  ;;  %26638 = vmatpush3.bf16.msra.mxu0 %v29291_v18  ;;  %26660 = vmatpush3.bf16.msra.mxu1 %v29292_v25 }
 0x2df   : > { %v26360_v19 = vpop.f32.mrb[45].mxu1  ;;  %26639 = vmatprep.subr.bf16.mxu0 %v29293_v27  ;;  %26661 = vmatprep.subr.bf16.mxu1 %v29294_v24 }
 0x2e0   : > { %v26337_v11 = vpop.f32.mrb[44].mxu0  ;;  %v26361_v17 = vadd.f32 %v26360_v19, %v26359_v15  ;;  %v26362_v23 = vpop.f32.mrb[46].mxu1  ;;  %v29323_v15 = vld [vmem:[%s31076_s9 + $0x13e0] sm:$0xff]  }
 0x2e1   : > { %v26338_v13 = vpop.f32.mrb[45].mxu0  ;;  %v26363_v31 = vpop.f32.mrb[47].mxu1  ;;  %v29324_v19 = vld [vmem:[%s31076_s9 + $0x1320] sm:$0xff]   ;;  %v29326_v23 = vld [vmem:[%s31076_s9 + $0x1368] sm:$0xff]  }
 0x2e2   : > { %v26339_v16 = vadd.f32 %v26338_v13, %v26337_v11  ;;  %v26340_v21 = vpop.f32.mrb[46].mxu0  ;;  %26640 = vmatpush3.bf16.msra.mxu0 %v29295_v30  ;;  %v29321_v11 = vld [vmem:[%s31076_s9 + $0x1398] sm:$0xff]   ;;  %v29322_v13 = vld [vmem:[%s31076_s9 + $0x1360] sm:$0xff]   ;;  %v29327_v30 = vld [vmem:[%s31076_s9 + $0x13e8] sm:$0xff]  }
 0x2e3   : > { %v26341_v22 = vpop.f32.mrb[47].mxu0  ;;  %26641 = vmatprep.subr.bf16.mxu0 %v29297_v32 }
 0x2e4   : > { %v18992_v26 = vadd.f32 %v26339_v16, %v32273_v20  ;;  %v29296_v20 = vld [vmem:[%s31076_s9 + $0x12a8] sm:$0xff]  }
 0x2e5   : > { %26662 = vmatpush3.bf16.msra.mxu1 %v29296_v20  ;;  %v29328_v20 = vld [vmem:[%s31076_s9 + $0x1328] sm:$0xff]  }
 0x2e6   : > { %v32344_v28 = vadd.f32 %v26361_v17, %v18992_v26  ;;  %26663 = vmatprep.subr.bf16.mxu1 %v29298_v33  ;;  %26642 = vmatpush3.bf16.msra.mxu0 %v29299_v35  ;;  %v29325_v26 = vld [vmem:[%s31076_s9 + $0x13a0] sm:$0xff]   ;;  %v29330_v33 = vld [vmem:[%s31076_s9 + $0x1370] sm:$0xff]   ;;  %v452_v35 = vadd.s32 9856, %v31126_v29 }
 0x2e7   : > { %26643 = vmatprep.subr.bf16.mxu0 %v29301_v40  ;;  %v451_v40 = vadd.s32 9728, %v31126_v29 }
 0x2e8   : > { %vm693_vm8 = vcmp.lt.s32.totalorder %v452_v35, %v31134_v36  ;;  %v456_v35 = vadd.s32 10368, %v31126_v29 }
 0x2e9   : > { %26664 = vmatpush3.bf16.msra.mxu1 %v29300_v38  ;;  %v454_v38 = vadd.s32 10112, %v31126_v29  ;;  %vm692_vm10 = vcmp.lt.s32.totalorder %v451_v40, %v31134_v36  ;;  %vm32436_vm11 = vmpackc.low %vm693_vm8, %vm693_vm8  ;;  %v455_v40 = vadd.s32 10240, %v31126_v29 }
 0x2ea   : > { %26665 = vmatprep.subr.bf16.mxu1 %v29302_v42  ;;  %26644 = vmatpush3.bf16.msra.mxu0 %v29303_v43  ;;  %v453_v42 = vadd.s32 9984, %v31126_v29  ;;  %v29335_v43 = vld [vmem:[%s31076_s9 + $0x13f8] sm:$0xff]   ;;  %vm32447_vm14 = vmpackc.low %vm692_vm10, %vm692_vm10  ;;  %vm697_vm0 = vcmp.lt.s32.totalorder %v456_v35, %v31134_v36  ;;  %v29396_v35 = vld [vmem:[%s31076_s9 + $0x1570] sm:$0xff]  }
 0x2eb   : > { %26673 = vmatprep.subr.bf16.mxu0 %v29306_v51  ;;  %vm695_vm9 = vcmp.lt.s32.totalorder %v454_v38, %v31134_v36  ;;  %v458_v38 = vadd.s32 10624, %v31126_v29  ;;  %vm696_vm2 = vcmp.lt.s32.totalorder %v455_v40, %v31134_v36  ;;  %vm32505_vm3 = vmpackc.low %vm697_vm0, %vm697_vm0  ;;  %v462_v40 = vadd.s32 11136, %v31126_v29 }
 0x2ec   : > { %vm694_vm12 = vcmp.lt.s32.totalorder %v453_v42, %v31134_v36  ;;  %vm32441_vm13 = vmpackc.low %vm695_vm9, %vm695_vm9  ;;  %v457_v42 = vadd.s32 10496, %v31126_v29 }
 0x2ed   : > { %26666 = vmatpush3.bf16.msra.mxu1 %v29304_v44  ;;  %25328 = vmatmul.mubr.msk.bf16.vlgmr.msra.gmra.mrb[72].mxu0 %vm32376_vm6, %v25327_v57  ;;  %v29336_v44 = vld [vmem:[%s31076_s9 + $0x1338] sm:$0xff]   ;;  %v25339_v57 = vpack.c.bf16 %v1306_v48, %v1306_v48  ;;  %vm32452_vm15 = vmpackc.low %vm694_vm12, %vm694_vm12  ;;  %vm699_vm1 = vcmp.lt.s32.totalorder %v458_v38, %v31134_v36  ;;  %v460_v38 = vadd.s32 10880, %v31126_v29  ;;  %vm703_vm9 = vcmp.lt.s32.totalorder %v462_v40, %v31134_v36  ;;  %v29431_v40 = vld [vmem:[%s31076_s9 + $0x1630] sm:$0xff]  }
 0x2ee   : > { %26695 = vmatprep.subr.bf16.mxu1 %v29307_v56  ;;  %26674 = vmatpush3.bf16.msra.mxu0 %v29308_v58  ;;  %v29340_v56 = vld [vmem:[%s31076_s9 + $0x14c0] sm:$0xff]   ;;  %vm698_vm4 = vcmp.lt.s32.totalorder %v457_v42, %v31134_v36  ;;  %vm32511_vm5 = vmpackc.low %vm699_vm1, %vm699_vm1  ;;  %v459_v42 = vadd.s32 10752, %v31126_v29 }
 0x2ef   : > { %26675 = vmatprep.subr.bf16.mxu0 %v29310_v63  ;;  %v29342_v63 = vld [vmem:[%s31076_s9 + $0x1480] sm:$0xff]   ;;  %25337 = vmatprep.mubr.msk.bf16.mxu0 %vm32436_vm11, %v25336_v59  ;;  %vm32515_vm6 = vmpackc.low %vm696_vm2, %vm696_vm2  ;;  %vm701_vm8 = vcmp.lt.s32.totalorder %v460_v38, %v31134_v36  ;;  %v29430_v38 = vld [vmem:[%s31076_s9 + $0x16f0] sm:$0xff]  }
 0x2f0   : > { %25334 = vmatmul.mubr.msk.bf16.vlgmr.msra.gmra.mrb[72].mxu1 %vm32381_vm7, %v25333_v62  ;;  %v25345_v62 = vpack.c.bf16 %v1313_v54, %v1313_v54  ;;  %v876_v48 = vld [vmem:[%s31094_s18 + $0xa0] sm:$0xff]  ;;  %vm32521_vm7 = vmpackc.low %vm698_vm4, %vm698_vm4  ;;  %vm700_vm10 = vcmp.lt.s32.totalorder %v459_v42, %v31134_v36  ;;  %v29432_v42 = vld [vmem:[%s31076_s9 + $0x16b0] sm:$0xff]  }
 0x2f1   : > { %26696 = vmatpush3.bf16.msra.mxu1 %v29309_v61  ;;  %v29341_v61 = vld [vmem:[%s31076_s9 + $0x1400] sm:$0xff]   ;;  %25343 = vmatprep.mubr.msk.bf16.mxu1 %vm32441_vm13, %v25342_v0  ;;  %v1323_v50 = vrot.slane %v876_v48, %v31145_v47  ;;  %v1316_v51 = vcombine.high %v876_v48, %v876_v48  ;;  %v29403_v48 = vld [vmem:[%s31076_s9 + $0x15b8] sm:$0xff]   ;;  %vm32575_vm11 = vmpackc.low %vm701_vm8, %vm701_vm8 }
 0x2f2   : > { %26697 = vmatprep.subr.bf16.mxu1 %v29311_v1  ;;  %26676 = vmatpush3.bf16.msra.mxu0 %v29312_v2  ;;  %v29343_v1 = vld [vmem:[%s31076_s9 + $0x1448] sm:$0xff]   ;;  %v29372_v54 = vld [vmem:[%s31076_s9 + $0x1540] sm:$0xff]   ;;  %vm32581_vm13 = vmpackc.low %vm703_vm9, %vm703_vm9 }
 0x2f3   : > { %26677 = vmatprep.subr.bf16.mxu0 %v29314_v4  ;;  %v29344_v2 = vld [vmem:[%s31076_s9 + $0x14c8] sm:$0xff]   ;;  %v1331_v55 = vcombine.high %v1323_v50, %v1323_v50  ;;  %v29373_v58 = vld [vmem:[%s31076_s9 + $0x15c0] sm:$0xff]   ;;  %v25351_v59 = vpack.c.bf16 %v1323_v50, %v1323_v50 }
 0x2f4   : > { %v29346_v4 = vld [vmem:[%s31076_s9 + $0x1488] sm:$0xff]  }
 0x2f5   : > { %26698 = vmatpush3.bf16.msra.mxu1 %v29313_v3  ;;  %v29345_v3 = vld [vmem:[%s31076_s9 + $0x1408] sm:$0xff]  }
 0x2f6   : > { %26699 = vmatprep.subr.bf16.mxu1 %v29315_v5  ;;  %26678 = vmatpush3.bf16.msra.mxu0 %v29316_v6  ;;  %v29347_v5 = vld [vmem:[%s31076_s9 + $0x1450] sm:$0xff]  }
 0x2f7   : > { %26679 = vmatprep.subr.bf16.mxu0 %v29318_v8  ;;  %v29348_v6 = vld [vmem:[%s31076_s9 + $0x14d0] sm:$0xff]  }
 0x2f8   : > { %v29350_v8 = vld [vmem:[%s31076_s9 + $0x1490] sm:$0xff]  }
 0x2f9   : > { %26700 = vmatpush3.bf16.msra.mxu1 %v29317_v7  ;;  %v29349_v7 = vld [vmem:[%s31076_s9 + $0x1410] sm:$0xff]  }
 0x2fa   : > { %26701 = vmatprep.subr.bf16.mxu1 %v29319_v9  ;;  %26680 = vmatpush3.bf16.msra.mxu0 %v29320_v10  ;;  %v29351_v9 = vld [vmem:[%s31076_s9 + $0x1458] sm:$0xff]   ;;  %v878_v50 = vld [vmem:[%s31094_s18 + $0xb0] sm:$0xff] }
 0x2fb   : > { %26681 = vmatprep.subr.bf16.mxu0 %v29322_v13  ;;  %v29352_v10 = vld [vmem:[%s31076_s9 + $0x14d8] sm:$0xff]   ;;  %v1350_v53 = vcombine.high %v878_v50, %v878_v50 }
 0x2fc   : > { %v29354_v13 = vld [vmem:[%s31076_s9 + $0x1498] sm:$0xff]  }
 0x2fd   : > { %26702 = vmatpush3.bf16.msra.mxu1 %v29321_v11  ;;  %v29353_v11 = vld [vmem:[%s31076_s9 + $0x1418] sm:$0xff]  }
 0x2fe   : > { %26703 = vmatprep.subr.bf16.mxu1 %v29323_v15  ;;  %26682 = vmatpush3.bf16.msra.mxu0 %v29324_v19  ;;  %v29355_v15 = vld [vmem:[%s31076_s9 + $0x1460] sm:$0xff]  }
 0x2ff   : > { %26683 = vmatprep.subr.bf16.mxu0 %v29326_v23  ;;  %v29356_v19 = vld [vmem:[%s31076_s9 + $0x14e0] sm:$0xff]  }
 0x300   : > { %v26381_v12 = vpop.f32.mrb[48].mxu0  ;;  %v26403_v16 = vpop.f32.mrb[48].mxu1  ;;  %v29358_v23 = vld [vmem:[%s31076_s9 + $0x14a0] sm:$0xff]  }
 0x301   : > { %v26382_v14 = vpop.f32.mrb[49].mxu0  ;;  %v26404_v25 = vpop.f32.mrb[49].mxu1  ;;  %26704 = vmatpush3.bf16.msra.mxu1 %v29325_v26  ;;  %v29357_v26 = vld [vmem:[%s31076_s9 + $0x1420] sm:$0xff]  }
 0x302   : > { %v26383_v18 = vadd.f32 %v26382_v14, %v26381_v12  ;;  %v26405_v21 = vadd.f32 %v26404_v25, %v26403_v16  ;;  %v26384_v27 = vpop.f32.mrb[50].mxu0  ;;  %v26406_v24 = vpop.f32.mrb[50].mxu1  ;;  %26705 = vmatprep.subr.bf16.mxu1 %v29327_v30  ;;  %26684 = vmatpush3.bf16.msra.mxu0 %v29328_v20 }
 0x303   : > { %v26385_v31 = vpop.f32.mrb[51].mxu0  ;;  %v26407_v32 = vpop.f32.mrb[51].mxu1  ;;  %26685 = vmatprep.subr.bf16.mxu0 %v29330_v33  ;;  %v29362_v33 = vld [vmem:[%s31076_s9 + $0x14a8] sm:$0xff]  }
 0x304   : > { %v19072_v17 = vadd.f32 %v26383_v18, %v32344_v28  ;;  %v29329_v28 = vld [vmem:[%s31076_s9 + $0x13a8] sm:$0xff]  }
 0x305   : > { %26706 = vmatpush3.bf16.msra.mxu1 %v29329_v28  ;;  %v29359_v31 = vld [vmem:[%s31076_s9 + $0x1468] sm:$0xff]  }
 0x306   : > { %v32414_v22 = vadd.f32 %v26405_v21, %v19072_v17  ;;  %26707 = vmatprep.subr.bf16.mxu1 %v29331_v34  ;;  %26686 = vmatpush3.bf16.msra.mxu0 %v29332_v37  ;;  %v29360_v32 = vld [vmem:[%s31076_s9 + $0x14e8] sm:$0xff]   ;;  %v29363_v34 = vld [vmem:[%s31076_s9 + $0x1470] sm:$0xff]  }
 0x307   : > { %26687 = vmatprep.subr.bf16.mxu0 %v29334_v41  ;;  %v29364_v37 = vld [vmem:[%s31076_s9 + $0x14f0] sm:$0xff]  }
 0x308   : > { %v29366_v41 = vld [vmem:[%s31076_s9 + $0x14b0] sm:$0xff]  }
 0x309   : > { %26708 = vmatpush3.bf16.msra.mxu1 %v29333_v39  ;;  %v29365_v39 = vld [vmem:[%s31076_s9 + $0x1430] sm:$0xff]  }
 0x30a   : > { %26709 = vmatprep.subr.bf16.mxu1 %v29335_v43  ;;  %26688 = vmatpush3.bf16.msra.mxu0 %v29336_v44  ;;  %v29367_v43 = vld [vmem:[%s31076_s9 + $0x1478] sm:$0xff]  }
 0x30b   : > { %26717 = vmatprep.subr.bf16.mxu0 %v29339_v52  ;;  %v29368_v44 = vld [vmem:[%s31076_s9 + $0x14f8] sm:$0xff]   ;;  %v1333_v52 = vcombine.high %v877_v49, %v877_v49 }
 0x30d   : > { %26710 = vmatpush3.bf16.msra.mxu1 %v29337_v45  ;;  %25340 = vmatmul.mubr.msk.bf16.vlgmr.msra.gmra.mrb[76].mxu0 %vm32447_vm14, %v25339_v57  ;;  %v29369_v45 = vld [vmem:[%s31076_s9 + $0x1438] sm:$0xff]   ;;  %vm32586_vm14 = vmpackc.low %vm700_vm10, %vm700_vm10  ;;  %v1347_v57 = vrot.slane %v1333_v52, %v31145_v47 }
 0x30e   : > { %26739 = vmatprep.subr.bf16.mxu1 %v29340_v56  ;;  %26718 = vmatpush3.bf16.msra.mxu0 %v29341_v61  ;;  %v1330_v56 = vrot.slane %v1316_v51, %v31145_v47  ;;  %v25348_v61 = vpack.c.bf16 %v1331_v55, %v1331_v55  ;;  %v1340_v51 = vrot.slane %v877_v49, %v31145_v47  ;;  %v29436_v49 = vld [vmem:[%s31076_s9 + $0x16b8] sm:$0xff]   ;;  %v29438_v55 = vld [vmem:[%s31076_s9 + $0x1740] sm:$0xff]  }
 0x30f   : > { %26719 = vmatprep.subr.bf16.mxu0 %v29343_v1  ;;  %v29376_v1 = vld [vmem:[%s31076_s9 + $0x1548] sm:$0xff]   ;;  %v880_v52 = vld [vmem:[%s31094_s18 + $0xc0] sm:$0xff] }
 0x310   : > { %25346 = vmatmul.mubr.msk.bf16.vlgmr.msra.gmra.mrb[76].mxu1 %vm32452_vm15, %v25345_v62  ;;  %v1332_v62 = vcombine.high %v1330_v56, %v1330_v56  ;;  %v25357_v0 = vpack.c.bf16 %v1330_v56, %v1330_v56  ;;  %25349 = vmatprep.mubr.msk.bf16.mxu0 %vm32505_vm3, %v25348_v61  ;;  %v1348_v56 = vcombine.high %v1340_v51, %v1340_v51  ;;  %v29407_v61 = vld [vmem:[%s31076_s9 + $0x1600] sm:$0xff]  }
 0x311   : > { %26740 = vmatpush3.bf16.msra.mxu1 %v29342_v63  ;;  %v29375_v63 = vld [vmem:[%s31076_s9 + $0x1580] sm:$0xff]  }
 0x312   : > { %26741 = vmatprep.subr.bf16.mxu1 %v29344_v2  ;;  %26720 = vmatpush3.bf16.msra.mxu0 %v29345_v3  ;;  %v25354_v2 = vpack.c.bf16 %v1332_v62, %v1332_v62  ;;  %v29377_v3 = vld [vmem:[%s31076_s9 + $0x15c8] sm:$0xff]   ;;  %v25360_v62 = vpack.c.bf16 %v1348_v56, %v1348_v56 }
 0x313   : > { %26721 = vmatprep.subr.bf16.mxu0 %v29347_v5  ;;  %v29379_v5 = vld [vmem:[%s31076_s9 + $0x1588] sm:$0xff]  }
 0x314   : > { %25355 = vmatprep.mubr.msk.bf16.mxu1 %vm32511_vm5, %v25354_v2  ;;  %v29409_v2 = vld [vmem:[%s31076_s9 + $0x1648] sm:$0xff]  }
 0x315   : > { %26742 = vmatpush3.bf16.msra.mxu1 %v29346_v4  ;;  %v29378_v4 = vld [vmem:[%s31076_s9 + $0x1508] sm:$0xff]  }
 0x316   : > { %26743 = vmatprep.subr.bf16.mxu1 %v29348_v6  ;;  %26722 = vmatpush3.bf16.msra.mxu0 %v29349_v7  ;;  %v29380_v6 = vld [vmem:[%s31076_s9 + $0x1550] sm:$0xff]  }
 0x317   : > { %26723 = vmatprep.subr.bf16.mxu0 %v29351_v9  ;;  %v29381_v7 = vld [vmem:[%s31076_s9 + $0x15d0] sm:$0xff]  }
 0x318   : > { %v29383_v9 = vld [vmem:[%s31076_s9 + $0x1590] sm:$0xff]  }
 0x319   : > { %26744 = vmatpush3.bf16.msra.mxu1 %v29350_v8  ;;  %v29382_v8 = vld [vmem:[%s31076_s9 + $0x1510] sm:$0xff]  }
 0x31a   : > { %26745 = vmatprep.subr.bf16.mxu1 %v29352_v10  ;;  %26724 = vmatpush3.bf16.msra.mxu0 %v29353_v11  ;;  %v29384_v10 = vld [vmem:[%s31076_s9 + $0x1558] sm:$0xff]  }
 0x31b   : > { %26725 = vmatprep.subr.bf16.mxu0 %v29355_v15  ;;  %v29385_v11 = vld [vmem:[%s31076_s9 + $0x15d8] sm:$0xff]   ;;  %v29388_v15 = vld [vmem:[%s31076_s9 + $0x1560] sm:$0xff]  }
 0x31d   : > { %26746 = vmatpush3.bf16.msra.mxu1 %v29354_v13  ;;  %v29387_v13 = vld [vmem:[%s31076_s9 + $0x1598] sm:$0xff]  }
 0x31e   : > { %26747 = vmatprep.subr.bf16.mxu1 %v29356_v19  ;;  %26726 = vmatpush3.bf16.msra.mxu0 %v29357_v26  ;;  %v29390_v26 = vld [vmem:[%s31076_s9 + $0x1520] sm:$0xff]  }
 0x31f   : > { %26727 = vmatprep.subr.bf16.mxu0 %v29359_v31  ;;  %v29392_v31 = vld [vmem:[%s31076_s9 + $0x1568] sm:$0xff]  }
 0x320   : > { %v26425_v12 = vpop.f32.mrb[52].mxu0  ;;  %v26447_v16 = vpop.f32.mrb[52].mxu1 }
 0x321   : > { %v26426_v14 = vpop.f32.mrb[53].mxu0  ;;  %v26448_v25 = vpop.f32.mrb[53].mxu1  ;;  %26748 = vmatpush3.bf16.msra.mxu1 %v29358_v23 }
 0x322   : > { %v26427_v18 = vadd.f32 %v26426_v14, %v26425_v12  ;;  %v26449_v21 = vadd.f32 %v26448_v25, %v26447_v16  ;;  %v26428_v27 = vpop.f32.mrb[54].mxu0  ;;  %v26450_v24 = vpop.f32.mrb[54].mxu1  ;;  %26749 = vmatprep.subr.bf16.mxu1 %v29360_v32  ;;  %v29386_v12 = vld [vmem:[%s31076_s9 + $0x1518] sm:$0xff]  }
 0x323   : > { %v26429_v20 = vpop.f32.mrb[55].mxu0  ;;  %v26451_v28 = vpop.f32.mrb[55].mxu1 }
 0x324   : > { %v19152_v17 = vadd.f32 %v26427_v18, %v32414_v22  ;;  %v29361_v22 = vld [vmem:[%s31076_s9 + $0x1428] sm:$0xff]   ;;  %v29389_v18 = vld [vmem:[%s31076_s9 + $0x15e0] sm:$0xff]  }
 0x325   : > { %26728 = vmatpush3.bf16.msra.mxu0 %v29361_v22  ;;  %26750 = vmatpush3.bf16.msra.mxu1 %v29362_v33  ;;  %v29393_v28 = vld [vmem:[%s31076_s9 + $0x15e8] sm:$0xff]  }
 0x326   : > { %v32483_v30 = vadd.f32 %v26449_v21, %v19152_v17  ;;  %26729 = vmatprep.subr.bf16.mxu0 %v29363_v34  ;;  %26751 = vmatprep.subr.bf16.mxu1 %v29364_v37  ;;  %v29391_v21 = vld [vmem:[%s31076_s9 + $0x15a0] sm:$0xff]   ;;  %v29394_v33 = vld [vmem:[%s31076_s9 + $0x1528] sm:$0xff]   ;;  %v29397_v37 = vld [vmem:[%s31076_s9 + $0x15f0] sm:$0xff]  }
 0x329   : > { %26730 = vmatpush3.bf16.msra.mxu0 %v29365_v39  ;;  %26752 = vmatpush3.bf16.msra.mxu1 %v29366_v41  ;;  %v29398_v39 = vld [vmem:[%s31076_s9 + $0x1530] sm:$0xff]  }
 0x32a   : > { %26731 = vmatprep.subr.bf16.mxu0 %v29367_v43  ;;  %26753 = vmatprep.subr.bf16.mxu1 %v29368_v44  ;;  %v29399_v41 = vld [vmem:[%s31076_s9 + $0x15b0] sm:$0xff]   ;;  %v29400_v43 = vld [vmem:[%s31076_s9 + $0x1578] sm:$0xff]   ;;  %v461_v44 = vadd.s32 11008, %v31126_v29 }
 0x32c   : > { %vm702_vm12 = vcmp.lt.s32.totalorder %v461_v44, %v31134_v36  ;;  %v29433_v44 = vld [vmem:[%s31076_s9 + $0x1678] sm:$0xff]  }
 0x32d   : > { %26732 = vmatpush3.bf16.msra.mxu0 %v29369_v45  ;;  %26754 = vmatpush3.bf16.msra.mxu1 %v29370_v46  ;;  %v29401_v45 = vld [vmem:[%s31076_s9 + $0x15f8] sm:$0xff]   ;;  %vm32591_vm15 = vmpackc.low %vm702_vm12, %vm702_vm12 }
 0x32e   : > { %26761 = vmatprep.subr.bf16.mxu0 %v29372_v54  ;;  %26783 = vmatprep.subr.bf16.mxu1 %v29373_v58  ;;  %v29402_v46 = vld [vmem:[%s31076_s9 + $0x1538] sm:$0xff]   ;;  %v29405_v54 = vld [vmem:[%s31076_s9 + $0x1640] sm:$0xff]  }
 0x330   : > { %25352 = vmatmul.mubr.msk.bf16.vlgmr.msra.gmra.mrb[80].mxu0 %vm32515_vm6, %v25351_v59  ;;  %25358 = vmatmul.mubr.msk.bf16.vlgmr.msra.gmra.mrb[80].mxu1 %vm32521_vm7, %v25357_v0  ;;  %v29406_v59 = vld [vmem:[%s31076_s9 + $0x16c0] sm:$0xff]  }
 0x331   : > { %26762 = vmatpush3.bf16.msra.mxu0 %v29374_v60  ;;  %26784 = vmatpush3.bf16.msra.mxu1 %v29375_v63  ;;  %v25363_v60 = vpack.c.bf16 %v1340_v51, %v1340_v51  ;;  %v1349_v63 = vcombine.high %v1347_v57, %v1347_v57  ;;  %v29408_v0 = vld [vmem:[%s31076_s9 + $0x1680] sm:$0xff]   ;;  %v1357_v51 = vrot.slane %v878_v50, %v31145_v47  ;;  %v29469_v50 = vld [vmem:[%s31076_s9 + $0x17b8] sm:$0xff]  }
 0x332   : > { %26763 = vmatprep.subr.bf16.mxu0 %v29376_v1  ;;  %26785 = vmatprep.subr.bf16.mxu1 %v29377_v3  ;;  %v25369_v1 = vpack.c.bf16 %v1347_v57, %v1347_v57  ;;  %v1364_v57 = vrot.slane %v1350_v53, %v31145_v47 }
 0x333   : > { %25361 = vmatprep.mubr.msk.bf16.mxu0 %vm32575_vm11, %v25360_v62  ;;  %v25366_v3 = vpack.c.bf16 %v1349_v63, %v1349_v63  ;;  %v1365_v56 = vcombine.high %v1357_v51, %v1357_v51 }
 0x334   : > { %v1366_v63 = vcombine.high %v1364_v57, %v1364_v57 }
 0x335   : > { %26764 = vmatpush3.bf16.msra.mxu0 %v29378_v4  ;;  %26786 = vmatpush3.bf16.msra.mxu1 %v29379_v5  ;;  %v29410_v4 = vld [vmem:[%s31076_s9 + $0x16c8] sm:$0xff]   ;;  %v25372_v62 = vpack.c.bf16 %v1365_v56, %v1365_v56 }
 0x336   : > { %26765 = vmatprep.subr.bf16.mxu0 %v29380_v6  ;;  %26787 = vmatprep.subr.bf16.mxu1 %v29381_v7  ;;  %v29411_v5 = vld [vmem:[%s31076_s9 + $0x1608] sm:$0xff]   ;;  %v29413_v7 = vld [vmem:[%s31076_s9 + $0x1650] sm:$0xff]  }
 0x337   : > { %25367 = vmatprep.mubr.msk.bf16.mxu1 %vm32581_vm13, %v25366_v3  ;;  %v29412_v6 = vld [vmem:[%s31076_s9 + $0x1688] sm:$0xff]   ;;  %v25378_v3 = vpack.c.bf16 %v1366_v63, %v1366_v63  ;;  %v29473_v63 = vld [vmem:[%s31076_s9 + $0x1800] sm:$0xff]  }
 0x339   : > { %26766 = vmatpush3.bf16.msra.mxu0 %v29382_v8  ;;  %26788 = vmatpush3.bf16.msra.mxu1 %v29383_v9  ;;  %v29414_v8 = vld [vmem:[%s31076_s9 + $0x16d0] sm:$0xff]  }
 0x33a   : > { %26767 = vmatprep.subr.bf16.mxu0 %v29384_v10  ;;  %26789 = vmatprep.subr.bf16.mxu1 %v29385_v11  ;;  %v29415_v9 = vld [vmem:[%s31076_s9 + $0x1610] sm:$0xff]   ;;  %v29417_v11 = vld [vmem:[%s31076_s9 + $0x1658] sm:$0xff]  }
 0x33b   : > { %v29416_v10 = vld [vmem:[%s31076_s9 + $0x1690] sm:$0xff]  }
 0x33d   : > { %26768 = vmatpush3.bf16.msra.mxu0 %v29386_v12  ;;  %26790 = vmatpush3.bf16.msra.mxu1 %v29387_v13  ;;  %v29418_v12 = vld [vmem:[%s31076_s9 + $0x16d8] sm:$0xff]  }
 0x33e   : > { %26769 = vmatprep.subr.bf16.mxu0 %v29388_v15  ;;  %26791 = vmatprep.subr.bf16.mxu1 %v29389_v18  ;;  %v29419_v13 = vld [vmem:[%s31076_s9 + $0x1618] sm:$0xff]  }
 0x340   : > { %v26469_v14 = vpop.f32.mrb[56].mxu0  ;;  %v26491_v19 = vpop.f32.mrb[56].mxu1 }
 0x341   : > { %v26470_v16 = vpop.f32.mrb[57].mxu0  ;;  %v26492_v17 = vpop.f32.mrb[57].mxu1  ;;  %26770 = vmatpush3.bf16.msra.mxu0 %v29390_v26  ;;  %26792 = vmatpush3.bf16.msra.mxu1 %v29391_v21 }
 0x342   : > { %v26471_v25 = vadd.f32 %v26470_v16, %v26469_v14  ;;  %v26493_v23 = vadd.f32 %v26492_v17, %v26491_v19  ;;  %v26472_v24 = vpop.f32.mrb[58].mxu0  ;;  %v26494_v20 = vpop.f32.mrb[58].mxu1  ;;  %26771 = vmatprep.subr.bf16.mxu0 %v29392_v31  ;;  %26793 = vmatprep.subr.bf16.mxu1 %v29393_v28  ;;  %v29420_v14 = vld [vmem:[%s31076_s9 + $0x1698] sm:$0xff]   ;;  %v29421_v16 = vld [vmem:[%s31076_s9 + $0x1660] sm:$0xff]  }
 0x343   : > { %v26473_v22 = vpop.f32.mrb[59].mxu0  ;;  %v26495_v34 = vpop.f32.mrb[59].mxu1  ;;  %v29422_v19 = vld [vmem:[%s31076_s9 + $0x16e0] sm:$0xff]   ;;  %v29425_v20 = vld [vmem:[%s31076_s9 + $0x1668] sm:$0xff]  }
 0x344   : > { %v19232_v27 = vadd.f32 %v26471_v25, %v32483_v30  ;;  %v29395_v30 = vld [vmem:[%s31076_s9 + $0x15a8] sm:$0xff]   ;;  %v29423_v17 = vld [vmem:[%s31076_s9 + $0x1620] sm:$0xff]  }
 0x345   : > { %26772 = vmatpush3.bf16.msra.mxu0 %v29394_v33  ;;  %26794 = vmatpush3.bf16.msra.mxu1 %v29395_v30  ;;  %v29426_v33 = vld [vmem:[%s31076_s9 + $0x16e8] sm:$0xff]  }
 0x346   : > { %v32554_v32 = vadd.f32 %v26493_v23, %v19232_v27  ;;  %26773 = vmatprep.subr.bf16.mxu0 %v29396_v35  ;;  %26795 = vmatprep.subr.bf16.mxu1 %v29397_v37  ;;  %v29424_v27 = vld [vmem:[%s31076_s9 + $0x16a0] sm:$0xff]   ;;  %v29427_v30 = vld [vmem:[%s31076_s9 + $0x1628] sm:$0xff]   ;;  %v29429_v37 = vld [vmem:[%s31076_s9 + $0x1670] sm:$0xff]  }
 0x349   : > { %26774 = vmatpush3.bf16.msra.mxu0 %v29398_v39  ;;  %26796 = vmatpush3.bf16.msra.mxu1 %v29399_v41  ;;  %v464_v39 = vadd.s32 11392, %v31126_v29  ;;  %v466_v41 = vadd.s32 11648, %v31126_v29 }
 0x34a   : > { %26775 = vmatprep.subr.bf16.mxu0 %v29400_v43  ;;  %26797 = vmatprep.subr.bf16.mxu1 %v29401_v45  ;;  %v463_v43 = vadd.s32 11264, %v31126_v29  ;;  %v465_v45 = vadd.s32 11520, %v31126_v29 }
 0x34b   : > { %vm705_vm0 = vcmp.lt.s32.totalorder %v464_v39, %v31134_v36  ;;  %vm707_vm1 = vcmp.lt.s32.totalorder %v466_v41, %v31134_v36  ;;  %v468_v39 = vadd.s32 11904, %v31126_v29  ;;  %v470_v41 = vadd.s32 12160, %v31126_v29 }
 0x34c   : > { %vm704_vm2 = vcmp.lt.s32.totalorder %v463_v43, %v31134_v36  ;;  %vm32646_vm3 = vmpackc.low %vm705_vm0, %vm705_vm0  ;;  %vm706_vm4 = vcmp.lt.s32.totalorder %v465_v45, %v31134_v36  ;;  %v467_v43 = vadd.s32 11776, %v31126_v29  ;;  %v469_v45 = vadd.s32 12032, %v31126_v29 }
 0x34d   : > { %26776 = vmatpush3.bf16.msra.mxu0 %v29402_v46  ;;  %26798 = vmatpush3.bf16.msra.mxu1 %v29403_v48  ;;  %v29434_v46 = vld [vmem:[%s31076_s9 + $0x16f8] sm:$0xff]   ;;  %vm32651_vm5 = vmpackc.low %vm707_vm1, %vm707_vm1  ;;  %vm709_vm8 = vcmp.lt.s32.totalorder %v468_v39, %v31134_v36  ;;  %vm711_vm9 = vcmp.lt.s32.totalorder %v470_v41, %v31134_v36  ;;  %v29495_v39 = vld [vmem:[%s31076_s9 + $0x1870] sm:$0xff]   ;;  %v472_v41 = vadd.s32 12416, %v31126_v29 }
 0x34e   : > { %26805 = vmatprep.subr.bf16.mxu0 %v29405_v54  ;;  %26827 = vmatprep.subr.bf16.mxu1 %v29406_v59  ;;  %v29435_v48 = vld [vmem:[%s31076_s9 + $0x1638] sm:$0xff]   ;;  %vm32657_vm6 = vmpackc.low %vm704_vm2, %vm704_vm2  ;;  %v29439_v59 = vld [vmem:[%s31076_s9 + $0x17c0] sm:$0xff]   ;;  %vm708_vm10 = vcmp.lt.s32.totalorder %v467_v43, %v31134_v36  ;;  %vm710_vm12 = vcmp.lt.s32.totalorder %v469_v45, %v31134_v36  ;;  %v474_v43 = vadd.s32 12672, %v31126_v29  ;;  %v471_v45 = vadd.s32 12288, %v31126_v29 }
 0x34f   : > { %vm32662_vm7 = vmpackc.low %vm706_vm4, %vm706_vm4  ;;  %vm713_vm0 = vcmp.lt.s32.totalorder %v472_v41, %v31134_v36  ;;  %v29529_v41 = vld [vmem:[%s31076_s9 + $0x19f0] sm:$0xff]  }
 0x350   : > { %25364 = vmatmul.mubr.msk.bf16.vlgmr.msra.gmra.mrb[84].mxu0 %vm32586_vm14, %v25363_v60  ;;  %25370 = vmatmul.mubr.msk.bf16.vlgmr.msra.gmra.mrb[84].mxu1 %vm32591_vm15, %v25369_v1  ;;  %v25375_v60 = vpack.c.bf16 %v1357_v51, %v1357_v51  ;;  %v25381_v1 = vpack.c.bf16 %v1364_v57, %v1364_v57  ;;  %v879_v51 = vld [vmem:[%s31094_s18 + $0xb8] sm:$0xff]  ;;  %vm32715_vm11 = vmpackc.low %vm709_vm8, %vm709_vm8  ;;  %v29471_v57 = vld [vmem:[%s31076_s9 + $0x1840] sm:$0xff]   ;;  %vm715_vm1 = vcmp.lt.s32.totalorder %v474_v43, %v31134_v36 }
 0x351   : > { %26806 = vmatpush3.bf16.msra.mxu0 %v29407_v61  ;;  %26828 = vmatpush3.bf16.msra.mxu1 %v29408_v0  ;;  %v29440_v0 = vld [vmem:[%s31076_s9 + $0x1700] sm:$0xff]   ;;  %v1374_v53 = vrot.slane %v879_v51, %v31145_v47  ;;  %v1367_v54 = vcombine.high %v879_v51, %v879_v51  ;;  %vm32721_vm13 = vmpackc.low %vm711_vm9, %vm711_vm9  ;;  %v29502_v51 = vld [vmem:[%s31076_s9 + $0x18b8] sm:$0xff]   ;;  %vm712_vm2 = vcmp.lt.s32.totalorder %v471_v45, %v31134_v36 }
 0x352   : > { %26807 = vmatprep.subr.bf16.mxu0 %v29409_v2  ;;  %26829 = vmatprep.subr.bf16.mxu1 %v29410_v4  ;;  %v29441_v2 = vld [vmem:[%s31076_s9 + $0x1780] sm:$0xff]   ;;  %v29442_v4 = vld [vmem:[%s31076_s9 + $0x1748] sm:$0xff]   ;;  %vm32725_vm14 = vmpackc.low %vm708_vm10, %vm708_vm10 }
 0x353   : > { %25373 = vmatprep.mubr.msk.bf16.mxu0 %vm32646_vm3, %v25372_v62  ;;  %25379 = vmatprep.mubr.msk.bf16.mxu1 %vm32651_vm5, %v25378_v3  ;;  %v1382_v58 = vcombine.high %v1374_v53, %v1374_v53  ;;  %vm32731_vm15 = vmpackc.low %vm710_vm12, %vm710_vm12  ;;  %v29472_v61 = vld [vmem:[%s31076_s9 + $0x18c0] sm:$0xff]   ;;  %v25387_v62 = vpack.c.bf16 %v1374_v53, %v1374_v53  ;;  %v29530_v43 = vld [vmem:[%s31076_s9 + $0x1930] sm:$0xff]  }
 0x354   : > { %vm32785_vm3 = vmpackc.low %vm713_vm0, %vm713_vm0  ;;  %v29531_v45 = vld [vmem:[%s31076_s9 + $0x19b0] sm:$0xff]   ;;  %v881_v53 = vld [vmem:[%s31094_s18 + $0xc8] sm:$0xff] }
 0x355   : > { %26808 = vmatpush3.bf16.msra.mxu0 %v29411_v5  ;;  %26830 = vmatpush3.bf16.msra.mxu1 %v29412_v6  ;;  %v29443_v5 = vld [vmem:[%s31076_s9 + $0x17c8] sm:$0xff]   ;;  %vm32791_vm5 = vmpackc.low %vm715_vm1, %vm715_vm1  ;;  %v1401_v56 = vcombine.high %v881_v53, %v881_v53 }
 0x356   : > { %26809 = vmatprep.subr.bf16.mxu0 %v29413_v7  ;;  %26831 = vmatprep.subr.bf16.mxu1 %v29414_v8  ;;  %v29444_v6 = vld [vmem:[%s31076_s9 + $0x1708] sm:$0xff]   ;;  %v29446_v8 = vld [vmem:[%s31076_s9 + $0x1750] sm:$0xff]  }
 0x357   : > { %v29445_v7 = vld [vmem:[%s31076_s9 + $0x1788] sm:$0xff]  }
 0x359   : > { %26810 = vmatpush3.bf16.msra.mxu0 %v29415_v9  ;;  %26832 = vmatpush3.bf16.msra.mxu1 %v29416_v10  ;;  %v29447_v9 = vld [vmem:[%s31076_s9 + $0x17d0] sm:$0xff]  }
 0x35a   : > { %26811 = vmatprep.subr.bf16.mxu0 %v29417_v11  ;;  %26833 = vmatprep.subr.bf16.mxu1 %v29418_v12  ;;  %v29448_v10 = vld [vmem:[%s31076_s9 + $0x1710] sm:$0xff]   ;;  %v29450_v12 = vld [vmem:[%s31076_s9 + $0x1758] sm:$0xff]  }
 0x35b   : > { %v29449_v11 = vld [vmem:[%s31076_s9 + $0x1790] sm:$0xff]  }
 0x35d   : > { %26812 = vmatpush3.bf16.msra.mxu0 %v29419_v13  ;;  %26834 = vmatpush3.bf16.msra.mxu1 %v29420_v14  ;;  %v29451_v13 = vld [vmem:[%s31076_s9 + $0x17d8] sm:$0xff]  }
 0x35e   : > { %26813 = vmatprep.subr.bf16.mxu0 %v29421_v16  ;;  %26835 = vmatprep.subr.bf16.mxu1 %v29422_v19  ;;  %v29452_v14 = vld [vmem:[%s31076_s9 + $0x1718] sm:$0xff]   ;;  %v29454_v19 = vld [vmem:[%s31076_s9 + $0x1760] sm:$0xff]  }
 0x35f   : > { %v29453_v16 = vld [vmem:[%s31076_s9 + $0x1798] sm:$0xff]  }
 0x360   : > { %v26513_v15 = vpop.f32.mrb[60].mxu0  ;;  %v26535_v25 = vpop.f32.mrb[60].mxu1 }
 0x361   : > { %v26514_v18 = vpop.f32.mrb[61].mxu0  ;;  %v26536_v21 = vpop.f32.mrb[61].mxu1  ;;  %26814 = vmatpush3.bf16.msra.mxu0 %v29423_v17  ;;  %26836 = vmatpush3.bf16.msra.mxu1 %v29424_v27  ;;  %v29455_v17 = vld [vmem:[%s31076_s9 + $0x17e0] sm:$0xff]  }
 0x362   : > { %v26515_v26 = vadd.f32 %v26514_v18, %v26513_v15  ;;  %v26537_v24 = vadd.f32 %v26536_v21, %v26535_v25  ;;  %v26516_v31 = vpop.f32.mrb[62].mxu0  ;;  %v26538_v28 = vpop.f32.mrb[62].mxu1  ;;  %26815 = vmatprep.subr.bf16.mxu0 %v29425_v20  ;;  %26837 = vmatprep.subr.bf16.mxu1 %v29426_v33  ;;  %v29456_v27 = vld [vmem:[%s31076_s9 + $0x1720] sm:$0xff]  }
 0x363   : > { %v26517_v34 = vpop.f32.mrb[63].mxu0  ;;  %v26539_v35 = vpop.f32.mrb[63].mxu1  ;;  %v29457_v20 = vld [vmem:[%s31076_s9 + $0x17a0] sm:$0xff]  }
 0x364   : > { %v19312_v23 = vadd.f32 %v26515_v26, %v32554_v32  ;;  %v29428_v32 = vld [vmem:[%s31076_s9 + $0x16a8] sm:$0xff]  }
 0x365   : > { %26816 = vmatpush3.bf16.msra.mxu0 %v29427_v30  ;;  %26838 = vmatpush3.bf16.msra.mxu1 %v29428_v32  ;;  %v29458_v34 = vld [vmem:[%s31076_s9 + $0x1768] sm:$0xff]  }
 0x366   : > { %v32624_v22 = vadd.f32 %v26537_v24, %v19312_v23  ;;  %26817 = vmatprep.subr.bf16.mxu0 %v29429_v37  ;;  %26839 = vmatprep.subr.bf16.mxu1 %v29430_v38  ;;  %v29459_v35 = vld [vmem:[%s31076_s9 + $0x17e8] sm:$0xff]   ;;  %v29462_v38 = vld [vmem:[%s31076_s9 + $0x1770] sm:$0xff]  }
 0x367   : > { %v29461_v37 = vld [vmem:[%s31076_s9 + $0x17a8] sm:$0xff]  }
 0x369   : > { %26818 = vmatpush3.bf16.msra.mxu0 %v29431_v40  ;;  %26840 = vmatpush3.bf16.msra.mxu1 %v29432_v42  ;;  %v29463_v40 = vld [vmem:[%s31076_s9 + $0x17f0] sm:$0xff]  }
 0x36a   : > { %26819 = vmatprep.subr.bf16.mxu0 %v29433_v44  ;;  %26841 = vmatprep.subr.bf16.mxu1 %v29434_v46  ;;  %v29464_v42 = vld [vmem:[%s31076_s9 + $0x1730] sm:$0xff]   ;;  %v29466_v46 = vld [vmem:[%s31076_s9 + $0x1778] sm:$0xff]  }
 0x36b   : > { %v29465_v44 = vld [vmem:[%s31076_s9 + $0x17b0] sm:$0xff]  }
 0x36d   : > { %26820 = vmatpush3.bf16.msra.mxu0 %v29435_v48  ;;  %26842 = vmatpush3.bf16.msra.mxu1 %v29436_v49  ;;  %v29467_v48 = vld [vmem:[%s31076_s9 + $0x17f8] sm:$0xff]  }
 0x36e   : > { %26849 = vmatprep.subr.bf16.mxu0 %v29438_v55  ;;  %26871 = vmatprep.subr.bf16.mxu1 %v29439_v59  ;;  %v29468_v49 = vld [vmem:[%s31076_s9 + $0x1738] sm:$0xff]   ;;  %v1381_v59 = vrot.slane %v1367_v54, %v31145_v47  ;;  %v1391_v54 = vrot.slane %v880_v52, %v31145_v47  ;;  %v1384_v55 = vcombine.high %v880_v52, %v880_v52 }
 0x36f   : > { %v29535_v52 = vld [vmem:[%s31076_s9 + $0x19b8] sm:$0xff]  }
 0x370   : > { %25376 = vmatmul.mubr.msk.bf16.vlgmr.msra.gmra.mrb[88].mxu0 %vm32657_vm6, %v25375_v60  ;;  %25382 = vmatmul.mubr.msk.bf16.vlgmr.msra.gmra.mrb[88].mxu1 %vm32662_vm7, %v25381_v1  ;;  %v1383_v1 = vcombine.high %v1381_v59, %v1381_v59  ;;  %v25393_v3 = vpack.c.bf16 %v1381_v59, %v1381_v59  ;;  %vm32796_vm6 = vmpackc.low %vm712_vm2, %vm712_vm2  ;;  %v1399_v59 = vcombine.high %v1391_v54, %v1391_v54 }
 0x371   : > { %26850 = vmatpush3.bf16.msra.mxu0 %v29440_v0  ;;  %26872 = vmatpush3.bf16.msra.mxu1 %v29441_v2  ;;  %v25384_v0 = vpack.c.bf16 %v1382_v58, %v1382_v58  ;;  %v29474_v2 = vld [vmem:[%s31076_s9 + $0x1880] sm:$0xff]   ;;  %v1398_v60 = vrot.slane %v1384_v55, %v31145_v47  ;;  %v883_v55 = vld [vmem:[%s31094_s18 + $0xd8] sm:$0xff] }
 0x372   : > { %26851 = vmatprep.subr.bf16.mxu0 %v29442_v4  ;;  %26873 = vmatprep.subr.bf16.mxu1 %v29443_v5  ;;  %v29475_v4 = vld [vmem:[%s31076_s9 + $0x1848] sm:$0xff]   ;;  %v25390_v5 = vpack.c.bf16 %v1383_v1, %v1383_v1  ;;  %v25396_v1 = vpack.c.bf16 %v1399_v59, %v1399_v59  ;;  %v29537_v58 = vld [vmem:[%s31076_s9 + $0x1a40] sm:$0xff]  }
 0x373   : > { %25385 = vmatprep.mubr.msk.bf16.mxu0 %vm32715_vm11, %v25384_v0  ;;  %v29506_v0 = vld [vmem:[%s31076_s9 + $0x1900] sm:$0xff]  }
 0x374   : > { %25391 = vmatprep.mubr.msk.bf16.mxu1 %vm32721_vm13, %v25390_v5  ;;  %v29508_v5 = vld [vmem:[%s31076_s9 + $0x1948] sm:$0xff]  }
 0x375   : > { %26852 = vmatpush3.bf16.msra.mxu0 %v29444_v6  ;;  %26874 = vmatpush3.bf16.msra.mxu1 %v29445_v7  ;;  %v29476_v6 = vld [vmem:[%s31076_s9 + $0x18c8] sm:$0xff]  }
 0x376   : > { %26853 = vmatprep.subr.bf16.mxu0 %v29446_v8  ;;  %26875 = vmatprep.subr.bf16.mxu1 %v29447_v9  ;;  %v29477_v7 = vld [vmem:[%s31076_s9 + $0x1808] sm:$0xff]   ;;  %v29479_v9 = vld [vmem:[%s31076_s9 + $0x1850] sm:$0xff]  }
 0x377   : > { %v29478_v8 = vld [vmem:[%s31076_s9 + $0x1888] sm:$0xff]  }
 0x379   : > { %26854 = vmatpush3.bf16.msra.mxu0 %v29448_v10  ;;  %26876 = vmatpush3.bf16.msra.mxu1 %v29449_v11  ;;  %v29480_v10 = vld [vmem:[%s31076_s9 + $0x18d0] sm:$0xff]  }
 0x37a   : > { %26855 = vmatprep.subr.bf16.mxu0 %v29450_v12  ;;  %26877 = vmatprep.subr.bf16.mxu1 %v29451_v13  ;;  %v29481_v11 = vld [vmem:[%s31076_s9 + $0x1810] sm:$0xff]   ;;  %v29483_v13 = vld [vmem:[%s31076_s9 + $0x1858] sm:$0xff]  }
 0x37b   : > { %v29482_v12 = vld [vmem:[%s31076_s9 + $0x1890] sm:$0xff]  }
 0x37d   : > { %26856 = vmatpush3.bf16.msra.mxu0 %v29452_v14  ;;  %26878 = vmatpush3.bf16.msra.mxu1 %v29453_v16  ;;  %v29484_v14 = vld [vmem:[%s31076_s9 + $0x18d8] sm:$0xff]  }
 0x37e   : > { %26857 = vmatprep.subr.bf16.mxu0 %v29454_v19  ;;  %26879 = vmatprep.subr.bf16.mxu1 %v29455_v17  ;;  %v29486_v16 = vld [vmem:[%s31076_s9 + $0x1898] sm:$0xff]   ;;  %v29487_v19 = vld [vmem:[%s31076_s9 + $0x1860] sm:$0xff]  }
 0x380   : > { %v26557_v15 = vpop.f32.mrb[64].mxu0  ;;  %v26579_v25 = vpop.f32.mrb[64].mxu1 }
 0x381   : > { %v26558_v18 = vpop.f32.mrb[65].mxu0  ;;  %v26580_v21 = vpop.f32.mrb[65].mxu1  ;;  %26858 = vmatpush3.bf16.msra.mxu0 %v29456_v27  ;;  %26880 = vmatpush3.bf16.msra.mxu1 %v29457_v20  ;;  %v29489_v27 = vld [vmem:[%s31076_s9 + $0x1820] sm:$0xff]  }
 0x382   : > { %v26559_v26 = vadd.f32 %v26558_v18, %v26557_v15  ;;  %v26581_v24 = vadd.f32 %v26580_v21, %v26579_v25  ;;  %v26560_v31 = vpop.f32.mrb[66].mxu0  ;;  %v26582_v28 = vpop.f32.mrb[66].mxu1  ;;  %26859 = vmatprep.subr.bf16.mxu0 %v29458_v34  ;;  %26881 = vmatprep.subr.bf16.mxu1 %v29459_v35  ;;  %v29485_v15 = vld [vmem:[%s31076_s9 + $0x1818] sm:$0xff]   ;;  %v29491_v34 = vld [vmem:[%s31076_s9 + $0x1868] sm:$0xff]  }
 0x383   : > { %v26561_v30 = vpop.f32.mrb[67].mxu0  ;;  %v26583_v32 = vpop.f32.mrb[67].mxu1 }
 0x384   : > { %v19392_v23 = vadd.f32 %v26559_v26, %v32624_v22  ;;  %v29460_v22 = vld [vmem:[%s31076_s9 + $0x1728] sm:$0xff]   ;;  %v29488_v26 = vld [vmem:[%s31076_s9 + $0x18e0] sm:$0xff]  }
 0x385   : > { %26860 = vmatpush3.bf16.msra.mxu0 %v29460_v22  ;;  %26882 = vmatpush3.bf16.msra.mxu1 %v29461_v37  ;;  %v29492_v32 = vld [vmem:[%s31076_s9 + $0x18e8] sm:$0xff]  }
 0x386   : > { %v32693_v33 = vadd.f32 %v26581_v24, %v19392_v23  ;;  %26861 = vmatprep.subr.bf16.mxu0 %v29462_v38  ;;  %26883 = vmatprep.subr.bf16.mxu1 %v29463_v40  ;;  %v29490_v24 = vld [vmem:[%s31076_s9 + $0x18a0] sm:$0xff]   ;;  %v29493_v37 = vld [vmem:[%s31076_s9 + $0x1828] sm:$0xff]   ;;  %v29496_v40 = vld [vmem:[%s31076_s9 + $0x18f0] sm:$0xff]  }
 0x389   : > { %26862 = vmatpush3.bf16.msra.mxu0 %v29464_v42  ;;  %26884 = vmatpush3.bf16.msra.mxu1 %v29465_v44  ;;  %v29497_v42 = vld [vmem:[%s31076_s9 + $0x1830] sm:$0xff]  }
 0x38a   : > { %26863 = vmatprep.subr.bf16.mxu0 %v29466_v46  ;;  %26885 = vmatprep.subr.bf16.mxu1 %v29467_v48  ;;  %v29498_v44 = vld [vmem:[%s31076_s9 + $0x18b0] sm:$0xff]   ;;  %v29499_v46 = vld [vmem:[%s31076_s9 + $0x1878] sm:$0xff]   ;;  %v473_v48 = vadd.s32 12544, %v31126_v29 }
 0x38c   : > { %vm714_vm4 = vcmp.lt.s32.totalorder %v473_v48, %v31134_v36  ;;  %v29532_v48 = vld [vmem:[%s31076_s9 + $0x1978] sm:$0xff]  }
 0x38d   : > { %26864 = vmatpush3.bf16.msra.mxu0 %v29468_v49  ;;  %26886 = vmatpush3.bf16.msra.mxu1 %v29469_v50  ;;  %v29500_v49 = vld [vmem:[%s31076_s9 + $0x18f8] sm:$0xff]   ;;  %vm32801_vm7 = vmpackc.low %vm714_vm4, %vm714_vm4 }
 0x38e   : > { %26893 = vmatprep.subr.bf16.mxu0 %v29471_v57  ;;  %26915 = vmatprep.subr.bf16.mxu1 %v29472_v61  ;;  %v29501_v50 = vld [vmem:[%s31076_s9 + $0x1838] sm:$0xff]   ;;  %v29504_v57 = vld [vmem:[%s31076_s9 + $0x1940] sm:$0xff]  }
 0x390   : > { %25388 = vmatmul.mubr.msk.bf16.vlgmr.msra.gmra.mrb[92].mxu0 %vm32725_vm14, %v25387_v62  ;;  %25394 = vmatmul.mubr.msk.bf16.vlgmr.msra.gmra.mrb[92].mxu1 %vm32731_vm15, %v25393_v3  ;;  %v29505_v62 = vld [vmem:[%s31076_s9 + $0x19c0] sm:$0xff]  }
 0x391   : > { %26894 = vmatpush3.bf16.msra.mxu0 %v29473_v63  ;;  %26916 = vmatpush3.bf16.msra.mxu1 %v29474_v2  ;;  %v25399_v63 = vpack.c.bf16 %v1391_v54, %v1391_v54  ;;  %v1400_v2 = vcombine.high %v1398_v60, %v1398_v60  ;;  %v29507_v3 = vld [vmem:[%s31076_s9 + $0x1980] sm:$0xff]   ;;  %v1408_v54 = vrot.slane %v881_v53, %v31145_v47  ;;  %v29568_v53 = vld [vmem:[%s31076_s9 + $0x1ab8] sm:$0xff]  }
 0x392   : > { %26895 = vmatprep.subr.bf16.mxu0 %v29475_v4  ;;  %26917 = vmatprep.subr.bf16.mxu1 %v29476_v6  ;;  %v25405_v4 = vpack.c.bf16 %v1398_v60, %v1398_v60  ;;  %v1415_v60 = vrot.slane %v1401_v56, %v31145_v47 }
 0x393   : > { %25397 = vmatprep.mubr.msk.bf16.mxu0 %vm32785_vm3, %v25396_v1  ;;  %v25402_v6 = vpack.c.bf16 %v1400_v2, %v1400_v2  ;;  %v1416_v59 = vcombine.high %v1408_v54, %v1408_v54 }
 0x394   : > { %v1417_v2 = vcombine.high %v1415_v60, %v1415_v60 }
 0x395   : > { %26896 = vmatpush3.bf16.msra.mxu0 %v29477_v7  ;;  %26918 = vmatpush3.bf16.msra.mxu1 %v29478_v8  ;;  %v29509_v7 = vld [vmem:[%s31076_s9 + $0x19c8] sm:$0xff]   ;;  %v25408_v1 = vpack.c.bf16 %v1416_v59, %v1416_v59 }
 0x396   : > { %26897 = vmatprep.subr.bf16.mxu0 %v29479_v9  ;;  %26919 = vmatprep.subr.bf16.mxu1 %v29480_v10  ;;  %v29510_v8 = vld [vmem:[%s31076_s9 + $0x1908] sm:$0xff]   ;;  %v29512_v10 = vld [vmem:[%s31076_s9 + $0x1950] sm:$0xff]  }
 0x397   : > { %25403 = vmatprep.mubr.msk.bf16.mxu1 %vm32791_vm5, %v25402_v6  ;;  %v29511_v9 = vld [vmem:[%s31076_s9 + $0x1988] sm:$0xff]   ;;  %v25414_v6 = vpack.c.bf16 %v1417_v2, %v1417_v2  ;;  %v29572_v2 = vld [vmem:[%s31076_s9 + $0x1b00] sm:$0xff]  }
 0x399   : > { %26898 = vmatpush3.bf16.msra.mxu0 %v29481_v11  ;;  %26920 = vmatpush3.bf16.msra.mxu1 %v29482_v12  ;;  %v29513_v11 = vld [vmem:[%s31076_s9 + $0x19d0] sm:$0xff]  }
 0x39a   : > { %26899 = vmatprep.subr.bf16.mxu0 %v29483_v13  ;;  %26921 = vmatprep.subr.bf16.mxu1 %v29484_v14  ;;  %v29514_v12 = vld [vmem:[%s31076_s9 + $0x1910] sm:$0xff]   ;;  %v29516_v14 = vld [vmem:[%s31076_s9 + $0x1958] sm:$0xff]  }
 0x39b   : > { %v29515_v13 = vld [vmem:[%s31076_s9 + $0x1990] sm:$0xff]  }
 0x39d   : > { %26900 = vmatpush3.bf16.msra.mxu0 %v29485_v15  ;;  %26922 = vmatpush3.bf16.msra.mxu1 %v29486_v16  ;;  %v29517_v15 = vld [vmem:[%s31076_s9 + $0x19d8] sm:$0xff]  }
 0x39e   : > { %26901 = vmatprep.subr.bf16.mxu0 %v29487_v19  ;;  %26923 = vmatprep.subr.bf16.mxu1 %v29488_v26  ;;  %v29518_v16 = vld [vmem:[%s31076_s9 + $0x1918] sm:$0xff]  }
 0x3a0   : > { %v26601_v18 = vpop.f32.mrb[68].mxu0  ;;  %v26623_v17 = vpop.f32.mrb[68].mxu1 }
 0x3a1   : > { %v26602_v25 = vpop.f32.mrb[69].mxu0  ;;  %v26624_v23 = vpop.f32.mrb[69].mxu1  ;;  %26902 = vmatpush3.bf16.msra.mxu0 %v29489_v27  ;;  %26924 = vmatpush3.bf16.msra.mxu1 %v29490_v24 }
 0x3a2   : > { %v26603_v21 = vadd.f32 %v26602_v25, %v26601_v18  ;;  %v26625_v20 = vadd.f32 %v26624_v23, %v26623_v17  ;;  %v26604_v28 = vpop.f32.mrb[70].mxu0  ;;  %v26626_v30 = vpop.f32.mrb[70].mxu1  ;;  %26903 = vmatprep.subr.bf16.mxu0 %v29491_v34  ;;  %26925 = vmatprep.subr.bf16.mxu1 %v29492_v32  ;;  %v29519_v18 = vld [vmem:[%s31076_s9 + $0x1998] sm:$0xff]   ;;  %v29520_v25 = vld [vmem:[%s31076_s9 + $0x1960] sm:$0xff]  }
 0x3a3   : > { %v26605_v22 = vpop.f32.mrb[71].mxu0  ;;  %v26627_v38 = vpop.f32.mrb[71].mxu1  ;;  %v29521_v17 = vld [vmem:[%s31076_s9 + $0x19e0] sm:$0xff]   ;;  %v29524_v30 = vld [vmem:[%s31076_s9 + $0x1968] sm:$0xff]  }
 0x3a4   : > { %v19472_v31 = vadd.f32 %v26603_v21, %v32693_v33  ;;  %v29494_v33 = vld [vmem:[%s31076_s9 + $0x18a8] sm:$0xff]   ;;  %v29522_v23 = vld [vmem:[%s31076_s9 + $0x1920] sm:$0xff]  }
 0x3a5   : > { %26904 = vmatpush3.bf16.msra.mxu0 %v29493_v37  ;;  %26926 = vmatpush3.bf16.msra.mxu1 %v29494_v33  ;;  %v29525_v37 = vld [vmem:[%s31076_s9 + $0x19e8] sm:$0xff]  }
 0x3a6   : > { %v32764_v35 = vadd.f32 %v26625_v20, %v19472_v31  ;;  %26905 = vmatprep.subr.bf16.mxu0 %v29495_v39  ;;  %26927 = vmatprep.subr.bf16.mxu1 %v29496_v40  ;;  %v29523_v31 = vld [vmem:[%s31076_s9 + $0x19a0] sm:$0xff]   ;;  %v29526_v33 = vld [vmem:[%s31076_s9 + $0x1928] sm:$0xff]   ;;  %v29528_v40 = vld [vmem:[%s31076_s9 + $0x1970] sm:$0xff]  }
 0x3a9   : > { %26906 = vmatpush3.bf16.msra.mxu0 %v29497_v42  ;;  %26928 = vmatpush3.bf16.msra.mxu1 %v29498_v44  ;;  %v476_v42 = vadd.s32 12928, %v31126_v29  ;;  %v478_v44 = vadd.s32 13184, %v31126_v29 }
 0x3aa   : > { %26907 = vmatprep.subr.bf16.mxu0 %v29499_v46  ;;  %26929 = vmatprep.subr.bf16.mxu1 %v29500_v49  ;;  %v475_v46 = vadd.s32 12800, %v31126_v29  ;;  %v477_v49 = vadd.s32 13056, %v31126_v29 }
 0x3ab   : > { %vm717_vm8 = vcmp.lt.s32.totalorder %v476_v42, %v31134_v36  ;;  %vm719_vm9 = vcmp.lt.s32.totalorder %v478_v44, %v31134_v36  ;;  %v480_v42 = vadd.s32 13440, %v31126_v29  ;;  %v482_v44 = vadd.s32 13696, %v31126_v29 }
 0x3ac   : > { %vm716_vm10 = vcmp.lt.s32.totalorder %v475_v46, %v31134_v36  ;;  %vm32856_vm11 = vmpackc.low %vm717_vm8, %vm717_vm8  ;;  %vm718_vm12 = vcmp.lt.s32.totalorder %v477_v49, %v31134_v36  ;;  %v479_v46 = vadd.s32 13312, %v31126_v29  ;;  %v481_v49 = vadd.s32 13568, %v31126_v29 }
 0x3ad   : > { %26908 = vmatpush3.bf16.msra.mxu0 %v29501_v50  ;;  %26930 = vmatpush3.bf16.msra.mxu1 %v29502_v51  ;;  %v29533_v50 = vld [vmem:[%s31076_s9 + $0x19f8] sm:$0xff]   ;;  %vm32861_vm13 = vmpackc.low %vm719_vm9, %vm719_vm9  ;;  %vm721_vm0 = vcmp.lt.s32.totalorder %v480_v42, %v31134_v36  ;;  %vm723_vm1 = vcmp.lt.s32.totalorder %v482_v44, %v31134_v36  ;;  %v29594_v42 = vld [vmem:[%s31076_s9 + $0x1b70] sm:$0xff]   ;;  %v484_v44 = vadd.s32 13952, %v31126_v29 }
 0x3ae   : > { %26937 = vmatprep.subr.bf16.mxu0 %v29504_v57  ;;  %26959 = vmatprep.subr.bf16.mxu1 %v29505_v62  ;;  %v29534_v51 = vld [vmem:[%s31076_s9 + $0x1938] sm:$0xff]   ;;  %vm32867_vm14 = vmpackc.low %vm716_vm10, %vm716_vm10  ;;  %v29538_v62 = vld [vmem:[%s31076_s9 + $0x1ac0] sm:$0xff]   ;;  %vm720_vm2 = vcmp.lt.s32.totalorder %v479_v46, %v31134_v36  ;;  %vm722_vm4 = vcmp.lt.s32.totalorder %v481_v49, %v31134_v36  ;;  %v486_v46 = vadd.s32 14208, %v31126_v29  ;;  %v483_v49 = vadd.s32 13824, %v31126_v29 }
 0x3af   : > { %vm32872_vm15 = vmpackc.low %vm718_vm12, %vm718_vm12  ;;  %vm725_vm8 = vcmp.lt.s32.totalorder %v484_v44, %v31134_v36  ;;  %v29628_v44 = vld [vmem:[%s31076_s9 + $0x1cf0] sm:$0xff]  }
 0x3b0   : > { %25400 = vmatmul.mubr.msk.bf16.vlgmr.msra.gmra.mrb[96].mxu0 %vm32796_vm6, %v25399_v63  ;;  %25406 = vmatmul.mubr.msk.bf16.vlgmr.msra.gmra.mrb[96].mxu1 %vm32801_vm7, %v25405_v4  ;;  %v25411_v63 = vpack.c.bf16 %v1408_v54, %v1408_v54  ;;  %v25417_v4 = vpack.c.bf16 %v1415_v60, %v1415_v60  ;;  %v882_v54 = vld [vmem:[%s31094_s18 + $0xd0] sm:$0xff]  ;;  %vm32925_vm3 = vmpackc.low %vm721_vm0, %vm721_vm0  ;;  %v29570_v60 = vld [vmem:[%s31076_s9 + $0x1b40] sm:$0xff]   ;;  %vm727_vm9 = vcmp.lt.s32.totalorder %v486_v46, %v31134_v36 }
 0x3b1   : > { %26938 = vmatpush3.bf16.msra.mxu0 %v29506_v0  ;;  %26960 = vmatpush3.bf16.msra.mxu1 %v29507_v3  ;;  %v29539_v3 = vld [vmem:[%s31076_s9 + $0x1a00] sm:$0xff]   ;;  %v1425_v56 = vrot.slane %v882_v54, %v31145_v47  ;;  %v1418_v57 = vcombine.high %v882_v54, %v882_v54  ;;  %vm32931_vm5 = vmpackc.low %vm723_vm1, %vm723_vm1  ;;  %v29601_v54 = vld [vmem:[%s31076_s9 + $0x1bb8] sm:$0xff]   ;;  %vm724_vm10 = vcmp.lt.s32.totalorder %v483_v49, %v31134_v36 }
 0x3b2   : > { %26939 = vmatprep.subr.bf16.mxu0 %v29508_v5  ;;  %26961 = vmatprep.subr.bf16.mxu1 %v29509_v7  ;;  %v29540_v5 = vld [vmem:[%s31076_s9 + $0x1a80] sm:$0xff]   ;;  %v29541_v7 = vld [vmem:[%s31076_s9 + $0x1a48] sm:$0xff]   ;;  %vm32935_vm6 = vmpackc.low %vm720_vm2, %vm720_vm2 }
 0x3b3   : > { %25409 = vmatprep.mubr.msk.bf16.mxu0 %vm32856_vm11, %v25408_v1  ;;  %25415 = vmatprep.mubr.msk.bf16.mxu1 %vm32861_vm13, %v25414_v6  ;;  %v1433_v61 = vcombine.high %v1425_v56, %v1425_v56  ;;  %vm32941_vm7 = vmpackc.low %vm722_vm4, %vm722_vm4  ;;  %v29571_v0 = vld [vmem:[%s31076_s9 + $0x1bc0] sm:$0xff]   ;;  %v25423_v1 = vpack.c.bf16 %v1425_v56, %v1425_v56  ;;  %v29629_v46 = vld [vmem:[%s31076_s9 + $0x1c30] sm:$0xff]  }
 0x3b4   : > { %vm32995_vm11 = vmpackc.low %vm725_vm8, %vm725_vm8  ;;  %v29630_v49 = vld [vmem:[%s31076_s9 + $0x1cb0] sm:$0xff]   ;;  %v884_v56 = vld [vmem:[%s31094_s18 + $0xe0] sm:$0xff] }
 0x3b5   : > { %26940 = vmatpush3.bf16.msra.mxu0 %v29510_v8  ;;  %26962 = vmatpush3.bf16.msra.mxu1 %v29511_v9  ;;  %v29542_v8 = vld [vmem:[%s31076_s9 + $0x1ac8] sm:$0xff]   ;;  %vm33001_vm13 = vmpackc.low %vm727_vm9, %vm727_vm9  ;;  %v1452_v59 = vcombine.high %v884_v56, %v884_v56 }
 0x3b6   : > { %26941 = vmatprep.subr.bf16.mxu0 %v29512_v10  ;;  %26963 = vmatprep.subr.bf16.mxu1 %v29513_v11  ;;  %v29543_v9 = vld [vmem:[%s31076_s9 + $0x1a08] sm:$0xff]   ;;  %v29545_v11 = vld [vmem:[%s31076_s9 + $0x1a50] sm:$0xff]  }
 0x3b7   : > { %v29544_v10 = vld [vmem:[%s31076_s9 + $0x1a88] sm:$0xff]  }
 0x3b9   : > { %26942 = vmatpush3.bf16.msra.mxu0 %v29514_v12  ;;  %26964 = vmatpush3.bf16.msra.mxu1 %v29515_v13  ;;  %v29546_v12 = vld [vmem:[%s31076_s9 + $0x1ad0] sm:$0xff]  }
 0x3ba   : > { %26943 = vmatprep.subr.bf16.mxu0 %v29516_v14  ;;  %26965 = vmatprep.subr.bf16.mxu1 %v29517_v15  ;;  %v29547_v13 = vld [vmem:[%s31076_s9 + $0x1a10] sm:$0xff]   ;;  %v29549_v15 = vld [vmem:[%s31076_s9 + $0x1a58] sm:$0xff]  }
 0x3bb   : > { %v29548_v14 = vld [vmem:[%s31076_s9 + $0x1a90] sm:$0xff]  }
 0x3bd   : > { %26944 = vmatpush3.bf16.msra.mxu0 %v29518_v16  ;;  %26966 = vmatpush3.bf16.msra.mxu1 %v29519_v18  ;;  %v29550_v16 = vld [vmem:[%s31076_s9 + $0x1ad8] sm:$0xff]  }
 0x3be   : > { %26945 = vmatprep.subr.bf16.mxu0 %v29520_v25  ;;  %26967 = vmatprep.subr.bf16.mxu1 %v29521_v17  ;;  %v29551_v18 = vld [vmem:[%s31076_s9 + $0x1a18] sm:$0xff]   ;;  %v29553_v17 = vld [vmem:[%s31076_s9 + $0x1a60] sm:$0xff]  }
 0x3bf   : > { %v29552_v25 = vld [vmem:[%s31076_s9 + $0x1a98] sm:$0xff]  }
 0x3c0   : > { %v26645_v19 = vpop.f32.mrb[72].mxu0 }
 0x3c1   : > { %v26646_v26 = vpop.f32.mrb[73].mxu0  ;;  %26946 = vmatpush3.bf16.msra.mxu0 %v29522_v23  ;;  %26968 = vmatpush3.bf16.msra.mxu1 %v29523_v31  ;;  %v29554_v23 = vld [vmem:[%s31076_s9 + $0x1ae0] sm:$0xff]  }
 0x3c2   : > { %v26647_v27 = vadd.f32 %v26646_v26, %v26645_v19  ;;  %v26648_v34 = vpop.f32.mrb[74].mxu0  ;;  %26947 = vmatprep.subr.bf16.mxu0 %v29524_v30  ;;  %26969 = vmatprep.subr.bf16.mxu1 %v29525_v37  ;;  %v29555_v31 = vld [vmem:[%s31076_s9 + $0x1a20] sm:$0xff]  }
 0x3c3   : > { %v26667_v21 = vpop.f32.mrb[72].mxu1  ;;  %v26649_v38 = vpop.f32.mrb[75].mxu0  ;;  %v29556_v30 = vld [vmem:[%s31076_s9 + $0x1aa0] sm:$0xff]  }
 0x3c4   : > { %v26668_v24 = vpop.f32.mrb[73].mxu1  ;;  %v19552_v20 = vadd.f32 %v26647_v27, %v32764_v35  ;;  %v29527_v35 = vld [vmem:[%s31076_s9 + $0x19a8] sm:$0xff]  }
 0x3c5   : > { %v26669_v28 = vadd.f32 %v26668_v24, %v26667_v21  ;;  %v26670_v32 = vpop.f32.mrb[74].mxu1  ;;  %26948 = vmatpush3.bf16.msra.mxu0 %v29526_v33  ;;  %26970 = vmatpush3.bf16.msra.mxu1 %v29527_v35  ;;  %v29557_v38 = vld [vmem:[%s31076_s9 + $0x1a68] sm:$0xff]  }
 0x3c6   : > { %v26671_v39 = vpop.f32.mrb[75].mxu1  ;;  %26949 = vmatprep.subr.bf16.mxu0 %v29528_v40  ;;  %26971 = vmatprep.subr.bf16.mxu1 %v29529_v41  ;;  %v29560_v40 = vld [vmem:[%s31076_s9 + $0x1aa8] sm:$0xff]   ;;  %v29561_v41 = vld [vmem:[%s31076_s9 + $0x1a70] sm:$0xff]  }
 0x3c7   : > { %v32834_v22 = vadd.f32 %v26669_v28, %v19552_v20  ;;  %v29558_v39 = vld [vmem:[%s31076_s9 + $0x1ae8] sm:$0xff]  }
 0x3c9   : > { %26950 = vmatpush3.bf16.msra.mxu0 %v29530_v43  ;;  %26972 = vmatpush3.bf16.msra.mxu1 %v29531_v45  ;;  %v29562_v43 = vld [vmem:[%s31076_s9 + $0x1af0] sm:$0xff]  }
 0x3ca   : > { %26951 = vmatprep.subr.bf16.mxu0 %v29532_v48  ;;  %26973 = vmatprep.subr.bf16.mxu1 %v29533_v50  ;;  %v29563_v45 = vld [vmem:[%s31076_s9 + $0x1a30] sm:$0xff]   ;;  %v29565_v50 = vld [vmem:[%s31076_s9 + $0x1a78] sm:$0xff]  }
 0x3cb   : > { %v29564_v48 = vld [vmem:[%s31076_s9 + $0x1ab0] sm:$0xff]  }
 0x3cd   : > { %26952 = vmatpush3.bf16.msra.mxu0 %v29534_v51  ;;  %26974 = vmatpush3.bf16.msra.mxu1 %v29535_v52  ;;  %v29566_v51 = vld [vmem:[%s31076_s9 + $0x1af8] sm:$0xff]  }
 0x3ce   : > { %26981 = vmatprep.subr.bf16.mxu0 %v29537_v58  ;;  %27003 = vmatprep.subr.bf16.mxu1 %v29538_v62  ;;  %v29567_v52 = vld [vmem:[%s31076_s9 + $0x1a38] sm:$0xff]   ;;  %v1432_v62 = vrot.slane %v1418_v57, %v31145_v47  ;;  %v1442_v57 = vrot.slane %v883_v55, %v31145_v47  ;;  %v1435_v58 = vcombine.high %v883_v55, %v883_v55 }
 0x3cf   : > { %v29634_v55 = vld [vmem:[%s31076_s9 + $0x1cb8] sm:$0xff]  }
 0x3d0   : > { %25412 = vmatmul.mubr.msk.bf16.vlgmr.msra.gmra.mrb[100].mxu0 %vm32867_vm14, %v25411_v63  ;;  %25418 = vmatmul.mubr.msk.bf16.vlgmr.msra.gmra.mrb[100].mxu1 %vm32872_vm15, %v25417_v4  ;;  %v1434_v4 = vcombine.high %v1432_v62, %v1432_v62  ;;  %v25429_v6 = vpack.c.bf16 %v1432_v62, %v1432_v62  ;;  %vm33006_vm14 = vmpackc.low %vm724_vm10, %vm724_vm10  ;;  %v1450_v62 = vcombine.high %v1442_v57, %v1442_v57 }
 0x3d1   : > { %26982 = vmatpush3.bf16.msra.mxu0 %v29539_v3  ;;  %27004 = vmatpush3.bf16.msra.mxu1 %v29540_v5  ;;  %v25420_v3 = vpack.c.bf16 %v1433_v61, %v1433_v61  ;;  %v29573_v5 = vld [vmem:[%s31076_s9 + $0x1b80] sm:$0xff]   ;;  %v1449_v63 = vrot.slane %v1435_v58, %v31145_v47  ;;  %v886_v58 = vld [vmem:[%s31094_s18 + $0xf0] sm:$0xff] }
 0x3d2   : > { %26983 = vmatprep.subr.bf16.mxu0 %v29541_v7  ;;  %27005 = vmatprep.subr.bf16.mxu1 %v29542_v8  ;;  %v29574_v7 = vld [vmem:[%s31076_s9 + $0x1b48] sm:$0xff]   ;;  %v25426_v8 = vpack.c.bf16 %v1434_v4, %v1434_v4  ;;  %v25432_v4 = vpack.c.bf16 %v1450_v62, %v1450_v62  ;;  %v29636_v61 = vld [vmem:[%s31076_s9 + $0x1d40] sm:$0xff]  }
 0x3d3   : > { %25421 = vmatprep.mubr.msk.bf16.mxu0 %vm32925_vm3, %v25420_v3  ;;  %v29605_v3 = vld [vmem:[%s31076_s9 + $0x1c00] sm:$0xff]  }
 0x3d4   : > { %25427 = vmatprep.mubr.msk.bf16.mxu1 %vm32931_vm5, %v25426_v8  ;;  %v29607_v8 = vld [vmem:[%s31076_s9 + $0x1c48] sm:$0xff]  }
 0x3d5   : > { %26984 = vmatpush3.bf16.msra.mxu0 %v29543_v9  ;;  %27006 = vmatpush3.bf16.msra.mxu1 %v29544_v10  ;;  %v29575_v9 = vld [vmem:[%s31076_s9 + $0x1bc8] sm:$0xff]  }
 0x3d6   : > { %26985 = vmatprep.subr.bf16.mxu0 %v29545_v11  ;;  %27007 = vmatprep.subr.bf16.mxu1 %v29546_v12  ;;  %v29576_v10 = vld [vmem:[%s31076_s9 + $0x1b08] sm:$0xff]   ;;  %v29578_v12 = vld [vmem:[%s31076_s9 + $0x1b50] sm:$0xff]  }
 0x3d7   : > { %v29577_v11 = vld [vmem:[%s31076_s9 + $0x1b88] sm:$0xff]  }
 0x3d9   : > { %26986 = vmatpush3.bf16.msra.mxu0 %v29547_v13  ;;  %27008 = vmatpush3.bf16.msra.mxu1 %v29548_v14  ;;  %v29579_v13 = vld [vmem:[%s31076_s9 + $0x1bd0] sm:$0xff]  }
 0x3da   : > { %26987 = vmatprep.subr.bf16.mxu0 %v29549_v15  ;;  %27009 = vmatprep.subr.bf16.mxu1 %v29550_v16  ;;  %v29580_v14 = vld [vmem:[%s31076_s9 + $0x1b10] sm:$0xff]   ;;  %v29582_v16 = vld [vmem:[%s31076_s9 + $0x1b58] sm:$0xff]  }
 0x3db   : > { %v29581_v15 = vld [vmem:[%s31076_s9 + $0x1b90] sm:$0xff]  }
 0x3dd   : > { %26988 = vmatpush3.bf16.msra.mxu0 %v29551_v18  ;;  %27010 = vmatpush3.bf16.msra.mxu1 %v29552_v25  ;;  %v29583_v18 = vld [vmem:[%s31076_s9 + $0x1bd8] sm:$0xff]  }
 0x3de   : > { %26989 = vmatprep.subr.bf16.mxu0 %v29553_v17  ;;  %27011 = vmatprep.subr.bf16.mxu1 %v29554_v23  ;;  %v29585_v25 = vld [vmem:[%s31076_s9 + $0x1b98] sm:$0xff]   ;;  %v29586_v17 = vld [vmem:[%s31076_s9 + $0x1b60] sm:$0xff]  }
 0x3e0   : > { %v26689_v19 = vpop.f32.mrb[76].mxu0 }
 0x3e1   : > { %v26690_v26 = vpop.f32.mrb[77].mxu0  ;;  %26990 = vmatpush3.bf16.msra.mxu0 %v29555_v31  ;;  %27012 = vmatpush3.bf16.msra.mxu1 %v29556_v30  ;;  %v29588_v31 = vld [vmem:[%s31076_s9 + $0x1b20] sm:$0xff]  }
 0x3e2   : > { %v26691_v27 = vadd.f32 %v26690_v26, %v26689_v19  ;;  %v26692_v34 = vpop.f32.mrb[78].mxu0  ;;  %26991 = vmatprep.subr.bf16.mxu0 %v29557_v38  ;;  %27013 = vmatprep.subr.bf16.mxu1 %v29558_v39  ;;  %v29584_v19 = vld [vmem:[%s31076_s9 + $0x1b18] sm:$0xff]   ;;  %v29590_v38 = vld [vmem:[%s31076_s9 + $0x1b68] sm:$0xff]  }
 0x3e3   : > { %v26711_v21 = vpop.f32.mrb[76].mxu1  ;;  %v26693_v33 = vpop.f32.mrb[79].mxu0 }
 0x3e4   : > { %v26712_v24 = vpop.f32.mrb[77].mxu1  ;;  %v19632_v20 = vadd.f32 %v26691_v27, %v32834_v22  ;;  %v29559_v22 = vld [vmem:[%s31076_s9 + $0x1a28] sm:$0xff]   ;;  %v29587_v27 = vld [vmem:[%s31076_s9 + $0x1be0] sm:$0xff]  }
 0x3e5   : > { %v26713_v28 = vadd.f32 %v26712_v24, %v26711_v21  ;;  %v26714_v32 = vpop.f32.mrb[78].mxu1  ;;  %26992 = vmatpush3.bf16.msra.mxu0 %v29559_v22  ;;  %27014 = vmatpush3.bf16.msra.mxu1 %v29560_v40  ;;  %v29592_v40 = vld [vmem:[%s31076_s9 + $0x1b28] sm:$0xff]  }
 0x3e6   : > { %v26715_v35 = vpop.f32.mrb[79].mxu1  ;;  %26993 = vmatprep.subr.bf16.mxu0 %v29561_v41  ;;  %27015 = vmatprep.subr.bf16.mxu1 %v29562_v43  ;;  %v29595_v43 = vld [vmem:[%s31076_s9 + $0x1bf0] sm:$0xff]  }
 0x3e7   : > { %v32903_v37 = vadd.f32 %v26713_v28, %v19632_v20  ;;  %v29589_v28 = vld [vmem:[%s31076_s9 + $0x1ba0] sm:$0xff]   ;;  %v29591_v35 = vld [vmem:[%s31076_s9 + $0x1be8] sm:$0xff]  }
 0x3e9   : > { %26994 = vmatpush3.bf16.msra.mxu0 %v29563_v45  ;;  %27016 = vmatpush3.bf16.msra.mxu1 %v29564_v48  ;;  %v29596_v45 = vld [vmem:[%s31076_s9 + $0x1b30] sm:$0xff]  }
 0x3ea   : > { %26995 = vmatprep.subr.bf16.mxu0 %v29565_v50  ;;  %27017 = vmatprep.subr.bf16.mxu1 %v29566_v51  ;;  %v29597_v48 = vld [vmem:[%s31076_s9 + $0x1bb0] sm:$0xff]   ;;  %v29598_v50 = vld [vmem:[%s31076_s9 + $0x1b78] sm:$0xff]   ;;  %v485_v51 = vadd.s32 14080, %v31126_v29 }
 0x3ec   : > { %vm726_vm12 = vcmp.lt.s32.totalorder %v485_v51, %v31134_v36  ;;  %v29631_v51 = vld [vmem:[%s31076_s9 + $0x1c78] sm:$0xff]  }
 0x3ed   : > { %26996 = vmatpush3.bf16.msra.mxu0 %v29567_v52  ;;  %27018 = vmatpush3.bf16.msra.mxu1 %v29568_v53  ;;  %v29599_v52 = vld [vmem:[%s31076_s9 + $0x1bf8] sm:$0xff]   ;;  %vm33011_vm15 = vmpackc.low %vm726_vm12, %vm726_vm12 }
 0x3ee   : > { %27025 = vmatprep.subr.bf16.mxu0 %v29570_v60  ;;  %27047 = vmatprep.subr.bf16.mxu1 %v29571_v0  ;;  %v29600_v53 = vld [vmem:[%s31076_s9 + $0x1b38] sm:$0xff]   ;;  %v29603_v60 = vld [vmem:[%s31076_s9 + $0x1c40] sm:$0xff]  }
 0x3f0   : > { %25424 = vmatmul.mubr.msk.bf16.vlgmr.msra.gmra.mrb[104].mxu0 %vm32935_vm6, %v25423_v1  ;;  %25430 = vmatmul.mubr.msk.bf16.vlgmr.msra.gmra.mrb[104].mxu1 %vm32941_vm7, %v25429_v6  ;;  %v29604_v1 = vld [vmem:[%s31076_s9 + $0x1cc0] sm:$0xff]  }
 0x3f1   : > { %27026 = vmatpush3.bf16.msra.mxu0 %v29572_v2  ;;  %27048 = vmatpush3.bf16.msra.mxu1 %v29573_v5  ;;  %v25435_v2 = vpack.c.bf16 %v1442_v57, %v1442_v57  ;;  %v1451_v5 = vcombine.high %v1449_v63, %v1449_v63  ;;  %v29606_v6 = vld [vmem:[%s31076_s9 + $0x1c80] sm:$0xff]   ;;  %v1459_v57 = vrot.slane %v884_v56, %v31145_v47  ;;  %v29667_v56 = vld [vmem:[%s31076_s9 + $0x1db8] sm:$0xff]  }
 0x3f2   : > { %27027 = vmatprep.subr.bf16.mxu0 %v29574_v7  ;;  %27049 = vmatprep.subr.bf16.mxu1 %v29575_v9  ;;  %v25441_v7 = vpack.c.bf16 %v1449_v63, %v1449_v63  ;;  %v1466_v63 = vrot.slane %v1452_v59, %v31145_v47 }
 0x3f3   : > { %25433 = vmatprep.mubr.msk.bf16.mxu0 %vm32995_vm11, %v25432_v4  ;;  %v25438_v9 = vpack.c.bf16 %v1451_v5, %v1451_v5  ;;  %v1467_v62 = vcombine.high %v1459_v57, %v1459_v57 }
 0x3f4   : > { %v1468_v5 = vcombine.high %v1466_v63, %v1466_v63 }
 0x3f5   : > { %27028 = vmatpush3.bf16.msra.mxu0 %v29576_v10  ;;  %27050 = vmatpush3.bf16.msra.mxu1 %v29577_v11  ;;  %v29608_v10 = vld [vmem:[%s31076_s9 + $0x1cc8] sm:$0xff]   ;;  %v25444_v4 = vpack.c.bf16 %v1467_v62, %v1467_v62 }
 0x3f6   : > { %27029 = vmatprep.subr.bf16.mxu0 %v29578_v12  ;;  %27051 = vmatprep.subr.bf16.mxu1 %v29579_v13  ;;  %v29609_v11 = vld [vmem:[%s31076_s9 + $0x1c08] sm:$0xff]   ;;  %v29611_v13 = vld [vmem:[%s31076_s9 + $0x1c50] sm:$0xff]  }
 0x3f7   : > { %25439 = vmatprep.mubr.msk.bf16.mxu1 %vm33001_vm13, %v25438_v9  ;;  %v29610_v12 = vld [vmem:[%s31076_s9 + $0x1c88] sm:$0xff]   ;;  %v25450_v9 = vpack.c.bf16 %v1468_v5, %v1468_v5  ;;  %v29671_v5 = vld [vmem:[%s31076_s9 + $0x1e00] sm:$0xff]  }
 0x3f9   : > { %27030 = vmatpush3.bf16.msra.mxu0 %v29580_v14  ;;  %27052 = vmatpush3.bf16.msra.mxu1 %v29581_v15  ;;  %v29612_v14 = vld [vmem:[%s31076_s9 + $0x1cd0] sm:$0xff]  }
 0x3fa   : > { %27031 = vmatprep.subr.bf16.mxu0 %v29582_v16  ;;  %27053 = vmatprep.subr.bf16.mxu1 %v29583_v18  ;;  %v29613_v15 = vld [vmem:[%s31076_s9 + $0x1c10] sm:$0xff]   ;;  %v29615_v18 = vld [vmem:[%s31076_s9 + $0x1c58] sm:$0xff]  }
 0x3fb   : > { %v29614_v16 = vld [vmem:[%s31076_s9 + $0x1c90] sm:$0xff]  }
 0x3fd   : > { %27032 = vmatpush3.bf16.msra.mxu0 %v29584_v19  ;;  %27054 = vmatpush3.bf16.msra.mxu1 %v29585_v25  ;;  %v29616_v19 = vld [vmem:[%s31076_s9 + $0x1cd8] sm:$0xff]  }
 0x3fe   : > { %27033 = vmatprep.subr.bf16.mxu0 %v29586_v17  ;;  %27055 = vmatprep.subr.bf16.mxu1 %v29587_v27  ;;  %v29617_v25 = vld [vmem:[%s31076_s9 + $0x1c18] sm:$0xff]  }
 0x401   : > { %27034 = vmatpush3.bf16.msra.mxu0 %v29588_v31  ;;  %27056 = vmatpush3.bf16.msra.mxu1 %v29589_v28 }
 0x402   : > { %27035 = vmatprep.subr.bf16.mxu0 %v29590_v38  ;;  %27057 = vmatprep.subr.bf16.mxu1 %v29591_v35 }
 0x403   : > { %v26733_v26 = vpop.f32.mrb[80].mxu0  ;;  %v26755_v23 = vpop.f32.mrb[80].mxu1 }
 0x404   : > { %v26734_v21 = vpop.f32.mrb[81].mxu0  ;;  %v26756_v20 = vpop.f32.mrb[81].mxu1 }
 0x405   : > { %v26735_v24 = vadd.f32 %v26734_v21, %v26733_v26  ;;  %v26757_v30 = vadd.f32 %v26756_v20, %v26755_v23  ;;  %v26736_v32 = vpop.f32.mrb[82].mxu0  ;;  %v26758_v33 = vpop.f32.mrb[82].mxu1  ;;  %27036 = vmatpush3.bf16.msra.mxu0 %v29592_v40  ;;  %v29618_v26 = vld [vmem:[%s31076_s9 + $0x1c98] sm:$0xff]   ;;  %v29619_v21 = vld [vmem:[%s31076_s9 + $0x1c60] sm:$0xff]   ;;  %v29624_v40 = vld [vmem:[%s31076_s9 + $0x1ce8] sm:$0xff]  }
 0x406   : > { %v26737_v22 = vpop.f32.mrb[83].mxu0  ;;  %v26759_v41 = vpop.f32.mrb[83].mxu1  ;;  %27037 = vmatprep.subr.bf16.mxu0 %v29594_v42  ;;  %v29620_v23 = vld [vmem:[%s31076_s9 + $0x1ce0] sm:$0xff]   ;;  %v29623_v33 = vld [vmem:[%s31076_s9 + $0x1c68] sm:$0xff]  }
 0x407   : > { %v19712_v34 = vadd.f32 %v26735_v24, %v32903_v37  ;;  %v29593_v37 = vld [vmem:[%s31076_s9 + $0x1ba8] sm:$0xff]   ;;  %v29621_v20 = vld [vmem:[%s31076_s9 + $0x1c20] sm:$0xff]  }
 0x408   : > { %27058 = vmatpush3.bf16.msra.mxu1 %v29593_v37  ;;  %v29625_v37 = vld [vmem:[%s31076_s9 + $0x1c28] sm:$0xff]  }
 0x409   : > { %v32974_v39 = vadd.f32 %v26757_v30, %v19712_v34  ;;  %27059 = vmatprep.subr.bf16.mxu1 %v29595_v43  ;;  %27038 = vmatpush3.bf16.msra.mxu0 %v29596_v45  ;;  %v29622_v34 = vld [vmem:[%s31076_s9 + $0x1ca0] sm:$0xff]   ;;  %v29627_v43 = vld [vmem:[%s31076_s9 + $0x1c70] sm:$0xff]   ;;  %v488_v45 = vadd.s32 14464, %v31126_v29 }
 0x40a   : > { %27039 = vmatprep.subr.bf16.mxu0 %v29598_v50  ;;  %v487_v50 = vadd.s32 14336, %v31126_v29 }
 0x40b   : > { %vm729_vm0 = vcmp.lt.s32.totalorder %v488_v45, %v31134_v36  ;;  %v492_v45 = vadd.s32 14976, %v31126_v29 }
 0x40c   : > { %27060 = vmatpush3.bf16.msra.mxu1 %v29597_v48  ;;  %v490_v48 = vadd.s32 14720, %v31126_v29  ;;  %vm728_vm2 = vcmp.lt.s32.totalorder %v487_v50, %v31134_v36  ;;  %vm33066_vm3 = vmpackc.low %vm729_vm0, %vm729_vm0  ;;  %v491_v50 = vadd.s32 14848, %v31126_v29 }
 0x40d   : > { %27061 = vmatprep.subr.bf16.mxu1 %v29599_v52  ;;  %27040 = vmatpush3.bf16.msra.mxu0 %v29600_v53  ;;  %v489_v52 = vadd.s32 14592, %v31126_v29  ;;  %v29632_v53 = vld [vmem:[%s31076_s9 + $0x1cf8] sm:$0xff]   ;;  %vm33077_vm6 = vmpackc.low %vm728_vm2, %vm728_vm2  ;;  %vm733_vm8 = vcmp.lt.s32.totalorder %v492_v45, %v31134_v36  ;;  %v29693_v45 = vld [vmem:[%s31076_s9 + $0x1e70] sm:$0xff]  }
 0x40e   : > { %27069 = vmatprep.subr.bf16.mxu0 %v29603_v60  ;;  %vm731_vm1 = vcmp.lt.s32.totalorder %v490_v48, %v31134_v36  ;;  %v494_v48 = vadd.s32 15232, %v31126_v29  ;;  %vm732_vm10 = vcmp.lt.s32.totalorder %v491_v50, %v31134_v36  ;;  %vm33135_vm11 = vmpackc.low %vm733_vm8, %vm733_vm8  ;;  %v498_v50 = vadd.s32 15744, %v31126_v29 }
 0x40f   : > { %vm730_vm4 = vcmp.lt.s32.totalorder %v489_v52, %v31134_v36  ;;  %vm33071_vm5 = vmpackc.low %vm731_vm1, %vm731_vm1  ;;  %v493_v52 = vadd.s32 15104, %v31126_v29 }
 0x410   : > { %27062 = vmatpush3.bf16.msra.mxu1 %v29601_v54  ;;  %25436 = vmatmul.mubr.msk.bf16.vlgmr.msra.gmra.mrb[108].mxu0 %vm33006_vm14, %v25435_v2  ;;  %v29633_v54 = vld [vmem:[%s31076_s9 + $0x1c38] sm:$0xff]   ;;  %v25447_v2 = vpack.c.bf16 %v1459_v57, %v1459_v57  ;;  %vm33082_vm7 = vmpackc.low %vm730_vm4, %vm730_vm4  ;;  %vm735_vm9 = vcmp.lt.s32.totalorder %v494_v48, %v31134_v36  ;;  %v885_v57 = vld [vmem:[%s31094_s18 + $0xe8] sm:$0xff]  ;;  %v496_v48 = vadd.s32 15488, %v31126_v29  ;;  %vm739_vm1 = vcmp.lt.s32.totalorder %v498_v50, %v31134_v36 }
 0x411   : > { %27091 = vmatprep.subr.bf16.mxu1 %v29604_v1  ;;  %27070 = vmatpush3.bf16.msra.mxu0 %v29605_v3  ;;  %v29637_v1 = vld [vmem:[%s31076_s9 + $0x1dc0] sm:$0xff]   ;;  %vm734_vm12 = vcmp.lt.s32.totalorder %v493_v52, %v31134_v36  ;;  %v1476_v59 = vrot.slane %v885_v57, %v31145_v47  ;;  %v1469_v60 = vcombine.high %v885_v57, %v885_v57  ;;  %vm33141_vm13 = vmpackc.low %vm735_vm9, %vm735_vm9  ;;  %v495_v52 = vadd.s32 15360, %v31126_v29  ;;  %v29700_v57 = vld [vmem:[%s31076_s9 + $0x1eb8] sm:$0xff]  }
 0x412   : > { %27071 = vmatprep.subr.bf16.mxu0 %v29607_v8  ;;  %v29639_v8 = vld [vmem:[%s31076_s9 + $0x1d80] sm:$0xff]   ;;  %25445 = vmatprep.mubr.msk.bf16.mxu0 %vm33066_vm3, %v25444_v4  ;;  %vm33145_vm14 = vmpackc.low %vm732_vm10, %vm732_vm10  ;;  %vm737_vm0 = vcmp.lt.s32.totalorder %v496_v48, %v31134_v36  ;;  %v29727_v48 = vld [vmem:[%s31076_s9 + $0x1ff0] sm:$0xff]  }
 0x413   : > { %25442 = vmatmul.mubr.msk.bf16.vlgmr.msra.gmra.mrb[108].mxu1 %vm33011_vm15, %v25441_v7  ;;  %v25453_v7 = vpack.c.bf16 %v1466_v63, %v1466_v63  ;;  %v29669_v63 = vld [vmem:[%s31076_s9 + $0x1e40] sm:$0xff]   ;;  %v1484_v0 = vcombine.high %v1476_v59, %v1476_v59  ;;  %vm33151_vm15 = vmpackc.low %vm734_vm12, %vm734_vm12  ;;  %v25459_v4 = vpack.c.bf16 %v1476_v59, %v1476_v59  ;;  %vm736_vm2 = vcmp.lt.s32.totalorder %v495_v52, %v31134_v36  ;;  %v29728_v50 = vld [vmem:[%s31076_s9 + $0x1f30] sm:$0xff]  }
 0x414   : > { %27092 = vmatpush3.bf16.msra.mxu1 %v29606_v6  ;;  %v29638_v6 = vld [vmem:[%s31076_s9 + $0x1d00] sm:$0xff]   ;;  %25451 = vmatprep.mubr.msk.bf16.mxu1 %vm33071_vm5, %v25450_v9  ;;  %vm33205_vm3 = vmpackc.low %vm737_vm0, %vm737_vm0  ;;  %v29729_v52 = vld [vmem:[%s31076_s9 + $0x1fb0] sm:$0xff]  }
 0x415   : > { %27093 = vmatprep.subr.bf16.mxu1 %v29608_v10  ;;  %27072 = vmatpush3.bf16.msra.mxu0 %v29609_v11  ;;  %v29640_v10 = vld [vmem:[%s31076_s9 + $0x1d48] sm:$0xff]   ;;  %v29670_v3 = vld [vmem:[%s31076_s9 + $0x1ec0] sm:$0xff]   ;;  %vm33211_vm5 = vmpackc.low %vm739_vm1, %vm739_vm1 }
 0x416   : > { %27073 = vmatprep.subr.bf16.mxu0 %v29611_v13  ;;  %v29641_v11 = vld [vmem:[%s31076_s9 + $0x1dc8] sm:$0xff]   ;;  %v887_v59 = vld [vmem:[%s31094_s18 + $0xf8] sm:$0xff] }
 0x417   : > { %v29643_v13 = vld [vmem:[%s31076_s9 + $0x1d88] sm:$0xff]   ;;  %v1503_v62 = vcombine.high %v887_v59, %v887_v59 }
 0x418   : > { %27094 = vmatpush3.bf16.msra.mxu1 %v29610_v12  ;;  %v29642_v12 = vld [vmem:[%s31076_s9 + $0x1d08] sm:$0xff]  }
 0x419   : > { %27095 = vmatprep.subr.bf16.mxu1 %v29612_v14  ;;  %27074 = vmatpush3.bf16.msra.mxu0 %v29613_v15  ;;  %v29644_v14 = vld [vmem:[%s31076_s9 + $0x1d50] sm:$0xff]  }
 0x41a   : > { %27075 = vmatprep.subr.bf16.mxu0 %v29615_v18  ;;  %v29645_v15 = vld [vmem:[%s31076_s9 + $0x1dd0] sm:$0xff]  }
 0x41b   : > { %v29647_v18 = vld [vmem:[%s31076_s9 + $0x1d90] sm:$0xff]  }
 0x41c   : > { %27096 = vmatpush3.bf16.msra.mxu1 %v29614_v16  ;;  %v29646_v16 = vld [vmem:[%s31076_s9 + $0x1d10] sm:$0xff]  }
 0x41d   : > { %27097 = vmatprep.subr.bf16.mxu1 %v29616_v19  ;;  %27076 = vmatpush3.bf16.msra.mxu0 %v29617_v25  ;;  %v29648_v19 = vld [vmem:[%s31076_s9 + $0x1d58] sm:$0xff]  }
 0x41e   : > { %27077 = vmatprep.subr.bf16.mxu0 %v29619_v21  ;;  %v29649_v25 = vld [vmem:[%s31076_s9 + $0x1dd8] sm:$0xff]  }
 0x41f   : > { %v29651_v21 = vld [vmem:[%s31076_s9 + $0x1d98] sm:$0xff]  }
 0x420   : > { %27098 = vmatpush3.bf16.msra.mxu1 %v29618_v26  ;;  %v29650_v26 = vld [vmem:[%s31076_s9 + $0x1d18] sm:$0xff]  }
 0x421   : > { %27099 = vmatprep.subr.bf16.mxu1 %v29620_v23  ;;  %27078 = vmatpush3.bf16.msra.mxu0 %v29621_v20  ;;  %v29652_v23 = vld [vmem:[%s31076_s9 + $0x1d60] sm:$0xff]  }
 0x422   : > { %27079 = vmatprep.subr.bf16.mxu0 %v29623_v33  ;;  %v29653_v20 = vld [vmem:[%s31076_s9 + $0x1de0] sm:$0xff]  }
 0x423   : > { %v26777_v17 = vpop.f32.mrb[84].mxu0  ;;  %v26799_v24 = vpop.f32.mrb[84].mxu1  ;;  %v29655_v33 = vld [vmem:[%s31076_s9 + $0x1da0] sm:$0xff]  }
 0x424   : > { %v26778_v27 = vpop.f32.mrb[85].mxu0  ;;  %v26800_v28 = vpop.f32.mrb[85].mxu1  ;;  %27100 = vmatpush3.bf16.msra.mxu1 %v29622_v34  ;;  %v29654_v34 = vld [vmem:[%s31076_s9 + $0x1d20] sm:$0xff]  }
 0x425   : > { %v26779_v31 = vadd.f32 %v26778_v27, %v26777_v17  ;;  %v26801_v32 = vadd.f32 %v26800_v28, %v26799_v24  ;;  %v26780_v38 = vpop.f32.mrb[86].mxu0  ;;  %v26802_v35 = vpop.f32.mrb[86].mxu1  ;;  %27101 = vmatprep.subr.bf16.mxu1 %v29624_v40  ;;  %27080 = vmatpush3.bf16.msra.mxu0 %v29625_v37 }
 0x426   : > { %v26781_v41 = vpop.f32.mrb[87].mxu0  ;;  %v26803_v42 = vpop.f32.mrb[87].mxu1  ;;  %27081 = vmatprep.subr.bf16.mxu0 %v29627_v43  ;;  %v29659_v43 = vld [vmem:[%s31076_s9 + $0x1da8] sm:$0xff]  }
 0x427   : > { %v19792_v30 = vadd.f32 %v26779_v31, %v32974_v39  ;;  %v29626_v39 = vld [vmem:[%s31076_s9 + $0x1ca8] sm:$0xff]  }
 0x428   : > { %27102 = vmatpush3.bf16.msra.mxu1 %v29626_v39  ;;  %v29656_v41 = vld [vmem:[%s31076_s9 + $0x1d68] sm:$0xff]  }
 0x429   : > { %v33044_v22 = vadd.f32 %v26801_v32, %v19792_v30  ;;  %27103 = vmatprep.subr.bf16.mxu1 %v29628_v44  ;;  %27082 = vmatpush3.bf16.msra.mxu0 %v29629_v46  ;;  %v29657_v42 = vld [vmem:[%s31076_s9 + $0x1de8] sm:$0xff]   ;;  %v29660_v44 = vld [vmem:[%s31076_s9 + $0x1d70] sm:$0xff]  }
 0x42a   : > { %27083 = vmatprep.subr.bf16.mxu0 %v29631_v51  ;;  %v29661_v46 = vld [vmem:[%s31076_s9 + $0x1df0] sm:$0xff]  }
 0x42b   : > { %v29663_v51 = vld [vmem:[%s31076_s9 + $0x1db0] sm:$0xff]  }
 0x42c   : > { %27104 = vmatpush3.bf16.msra.mxu1 %v29630_v49  ;;  %v29662_v49 = vld [vmem:[%s31076_s9 + $0x1d30] sm:$0xff]  }
 0x42d   : > { %27105 = vmatprep.subr.bf16.mxu1 %v29632_v53  ;;  %27084 = vmatpush3.bf16.msra.mxu0 %v29633_v54  ;;  %v29664_v53 = vld [vmem:[%s31076_s9 + $0x1d78] sm:$0xff]  }
 0x42e   : > { %27113 = vmatprep.subr.bf16.mxu0 %v29636_v61  ;;  %v29665_v54 = vld [vmem:[%s31076_s9 + $0x1df8] sm:$0xff]   ;;  %v1486_v61 = vcombine.high %v886_v58, %v886_v58 }
 0x430   : > { %27106 = vmatpush3.bf16.msra.mxu1 %v29634_v55  ;;  %25448 = vmatmul.mubr.msk.bf16.vlgmr.msra.gmra.mrb[112].mxu0 %vm33077_vm6, %v25447_v2  ;;  %v29666_v55 = vld [vmem:[%s31076_s9 + $0x1d38] sm:$0xff]   ;;  %vm33216_vm6 = vmpackc.low %vm736_vm2, %vm736_vm2  ;;  %v1500_v2 = vrot.slane %v1486_v61, %v31145_v47  ;;  %v889_v61 = vld [vmem:[%s31094_s18 + $0x108] sm:$0xff] }
 0x431   : > { %27135 = vmatprep.subr.bf16.mxu1 %v29637_v1  ;;  %27114 = vmatpush3.bf16.msra.mxu0 %v29638_v6  ;;  %v1483_v1 = vrot.slane %v1469_v60, %v31145_v47  ;;  %v25456_v6 = vpack.c.bf16 %v1484_v0, %v1484_v0  ;;  %v1493_v60 = vrot.slane %v886_v58, %v31145_v47  ;;  %v29733_v58 = vld [vmem:[%s31076_s9 + $0x1fb8] sm:$0xff]   ;;  %v29735_v0 = vld [vmem:[%s31076_s9 + $0x2040] sm:$0xff]  }
 0x432   : > { %27115 = vmatprep.subr.bf16.mxu0 %v29640_v10  ;;  %v29673_v10 = vld [vmem:[%s31076_s9 + $0x1e48] sm:$0xff]  }
 0x433   : > { %25454 = vmatmul.mubr.msk.bf16.vlgmr.msra.gmra.mrb[112].mxu1 %vm33082_vm7, %v25453_v7  ;;  %v1485_v7 = vcombine.high %v1483_v1, %v1483_v1  ;;  %v25465_v9 = vpack.c.bf16 %v1483_v1, %v1483_v1  ;;  %25457 = vmatprep.mubr.msk.bf16.mxu0 %vm33135_vm11, %v25456_v6  ;;  %v1501_v1 = vcombine.high %v1493_v60, %v1493_v60  ;;  %v29704_v6 = vld [vmem:[%s31076_s9 + $0x1f00] sm:$0xff]  }
 0x434   : > { %27136 = vmatpush3.bf16.msra.mxu1 %v29639_v8  ;;  %v29672_v8 = vld [vmem:[%s31076_s9 + $0x1e80] sm:$0xff]  }
 0x435   : > { %27137 = vmatprep.subr.bf16.mxu1 %v29641_v11  ;;  %27116 = vmatpush3.bf16.msra.mxu0 %v29642_v12  ;;  %v25462_v11 = vpack.c.bf16 %v1485_v7, %v1485_v7  ;;  %v29674_v12 = vld [vmem:[%s31076_s9 + $0x1ec8] sm:$0xff]   ;;  %v25468_v7 = vpack.c.bf16 %v1501_v1, %v1501_v1 }
 0x436   : > { %27117 = vmatprep.subr.bf16.mxu0 %v29644_v14  ;;  %v29676_v14 = vld [vmem:[%s31076_s9 + $0x1e88] sm:$0xff]  }
 0x437   : > { %25463 = vmatprep.mubr.msk.bf16.mxu1 %vm33141_vm13, %v25462_v11  ;;  %v29706_v11 = vld [vmem:[%s31076_s9 + $0x1f48] sm:$0xff]  }
 0x438   : > { %27138 = vmatpush3.bf16.msra.mxu1 %v29643_v13  ;;  %v29675_v13 = vld [vmem:[%s31076_s9 + $0x1e08] sm:$0xff]  }
 0x439   : > { %27139 = vmatprep.subr.bf16.mxu1 %v29645_v15  ;;  %27118 = vmatpush3.bf16.msra.mxu0 %v29646_v16  ;;  %v29677_v15 = vld [vmem:[%s31076_s9 + $0x1e50] sm:$0xff]  }
 0x43a   : > { %27119 = vmatprep.subr.bf16.mxu0 %v29648_v19  ;;  %v29678_v16 = vld [vmem:[%s31076_s9 + $0x1ed0] sm:$0xff]  }
 0x43b   : > { %v29680_v19 = vld [vmem:[%s31076_s9 + $0x1e90] sm:$0xff]  }
 0x43c   : > { %27140 = vmatpush3.bf16.msra.mxu1 %v29647_v18  ;;  %v29679_v18 = vld [vmem:[%s31076_s9 + $0x1e10] sm:$0xff]  }
 0x43d   : > { %27141 = vmatprep.subr.bf16.mxu1 %v29649_v25  ;;  %27120 = vmatpush3.bf16.msra.mxu0 %v29650_v26  ;;  %v29681_v25 = vld [vmem:[%s31076_s9 + $0x1e58] sm:$0xff]  }
 0x43e   : > { %27121 = vmatprep.subr.bf16.mxu0 %v29652_v23  ;;  %v29682_v26 = vld [vmem:[%s31076_s9 + $0x1ed8] sm:$0xff]   ;;  %v29685_v23 = vld [vmem:[%s31076_s9 + $0x1e60] sm:$0xff]  }
 0x440   : > { %27142 = vmatpush3.bf16.msra.mxu1 %v29651_v21  ;;  %v29684_v21 = vld [vmem:[%s31076_s9 + $0x1e98] sm:$0xff]  }
 0x441   : > { %27143 = vmatprep.subr.bf16.mxu1 %v29653_v20  ;;  %27122 = vmatpush3.bf16.msra.mxu0 %v29654_v34  ;;  %v29687_v34 = vld [vmem:[%s31076_s9 + $0x1e20] sm:$0xff]  }
 0x442   : > { %27123 = vmatprep.subr.bf16.mxu0 %v29656_v41  ;;  %v29689_v41 = vld [vmem:[%s31076_s9 + $0x1e68] sm:$0xff]  }
 0x443   : > { %v26821_v17 = vpop.f32.mrb[88].mxu0  ;;  %v26843_v24 = vpop.f32.mrb[88].mxu1 }
 0x444   : > { %v26822_v27 = vpop.f32.mrb[89].mxu0  ;;  %v26844_v28 = vpop.f32.mrb[89].mxu1  ;;  %27144 = vmatpush3.bf16.msra.mxu1 %v29655_v33 }
 0x445   : > { %v26823_v31 = vadd.f32 %v26822_v27, %v26821_v17  ;;  %v26845_v32 = vadd.f32 %v26844_v28, %v26843_v24  ;;  %v26824_v38 = vpop.f32.mrb[90].mxu0  ;;  %v26846_v35 = vpop.f32.mrb[90].mxu1  ;;  %27145 = vmatprep.subr.bf16.mxu1 %v29657_v42  ;;  %v29683_v17 = vld [vmem:[%s31076_s9 + $0x1e18] sm:$0xff]  }
 0x446   : > { %v26825_v37 = vpop.f32.mrb[91].mxu0  ;;  %v26847_v39 = vpop.f32.mrb[91].mxu1 }
 0x447   : > { %v19872_v30 = vadd.f32 %v26823_v31, %v33044_v22  ;;  %v29658_v22 = vld [vmem:[%s31076_s9 + $0x1d28] sm:$0xff]   ;;  %v29686_v31 = vld [vmem:[%s31076_s9 + $0x1ee0] sm:$0xff]  }
 0x448   : > { %27124 = vmatpush3.bf16.msra.mxu0 %v29658_v22  ;;  %27146 = vmatpush3.bf16.msra.mxu1 %v29659_v43  ;;  %v29690_v39 = vld [vmem:[%s31076_s9 + $0x1ee8] sm:$0xff]  }
 0x449   : > { %v33113_v40 = vadd.f32 %v26845_v32, %v19872_v30  ;;  %27125 = vmatprep.subr.bf16.mxu0 %v29660_v44  ;;  %27147 = vmatprep.subr.bf16.mxu1 %v29661_v46  ;;  %v29688_v32 = vld [vmem:[%s31076_s9 + $0x1ea0] sm:$0xff]   ;;  %v29691_v43 = vld [vmem:[%s31076_s9 + $0x1e28] sm:$0xff]   ;;  %v29694_v46 = vld [vmem:[%s31076_s9 + $0x1ef0] sm:$0xff]  }
 0x44c   : > { %27126 = vmatpush3.bf16.msra.mxu0 %v29662_v49  ;;  %27148 = vmatpush3.bf16.msra.mxu1 %v29663_v51  ;;  %v29695_v49 = vld [vmem:[%s31076_s9 + $0x1e30] sm:$0xff]  }
 0x44d   : > { %27127 = vmatprep.subr.bf16.mxu0 %v29664_v53  ;;  %27149 = vmatprep.subr.bf16.mxu1 %v29665_v54  ;;  %v29696_v51 = vld [vmem:[%s31076_s9 + $0x1eb0] sm:$0xff]   ;;  %v29697_v53 = vld [vmem:[%s31076_s9 + $0x1e78] sm:$0xff]   ;;  %v497_v54 = vadd.s32 15616, %v31126_v29 }
 0x44f   : > { %vm738_vm4 = vcmp.lt.s32.totalorder %v497_v54, %v31134_v36  ;;  %v29730_v54 = vld [vmem:[%s31076_s9 + $0x1f78] sm:$0xff]  }
 0x450   : > { %27128 = vmatpush3.bf16.msra.mxu0 %v29666_v55  ;;  %27150 = vmatpush3.bf16.msra.mxu1 %v29667_v56  ;;  %v29698_v55 = vld [vmem:[%s31076_s9 + $0x1ef8] sm:$0xff]   ;;  %vm33221_vm7 = vmpackc.low %vm738_vm4, %vm738_vm4 }
 0x451   : > { %27157 = vmatprep.subr.bf16.mxu0 %v29669_v63  ;;  %27179 = vmatprep.subr.bf16.mxu1 %v29670_v3  ;;  %v29699_v56 = vld [vmem:[%s31076_s9 + $0x1e38] sm:$0xff]   ;;  %v29702_v63 = vld [vmem:[%s31076_s9 + $0x1f40] sm:$0xff]  }
 0x453   : > { %25460 = vmatmul.mubr.msk.bf16.vlgmr.msra.gmra.mrb[116].mxu0 %vm33145_vm14, %v25459_v4  ;;  %25466 = vmatmul.mubr.msk.bf16.vlgmr.msra.gmra.mrb[116].mxu1 %vm33151_vm15, %v25465_v9  ;;  %v29703_v4 = vld [vmem:[%s31076_s9 + $0x1fc0] sm:$0xff]  }
 0x454   : > { %27158 = vmatpush3.bf16.msra.mxu0 %v29671_v5  ;;  %27180 = vmatpush3.bf16.msra.mxu1 %v29672_v8  ;;  %v25471_v5 = vpack.c.bf16 %v1493_v60, %v1493_v60  ;;  %v1502_v8 = vcombine.high %v1500_v2, %v1500_v2  ;;  %v29705_v9 = vld [vmem:[%s31076_s9 + $0x1f80] sm:$0xff]   ;;  %v1510_v60 = vrot.slane %v887_v59, %v31145_v47  ;;  %v29766_v59 = vld [vmem:[%s31076_s9 + $0x20b8] sm:$0xff]  }
 0x455   : > { %27159 = vmatprep.subr.bf16.mxu0 %v29673_v10  ;;  %27181 = vmatprep.subr.bf16.mxu1 %v29674_v12  ;;  %v25477_v10 = vpack.c.bf16 %v1500_v2, %v1500_v2  ;;  %v1517_v2 = vrot.slane %v1503_v62, %v31145_v47 }
 0x456   : > { %25469 = vmatprep.mubr.msk.bf16.mxu0 %vm33205_vm3, %v25468_v7  ;;  %v25474_v12 = vpack.c.bf16 %v1502_v8, %v1502_v8  ;;  %v1518_v1 = vcombine.high %v1510_v60, %v1510_v60 }
 0x457   : > { %v1519_v8 = vcombine.high %v1517_v2, %v1517_v2 }
 0x458   : > { %27160 = vmatpush3.bf16.msra.mxu0 %v29675_v13  ;;  %27182 = vmatpush3.bf16.msra.mxu1 %v29676_v14  ;;  %v29707_v13 = vld [vmem:[%s31076_s9 + $0x1fc8] sm:$0xff]   ;;  %v25480_v7 = vpack.c.bf16 %v1518_v1, %v1518_v1 }
 0x459   : > { %27161 = vmatprep.subr.bf16.mxu0 %v29677_v15  ;;  %27183 = vmatprep.subr.bf16.mxu1 %v29678_v16  ;;  %v29708_v14 = vld [vmem:[%s31076_s9 + $0x1f08] sm:$0xff]   ;;  %v29710_v16 = vld [vmem:[%s31076_s9 + $0x1f50] sm:$0xff]  }
 0x45a   : > { %25475 = vmatprep.mubr.msk.bf16.mxu1 %vm33211_vm5, %v25474_v12  ;;  %v29709_v15 = vld [vmem:[%s31076_s9 + $0x1f88] sm:$0xff]   ;;  %v25486_v12 = vpack.c.bf16 %v1519_v8, %v1519_v8  ;;  %v29770_v8 = vld [vmem:[%s31076_s9 + $0x2100] sm:$0xff]  }
 0x45c   : > { %27162 = vmatpush3.bf16.msra.mxu0 %v29679_v18  ;;  %27184 = vmatpush3.bf16.msra.mxu1 %v29680_v19  ;;  %v29711_v18 = vld [vmem:[%s31076_s9 + $0x1fd0] sm:$0xff]  }
 0x45d   : > { %27163 = vmatprep.subr.bf16.mxu0 %v29681_v25  ;;  %27185 = vmatprep.subr.bf16.mxu1 %v29682_v26  ;;  %v29712_v19 = vld [vmem:[%s31076_s9 + $0x1f10] sm:$0xff]   ;;  %v29714_v26 = vld [vmem:[%s31076_s9 + $0x1f58] sm:$0xff]  }
 0x45e   : > { %v29713_v25 = vld [vmem:[%s31076_s9 + $0x1f90] sm:$0xff]  }
 0x460   : > { %27164 = vmatpush3.bf16.msra.mxu0 %v29683_v17  ;;  %27186 = vmatpush3.bf16.msra.mxu1 %v29684_v21  ;;  %v29715_v17 = vld [vmem:[%s31076_s9 + $0x1fd8] sm:$0xff]  }
 0x461   : > { %27165 = vmatprep.subr.bf16.mxu0 %v29685_v23  ;;  %27187 = vmatprep.subr.bf16.mxu1 %v29686_v31  ;;  %v29716_v21 = vld [vmem:[%s31076_s9 + $0x1f18] sm:$0xff]  }
 0x463   : > { %v26865_v27 = vpop.f32.mrb[92].mxu0  ;;  %v26887_v20 = vpop.f32.mrb[92].mxu1 }
 0x464   : > { %v26866_v24 = vpop.f32.mrb[93].mxu0  ;;  %v26888_v30 = vpop.f32.mrb[93].mxu1  ;;  %27166 = vmatpush3.bf16.msra.mxu0 %v29687_v34  ;;  %27188 = vmatpush3.bf16.msra.mxu1 %v29688_v32 }
 0x465   : > { %v26867_v28 = vadd.f32 %v26866_v24, %v26865_v27  ;;  %v26889_v33 = vadd.f32 %v26888_v30, %v26887_v20  ;;  %v26868_v35 = vpop.f32.mrb[94].mxu0  ;;  %v26890_v37 = vpop.f32.mrb[94].mxu1  ;;  %27167 = vmatprep.subr.bf16.mxu0 %v29689_v41  ;;  %27189 = vmatprep.subr.bf16.mxu1 %v29690_v39  ;;  %v29717_v27 = vld [vmem:[%s31076_s9 + $0x1f98] sm:$0xff]   ;;  %v29718_v24 = vld [vmem:[%s31076_s9 + $0x1f60] sm:$0xff]  }
 0x466   : > { %v26869_v22 = vpop.f32.mrb[95].mxu0  ;;  %v26891_v44 = vpop.f32.mrb[95].mxu1  ;;  %v29719_v20 = vld [vmem:[%s31076_s9 + $0x1fe0] sm:$0xff]   ;;  %v29722_v37 = vld [vmem:[%s31076_s9 + $0x1f68] sm:$0xff]  }
 0x467   : > { %v19952_v38 = vadd.f32 %v26867_v28, %v33113_v40  ;;  %v29692_v40 = vld [vmem:[%s31076_s9 + $0x1ea8] sm:$0xff]   ;;  %v29720_v30 = vld [vmem:[%s31076_s9 + $0x1f20] sm:$0xff]  }
 0x468   : > { %27168 = vmatpush3.bf16.msra.mxu0 %v29691_v43  ;;  %27190 = vmatpush3.bf16.msra.mxu1 %v29692_v40  ;;  %v29723_v43 = vld [vmem:[%s31076_s9 + $0x1fe8] sm:$0xff]  }
 0x469   : > { %v33184_v42 = vadd.f32 %v26889_v33, %v19952_v38  ;;  %27169 = vmatprep.subr.bf16.mxu0 %v29693_v45  ;;  %27191 = vmatprep.subr.bf16.mxu1 %v29694_v46  ;;  %v29721_v38 = vld [vmem:[%s31076_s9 + $0x1fa0] sm:$0xff]   ;;  %v29724_v40 = vld [vmem:[%s31076_s9 + $0x1f28] sm:$0xff]   ;;  %v29726_v46 = vld [vmem:[%s31076_s9 + $0x1f70] sm:$0xff]  }
 0x46c   : > { %27170 = vmatpush3.bf16.msra.mxu0 %v29695_v49  ;;  %27192 = vmatpush3.bf16.msra.mxu1 %v29696_v51  ;;  %v500_v49 = vadd.s32 16000, %v31126_v29  ;;  %v502_v51 = vadd.s32 16256, %v31126_v29 }
 0x46d   : > { %27171 = vmatprep.subr.bf16.mxu0 %v29697_v53  ;;  %27193 = vmatprep.subr.bf16.mxu1 %v29698_v55  ;;  %v499_v53 = vadd.s32 15872, %v31126_v29  ;;  %v501_v55 = vadd.s32 16128, %v31126_v29 }
 0x46e   : > { %vm741_vm8 = vcmp.lt.s32.totalorder %v500_v49, %v31134_v36  ;;  %vm743_vm9 = vcmp.lt.s32.totalorder %v502_v51, %v31134_v36  ;;  %v504_v49 = vadd.s32 16512, %v31126_v29  ;;  %v506_v51 = vadd.s32 16768, %v31126_v29 }
 0x46f   : > { %vm740_vm10 = vcmp.lt.s32.totalorder %v499_v53, %v31134_v36  ;;  %vm33276_vm11 = vmpackc.low %vm741_vm8, %vm741_vm8  ;;  %vm742_vm12 = vcmp.lt.s32.totalorder %v501_v55, %v31134_v36  ;;  %v503_v53 = vadd.s32 16384, %v31126_v29  ;;  %v505_v55 = vadd.s32 16640, %v31126_v29 }
 0x470   : > { %27172 = vmatpush3.bf16.msra.mxu0 %v29699_v56  ;;  %27194 = vmatpush3.bf16.msra.mxu1 %v29700_v57  ;;  %v29731_v56 = vld [vmem:[%s31076_s9 + $0x1ff8] sm:$0xff]   ;;  %vm33281_vm13 = vmpackc.low %vm743_vm9, %vm743_vm9  ;;  %vm745_vm0 = vcmp.lt.s32.totalorder %v504_v49, %v31134_v36  ;;  %vm747_vm1 = vcmp.lt.s32.totalorder %v506_v51, %v31134_v36  ;;  %v29792_v49 = vld [vmem:[%s31076_s9 + $0x2170] sm:$0xff]   ;;  %v508_v51 = vadd.s32 17024, %v31126_v29 }
 0x471   : > { %27201 = vmatprep.subr.bf16.mxu0 %v29702_v63  ;;  %27223 = vmatprep.subr.bf16.mxu1 %v29703_v4  ;;  %v29732_v57 = vld [vmem:[%s31076_s9 + $0x1f38] sm:$0xff]   ;;  %vm33287_vm14 = vmpackc.low %vm740_vm10, %vm740_vm10  ;;  %v29736_v4 = vld [vmem:[%s31076_s9 + $0x20c0] sm:$0xff]   ;;  %vm744_vm2 = vcmp.lt.s32.totalorder %v503_v53, %v31134_v36  ;;  %vm746_vm4 = vcmp.lt.s32.totalorder %v505_v55, %v31134_v36  ;;  %v510_v53 = vadd.s32 17280, %v31126_v29  ;;  %v507_v55 = vadd.s32 16896, %v31126_v29 }
 0x472   : > { %vm33292_vm15 = vmpackc.low %vm742_vm12, %vm742_vm12  ;;  %vm749_vm8 = vcmp.lt.s32.totalorder %v508_v51, %v31134_v36  ;;  %v29826_v51 = vld [vmem:[%s31076_s9 + $0x22f0] sm:$0xff]  }
 0x473   : > { %25472 = vmatmul.mubr.msk.bf16.vlgmr.msra.gmra.mrb[120].mxu0 %vm33216_vm6, %v25471_v5  ;;  %25478 = vmatmul.mubr.msk.bf16.vlgmr.msra.gmra.mrb[120].mxu1 %vm33221_vm7, %v25477_v10  ;;  %v25483_v5 = vpack.c.bf16 %v1510_v60, %v1510_v60  ;;  %v25489_v10 = vpack.c.bf16 %v1517_v2, %v1517_v2  ;;  %v888_v60 = vld [vmem:[%s31094_s18 + $0x100] sm:$0xff]  ;;  %vm33345_vm3 = vmpackc.low %vm745_vm0, %vm745_vm0  ;;  %vm751_vm9 = vcmp.lt.s32.totalorder %v510_v53, %v31134_v36  ;;  %v29827_v53 = vld [vmem:[%s31076_s9 + $0x2230] sm:$0xff]  }
 0x474   : > { %27202 = vmatpush3.bf16.msra.mxu0 %v29704_v6  ;;  %27224 = vmatpush3.bf16.msra.mxu1 %v29705_v9  ;;  %v29737_v9 = vld [vmem:[%s31076_s9 + $0x2000] sm:$0xff]   ;;  %v1527_v62 = vrot.slane %v888_v60, %v31145_v47  ;;  %v1520_v63 = vcombine.high %v888_v60, %v888_v60  ;;  %vm33351_vm5 = vmpackc.low %vm747_vm1, %vm747_vm1  ;;  %v29799_v60 = vld [vmem:[%s31076_s9 + $0x21b8] sm:$0xff]   ;;  %vm748_vm10 = vcmp.lt.s32.totalorder %v507_v55, %v31134_v36 }
 0x475   : > { %27203 = vmatprep.subr.bf16.mxu0 %v29706_v11  ;;  %27225 = vmatprep.subr.bf16.mxu1 %v29707_v13  ;;  %v29738_v11 = vld [vmem:[%s31076_s9 + $0x2080] sm:$0xff]   ;;  %v29739_v13 = vld [vmem:[%s31076_s9 + $0x2048] sm:$0xff]   ;;  %vm33355_vm6 = vmpackc.low %vm744_vm2, %vm744_vm2 }
 0x476   : > { %25481 = vmatprep.mubr.msk.bf16.mxu0 %vm33276_vm11, %v25480_v7  ;;  %25487 = vmatprep.mubr.msk.bf16.mxu1 %vm33281_vm13, %v25486_v12  ;;  %v29768_v2 = vld [vmem:[%s31076_s9 + $0x2140] sm:$0xff]   ;;  %v1535_v3 = vcombine.high %v1527_v62, %v1527_v62  ;;  %vm33361_vm7 = vmpackc.low %vm746_vm4, %vm746_vm4  ;;  %v25495_v7 = vpack.c.bf16 %v1527_v62, %v1527_v62  ;;  %v29828_v55 = vld [vmem:[%s31076_s9 + $0x22b0] sm:$0xff]  }
 0x477   : > { %v29769_v6 = vld [vmem:[%s31076_s9 + $0x21c0] sm:$0xff]   ;;  %vm33415_vm11 = vmpackc.low %vm749_vm8, %vm749_vm8  ;;  %v890_v62 = vld [vmem:[%s31094_s18 + $0x110] sm:$0xff] }
 0x478   : > { %27204 = vmatpush3.bf16.msra.mxu0 %v29708_v14  ;;  %27226 = vmatpush3.bf16.msra.mxu1 %v29709_v15  ;;  %v29740_v14 = vld [vmem:[%s31076_s9 + $0x20c8] sm:$0xff]   ;;  %vm33421_vm13 = vmpackc.low %vm751_vm9, %vm751_vm9  ;;  %v1554_v1 = vcombine.high %v890_v62, %v890_v62 }
 0x479   : > { %27205 = vmatprep.subr.bf16.mxu0 %v29710_v16  ;;  %27227 = vmatprep.subr.bf16.mxu1 %v29711_v18  ;;  %v29741_v15 = vld [vmem:[%s31076_s9 + $0x2008] sm:$0xff]   ;;  %v29743_v18 = vld [vmem:[%s31076_s9 + $0x2050] sm:$0xff]  }
 0x47a   : > { %v29742_v16 = vld [vmem:[%s31076_s9 + $0x2088] sm:$0xff]  }
 0x47c   : > { %27206 = vmatpush3.bf16.msra.mxu0 %v29712_v19  ;;  %27228 = vmatpush3.bf16.msra.mxu1 %v29713_v25  ;;  %v29744_v19 = vld [vmem:[%s31076_s9 + $0x20d0] sm:$0xff]  }
 0x47d   : > { %27207 = vmatprep.subr.bf16.mxu0 %v29714_v26  ;;  %27229 = vmatprep.subr.bf16.mxu1 %v29715_v17  ;;  %v29745_v25 = vld [vmem:[%s31076_s9 + $0x2010] sm:$0xff]   ;;  %v29747_v17 = vld [vmem:[%s31076_s9 + $0x2058] sm:$0xff]  }
 0x47e   : > { %v29746_v26 = vld [vmem:[%s31076_s9 + $0x2090] sm:$0xff]  }
 0x480   : > { %27208 = vmatpush3.bf16.msra.mxu0 %v29716_v21  ;;  %27230 = vmatpush3.bf16.msra.mxu1 %v29717_v27  ;;  %v29748_v21 = vld [vmem:[%s31076_s9 + $0x20d8] sm:$0xff]  }
 0x481   : > { %27209 = vmatprep.subr.bf16.mxu0 %v29718_v24  ;;  %27231 = vmatprep.subr.bf16.mxu1 %v29719_v20  ;;  %v29749_v27 = vld [vmem:[%s31076_s9 + $0x2018] sm:$0xff]   ;;  %v29751_v20 = vld [vmem:[%s31076_s9 + $0x2060] sm:$0xff]  }
 0x482   : > { %v29750_v24 = vld [vmem:[%s31076_s9 + $0x2098] sm:$0xff]  }
 0x483   : > { %v26909_v23 = vpop.f32.mrb[96].mxu0  ;;  %v26931_v28 = vpop.f32.mrb[96].mxu1 }
 0x484   : > { %v26910_v31 = vpop.f32.mrb[97].mxu0  ;;  %v26932_v32 = vpop.f32.mrb[97].mxu1  ;;  %27210 = vmatpush3.bf16.msra.mxu0 %v29720_v30  ;;  %27232 = vmatpush3.bf16.msra.mxu1 %v29721_v38  ;;  %v29752_v30 = vld [vmem:[%s31076_s9 + $0x20e0] sm:$0xff]  }
 0x485   : > { %v26911_v34 = vadd.f32 %v26910_v31, %v26909_v23  ;;  %v26933_v35 = vadd.f32 %v26932_v32, %v26931_v28  ;;  %v26912_v41 = vpop.f32.mrb[98].mxu0  ;;  %v26934_v39 = vpop.f32.mrb[98].mxu1  ;;  %27211 = vmatprep.subr.bf16.mxu0 %v29722_v37  ;;  %27233 = vmatprep.subr.bf16.mxu1 %v29723_v43  ;;  %v29753_v38 = vld [vmem:[%s31076_s9 + $0x2020] sm:$0xff]  }
 0x486   : > { %v26913_v44 = vpop.f32.mrb[99].mxu0  ;;  %v26935_v45 = vpop.f32.mrb[99].mxu1  ;;  %v29754_v37 = vld [vmem:[%s31076_s9 + $0x20a0] sm:$0xff]  }
 0x487   : > { %v20032_v33 = vadd.f32 %v26911_v34, %v33184_v42  ;;  %v29725_v42 = vld [vmem:[%s31076_s9 + $0x1fa8] sm:$0xff]  }
 0x488   : > { %27212 = vmatpush3.bf16.msra.mxu0 %v29724_v40  ;;  %27234 = vmatpush3.bf16.msra.mxu1 %v29725_v42  ;;  %v29755_v44 = vld [vmem:[%s31076_s9 + $0x2068] sm:$0xff]  }
 0x489   : > { %v33254_v22 = vadd.f32 %v26933_v35, %v20032_v33  ;;  %27213 = vmatprep.subr.bf16.mxu0 %v29726_v46  ;;  %27235 = vmatprep.subr.bf16.mxu1 %v29727_v48  ;;  %v29756_v45 = vld [vmem:[%s31076_s9 + $0x20e8] sm:$0xff]   ;;  %v29759_v48 = vld [vmem:[%s31076_s9 + $0x2070] sm:$0xff]  }
 0x48a   : > { %v29758_v46 = vld [vmem:[%s31076_s9 + $0x20a8] sm:$0xff]  }
 0x48c   : > { %27214 = vmatpush3.bf16.msra.mxu0 %v29728_v50  ;;  %27236 = vmatpush3.bf16.msra.mxu1 %v29729_v52  ;;  %v29760_v50 = vld [vmem:[%s31076_s9 + $0x20f0] sm:$0xff]  }
 0x48d   : > { %27215 = vmatprep.subr.bf16.mxu0 %v29730_v54  ;;  %27237 = vmatprep.subr.bf16.mxu1 %v29731_v56  ;;  %v29761_v52 = vld [vmem:[%s31076_s9 + $0x2030] sm:$0xff]   ;;  %v29763_v56 = vld [vmem:[%s31076_s9 + $0x2078] sm:$0xff]  }
 0x48e   : > { %v29762_v54 = vld [vmem:[%s31076_s9 + $0x20b0] sm:$0xff]  }
 0x490   : > { %27216 = vmatpush3.bf16.msra.mxu0 %v29732_v57  ;;  %27238 = vmatpush3.bf16.msra.mxu1 %v29733_v58  ;;  %v29764_v57 = vld [vmem:[%s31076_s9 + $0x20f8] sm:$0xff]  }
 0x491   : > { %27245 = vmatprep.subr.bf16.mxu0 %v29735_v0  ;;  %27267 = vmatprep.subr.bf16.mxu1 %v29736_v4  ;;  %v29765_v58 = vld [vmem:[%s31076_s9 + $0x2038] sm:$0xff]   ;;  %v1534_v4 = vrot.slane %v1520_v63, %v31145_v47  ;;  %v1544_v63 = vrot.slane %v889_v61, %v31145_v47  ;;  %v1537_v0 = vcombine.high %v889_v61, %v889_v61 }
 0x492   : > { %v29832_v61 = vld [vmem:[%s31076_s9 + $0x22b8] sm:$0xff]  }
 0x493   : > { %25484 = vmatmul.mubr.msk.bf16.vlgmr.msra.gmra.mrb[124].mxu0 %vm33287_vm14, %v25483_v5  ;;  %25490 = vmatmul.mubr.msk.bf16.vlgmr.msra.gmra.mrb[124].mxu1 %vm33292_vm15, %v25489_v10  ;;  %v1536_v10 = vcombine.high %v1534_v4, %v1534_v4  ;;  %v25501_v12 = vpack.c.bf16 %v1534_v4, %v1534_v4  ;;  %vm33426_vm14 = vmpackc.low %vm748_vm10, %vm748_vm10  ;;  %v1552_v4 = vcombine.high %v1544_v63, %v1544_v63 }
 0x494   : > { %27246 = vmatpush3.bf16.msra.mxu0 %v29737_v9  ;;  %27268 = vmatpush3.bf16.msra.mxu1 %v29738_v11  ;;  %v25492_v9 = vpack.c.bf16 %v1535_v3, %v1535_v3  ;;  %v29771_v11 = vld [vmem:[%s31076_s9 + $0x2180] sm:$0xff]   ;;  %v1551_v5 = vrot.slane %v1537_v0, %v31145_v47 }
 0x495   : > { %27247 = vmatprep.subr.bf16.mxu0 %v29739_v13  ;;  %27269 = vmatprep.subr.bf16.mxu1 %v29740_v14  ;;  %v29772_v13 = vld [vmem:[%s31076_s9 + $0x2148] sm:$0xff]   ;;  %v25498_v14 = vpack.c.bf16 %v1536_v10, %v1536_v10  ;;  %v25504_v10 = vpack.c.bf16 %v1552_v4, %v1552_v4  ;;  %v29834_v3 = vld [vmem:[%s31076_s9 + $0x2340] sm:$0xff]  }
 0x496   : > { %25493 = vmatprep.mubr.msk.bf16.mxu0 %vm33345_vm3, %v25492_v9  ;;  %v29803_v9 = vld [vmem:[%s31076_s9 + $0x2200] sm:$0xff]  }
 0x497   : > { %25499 = vmatprep.mubr.msk.bf16.mxu1 %vm33351_vm5, %v25498_v14  ;;  %v29805_v14 = vld [vmem:[%s31076_s9 + $0x2248] sm:$0xff]   ;;  %v892_v0 = vld [vmem:[%s31094_s18 + $0x120] sm:$0xff] }
 0x498   : > { %27248 = vmatpush3.bf16.msra.mxu0 %v29741_v15  ;;  %27270 = vmatpush3.bf16.msra.mxu1 %v29742_v16  ;;  %v29773_v15 = vld [vmem:[%s31076_s9 + $0x21c8] sm:$0xff]  }
 0x499   : > { %27249 = vmatprep.subr.bf16.mxu0 %v29743_v18  ;;  %27271 = vmatprep.subr.bf16.mxu1 %v29744_v19  ;;  %v29774_v16 = vld [vmem:[%s31076_s9 + $0x2108] sm:$0xff]   ;;  %v29776_v19 = vld [vmem:[%s31076_s9 + $0x2150] sm:$0xff]  }
 0x49a   : > { %v29775_v18 = vld [vmem:[%s31076_s9 + $0x2188] sm:$0xff]  }
 0x49c   : > { %27250 = vmatpush3.bf16.msra.mxu0 %v29745_v25  ;;  %27272 = vmatpush3.bf16.msra.mxu1 %v29746_v26  ;;  %v29777_v25 = vld [vmem:[%s31076_s9 + $0x21d0] sm:$0xff]  }
 0x49d   : > { %27251 = vmatprep.subr.bf16.mxu0 %v29747_v17  ;;  %27273 = vmatprep.subr.bf16.mxu1 %v29748_v21  ;;  %v29778_v26 = vld [vmem:[%s31076_s9 + $0x2110] sm:$0xff]   ;;  %v29780_v21 = vld [vmem:[%s31076_s9 + $0x2158] sm:$0xff]  }
 0x49e   : > { %v29779_v17 = vld [vmem:[%s31076_s9 + $0x2190] sm:$0xff]  }
 0x4a0   : > { %27252 = vmatpush3.bf16.msra.mxu0 %v29749_v27  ;;  %27274 = vmatpush3.bf16.msra.mxu1 %v29750_v24  ;;  %v29781_v27 = vld [vmem:[%s31076_s9 + $0x21d8] sm:$0xff]  }
 0x4a1   : > { %27253 = vmatprep.subr.bf16.mxu0 %v29751_v20  ;;  %27275 = vmatprep.subr.bf16.mxu1 %v29752_v30  ;;  %v29783_v24 = vld [vmem:[%s31076_s9 + $0x2198] sm:$0xff]   ;;  %v29784_v20 = vld [vmem:[%s31076_s9 + $0x2160] sm:$0xff]  }
 0x4a3   : > { %v26953_v23 = vpop.f32.mrb[100].mxu0  ;;  %v26975_v28 = vpop.f32.mrb[100].mxu1 }
 0x4a4   : > { %v26954_v31 = vpop.f32.mrb[101].mxu0  ;;  %v26976_v32 = vpop.f32.mrb[101].mxu1  ;;  %27254 = vmatpush3.bf16.msra.mxu0 %v29753_v38  ;;  %27276 = vmatpush3.bf16.msra.mxu1 %v29754_v37  ;;  %v29786_v38 = vld [vmem:[%s31076_s9 + $0x2120] sm:$0xff]  }
 0x4a5   : > { %v26955_v34 = vadd.f32 %v26954_v31, %v26953_v23  ;;  %v26977_v35 = vadd.f32 %v26976_v32, %v26975_v28  ;;  %v26956_v41 = vpop.f32.mrb[102].mxu0  ;;  %v26978_v39 = vpop.f32.mrb[102].mxu1  ;;  %27255 = vmatprep.subr.bf16.mxu0 %v29755_v44  ;;  %27277 = vmatprep.subr.bf16.mxu1 %v29756_v45  ;;  %v29782_v23 = vld [vmem:[%s31076_s9 + $0x2118] sm:$0xff]   ;;  %v29788_v44 = vld [vmem:[%s31076_s9 + $0x2168] sm:$0xff]  }
 0x4a6   : > { %v26957_v40 = vpop.f32.mrb[103].mxu0  ;;  %v26979_v42 = vpop.f32.mrb[103].mxu1 }
 0x4a7   : > { %v20112_v33 = vadd.f32 %v26955_v34, %v33254_v22  ;;  %v29757_v22 = vld [vmem:[%s31076_s9 + $0x2028] sm:$0xff]   ;;  %v29785_v34 = vld [vmem:[%s31076_s9 + $0x21e0] sm:$0xff]  }
 0x4a8   : > { %27256 = vmatpush3.bf16.msra.mxu0 %v29757_v22  ;;  %27278 = vmatpush3.bf16.msra.mxu1 %v29758_v46  ;;  %v29789_v42 = vld [vmem:[%s31076_s9 + $0x21e8] sm:$0xff]  }
 0x4a9   : > { %v33323_v43 = vadd.f32 %v26977_v35, %v20112_v33  ;;  %27257 = vmatprep.subr.bf16.mxu0 %v29759_v48  ;;  %27279 = vmatprep.subr.bf16.mxu1 %v29760_v50  ;;  %v29787_v35 = vld [vmem:[%s31076_s9 + $0x21a0] sm:$0xff]   ;;  %v29790_v46 = vld [vmem:[%s31076_s9 + $0x2128] sm:$0xff]   ;;  %v29793_v50 = vld [vmem:[%s31076_s9 + $0x21f0] sm:$0xff]  }
 0x4ac   : > { %27258 = vmatpush3.bf16.msra.mxu0 %v29761_v52  ;;  %27280 = vmatpush3.bf16.msra.mxu1 %v29762_v54  ;;  %v29794_v52 = vld [vmem:[%s31076_s9 + $0x2130] sm:$0xff]  }
 0x4ad   : > { %27259 = vmatprep.subr.bf16.mxu0 %v29763_v56  ;;  %27281 = vmatprep.subr.bf16.mxu1 %v29764_v57  ;;  %v29795_v54 = vld [vmem:[%s31076_s9 + $0x21b0] sm:$0xff]   ;;  %v29796_v56 = vld [vmem:[%s31076_s9 + $0x2178] sm:$0xff]   ;;  %v509_v57 = vadd.s32 17152, %v31126_v29 }
 0x4af   : > { %vm750_vm12 = vcmp.lt.s32.totalorder %v509_v57, %v31134_v36  ;;  %v29829_v57 = vld [vmem:[%s31076_s9 + $0x2278] sm:$0xff]  }
 0x4b0   : > { %27260 = vmatpush3.bf16.msra.mxu0 %v29765_v58  ;;  %27282 = vmatpush3.bf16.msra.mxu1 %v29766_v59  ;;  %v29797_v58 = vld [vmem:[%s31076_s9 + $0x21f8] sm:$0xff]   ;;  %vm33431_vm15 = vmpackc.low %vm750_vm12, %vm750_vm12 }
 0x4b1   : > { %27289 = vmatprep.subr.bf16.mxu0 %v29768_v2  ;;  %27311 = vmatprep.subr.bf16.mxu1 %v29769_v6  ;;  %v29798_v59 = vld [vmem:[%s31076_s9 + $0x2138] sm:$0xff]   ;;  %v29801_v2 = vld [vmem:[%s31076_s9 + $0x2240] sm:$0xff]  }
 0x4b3   : > { %25496 = vmatmul.mubr.msk.bf16.vlgmr.msra.gmra.mrb[128].mxu0 %vm33355_vm6, %v25495_v7  ;;  %25502 = vmatmul.mubr.msk.bf16.vlgmr.msra.gmra.mrb[128].mxu1 %vm33361_vm7, %v25501_v12  ;;  %v29802_v7 = vld [vmem:[%s31076_s9 + $0x22c0] sm:$0xff]  }
 0x4b4   : > { %27290 = vmatpush3.bf16.msra.mxu0 %v29770_v8  ;;  %27312 = vmatpush3.bf16.msra.mxu1 %v29771_v11  ;;  %v25507_v8 = vpack.c.bf16 %v1544_v63, %v1544_v63  ;;  %v1553_v11 = vcombine.high %v1551_v5, %v1551_v5  ;;  %v29804_v12 = vld [vmem:[%s31076_s9 + $0x2280] sm:$0xff]   ;;  %v1561_v63 = vrot.slane %v890_v62, %v31145_v47  ;;  %v29865_v62 = vld [vmem:[%s31076_s9 + $0x23b8] sm:$0xff]  }
 0x4b5   : > { %27291 = vmatprep.subr.bf16.mxu0 %v29772_v13  ;;  %27313 = vmatprep.subr.bf16.mxu1 %v29773_v15  ;;  %v25513_v13 = vpack.c.bf16 %v1551_v5, %v1551_v5  ;;  %v1568_v5 = vrot.slane %v1554_v1, %v31145_v47 }
 0x4b6   : > { %25505 = vmatprep.mubr.msk.bf16.mxu0 %vm33415_vm11, %v25504_v10  ;;  %v25510_v15 = vpack.c.bf16 %v1553_v11, %v1553_v11  ;;  %v1569_v4 = vcombine.high %v1561_v63, %v1561_v63 }
 0x4b7   : > { %v1570_v11 = vcombine.high %v1568_v5, %v1568_v5 }
 0x4b8   : > { %27292 = vmatpush3.bf16.msra.mxu0 %v29774_v16  ;;  %27314 = vmatpush3.bf16.msra.mxu1 %v29775_v18  ;;  %v29806_v16 = vld [vmem:[%s31076_s9 + $0x22c8] sm:$0xff]   ;;  %v25516_v10 = vpack.c.bf16 %v1569_v4, %v1569_v4 }
 0x4b9   : > { %27293 = vmatprep.subr.bf16.mxu0 %v29776_v19  ;;  %27315 = vmatprep.subr.bf16.mxu1 %v29777_v25  ;;  %v29807_v18 = vld [vmem:[%s31076_s9 + $0x2208] sm:$0xff]   ;;  %v29809_v25 = vld [vmem:[%s31076_s9 + $0x2250] sm:$0xff]  }
 0x4ba   : > { %25511 = vmatprep.mubr.msk.bf16.mxu1 %vm33421_vm13, %v25510_v15  ;;  %v29808_v19 = vld [vmem:[%s31076_s9 + $0x2288] sm:$0xff]   ;;  %v25522_v15 = vpack.c.bf16 %v1570_v11, %v1570_v11  ;;  %v29869_v11 = vld [vmem:[%s31076_s9 + $0x2400] sm:$0xff]  }
 0x4bc   : > { %27294 = vmatpush3.bf16.msra.mxu0 %v29778_v26  ;;  %27316 = vmatpush3.bf16.msra.mxu1 %v29779_v17  ;;  %v29810_v26 = vld [vmem:[%s31076_s9 + $0x22d0] sm:$0xff]  }
 0x4bd   : > { %27295 = vmatprep.subr.bf16.mxu0 %v29780_v21  ;;  %27317 = vmatprep.subr.bf16.mxu1 %v29781_v27  ;;  %v29811_v17 = vld [vmem:[%s31076_s9 + $0x2210] sm:$0xff]   ;;  %v29813_v27 = vld [vmem:[%s31076_s9 + $0x2258] sm:$0xff]  }
 0x4be   : > { %v29812_v21 = vld [vmem:[%s31076_s9 + $0x2290] sm:$0xff]  }
 0x4c0   : > { %27296 = vmatpush3.bf16.msra.mxu0 %v29782_v23  ;;  %27318 = vmatpush3.bf16.msra.mxu1 %v29783_v24  ;;  %v29814_v23 = vld [vmem:[%s31076_s9 + $0x22d8] sm:$0xff]  }
 0x4c1   : > { %27297 = vmatprep.subr.bf16.mxu0 %v29784_v20  ;;  %27319 = vmatprep.subr.bf16.mxu1 %v29785_v34  ;;  %v29815_v24 = vld [vmem:[%s31076_s9 + $0x2218] sm:$0xff]  }
 0x4c3   : > { %v26997_v31 = vpop.f32.mrb[104].mxu0  ;;  %v27019_v30 = vpop.f32.mrb[104].mxu1 }
 0x4c4   : > { %v26998_v28 = vpop.f32.mrb[105].mxu0  ;;  %v27020_v33 = vpop.f32.mrb[105].mxu1  ;;  %27298 = vmatpush3.bf16.msra.mxu0 %v29786_v38  ;;  %27320 = vmatpush3.bf16.msra.mxu1 %v29787_v35 }
 0x4c5   : > { %v26999_v32 = vadd.f32 %v26998_v28, %v26997_v31  ;;  %v27021_v37 = vadd.f32 %v27020_v33, %v27019_v30  ;;  %v27000_v39 = vpop.f32.mrb[106].mxu0  ;;  %v27022_v40 = vpop.f32.mrb[106].mxu1  ;;  %27299 = vmatprep.subr.bf16.mxu0 %v29788_v44  ;;  %27321 = vmatprep.subr.bf16.mxu1 %v29789_v42  ;;  %v29816_v31 = vld [vmem:[%s31076_s9 + $0x2298] sm:$0xff]   ;;  %v29817_v28 = vld [vmem:[%s31076_s9 + $0x2260] sm:$0xff]  }
 0x4c6   : > { %v27001_v22 = vpop.f32.mrb[107].mxu0  ;;  %v27023_v48 = vpop.f32.mrb[107].mxu1  ;;  %v29818_v30 = vld [vmem:[%s31076_s9 + $0x22e0] sm:$0xff]   ;;  %v29821_v40 = vld [vmem:[%s31076_s9 + $0x2268] sm:$0xff]  }
 0x4c7   : > { %v20192_v41 = vadd.f32 %v26999_v32, %v33323_v43  ;;  %v29791_v43 = vld [vmem:[%s31076_s9 + $0x21a8] sm:$0xff]   ;;  %v29819_v33 = vld [vmem:[%s31076_s9 + $0x2220] sm:$0xff]  }
 0x4c8   : > { %27300 = vmatpush3.bf16.msra.mxu0 %v29790_v46  ;;  %27322 = vmatpush3.bf16.msra.mxu1 %v29791_v43  ;;  %v29822_v46 = vld [vmem:[%s31076_s9 + $0x22e8] sm:$0xff]  }
 0x4c9   : > { %v33394_v45 = vadd.f32 %v27021_v37, %v20192_v41  ;;  %27301 = vmatprep.subr.bf16.mxu0 %v29792_v49  ;;  %27323 = vmatprep.subr.bf16.mxu1 %v29793_v50  ;;  %v29820_v41 = vld [vmem:[%s31076_s9 + $0x22a0] sm:$0xff]   ;;  %v29823_v43 = vld [vmem:[%s31076_s9 + $0x2228] sm:$0xff]   ;;  %v29825_v50 = vld [vmem:[%s31076_s9 + $0x2270] sm:$0xff]  }
 0x4cc   : > { %27302 = vmatpush3.bf16.msra.mxu0 %v29794_v52  ;;  %27324 = vmatpush3.bf16.msra.mxu1 %v29795_v54  ;;  %v512_v52 = vadd.s32 17536, %v31126_v29  ;;  %v514_v54 = vadd.s32 17792, %v31126_v29 }
 0x4cd   : > { %27303 = vmatprep.subr.bf16.mxu0 %v29796_v56  ;;  %27325 = vmatprep.subr.bf16.mxu1 %v29797_v58  ;;  %v511_v56 = vadd.s32 17408, %v31126_v29  ;;  %v513_v58 = vadd.s32 17664, %v31126_v29 }
 0x4ce   : > { %vm753_vm0 = vcmp.lt.s32.totalorder %v512_v52, %v31134_v36  ;;  %vm755_vm1 = vcmp.lt.s32.totalorder %v514_v54, %v31134_v36  ;;  %v516_v52 = vadd.s32 18048, %v31126_v29  ;;  %v518_v54 = vadd.s32 18304, %v31126_v29 }
 0x4cf   : > { %vm752_vm2 = vcmp.lt.s32.totalorder %v511_v56, %v31134_v36  ;;  %vm33486_vm3 = vmpackc.low %vm753_vm0, %vm753_vm0  ;;  %vm754_vm4 = vcmp.lt.s32.totalorder %v513_v58, %v31134_v36  ;;  %v515_v56 = vadd.s32 17920, %v31126_v29  ;;  %v517_v58 = vadd.s32 18176, %v31126_v29 }
 0x4d0   : > { %27304 = vmatpush3.bf16.msra.mxu0 %v29798_v59  ;;  %27326 = vmatpush3.bf16.msra.mxu1 %v29799_v60  ;;  %v29830_v59 = vld [vmem:[%s31076_s9 + $0x22f8] sm:$0xff]   ;;  %vm33491_vm5 = vmpackc.low %vm755_vm1, %vm755_vm1  ;;  %vm757_vm8 = vcmp.lt.s32.totalorder %v516_v52, %v31134_v36  ;;  %vm759_vm9 = vcmp.lt.s32.totalorder %v518_v54, %v31134_v36  ;;  %v29891_v52 = vld [vmem:[%s31076_s9 + $0x2470] sm:$0xff]   ;;  %v520_v54 = vadd.s32 18560, %v31126_v29 }
 0x4d1   : > { %27333 = vmatprep.subr.bf16.mxu0 %v29801_v2  ;;  %27355 = vmatprep.subr.bf16.mxu1 %v29802_v7  ;;  %v29831_v60 = vld [vmem:[%s31076_s9 + $0x2238] sm:$0xff]   ;;  %vm33497_vm6 = vmpackc.low %vm752_vm2, %vm752_vm2  ;;  %v29835_v7 = vld [vmem:[%s31076_s9 + $0x23c0] sm:$0xff]   ;;  %vm756_vm10 = vcmp.lt.s32.totalorder %v515_v56, %v31134_v36  ;;  %vm758_vm12 = vcmp.lt.s32.totalorder %v517_v58, %v31134_v36  ;;  %v522_v56 = vadd.s32 18816, %v31126_v29  ;;  %v519_v58 = vadd.s32 18432, %v31126_v29 }
 0x4d2   : > { %vm33502_vm7 = vmpackc.low %vm754_vm4, %vm754_vm4  ;;  %vm761_vm0 = vcmp.lt.s32.totalorder %v520_v54, %v31134_v36  ;;  %v29925_v54 = vld [vmem:[%s31076_s9 + $0x25f0] sm:$0xff]  }
 0x4d3   : > { %25508 = vmatmul.mubr.msk.bf16.vlgmr.msra.gmra.mrb[132].mxu0 %vm33426_vm14, %v25507_v8  ;;  %25514 = vmatmul.mubr.msk.bf16.vlgmr.msra.gmra.mrb[132].mxu1 %vm33431_vm15, %v25513_v13  ;;  %v25519_v8 = vpack.c.bf16 %v1561_v63, %v1561_v63  ;;  %v25525_v13 = vpack.c.bf16 %v1568_v5, %v1568_v5  ;;  %v891_v63 = vld [vmem:[%s31094_s18 + $0x118] sm:$0xff]  ;;  %vm33555_vm11 = vmpackc.low %vm757_vm8, %vm757_vm8  ;;  %v29867_v5 = vld [vmem:[%s31076_s9 + $0x2440] sm:$0xff]   ;;  %vm763_vm1 = vcmp.lt.s32.totalorder %v522_v56, %v31134_v36 }
 0x4d4   : > { %27334 = vmatpush3.bf16.msra.mxu0 %v29803_v9  ;;  %27356 = vmatpush3.bf16.msra.mxu1 %v29804_v12  ;;  %v29836_v12 = vld [vmem:[%s31076_s9 + $0x2300] sm:$0xff]   ;;  %v1578_v1 = vrot.slane %v891_v63, %v31145_v47  ;;  %v1571_v2 = vcombine.high %v891_v63, %v891_v63  ;;  %vm33561_vm13 = vmpackc.low %vm759_vm9, %vm759_vm9  ;;  %v29898_v63 = vld [vmem:[%s31076_s9 + $0x24b8] sm:$0xff]   ;;  %vm760_vm2 = vcmp.lt.s32.totalorder %v519_v58, %v31134_v36 }
 0x4d5   : > { %27335 = vmatprep.subr.bf16.mxu0 %v29805_v14  ;;  %27357 = vmatprep.subr.bf16.mxu1 %v29806_v16  ;;  %v29837_v14 = vld [vmem:[%s31076_s9 + $0x2380] sm:$0xff]   ;;  %v29838_v16 = vld [vmem:[%s31076_s9 + $0x2348] sm:$0xff]   ;;  %vm33565_vm14 = vmpackc.low %vm756_vm10, %vm756_vm10 }
 0x4d6   : > { %25517 = vmatprep.mubr.msk.bf16.mxu0 %vm33486_vm3, %v25516_v10  ;;  %25523 = vmatprep.mubr.msk.bf16.mxu1 %vm33491_vm5, %v25522_v15  ;;  %v1586_v6 = vcombine.high %v1578_v1, %v1578_v1  ;;  %vm33571_vm15 = vmpackc.low %vm758_vm12, %vm758_vm12  ;;  %v29868_v9 = vld [vmem:[%s31076_s9 + $0x24c0] sm:$0xff]   ;;  %v25531_v10 = vpack.c.bf16 %v1578_v1, %v1578_v1  ;;  %v29926_v56 = vld [vmem:[%s31076_s9 + $0x2530] sm:$0xff]  }
 0x4d7   : > { %vm33625_vm3 = vmpackc.low %vm761_vm0, %vm761_vm0  ;;  %v29927_v58 = vld [vmem:[%s31076_s9 + $0x25b0] sm:$0xff]   ;;  %v893_v1 = vld [vmem:[%s31094_s18 + $0x128] sm:$0xff] }
 0x4d8   : > { %27336 = vmatpush3.bf16.msra.mxu0 %v29807_v18  ;;  %27358 = vmatpush3.bf16.msra.mxu1 %v29808_v19  ;;  %v29839_v18 = vld [vmem:[%s31076_s9 + $0x23c8] sm:$0xff]   ;;  %vm33631_vm5 = vmpackc.low %vm763_vm1, %vm763_vm1  ;;  %v1605_v4 = vcombine.high %v893_v1, %v893_v1 }
 0x4d9   : > { %27337 = vmatprep.subr.bf16.mxu0 %v29809_v25  ;;  %27359 = vmatprep.subr.bf16.mxu1 %v29810_v26  ;;  %v29840_v19 = vld [vmem:[%s31076_s9 + $0x2308] sm:$0xff]   ;;  %v29842_v26 = vld [vmem:[%s31076_s9 + $0x2350] sm:$0xff]  }
 0x4da   : > { %v29841_v25 = vld [vmem:[%s31076_s9 + $0x2388] sm:$0xff]  }
 0x4dc   : > { %27338 = vmatpush3.bf16.msra.mxu0 %v29811_v17  ;;  %27360 = vmatpush3.bf16.msra.mxu1 %v29812_v21  ;;  %v29843_v17 = vld [vmem:[%s31076_s9 + $0x23d0] sm:$0xff]  }
 0x4dd   : > { %27339 = vmatprep.subr.bf16.mxu0 %v29813_v27  ;;  %27361 = vmatprep.subr.bf16.mxu1 %v29814_v23  ;;  %v29844_v21 = vld [vmem:[%s31076_s9 + $0x2310] sm:$0xff]   ;;  %v29846_v23 = vld [vmem:[%s31076_s9 + $0x2358] sm:$0xff]  }
 0x4de   : > { %v29845_v27 = vld [vmem:[%s31076_s9 + $0x2390] sm:$0xff]  }
 0x4e0   : > { %27340 = vmatpush3.bf16.msra.mxu0 %v29815_v24  ;;  %27362 = vmatpush3.bf16.msra.mxu1 %v29816_v31  ;;  %v29847_v24 = vld [vmem:[%s31076_s9 + $0x23d8] sm:$0xff]  }
 0x4e1   : > { %27341 = vmatprep.subr.bf16.mxu0 %v29817_v28  ;;  %27363 = vmatprep.subr.bf16.mxu1 %v29818_v30  ;;  %v29848_v31 = vld [vmem:[%s31076_s9 + $0x2318] sm:$0xff]   ;;  %v29850_v30 = vld [vmem:[%s31076_s9 + $0x2360] sm:$0xff]  }
 0x4e2   : > { %v29849_v28 = vld [vmem:[%s31076_s9 + $0x2398] sm:$0xff]  }
 0x4e3   : > { %v27041_v20 = vpop.f32.mrb[108].mxu0 }
 0x4e4   : > { %v27042_v34 = vpop.f32.mrb[109].mxu0  ;;  %27342 = vmatpush3.bf16.msra.mxu0 %v29819_v33  ;;  %27364 = vmatpush3.bf16.msra.mxu1 %v29820_v41  ;;  %v29851_v33 = vld [vmem:[%s31076_s9 + $0x23e0] sm:$0xff]  }
 0x4e5   : > { %v27043_v38 = vadd.f32 %v27042_v34, %v27041_v20  ;;  %v27044_v44 = vpop.f32.mrb[110].mxu0  ;;  %27343 = vmatprep.subr.bf16.mxu0 %v29821_v40  ;;  %27365 = vmatprep.subr.bf16.mxu1 %v29822_v46  ;;  %v29852_v41 = vld [vmem:[%s31076_s9 + $0x2320] sm:$0xff]  }
 0x4e6   : > { %v27063_v32 = vpop.f32.mrb[108].mxu1  ;;  %v27045_v48 = vpop.f32.mrb[111].mxu0  ;;  %v29853_v40 = vld [vmem:[%s31076_s9 + $0x23a0] sm:$0xff]  }
 0x4e7   : > { %v27064_v35 = vpop.f32.mrb[109].mxu1  ;;  %v20272_v37 = vadd.f32 %v27043_v38, %v33394_v45  ;;  %v29824_v45 = vld [vmem:[%s31076_s9 + $0x22a8] sm:$0xff]  }
 0x4e8   : > { %v27065_v39 = vadd.f32 %v27064_v35, %v27063_v32  ;;  %v27066_v42 = vpop.f32.mrb[110].mxu1  ;;  %27344 = vmatpush3.bf16.msra.mxu0 %v29823_v43  ;;  %27366 = vmatpush3.bf16.msra.mxu1 %v29824_v45  ;;  %v29854_v48 = vld [vmem:[%s31076_s9 + $0x2368] sm:$0xff]  }
 0x4e9   : > { %v27067_v49 = vpop.f32.mrb[111].mxu1  ;;  %27345 = vmatprep.subr.bf16.mxu0 %v29825_v50  ;;  %27367 = vmatprep.subr.bf16.mxu1 %v29826_v51  ;;  %v29857_v50 = vld [vmem:[%s31076_s9 + $0x23a8] sm:$0xff]   ;;  %v29858_v51 = vld [vmem:[%s31076_s9 + $0x2370] sm:$0xff]  }
 0x4ea   : > { %v33464_v22 = vadd.f32 %v27065_v39, %v20272_v37  ;;  %v29855_v49 = vld [vmem:[%s31076_s9 + $0x23e8] sm:$0xff]  }
 0x4ec   : > { %27346 = vmatpush3.bf16.msra.mxu0 %v29827_v53  ;;  %27368 = vmatpush3.bf16.msra.mxu1 %v29828_v55  ;;  %v29859_v53 = vld [vmem:[%s31076_s9 + $0x23f0] sm:$0xff]  }
 0x4ed   : > { %27347 = vmatprep.subr.bf16.mxu0 %v29829_v57  ;;  %27369 = vmatprep.subr.bf16.mxu1 %v29830_v59  ;;  %v29860_v55 = vld [vmem:[%s31076_s9 + $0x2330] sm:$0xff]   ;;  %v29862_v59 = vld [vmem:[%s31076_s9 + $0x2378] sm:$0xff]  }
 0x4ee   : > { %v29861_v57 = vld [vmem:[%s31076_s9 + $0x23b0] sm:$0xff]  }
 0x4f0   : > { %27348 = vmatpush3.bf16.msra.mxu0 %v29831_v60  ;;  %27370 = vmatpush3.bf16.msra.mxu1 %v29832_v61  ;;  %v29863_v60 = vld [vmem:[%s31076_s9 + $0x23f8] sm:$0xff]  }
 0x4f1   : > { %27377 = vmatprep.subr.bf16.mxu0 %v29834_v3  ;;  %27399 = vmatprep.subr.bf16.mxu1 %v29835_v7  ;;  %v29864_v61 = vld [vmem:[%s31076_s9 + $0x2338] sm:$0xff]   ;;  %v1585_v7 = vrot.slane %v1571_v2, %v31145_v47  ;;  %v1595_v2 = vrot.slane %v892_v0, %v31145_v47  ;;  %v1588_v3 = vcombine.high %v892_v0, %v892_v0 }
 0x4f2   : > { %v29931_v0 = vld [vmem:[%s31076_s9 + $0x25b8] sm:$0xff]  }
 0x4f3   : > { %25520 = vmatmul.mubr.msk.bf16.vlgmr.msra.gmra.mrb[136].mxu0 %vm33497_vm6, %v25519_v8  ;;  %25526 = vmatmul.mubr.msk.bf16.vlgmr.msra.gmra.mrb[136].mxu1 %vm33502_vm7, %v25525_v13  ;;  %v1587_v13 = vcombine.high %v1585_v7, %v1585_v7  ;;  %v25537_v15 = vpack.c.bf16 %v1585_v7, %v1585_v7  ;;  %vm33636_vm6 = vmpackc.low %vm760_vm2, %vm760_vm2  ;;  %v1603_v7 = vcombine.high %v1595_v2, %v1595_v2 }
 0x4f4   : > { %27378 = vmatpush3.bf16.msra.mxu0 %v29836_v12  ;;  %27400 = vmatpush3.bf16.msra.mxu1 %v29837_v14  ;;  %v25528_v12 = vpack.c.bf16 %v1586_v6, %v1586_v6  ;;  %v29870_v14 = vld [vmem:[%s31076_s9 + $0x2480] sm:$0xff]   ;;  %v1602_v8 = vrot.slane %v1588_v3, %v31145_v47  ;;  %v895_v3 = vld [vmem:[%s31094_s18 + $0x138] sm:$0xff] }
 0x4f5   : > { %27379 = vmatprep.subr.bf16.mxu0 %v29838_v16  ;;  %27401 = vmatprep.subr.bf16.mxu1 %v29839_v18  ;;  %v29871_v16 = vld [vmem:[%s31076_s9 + $0x2448] sm:$0xff]   ;;  %v25534_v18 = vpack.c.bf16 %v1587_v13, %v1587_v13  ;;  %v25540_v13 = vpack.c.bf16 %v1603_v7, %v1603_v7  ;;  %v29933_v6 = vld [vmem:[%s31076_s9 + $0x2640] sm:$0xff]  }
 0x4f6   : > { %25529 = vmatprep.mubr.msk.bf16.mxu0 %vm33555_vm11, %v25528_v12  ;;  %v29902_v12 = vld [vmem:[%s31076_s9 + $0x2500] sm:$0xff]  }
 0x4f7   : > { %25535 = vmatprep.mubr.msk.bf16.mxu1 %vm33561_vm13, %v25534_v18  ;;  %v29904_v18 = vld [vmem:[%s31076_s9 + $0x2548] sm:$0xff]  }
 0x4f8   : > { %27380 = vmatpush3.bf16.msra.mxu0 %v29840_v19  ;;  %27402 = vmatpush3.bf16.msra.mxu1 %v29841_v25  ;;  %v29872_v19 = vld [vmem:[%s31076_s9 + $0x24c8] sm:$0xff]  }
 0x4f9   : > { %27381 = vmatprep.subr.bf16.mxu0 %v29842_v26  ;;  %27403 = vmatprep.subr.bf16.mxu1 %v29843_v17  ;;  %v29873_v25 = vld [vmem:[%s31076_s9 + $0x2408] sm:$0xff]   ;;  %v29875_v17 = vld [vmem:[%s31076_s9 + $0x2450] sm:$0xff]  }
 0x4fa   : > { %v29874_v26 = vld [vmem:[%s31076_s9 + $0x2488] sm:$0xff]  }
 0x4fc   : > { %27382 = vmatpush3.bf16.msra.mxu0 %v29844_v21  ;;  %27404 = vmatpush3.bf16.msra.mxu1 %v29845_v27  ;;  %v29876_v21 = vld [vmem:[%s31076_s9 + $0x24d0] sm:$0xff]  }
 0x4fd   : > { %27383 = vmatprep.subr.bf16.mxu0 %v29846_v23  ;;  %27405 = vmatprep.subr.bf16.mxu1 %v29847_v24  ;;  %v29877_v27 = vld [vmem:[%s31076_s9 + $0x2410] sm:$0xff]   ;;  %v29879_v24 = vld [vmem:[%s31076_s9 + $0x2458] sm:$0xff]  }
 0x4fe   : > { %v29878_v23 = vld [vmem:[%s31076_s9 + $0x2490] sm:$0xff]  }
 0x500   : > { %27384 = vmatpush3.bf16.msra.mxu0 %v29848_v31  ;;  %27406 = vmatpush3.bf16.msra.mxu1 %v29849_v28  ;;  %v29880_v31 = vld [vmem:[%s31076_s9 + $0x24d8] sm:$0xff]  }
 0x501   : > { %27385 = vmatprep.subr.bf16.mxu0 %v29850_v30  ;;  %27407 = vmatprep.subr.bf16.mxu1 %v29851_v33  ;;  %v29882_v28 = vld [vmem:[%s31076_s9 + $0x2498] sm:$0xff]   ;;  %v29883_v30 = vld [vmem:[%s31076_s9 + $0x2460] sm:$0xff]  }
 0x503   : > { %v27085_v20 = vpop.f32.mrb[112].mxu0 }
 0x504   : > { %v27086_v34 = vpop.f32.mrb[113].mxu0  ;;  %27386 = vmatpush3.bf16.msra.mxu0 %v29852_v41  ;;  %27408 = vmatpush3.bf16.msra.mxu1 %v29853_v40  ;;  %v29885_v41 = vld [vmem:[%s31076_s9 + $0x2420] sm:$0xff]  }
 0x505   : > { %v27087_v38 = vadd.f32 %v27086_v34, %v27085_v20  ;;  %v27088_v44 = vpop.f32.mrb[114].mxu0  ;;  %27387 = vmatprep.subr.bf16.mxu0 %v29854_v48  ;;  %27409 = vmatprep.subr.bf16.mxu1 %v29855_v49  ;;  %v29881_v20 = vld [vmem:[%s31076_s9 + $0x2418] sm:$0xff]   ;;  %v29887_v48 = vld [vmem:[%s31076_s9 + $0x2468] sm:$0xff]  }
 0x506   : > { %v27107_v32 = vpop.f32.mrb[112].mxu1  ;;  %v27089_v43 = vpop.f32.mrb[115].mxu0 }
 0x507   : > { %v27108_v35 = vpop.f32.mrb[113].mxu1  ;;  %v20352_v37 = vadd.f32 %v27087_v38, %v33464_v22  ;;  %v29856_v22 = vld [vmem:[%s31076_s9 + $0x2328] sm:$0xff]   ;;  %v29884_v38 = vld [vmem:[%s31076_s9 + $0x24e0] sm:$0xff]  }
 0x508   : > { %v27109_v39 = vadd.f32 %v27108_v35, %v27107_v32  ;;  %v27110_v42 = vpop.f32.mrb[114].mxu1  ;;  %27388 = vmatpush3.bf16.msra.mxu0 %v29856_v22  ;;  %27410 = vmatpush3.bf16.msra.mxu1 %v29857_v50  ;;  %v29889_v50 = vld [vmem:[%s31076_s9 + $0x2428] sm:$0xff]  }
 0x509   : > { %v27111_v45 = vpop.f32.mrb[115].mxu1  ;;  %27389 = vmatprep.subr.bf16.mxu0 %v29858_v51  ;;  %27411 = vmatprep.subr.bf16.mxu1 %v29859_v53  ;;  %v29892_v53 = vld [vmem:[%s31076_s9 + $0x24f0] sm:$0xff]  }
 0x50a   : > { %v33533_v46 = vadd.f32 %v27109_v39, %v20352_v37  ;;  %v29886_v39 = vld [vmem:[%s31076_s9 + $0x24a0] sm:$0xff]   ;;  %v29888_v45 = vld [vmem:[%s31076_s9 + $0x24e8] sm:$0xff]  }
 0x50c   : > { %27390 = vmatpush3.bf16.msra.mxu0 %v29860_v55  ;;  %27412 = vmatpush3.bf16.msra.mxu1 %v29861_v57  ;;  %v29893_v55 = vld [vmem:[%s31076_s9 + $0x2430] sm:$0xff]  }
 0x50d   : > { %27391 = vmatprep.subr.bf16.mxu0 %v29862_v59  ;;  %27413 = vmatprep.subr.bf16.mxu1 %v29863_v60  ;;  %v29894_v57 = vld [vmem:[%s31076_s9 + $0x24b0] sm:$0xff]   ;;  %v29895_v59 = vld [vmem:[%s31076_s9 + $0x2478] sm:$0xff]   ;;  %v521_v60 = vadd.s32 18688, %v31126_v29 }
 0x50f   : > { %vm762_vm4 = vcmp.lt.s32.totalorder %v521_v60, %v31134_v36  ;;  %v29928_v60 = vld [vmem:[%s31076_s9 + $0x2578] sm:$0xff]  }
 0x510   : > { %27392 = vmatpush3.bf16.msra.mxu0 %v29864_v61  ;;  %27414 = vmatpush3.bf16.msra.mxu1 %v29865_v62  ;;  %v29896_v61 = vld [vmem:[%s31076_s9 + $0x24f8] sm:$0xff]   ;;  %vm33641_vm7 = vmpackc.low %vm762_vm4, %vm762_vm4 }
 0x511   : > { %27421 = vmatprep.subr.bf16.mxu0 %v29867_v5  ;;  %27443 = vmatprep.subr.bf16.mxu1 %v29868_v9  ;;  %v29897_v62 = vld [vmem:[%s31076_s9 + $0x2438] sm:$0xff]   ;;  %v29900_v5 = vld [vmem:[%s31076_s9 + $0x2540] sm:$0xff]  }
 0x513   : > { %25532 = vmatmul.mubr.msk.bf16.vlgmr.msra.gmra.mrb[140].mxu0 %vm33565_vm14, %v25531_v10  ;;  %25538 = vmatmul.mubr.msk.bf16.vlgmr.msra.gmra.mrb[140].mxu1 %vm33571_vm15, %v25537_v15  ;;  %v29901_v10 = vld [vmem:[%s31076_s9 + $0x25c0] sm:$0xff]  }
 0x514   : > { %27422 = vmatpush3.bf16.msra.mxu0 %v29869_v11  ;;  %27444 = vmatpush3.bf16.msra.mxu1 %v29870_v14  ;;  %v25543_v11 = vpack.c.bf16 %v1595_v2, %v1595_v2  ;;  %v1604_v14 = vcombine.high %v1602_v8, %v1602_v8  ;;  %v29903_v15 = vld [vmem:[%s31076_s9 + $0x2580] sm:$0xff]   ;;  %v1612_v2 = vrot.slane %v893_v1, %v31145_v47  ;;  %v29964_v1 = vld [vmem:[%s31076_s9 + $0x26b8] sm:$0xff]  }
 0x515   : > { %27423 = vmatprep.subr.bf16.mxu0 %v29871_v16  ;;  %27445 = vmatprep.subr.bf16.mxu1 %v29872_v19  ;;  %v25549_v16 = vpack.c.bf16 %v1602_v8, %v1602_v8  ;;  %v1619_v8 = vrot.slane %v1605_v4, %v31145_v47 }
 0x516   : > { %25541 = vmatprep.mubr.msk.bf16.mxu0 %vm33625_vm3, %v25540_v13  ;;  %v25546_v19 = vpack.c.bf16 %v1604_v14, %v1604_v14  ;;  %v1620_v7 = vcombine.high %v1612_v2, %v1612_v2 }
 0x517   : > { %v1621_v14 = vcombine.high %v1619_v8, %v1619_v8 }
 0x518   : > { %27424 = vmatpush3.bf16.msra.mxu0 %v29873_v25  ;;  %27446 = vmatpush3.bf16.msra.mxu1 %v29874_v26  ;;  %v29905_v25 = vld [vmem:[%s31076_s9 + $0x25c8] sm:$0xff]   ;;  %v25552_v13 = vpack.c.bf16 %v1620_v7, %v1620_v7 }
 0x519   : > { %27425 = vmatprep.subr.bf16.mxu0 %v29875_v17  ;;  %27447 = vmatprep.subr.bf16.mxu1 %v29876_v21  ;;  %v29906_v26 = vld [vmem:[%s31076_s9 + $0x2508] sm:$0xff]   ;;  %v29908_v21 = vld [vmem:[%s31076_s9 + $0x2550] sm:$0xff]  }
 0x51a   : > { %25547 = vmatprep.mubr.msk.bf16.mxu1 %vm33631_vm5, %v25546_v19  ;;  %v29907_v17 = vld [vmem:[%s31076_s9 + $0x2588] sm:$0xff]   ;;  %v25558_v19 = vpack.c.bf16 %v1621_v14, %v1621_v14  ;;  %v29968_v14 = vld [vmem:[%s31076_s9 + $0x2700] sm:$0xff]  }
 0x51c   : > { %27426 = vmatpush3.bf16.msra.mxu0 %v29877_v27  ;;  %27448 = vmatpush3.bf16.msra.mxu1 %v29878_v23  ;;  %v29909_v27 = vld [vmem:[%s31076_s9 + $0x25d0] sm:$0xff]  }
 0x51d   : > { %27427 = vmatprep.subr.bf16.mxu0 %v29879_v24  ;;  %27449 = vmatprep.subr.bf16.mxu1 %v29880_v31  ;;  %v29910_v23 = vld [vmem:[%s31076_s9 + $0x2510] sm:$0xff]   ;;  %v29912_v31 = vld [vmem:[%s31076_s9 + $0x2558] sm:$0xff]  }
 0x51e   : > { %v29911_v24 = vld [vmem:[%s31076_s9 + $0x2590] sm:$0xff]  }
 0x520   : > { %27428 = vmatpush3.bf16.msra.mxu0 %v29881_v20  ;;  %27450 = vmatpush3.bf16.msra.mxu1 %v29882_v28  ;;  %v29913_v20 = vld [vmem:[%s31076_s9 + $0x25d8] sm:$0xff]  }
 0x521   : > { %27429 = vmatprep.subr.bf16.mxu0 %v29883_v30  ;;  %27451 = vmatprep.subr.bf16.mxu1 %v29884_v38  ;;  %v29914_v28 = vld [vmem:[%s31076_s9 + $0x2518] sm:$0xff]  }
 0x524   : > { %27430 = vmatpush3.bf16.msra.mxu0 %v29885_v41  ;;  %27452 = vmatpush3.bf16.msra.mxu1 %v29886_v39 }
 0x525   : > { %27431 = vmatprep.subr.bf16.mxu0 %v29887_v48  ;;  %27453 = vmatprep.subr.bf16.mxu1 %v29888_v45 }
 0x526   : > { %v27129_v34 = vpop.f32.mrb[116].mxu0  ;;  %v27151_v33 = vpop.f32.mrb[116].mxu1 }
 0x527   : > { %v27130_v32 = vpop.f32.mrb[117].mxu0  ;;  %v27152_v37 = vpop.f32.mrb[117].mxu1 }
 0x528   : > { %v27131_v35 = vadd.f32 %v27130_v32, %v27129_v34  ;;  %v27153_v40 = vadd.f32 %v27152_v37, %v27151_v33  ;;  %v27132_v42 = vpop.f32.mrb[118].mxu0  ;;  %v27154_v43 = vpop.f32.mrb[118].mxu1  ;;  %27432 = vmatpush3.bf16.msra.mxu0 %v29889_v50  ;;  %v29915_v34 = vld [vmem:[%s31076_s9 + $0x2598] sm:$0xff]   ;;  %v29916_v32 = vld [vmem:[%s31076_s9 + $0x2560] sm:$0xff]   ;;  %v29921_v50 = vld [vmem:[%s31076_s9 + $0x25e8] sm:$0xff]  }
 0x529   : > { %v27133_v22 = vpop.f32.mrb[119].mxu0  ;;  %v27155_v51 = vpop.f32.mrb[119].mxu1  ;;  %27433 = vmatprep.subr.bf16.mxu0 %v29891_v52  ;;  %v29917_v33 = vld [vmem:[%s31076_s9 + $0x25e0] sm:$0xff]   ;;  %v29920_v43 = vld [vmem:[%s31076_s9 + $0x2568] sm:$0xff]  }
 0x52a   : > { %v20432_v44 = vadd.f32 %v27131_v35, %v33533_v46  ;;  %v29890_v46 = vld [vmem:[%s31076_s9 + $0x24a8] sm:$0xff]   ;;  %v29918_v37 = vld [vmem:[%s31076_s9 + $0x2520] sm:$0xff]  }
 0x52b   : > { %27454 = vmatpush3.bf16.msra.mxu1 %v29890_v46  ;;  %v29922_v46 = vld [vmem:[%s31076_s9 + $0x2528] sm:$0xff]  }
 0x52c   : > { %v33604_v49 = vadd.f32 %v27153_v40, %v20432_v44  ;;  %27455 = vmatprep.subr.bf16.mxu1 %v29892_v53  ;;  %27434 = vmatpush3.bf16.msra.mxu0 %v29893_v55  ;;  %v29919_v44 = vld [vmem:[%s31076_s9 + $0x25a0] sm:$0xff]   ;;  %v29924_v53 = vld [vmem:[%s31076_s9 + $0x2570] sm:$0xff]   ;;  %v524_v55 = vadd.s32 19072, %v31126_v29 }
 0x52d   : > { %27435 = vmatprep.subr.bf16.mxu0 %v29895_v59  ;;  %v523_v59 = vadd.s32 18944, %v31126_v29 }
 0x52e   : > { %vm765_vm8 = vcmp.lt.s32.totalorder %v524_v55, %v31134_v36  ;;  %v528_v55 = vadd.s32 19584, %v31126_v29 }
 0x52f   : > { %27456 = vmatpush3.bf16.msra.mxu1 %v29894_v57  ;;  %v526_v57 = vadd.s32 19328, %v31126_v29  ;;  %vm764_vm10 = vcmp.lt.s32.totalorder %v523_v59, %v31134_v36  ;;  %vm33696_vm11 = vmpackc.low %vm765_vm8, %vm765_vm8  ;;  %v527_v59 = vadd.s32 19456, %v31126_v29 }
 0x530   : > { %27457 = vmatprep.subr.bf16.mxu1 %v29896_v61  ;;  %27436 = vmatpush3.bf16.msra.mxu0 %v29897_v62  ;;  %v525_v61 = vadd.s32 19200, %v31126_v29  ;;  %v29929_v62 = vld [vmem:[%s31076_s9 + $0x25f8] sm:$0xff]   ;;  %vm33707_vm14 = vmpackc.low %vm764_vm10, %vm764_vm10  ;;  %vm769_vm0 = vcmp.lt.s32.totalorder %v528_v55, %v31134_v36  ;;  %v29990_v55 = vld [vmem:[%s31076_s9 + $0x2770] sm:$0xff]  }
 0x531   : > { %27465 = vmatprep.subr.bf16.mxu0 %v29900_v5  ;;  %vm767_vm9 = vcmp.lt.s32.totalorder %v526_v57, %v31134_v36  ;;  %v530_v57 = vadd.s32 19840, %v31126_v29  ;;  %vm768_vm2 = vcmp.lt.s32.totalorder %v527_v59, %v31134_v36  ;;  %vm33765_vm3 = vmpackc.low %vm769_vm0, %vm769_vm0  ;;  %v534_v59 = vadd.s32 20352, %v31126_v29 }
 0x532   : > { %vm766_vm12 = vcmp.lt.s32.totalorder %v525_v61, %v31134_v36  ;;  %vm33701_vm13 = vmpackc.low %vm767_vm9, %vm767_vm9  ;;  %v529_v61 = vadd.s32 19712, %v31126_v29 }
 0x533   : > { %27458 = vmatpush3.bf16.msra.mxu1 %v29898_v63  ;;  %25544 = vmatmul.mubr.msk.bf16.vlgmr.msra.gmra.mrb[144].mxu0 %vm33636_vm6, %v25543_v11  ;;  %v29930_v63 = vld [vmem:[%s31076_s9 + $0x2538] sm:$0xff]   ;;  %v25555_v11 = vpack.c.bf16 %v1612_v2, %v1612_v2  ;;  %vm33712_vm15 = vmpackc.low %vm766_vm12, %vm766_vm12  ;;  %vm771_vm1 = vcmp.lt.s32.totalorder %v530_v57, %v31134_v36  ;;  %v894_v2 = vld [vmem:[%s31094_s18 + $0x130] sm:$0xff]  ;;  %v532_v57 = vadd.s32 20096, %v31126_v29  ;;  %vm775_vm9 = vcmp.lt.s32.totalorder %v534_v59, %v31134_v36 }
 0x534   : > { %27487 = vmatprep.subr.bf16.mxu1 %v29901_v10  ;;  %27466 = vmatpush3.bf16.msra.mxu0 %v29902_v12  ;;  %v29934_v10 = vld [vmem:[%s31076_s9 + $0x26c0] sm:$0xff]   ;;  %vm770_vm4 = vcmp.lt.s32.totalorder %v529_v61, %v31134_v36  ;;  %v1629_v4 = vrot.slane %v894_v2, %v31145_v47  ;;  %v1622_v5 = vcombine.high %v894_v2, %v894_v2  ;;  %vm33771_vm5 = vmpackc.low %vm771_vm1, %vm771_vm1  ;;  %v531_v61 = vadd.s32 19968, %v31126_v29  ;;  %v29997_v2 = vld [vmem:[%s31076_s9 + $0x27b8] sm:$0xff]  }
 0x535   : > { %27467 = vmatprep.subr.bf16.mxu0 %v29904_v18  ;;  %v29936_v18 = vld [vmem:[%s31076_s9 + $0x2680] sm:$0xff]   ;;  %25553 = vmatprep.mubr.msk.bf16.mxu0 %vm33696_vm11, %v25552_v13  ;;  %vm33775_vm6 = vmpackc.low %vm768_vm2, %vm768_vm2  ;;  %vm773_vm8 = vcmp.lt.s32.totalorder %v532_v57, %v31134_v36  ;;  %v30024_v57 = vld [vmem:[%s31076_s9 + $0x28f0] sm:$0xff]  }
 0x536   : > { %25550 = vmatmul.mubr.msk.bf16.vlgmr.msra.gmra.mrb[144].mxu1 %vm33641_vm7, %v25549_v16  ;;  %v25561_v16 = vpack.c.bf16 %v1619_v8, %v1619_v8  ;;  %v29966_v8 = vld [vmem:[%s31076_s9 + $0x2740] sm:$0xff]   ;;  %v1637_v9 = vcombine.high %v1629_v4, %v1629_v4  ;;  %vm33781_vm7 = vmpackc.low %vm770_vm4, %vm770_vm4  ;;  %v25567_v13 = vpack.c.bf16 %v1629_v4, %v1629_v4  ;;  %vm772_vm10 = vcmp.lt.s32.totalorder %v531_v61, %v31134_v36  ;;  %v30025_v59 = vld [vmem:[%s31076_s9 + $0x2830] sm:$0xff]  }
 0x537   : > { %27488 = vmatpush3.bf16.msra.mxu1 %v29903_v15  ;;  %v29935_v15 = vld [vmem:[%s31076_s9 + $0x2600] sm:$0xff]   ;;  %25559 = vmatprep.mubr.msk.bf16.mxu1 %vm33701_vm13, %v25558_v19  ;;  %vm33835_vm11 = vmpackc.low %vm773_vm8, %vm773_vm8  ;;  %v30026_v61 = vld [vmem:[%s31076_s9 + $0x28b0] sm:$0xff]  }
 0x538   : > { %27489 = vmatprep.subr.bf16.mxu1 %v29905_v25  ;;  %27468 = vmatpush3.bf16.msra.mxu0 %v29906_v26  ;;  %v29937_v25 = vld [vmem:[%s31076_s9 + $0x2648] sm:$0xff]   ;;  %v29967_v12 = vld [vmem:[%s31076_s9 + $0x27c0] sm:$0xff]   ;;  %vm33841_vm13 = vmpackc.low %vm775_vm9, %vm775_vm9 }
 0x539   : > { %27469 = vmatprep.subr.bf16.mxu0 %v29908_v21  ;;  %v29938_v26 = vld [vmem:[%s31076_s9 + $0x26c8] sm:$0xff]   ;;  %v896_v4 = vld [vmem:[%s31094_s18 + $0x140] sm:$0xff] }
 0x53a   : > { %v29940_v21 = vld [vmem:[%s31076_s9 + $0x2688] sm:$0xff]   ;;  %v1656_v7 = vcombine.high %v896_v4, %v896_v4 }
 0x53b   : > { %27490 = vmatpush3.bf16.msra.mxu1 %v29907_v17  ;;  %v29939_v17 = vld [vmem:[%s31076_s9 + $0x2608] sm:$0xff]  }
 0x53c   : > { %27491 = vmatprep.subr.bf16.mxu1 %v29909_v27  ;;  %27470 = vmatpush3.bf16.msra.mxu0 %v29910_v23  ;;  %v29941_v27 = vld [vmem:[%s31076_s9 + $0x2650] sm:$0xff]  }
 0x53d   : > { %27471 = vmatprep.subr.bf16.mxu0 %v29912_v31  ;;  %v29942_v23 = vld [vmem:[%s31076_s9 + $0x26d0] sm:$0xff]  }
 0x53e   : > { %v29944_v31 = vld [vmem:[%s31076_s9 + $0x2690] sm:$0xff]  }
 0x53f   : > { %27492 = vmatpush3.bf16.msra.mxu1 %v29911_v24  ;;  %v29943_v24 = vld [vmem:[%s31076_s9 + $0x2610] sm:$0xff]  }
 0x540   : > { %27493 = vmatprep.subr.bf16.mxu1 %v29913_v20  ;;  %27472 = vmatpush3.bf16.msra.mxu0 %v29914_v28  ;;  %v29945_v20 = vld [vmem:[%s31076_s9 + $0x2658] sm:$0xff]  }
 0x541   : > { %27473 = vmatprep.subr.bf16.mxu0 %v29916_v32  ;;  %v29946_v28 = vld [vmem:[%s31076_s9 + $0x26d8] sm:$0xff]  }
 0x542   : > { %v29948_v32 = vld [vmem:[%s31076_s9 + $0x2698] sm:$0xff]  }
 0x543   : > { %27494 = vmatpush3.bf16.msra.mxu1 %v29915_v34  ;;  %v29947_v34 = vld [vmem:[%s31076_s9 + $0x2618] sm:$0xff]  }
 0x544   : > { %27495 = vmatprep.subr.bf16.mxu1 %v29917_v33  ;;  %27474 = vmatpush3.bf16.msra.mxu0 %v29918_v37  ;;  %v29949_v33 = vld [vmem:[%s31076_s9 + $0x2660] sm:$0xff]  }
 0x545   : > { %27475 = vmatprep.subr.bf16.mxu0 %v29920_v43  ;;  %v29950_v37 = vld [vmem:[%s31076_s9 + $0x26e0] sm:$0xff]  }
 0x546   : > { %v27173_v30 = vpop.f32.mrb[120].mxu0  ;;  %v27195_v35 = vpop.f32.mrb[120].mxu1  ;;  %v29952_v43 = vld [vmem:[%s31076_s9 + $0x26a0] sm:$0xff]  }
 0x547   : > { %v27174_v38 = vpop.f32.mrb[121].mxu0  ;;  %v27196_v39 = vpop.f32.mrb[121].mxu1  ;;  %27496 = vmatpush3.bf16.msra.mxu1 %v29919_v44  ;;  %v29951_v44 = vld [vmem:[%s31076_s9 + $0x2620] sm:$0xff]  }
 0x548   : > { %v27175_v41 = vadd.f32 %v27174_v38, %v27173_v30  ;;  %v27197_v42 = vadd.f32 %v27196_v39, %v27195_v35  ;;  %v27176_v48 = vpop.f32.mrb[122].mxu0  ;;  %v27198_v45 = vpop.f32.mrb[122].mxu1  ;;  %27497 = vmatprep.subr.bf16.mxu1 %v29921_v50  ;;  %27476 = vmatpush3.bf16.msra.mxu0 %v29922_v46 }
 0x549   : > { %v27177_v51 = vpop.f32.mrb[123].mxu0  ;;  %v27199_v52 = vpop.f32.mrb[123].mxu1  ;;  %27477 = vmatprep.subr.bf16.mxu0 %v29924_v53  ;;  %v29956_v53 = vld [vmem:[%s31076_s9 + $0x26a8] sm:$0xff]  }
 0x54a   : > { %v20512_v40 = vadd.f32 %v27175_v41, %v33604_v49  ;;  %v29923_v49 = vld [vmem:[%s31076_s9 + $0x25a8] sm:$0xff]  }
 0x54b   : > { %27498 = vmatpush3.bf16.msra.mxu1 %v29923_v49  ;;  %v29953_v51 = vld [vmem:[%s31076_s9 + $0x2668] sm:$0xff]  }
 0x54c   : > { %v33674_v22 = vadd.f32 %v27197_v42, %v20512_v40  ;;  %27499 = vmatprep.subr.bf16.mxu1 %v29925_v54  ;;  %27478 = vmatpush3.bf16.msra.mxu0 %v29926_v56  ;;  %v29954_v52 = vld [vmem:[%s31076_s9 + $0x26e8] sm:$0xff]   ;;  %v29957_v54 = vld [vmem:[%s31076_s9 + $0x2670] sm:$0xff]  }
 0x54d   : > { %27479 = vmatprep.subr.bf16.mxu0 %v29928_v60  ;;  %v29958_v56 = vld [vmem:[%s31076_s9 + $0x26f0] sm:$0xff]  }
 0x54e   : > { %v29960_v60 = vld [vmem:[%s31076_s9 + $0x26b0] sm:$0xff]  }
 0x54f   : > { %27500 = vmatpush3.bf16.msra.mxu1 %v29927_v58  ;;  %v29959_v58 = vld [vmem:[%s31076_s9 + $0x2630] sm:$0xff]  }
 0x550   : > { %27501 = vmatprep.subr.bf16.mxu1 %v29929_v62  ;;  %27480 = vmatpush3.bf16.msra.mxu0 %v29930_v63  ;;  %v29961_v62 = vld [vmem:[%s31076_s9 + $0x2678] sm:$0xff]  }
 0x551   : > { %27509 = vmatprep.subr.bf16.mxu0 %v29933_v6  ;;  %v29962_v63 = vld [vmem:[%s31076_s9 + $0x26f8] sm:$0xff]   ;;  %v1639_v6 = vcombine.high %v895_v3, %v895_v3 }
 0x553   : > { %27502 = vmatpush3.bf16.msra.mxu1 %v29931_v0  ;;  %25556 = vmatmul.mubr.msk.bf16.vlgmr.msra.gmra.mrb[148].mxu0 %vm33707_vm14, %v25555_v11  ;;  %v29963_v0 = vld [vmem:[%s31076_s9 + $0x2638] sm:$0xff]   ;;  %vm33846_vm14 = vmpackc.low %vm772_vm10, %vm772_vm10  ;;  %v1653_v11 = vrot.slane %v1639_v6, %v31145_v47  ;;  %v898_v6 = vld [vmem:[%s31094_s18 + $0x150] sm:$0xff] }
 0x554   : > { %27531 = vmatprep.subr.bf16.mxu1 %v29934_v10  ;;  %27510 = vmatpush3.bf16.msra.mxu0 %v29935_v15  ;;  %v1636_v10 = vrot.slane %v1622_v5, %v31145_v47  ;;  %v25564_v15 = vpack.c.bf16 %v1637_v9, %v1637_v9  ;;  %v1646_v5 = vrot.slane %v895_v3, %v31145_v47  ;;  %v30030_v3 = vld [vmem:[%s31076_s9 + $0x28b8] sm:$0xff]   ;;  %v30032_v9 = vld [vmem:[%s31076_s9 + $0x2940] sm:$0xff]  }
 0x555   : > { %27511 = vmatprep.subr.bf16.mxu0 %v29937_v25  ;;  %v29970_v25 = vld [vmem:[%s31076_s9 + $0x2748] sm:$0xff]  }
 0x556   : > { %25562 = vmatmul.mubr.msk.bf16.vlgmr.msra.gmra.mrb[148].mxu1 %vm33712_vm15, %v25561_v16  ;;  %v1638_v16 = vcombine.high %v1636_v10, %v1636_v10  ;;  %v25573_v19 = vpack.c.bf16 %v1636_v10, %v1636_v10  ;;  %25565 = vmatprep.mubr.msk.bf16.mxu0 %vm33765_vm3, %v25564_v15  ;;  %v1654_v10 = vcombine.high %v1646_v5, %v1646_v5  ;;  %v30001_v15 = vld [vmem:[%s31076_s9 + $0x2800] sm:$0xff]  }
 0x557   : > { %27532 = vmatpush3.bf16.msra.mxu1 %v29936_v18  ;;  %v29969_v18 = vld [vmem:[%s31076_s9 + $0x2780] sm:$0xff]  }
 0x558   : > { %27533 = vmatprep.subr.bf16.mxu1 %v29938_v26  ;;  %27512 = vmatpush3.bf16.msra.mxu0 %v29939_v17  ;;  %v25570_v26 = vpack.c.bf16 %v1638_v16, %v1638_v16  ;;  %v29971_v17 = vld [vmem:[%s31076_s9 + $0x27c8] sm:$0xff]   ;;  %v25576_v16 = vpack.c.bf16 %v1654_v10, %v1654_v10 }
 0x559   : > { %27513 = vmatprep.subr.bf16.mxu0 %v29941_v27  ;;  %v29973_v27 = vld [vmem:[%s31076_s9 + $0x2788] sm:$0xff]  }
 0x55a   : > { %25571 = vmatprep.mubr.msk.bf16.mxu1 %vm33771_vm5, %v25570_v26  ;;  %v30003_v26 = vld [vmem:[%s31076_s9 + $0x2848] sm:$0xff]  }
 0x55b   : > { %27534 = vmatpush3.bf16.msra.mxu1 %v29940_v21  ;;  %v29972_v21 = vld [vmem:[%s31076_s9 + $0x2708] sm:$0xff]  }
 0x55c   : > { %27535 = vmatprep.subr.bf16.mxu1 %v29942_v23  ;;  %27514 = vmatpush3.bf16.msra.mxu0 %v29943_v24  ;;  %v29974_v23 = vld [vmem:[%s31076_s9 + $0x2750] sm:$0xff]  }
 0x55d   : > { %27515 = vmatprep.subr.bf16.mxu0 %v29945_v20  ;;  %v29975_v24 = vld [vmem:[%s31076_s9 + $0x27d0] sm:$0xff]  }
 0x55e   : > { %v29977_v20 = vld [vmem:[%s31076_s9 + $0x2790] sm:$0xff]  }
 0x55f   : > { %27536 = vmatpush3.bf16.msra.mxu1 %v29944_v31  ;;  %v29976_v31 = vld [vmem:[%s31076_s9 + $0x2710] sm:$0xff]  }
 0x560   : > { %27537 = vmatprep.subr.bf16.mxu1 %v29946_v28  ;;  %27516 = vmatpush3.bf16.msra.mxu0 %v29947_v34  ;;  %v29978_v28 = vld [vmem:[%s31076_s9 + $0x2758] sm:$0xff]  }
 0x561   : > { %27517 = vmatprep.subr.bf16.mxu0 %v29949_v33  ;;  %v29979_v34 = vld [vmem:[%s31076_s9 + $0x27d8] sm:$0xff]   ;;  %v29982_v33 = vld [vmem:[%s31076_s9 + $0x2760] sm:$0xff]  }
 0x563   : > { %27538 = vmatpush3.bf16.msra.mxu1 %v29948_v32  ;;  %v29981_v32 = vld [vmem:[%s31076_s9 + $0x2798] sm:$0xff]  }
 0x564   : > { %27539 = vmatprep.subr.bf16.mxu1 %v29950_v37  ;;  %27518 = vmatpush3.bf16.msra.mxu0 %v29951_v44  ;;  %v29984_v44 = vld [vmem:[%s31076_s9 + $0x2720] sm:$0xff]  }
 0x565   : > { %27519 = vmatprep.subr.bf16.mxu0 %v29953_v51  ;;  %v29986_v51 = vld [vmem:[%s31076_s9 + $0x2768] sm:$0xff]  }
 0x566   : > { %v27217_v30 = vpop.f32.mrb[124].mxu0  ;;  %v27239_v35 = vpop.f32.mrb[124].mxu1 }
 0x567   : > { %v27218_v38 = vpop.f32.mrb[125].mxu0  ;;  %v27240_v39 = vpop.f32.mrb[125].mxu1  ;;  %27540 = vmatpush3.bf16.msra.mxu1 %v29952_v43 }
 0x568   : > { %v27219_v41 = vadd.f32 %v27218_v38, %v27217_v30  ;;  %v27241_v42 = vadd.f32 %v27240_v39, %v27239_v35  ;;  %v27220_v48 = vpop.f32.mrb[126].mxu0  ;;  %v27242_v45 = vpop.f32.mrb[126].mxu1  ;;  %27541 = vmatprep.subr.bf16.mxu1 %v29954_v52  ;;  %v29980_v30 = vld [vmem:[%s31076_s9 + $0x2718] sm:$0xff]  }
 0x569   : > { %v27221_v46 = vpop.f32.mrb[127].mxu0  ;;  %v27243_v49 = vpop.f32.mrb[127].mxu1 }
 0x56a   : > { %v20592_v40 = vadd.f32 %v27219_v41, %v33674_v22  ;;  %v29955_v22 = vld [vmem:[%s31076_s9 + $0x2628] sm:$0xff]   ;;  %v29983_v41 = vld [vmem:[%s31076_s9 + $0x27e0] sm:$0xff]  }
 0x56b   : > { %27520 = vmatpush3.bf16.msra.mxu0 %v29955_v22  ;;  %27542 = vmatpush3.bf16.msra.mxu1 %v29956_v53  ;;  %v29987_v49 = vld [vmem:[%s31076_s9 + $0x27e8] sm:$0xff]  }
 0x56c   : > { %v33743_v50 = vadd.f32 %v27241_v42, %v20592_v40  ;;  %27521 = vmatprep.subr.bf16.mxu0 %v29957_v54  ;;  %27543 = vmatprep.subr.bf16.mxu1 %v29958_v56  ;;  %v29985_v42 = vld [vmem:[%s31076_s9 + $0x27a0] sm:$0xff]   ;;  %v29988_v53 = vld [vmem:[%s31076_s9 + $0x2728] sm:$0xff]   ;;  %v29991_v56 = vld [vmem:[%s31076_s9 + $0x27f0] sm:$0xff]  }
 0x56f   : > { %27522 = vmatpush3.bf16.msra.mxu0 %v29959_v58  ;;  %27544 = vmatpush3.bf16.msra.mxu1 %v29960_v60  ;;  %v29992_v58 = vld [vmem:[%s31076_s9 + $0x2730] sm:$0xff]  }
 0x570   : > { %27523 = vmatprep.subr.bf16.mxu0 %v29961_v62  ;;  %27545 = vmatprep.subr.bf16.mxu1 %v29962_v63  ;;  %v29993_v60 = vld [vmem:[%s31076_s9 + $0x27b0] sm:$0xff]   ;;  %v29994_v62 = vld [vmem:[%s31076_s9 + $0x2778] sm:$0xff]   ;;  %v533_v63 = vadd.s32 20224, %v31126_v29 }
 0x572   : > { %vm774_vm12 = vcmp.lt.s32.totalorder %v533_v63, %v31134_v36  ;;  %v30027_v63 = vld [vmem:[%s31076_s9 + $0x2878] sm:$0xff]  }
 0x573   : > { %27524 = vmatpush3.bf16.msra.mxu0 %v29963_v0  ;;  %27546 = vmatpush3.bf16.msra.mxu1 %v29964_v1  ;;  %v29995_v0 = vld [vmem:[%s31076_s9 + $0x27f8] sm:$0xff]   ;;  %vm33851_vm15 = vmpackc.low %vm774_vm12, %vm774_vm12 }
 0x574   : > { %27553 = vmatprep.subr.bf16.mxu0 %v29966_v8  ;;  %27575 = vmatprep.subr.bf16.mxu1 %v29967_v12  ;;  %v29996_v1 = vld [vmem:[%s31076_s9 + $0x2738] sm:$0xff]   ;;  %v29999_v8 = vld [vmem:[%s31076_s9 + $0x2840] sm:$0xff]  }
 0x576   : > { %25568 = vmatmul.mubr.msk.bf16.vlgmr.msra.gmra.mrb[152].mxu0 %vm33775_vm6, %v25567_v13  ;;  %25574 = vmatmul.mubr.msk.bf16.vlgmr.msra.gmra.mrb[152].mxu1 %vm33781_vm7, %v25573_v19  ;;  %v30000_v13 = vld [vmem:[%s31076_s9 + $0x28c0] sm:$0xff]  }
 0x577   : > { %27554 = vmatpush3.bf16.msra.mxu0 %v29968_v14  ;;  %27576 = vmatpush3.bf16.msra.mxu1 %v29969_v18  ;;  %v25579_v14 = vpack.c.bf16 %v1646_v5, %v1646_v5  ;;  %v1655_v18 = vcombine.high %v1653_v11, %v1653_v11  ;;  %v30002_v19 = vld [vmem:[%s31076_s9 + $0x2880] sm:$0xff]   ;;  %v1663_v5 = vrot.slane %v896_v4, %v31145_v47  ;;  %v30063_v4 = vld [vmem:[%s31076_s9 + $0x29b8] sm:$0xff]  }
 0x578   : > { %27555 = vmatprep.subr.bf16.mxu0 %v29970_v25  ;;  %27577 = vmatprep.subr.bf16.mxu1 %v29971_v17  ;;  %v25585_v25 = vpack.c.bf16 %v1653_v11, %v1653_v11  ;;  %v1670_v11 = vrot.slane %v1656_v7, %v31145_v47 }
 0x579   : > { %25577 = vmatprep.mubr.msk.bf16.mxu0 %vm33835_vm11, %v25576_v16  ;;  %v25582_v17 = vpack.c.bf16 %v1655_v18, %v1655_v18  ;;  %v1671_v10 = vcombine.high %v1663_v5, %v1663_v5 }
 0x57a   : > { %v1672_v18 = vcombine.high %v1670_v11, %v1670_v11 }
 0x57b   : > { %27556 = vmatpush3.bf16.msra.mxu0 %v29972_v21  ;;  %27578 = vmatpush3.bf16.msra.mxu1 %v29973_v27  ;;  %v30004_v21 = vld [vmem:[%s31076_s9 + $0x28c8] sm:$0xff]   ;;  %v25588_v16 = vpack.c.bf16 %v1671_v10, %v1671_v10 }
 0x57c   : > { %27557 = vmatprep.subr.bf16.mxu0 %v29974_v23  ;;  %27579 = vmatprep.subr.bf16.mxu1 %v29975_v24  ;;  %v30005_v27 = vld [vmem:[%s31076_s9 + $0x2808] sm:$0xff]   ;;  %v30007_v24 = vld [vmem:[%s31076_s9 + $0x2850] sm:$0xff]  }
 0x57d   : > { %25583 = vmatprep.mubr.msk.bf16.mxu1 %vm33841_vm13, %v25582_v17  ;;  %v30006_v23 = vld [vmem:[%s31076_s9 + $0x2888] sm:$0xff]   ;;  %v25594_v17 = vpack.c.bf16 %v1672_v18, %v1672_v18  ;;  %v30067_v18 = vld [vmem:[%s31076_s9 + $0x2a00] sm:$0xff]  }
 0x57f   : > { %27558 = vmatpush3.bf16.msra.mxu0 %v29976_v31  ;;  %27580 = vmatpush3.bf16.msra.mxu1 %v29977_v20  ;;  %v30008_v31 = vld [vmem:[%s31076_s9 + $0x28d0] sm:$0xff]  }
 0x580   : > { %27559 = vmatprep.subr.bf16.mxu0 %v29978_v28  ;;  %27581 = vmatprep.subr.bf16.mxu1 %v29979_v34  ;;  %v30009_v20 = vld [vmem:[%s31076_s9 + $0x2810] sm:$0xff]   ;;  %v30011_v34 = vld [vmem:[%s31076_s9 + $0x2858] sm:$0xff]  }
 0x581   : > { %v30010_v28 = vld [vmem:[%s31076_s9 + $0x2890] sm:$0xff]  }
 0x583   : > { %27560 = vmatpush3.bf16.msra.mxu0 %v29980_v30  ;;  %27582 = vmatpush3.bf16.msra.mxu1 %v29981_v32  ;;  %v30012_v30 = vld [vmem:[%s31076_s9 + $0x28d8] sm:$0xff]  }
 0x584   : > { %27561 = vmatprep.subr.bf16.mxu0 %v29982_v33  ;;  %27583 = vmatprep.subr.bf16.mxu1 %v29983_v41  ;;  %v30013_v32 = vld [vmem:[%s31076_s9 + $0x2818] sm:$0xff]  }
 0x586   : > { %v27261_v38 = vpop.f32.mrb[128].mxu0  ;;  %v27283_v37 = vpop.f32.mrb[128].mxu1 }
 0x587   : > { %v27262_v35 = vpop.f32.mrb[129].mxu0  ;;  %v27284_v40 = vpop.f32.mrb[129].mxu1  ;;  %27562 = vmatpush3.bf16.msra.mxu0 %v29984_v44  ;;  %27584 = vmatpush3.bf16.msra.mxu1 %v29985_v42 }
 0x588   : > { %v27263_v39 = vadd.f32 %v27262_v35, %v27261_v38  ;;  %v27285_v43 = vadd.f32 %v27284_v40, %v27283_v37  ;;  %v27264_v45 = vpop.f32.mrb[130].mxu0  ;;  %v27286_v46 = vpop.f32.mrb[130].mxu1  ;;  %27563 = vmatprep.subr.bf16.mxu0 %v29986_v51  ;;  %27585 = vmatprep.subr.bf16.mxu1 %v29987_v49  ;;  %v30014_v38 = vld [vmem:[%s31076_s9 + $0x2898] sm:$0xff]   ;;  %v30015_v35 = vld [vmem:[%s31076_s9 + $0x2860] sm:$0xff]  }
 0x589   : > { %v27265_v22 = vpop.f32.mrb[131].mxu0  ;;  %v27287_v54 = vpop.f32.mrb[131].mxu1  ;;  %v30016_v37 = vld [vmem:[%s31076_s9 + $0x28e0] sm:$0xff]   ;;  %v30019_v46 = vld [vmem:[%s31076_s9 + $0x2868] sm:$0xff]  }
 0x58a   : > { %v20672_v48 = vadd.f32 %v27263_v39, %v33743_v50  ;;  %v29989_v50 = vld [vmem:[%s31076_s9 + $0x27a8] sm:$0xff]   ;;  %v30017_v40 = vld [vmem:[%s31076_s9 + $0x2820] sm:$0xff]  }
 0x58b   : > { %27564 = vmatpush3.bf16.msra.mxu0 %v29988_v53  ;;  %27586 = vmatpush3.bf16.msra.mxu1 %v29989_v50  ;;  %v30020_v53 = vld [vmem:[%s31076_s9 + $0x28e8] sm:$0xff]  }
 0x58c   : > { %v33814_v52 = vadd.f32 %v27285_v43, %v20672_v48  ;;  %27565 = vmatprep.subr.bf16.mxu0 %v29990_v55  ;;  %27587 = vmatprep.subr.bf16.mxu1 %v29991_v56  ;;  %v30018_v48 = vld [vmem:[%s31076_s9 + $0x28a0] sm:$0xff]   ;;  %v30021_v50 = vld [vmem:[%s31076_s9 + $0x2828] sm:$0xff]   ;;  %v30023_v56 = vld [vmem:[%s31076_s9 + $0x2870] sm:$0xff]  }
 0x58f   : > { %27566 = vmatpush3.bf16.msra.mxu0 %v29992_v58  ;;  %27588 = vmatpush3.bf16.msra.mxu1 %v29993_v60  ;;  %v536_v58 = vadd.s32 20608, %v31126_v29  ;;  %v538_v60 = vadd.s32 20864, %v31126_v29 }
 0x590   : > { %27567 = vmatprep.subr.bf16.mxu0 %v29994_v62  ;;  %27589 = vmatprep.subr.bf16.mxu1 %v29995_v0  ;;  %v535_v62 = vadd.s32 20480, %v31126_v29  ;;  %v537_v0 = vadd.s32 20736, %v31126_v29 }
 0x591   : > { %vm777_vm0 = vcmp.lt.s32.totalorder %v536_v58, %v31134_v36  ;;  %vm779_vm1 = vcmp.lt.s32.totalorder %v538_v60, %v31134_v36  ;;  %v540_v58 = vadd.s32 21120, %v31126_v29  ;;  %v542_v60 = vadd.s32 21376, %v31126_v29 }
 0x592   : > { %vm776_vm2 = vcmp.lt.s32.totalorder %v535_v62, %v31134_v36  ;;  %vm33906_vm3 = vmpackc.low %vm777_vm0, %vm777_vm0  ;;  %vm778_vm4 = vcmp.lt.s32.totalorder %v537_v0, %v31134_v36  ;;  %v539_v62 = vadd.s32 20992, %v31126_v29  ;;  %v541_v0 = vadd.s32 21248, %v31126_v29 }
 0x593   : > { %27568 = vmatpush3.bf16.msra.mxu0 %v29996_v1  ;;  %27590 = vmatpush3.bf16.msra.mxu1 %v29997_v2  ;;  %v30028_v1 = vld [vmem:[%s31076_s9 + $0x28f8] sm:$0xff]   ;;  %vm33911_vm5 = vmpackc.low %vm779_vm1, %vm779_vm1  ;;  %vm781_vm8 = vcmp.lt.s32.totalorder %v540_v58, %v31134_v36  ;;  %vm783_vm9 = vcmp.lt.s32.totalorder %v542_v60, %v31134_v36  ;;  %v30089_v58 = vld [vmem:[%s31076_s9 + $0x2a70] sm:$0xff]   ;;  %v544_v60 = vadd.s32 21632, %v31126_v29 }
 0x594   : > { %27597 = vmatprep.subr.bf16.mxu0 %v29999_v8  ;;  %27619 = vmatprep.subr.bf16.mxu1 %v30000_v13  ;;  %v30029_v2 = vld [vmem:[%s31076_s9 + $0x2838] sm:$0xff]   ;;  %vm33917_vm6 = vmpackc.low %vm776_vm2, %vm776_vm2  ;;  %v30033_v13 = vld [vmem:[%s31076_s9 + $0x29c0] sm:$0xff]   ;;  %vm780_vm10 = vcmp.lt.s32.totalorder %v539_v62, %v31134_v36  ;;  %vm782_vm12 = vcmp.lt.s32.totalorder %v541_v0, %v31134_v36  ;;  %v546_v62 = vadd.s32 21888, %v31126_v29  ;;  %v543_v0 = vadd.s32 21504, %v31126_v29 }
 0x595   : > { %vm33922_vm7 = vmpackc.low %vm778_vm4, %vm778_vm4  ;;  %vm785_vm0 = vcmp.lt.s32.totalorder %v544_v60, %v31134_v36  ;;  %v30123_v60 = vld [vmem:[%s31076_s9 + $0x2bf0] sm:$0xff]  }
 0x596   : > { %25580 = vmatmul.mubr.msk.bf16.vlgmr.msra.gmra.mrb[156].mxu0 %vm33846_vm14, %v25579_v14  ;;  %25586 = vmatmul.mubr.msk.bf16.vlgmr.msra.gmra.mrb[156].mxu1 %vm33851_vm15, %v25585_v25  ;;  %v25591_v14 = vpack.c.bf16 %v1663_v5, %v1663_v5  ;;  %v25597_v25 = vpack.c.bf16 %v1670_v11, %v1670_v11  ;;  %v897_v5 = vld [vmem:[%s31094_s18 + $0x148] sm:$0xff]  ;;  %vm33975_vm11 = vmpackc.low %vm781_vm8, %vm781_vm8  ;;  %vm787_vm1 = vcmp.lt.s32.totalorder %v546_v62, %v31134_v36  ;;  %v30124_v62 = vld [vmem:[%s31076_s9 + $0x2b30] sm:$0xff]  }
 0x597   : > { %27598 = vmatpush3.bf16.msra.mxu0 %v30001_v15  ;;  %27620 = vmatpush3.bf16.msra.mxu1 %v30002_v19  ;;  %v30034_v19 = vld [vmem:[%s31076_s9 + $0x2900] sm:$0xff]   ;;  %v1680_v7 = vrot.slane %v897_v5, %v31145_v47  ;;  %v1673_v8 = vcombine.high %v897_v5, %v897_v5  ;;  %vm33981_vm13 = vmpackc.low %vm783_vm9, %vm783_vm9  ;;  %v30096_v5 = vld [vmem:[%s31076_s9 + $0x2ab8] sm:$0xff]   ;;  %vm784_vm2 = vcmp.lt.s32.totalorder %v543_v0, %v31134_v36 }
 0x598   : > { %27599 = vmatprep.subr.bf16.mxu0 %v30003_v26  ;;  %27621 = vmatprep.subr.bf16.mxu1 %v30004_v21  ;;  %v30035_v26 = vld [vmem:[%s31076_s9 + $0x2980] sm:$0xff]   ;;  %v30036_v21 = vld [vmem:[%s31076_s9 + $0x2948] sm:$0xff]   ;;  %vm33985_vm14 = vmpackc.low %vm780_vm10, %vm780_vm10 }
 0x599   : > { %25589 = vmatprep.mubr.msk.bf16.mxu0 %vm33906_vm3, %v25588_v16  ;;  %25595 = vmatprep.mubr.msk.bf16.mxu1 %vm33911_vm5, %v25594_v17  ;;  %v30065_v11 = vld [vmem:[%s31076_s9 + $0x2a40] sm:$0xff]   ;;  %v1688_v12 = vcombine.high %v1680_v7, %v1680_v7  ;;  %vm33991_vm15 = vmpackc.low %vm782_vm12, %vm782_vm12  ;;  %v25603_v16 = vpack.c.bf16 %v1680_v7, %v1680_v7  ;;  %v30125_v0 = vld [vmem:[%s31076_s9 + $0x2bb0] sm:$0xff]  }
 0x59a   : > { %v30066_v15 = vld [vmem:[%s31076_s9 + $0x2ac0] sm:$0xff]   ;;  %vm34045_vm3 = vmpackc.low %vm785_vm0, %vm785_vm0  ;;  %v899_v7 = vld [vmem:[%s31094_s18 + $0x158] sm:$0xff] }
 0x59b   : > { %27600 = vmatpush3.bf16.msra.mxu0 %v30005_v27  ;;  %27622 = vmatpush3.bf16.msra.mxu1 %v30006_v23  ;;  %v30037_v27 = vld [vmem:[%s31076_s9 + $0x29c8] sm:$0xff]   ;;  %vm34051_vm5 = vmpackc.low %vm787_vm1, %vm787_vm1  ;;  %v1707_v10 = vcombine.high %v899_v7, %v899_v7 }
 0x59c   : > { %27601 = vmatprep.subr.bf16.mxu0 %v30007_v24  ;;  %27623 = vmatprep.subr.bf16.mxu1 %v30008_v31  ;;  %v30038_v23 = vld [vmem:[%s31076_s9 + $0x2908] sm:$0xff]   ;;  %v30040_v31 = vld [vmem:[%s31076_s9 + $0x2950] sm:$0xff]  }
 0x59d   : > { %v30039_v24 = vld [vmem:[%s31076_s9 + $0x2988] sm:$0xff]  }
 0x59f   : > { %27602 = vmatpush3.bf16.msra.mxu0 %v30009_v20  ;;  %27624 = vmatpush3.bf16.msra.mxu1 %v30010_v28  ;;  %v30041_v20 = vld [vmem:[%s31076_s9 + $0x29d0] sm:$0xff]  }
 0x5a0   : > { %27603 = vmatprep.subr.bf16.mxu0 %v30011_v34  ;;  %27625 = vmatprep.subr.bf16.mxu1 %v30012_v30  ;;  %v30042_v28 = vld [vmem:[%s31076_s9 + $0x2910] sm:$0xff]   ;;  %v30044_v30 = vld [vmem:[%s31076_s9 + $0x2958] sm:$0xff]  }
 0x5a1   : > { %v30043_v34 = vld [vmem:[%s31076_s9 + $0x2990] sm:$0xff]  }
 0x5a3   : > { %27604 = vmatpush3.bf16.msra.mxu0 %v30013_v32  ;;  %27626 = vmatpush3.bf16.msra.mxu1 %v30014_v38  ;;  %v30045_v32 = vld [vmem:[%s31076_s9 + $0x29d8] sm:$0xff]  }
 0x5a4   : > { %27605 = vmatprep.subr.bf16.mxu0 %v30015_v35  ;;  %27627 = vmatprep.subr.bf16.mxu1 %v30016_v37  ;;  %v30046_v38 = vld [vmem:[%s31076_s9 + $0x2918] sm:$0xff]   ;;  %v30048_v37 = vld [vmem:[%s31076_s9 + $0x2960] sm:$0xff]  }
 0x5a5   : > { %v30047_v35 = vld [vmem:[%s31076_s9 + $0x2998] sm:$0xff]  }
 0x5a6   : > { %v27305_v33 = vpop.f32.mrb[132].mxu0  ;;  %v27327_v39 = vpop.f32.mrb[132].mxu1 }
 0x5a7   : > { %v27306_v41 = vpop.f32.mrb[133].mxu0  ;;  %v27328_v42 = vpop.f32.mrb[133].mxu1  ;;  %27606 = vmatpush3.bf16.msra.mxu0 %v30017_v40  ;;  %27628 = vmatpush3.bf16.msra.mxu1 %v30018_v48  ;;  %v30049_v40 = vld [vmem:[%s31076_s9 + $0x29e0] sm:$0xff]  }
 0x5a8   : > { %v27307_v44 = vadd.f32 %v27306_v41, %v27305_v33  ;;  %v27329_v45 = vadd.f32 %v27328_v42, %v27327_v39  ;;  %v27308_v51 = vpop.f32.mrb[134].mxu0  ;;  %v27330_v49 = vpop.f32.mrb[134].mxu1  ;;  %27607 = vmatprep.subr.bf16.mxu0 %v30019_v46  ;;  %27629 = vmatprep.subr.bf16.mxu1 %v30020_v53  ;;  %v30050_v48 = vld [vmem:[%s31076_s9 + $0x2920] sm:$0xff]  }
 0x5a9   : > { %v27309_v54 = vpop.f32.mrb[135].mxu0  ;;  %v27331_v55 = vpop.f32.mrb[135].mxu1  ;;  %v30051_v46 = vld [vmem:[%s31076_s9 + $0x29a0] sm:$0xff]  }
 0x5aa   : > { %v20752_v43 = vadd.f32 %v27307_v44, %v33814_v52  ;;  %v30022_v52 = vld [vmem:[%s31076_s9 + $0x28a8] sm:$0xff]  }
 0x5ab   : > { %27608 = vmatpush3.bf16.msra.mxu0 %v30021_v50  ;;  %27630 = vmatpush3.bf16.msra.mxu1 %v30022_v52  ;;  %v30052_v54 = vld [vmem:[%s31076_s9 + $0x2968] sm:$0xff]  }
 0x5ac   : > { %v33884_v22 = vadd.f32 %v27329_v45, %v20752_v43  ;;  %27609 = vmatprep.subr.bf16.mxu0 %v30023_v56  ;;  %27631 = vmatprep.subr.bf16.mxu1 %v30024_v57  ;;  %v30053_v55 = vld [vmem:[%s31076_s9 + $0x29e8] sm:$0xff]   ;;  %v30056_v57 = vld [vmem:[%s31076_s9 + $0x2970] sm:$0xff]  }
 0x5ad   : > { %v30055_v56 = vld [vmem:[%s31076_s9 + $0x29a8] sm:$0xff]  }
 0x5af   : > { %27610 = vmatpush3.bf16.msra.mxu0 %v30025_v59  ;;  %27632 = vmatpush3.bf16.msra.mxu1 %v30026_v61  ;;  %v30057_v59 = vld [vmem:[%s31076_s9 + $0x29f0] sm:$0xff]  }
 0x5b0   : > { %27611 = vmatprep.subr.bf16.mxu0 %v30027_v63  ;;  %27633 = vmatprep.subr.bf16.mxu1 %v30028_v1  ;;  %v30058_v61 = vld [vmem:[%s31076_s9 + $0x2930] sm:$0xff]   ;;  %v30060_v1 = vld [vmem:[%s31076_s9 + $0x2978] sm:$0xff]  }
 0x5b1   : > { %v30059_v63 = vld [vmem:[%s31076_s9 + $0x29b0] sm:$0xff]  }
 0x5b3   : > { %27612 = vmatpush3.bf16.msra.mxu0 %v30029_v2  ;;  %27634 = vmatpush3.bf16.msra.mxu1 %v30030_v3  ;;  %v30061_v2 = vld [vmem:[%s31076_s9 + $0x29f8] sm:$0xff]  }
 0x5b4   : > { %27641 = vmatprep.subr.bf16.mxu0 %v30032_v9  ;;  %27663 = vmatprep.subr.bf16.mxu1 %v30033_v13  ;;  %v30062_v3 = vld [vmem:[%s31076_s9 + $0x2938] sm:$0xff]   ;;  %v1687_v13 = vrot.slane %v1673_v8, %v31145_v47  ;;  %v1697_v8 = vrot.slane %v898_v6, %v31145_v47  ;;  %v1690_v9 = vcombine.high %v898_v6, %v898_v6 }
 0x5b5   : > { %v30129_v6 = vld [vmem:[%s31076_s9 + $0x2bb8] sm:$0xff]  }
 0x5b6   : > { %25592 = vmatmul.mubr.msk.bf16.vlgmr.msra.gmra.mrb[160].mxu0 %vm33917_vm6, %v25591_v14  ;;  %25598 = vmatmul.mubr.msk.bf16.vlgmr.msra.gmra.mrb[160].mxu1 %vm33922_vm7, %v25597_v25  ;;  %v1689_v25 = vcombine.high %v1687_v13, %v1687_v13  ;;  %v25609_v17 = vpack.c.bf16 %v1687_v13, %v1687_v13  ;;  %vm34056_vm6 = vmpackc.low %vm784_vm2, %vm784_vm2  ;;  %v1705_v13 = vcombine.high %v1697_v8, %v1697_v8 }
 0x5b7   : > { %27642 = vmatpush3.bf16.msra.mxu0 %v30034_v19  ;;  %27664 = vmatpush3.bf16.msra.mxu1 %v30035_v26  ;;  %v25600_v19 = vpack.c.bf16 %v1688_v12, %v1688_v12  ;;  %v30068_v26 = vld [vmem:[%s31076_s9 + $0x2a80] sm:$0xff]   ;;  %v1704_v14 = vrot.slane %v1690_v9, %v31145_v47 }
 0x5b8   : > { %27643 = vmatprep.subr.bf16.mxu0 %v30036_v21  ;;  %27665 = vmatprep.subr.bf16.mxu1 %v30037_v27  ;;  %v30069_v21 = vld [vmem:[%s31076_s9 + $0x2a48] sm:$0xff]   ;;  %v25606_v27 = vpack.c.bf16 %v1689_v25, %v1689_v25  ;;  %v25612_v25 = vpack.c.bf16 %v1705_v13, %v1705_v13  ;;  %v30131_v12 = vld [vmem:[%s31076_s9 + $0x2c40] sm:$0xff]  }
 0x5b9   : > { %25601 = vmatprep.mubr.msk.bf16.mxu0 %vm33975_vm11, %v25600_v19  ;;  %v30100_v19 = vld [vmem:[%s31076_s9 + $0x2b00] sm:$0xff]  }
 0x5ba   : > { %25607 = vmatprep.mubr.msk.bf16.mxu1 %vm33981_vm13, %v25606_v27  ;;  %v30102_v27 = vld [vmem:[%s31076_s9 + $0x2b48] sm:$0xff]  }
 0x5bb   : > { %27644 = vmatpush3.bf16.msra.mxu0 %v30038_v23  ;;  %27666 = vmatpush3.bf16.msra.mxu1 %v30039_v24  ;;  %v30070_v23 = vld [vmem:[%s31076_s9 + $0x2ac8] sm:$0xff]  }
 0x5bc   : > { %27645 = vmatprep.subr.bf16.mxu0 %v30040_v31  ;;  %27667 = vmatprep.subr.bf16.mxu1 %v30041_v20  ;;  %v30071_v24 = vld [vmem:[%s31076_s9 + $0x2a08] sm:$0xff]   ;;  %v30073_v20 = vld [vmem:[%s31076_s9 + $0x2a50] sm:$0xff]  }
 0x5bd   : > { %v30072_v31 = vld [vmem:[%s31076_s9 + $0x2a88] sm:$0xff]  }
 0x5be   : > { %v901_v9 = vld [vmem:[%s31094_s18 + $0x168] sm:$0xff] }
 0x5bf   : > { %27646 = vmatpush3.bf16.msra.mxu0 %v30042_v28  ;;  %27668 = vmatpush3.bf16.msra.mxu1 %v30043_v34  ;;  %v30074_v28 = vld [vmem:[%s31076_s9 + $0x2ad0] sm:$0xff]  }
 0x5c0   : > { %27647 = vmatprep.subr.bf16.mxu0 %v30044_v30  ;;  %27669 = vmatprep.subr.bf16.mxu1 %v30045_v32  ;;  %v30075_v34 = vld [vmem:[%s31076_s9 + $0x2a10] sm:$0xff]   ;;  %v30077_v32 = vld [vmem:[%s31076_s9 + $0x2a58] sm:$0xff]  }
 0x5c1   : > { %v30076_v30 = vld [vmem:[%s31076_s9 + $0x2a90] sm:$0xff]  }
 0x5c3   : > { %27648 = vmatpush3.bf16.msra.mxu0 %v30046_v38  ;;  %27670 = vmatpush3.bf16.msra.mxu1 %v30047_v35  ;;  %v30078_v38 = vld [vmem:[%s31076_s9 + $0x2ad8] sm:$0xff]  }
 0x5c4   : > { %27649 = vmatprep.subr.bf16.mxu0 %v30048_v37  ;;  %27671 = vmatprep.subr.bf16.mxu1 %v30049_v40  ;;  %v30080_v35 = vld [vmem:[%s31076_s9 + $0x2a98] sm:$0xff]   ;;  %v30081_v37 = vld [vmem:[%s31076_s9 + $0x2a60] sm:$0xff]  }
 0x5c6   : > { %v27349_v33 = vpop.f32.mrb[136].mxu0  ;;  %v27371_v39 = vpop.f32.mrb[136].mxu1 }
 0x5c7   : > { %v27350_v41 = vpop.f32.mrb[137].mxu0  ;;  %v27372_v42 = vpop.f32.mrb[137].mxu1  ;;  %27650 = vmatpush3.bf16.msra.mxu0 %v30050_v48  ;;  %27672 = vmatpush3.bf16.msra.mxu1 %v30051_v46  ;;  %v30083_v48 = vld [vmem:[%s31076_s9 + $0x2a20] sm:$0xff]  }
 0x5c8   : > { %v27351_v44 = vadd.f32 %v27350_v41, %v27349_v33  ;;  %v27373_v45 = vadd.f32 %v27372_v42, %v27371_v39  ;;  %v27352_v51 = vpop.f32.mrb[138].mxu0  ;;  %v27374_v49 = vpop.f32.mrb[138].mxu1  ;;  %27651 = vmatprep.subr.bf16.mxu0 %v30052_v54  ;;  %27673 = vmatprep.subr.bf16.mxu1 %v30053_v55  ;;  %v30079_v33 = vld [vmem:[%s31076_s9 + $0x2a18] sm:$0xff]   ;;  %v30085_v54 = vld [vmem:[%s31076_s9 + $0x2a68] sm:$0xff]  }
 0x5c9   : > { %v27353_v50 = vpop.f32.mrb[139].mxu0  ;;  %v27375_v52 = vpop.f32.mrb[139].mxu1 }
 0x5ca   : > { %v20832_v43 = vadd.f32 %v27351_v44, %v33884_v22  ;;  %v30054_v22 = vld [vmem:[%s31076_s9 + $0x2928] sm:$0xff]   ;;  %v30082_v44 = vld [vmem:[%s31076_s9 + $0x2ae0] sm:$0xff]  }
 0x5cb   : > { %27652 = vmatpush3.bf16.msra.mxu0 %v30054_v22  ;;  %27674 = vmatpush3.bf16.msra.mxu1 %v30055_v56  ;;  %v30086_v52 = vld [vmem:[%s31076_s9 + $0x2ae8] sm:$0xff]  }
 0x5cc   : > { %v33953_v53 = vadd.f32 %v27373_v45, %v20832_v43  ;;  %27653 = vmatprep.subr.bf16.mxu0 %v30056_v57  ;;  %27675 = vmatprep.subr.bf16.mxu1 %v30057_v59  ;;  %v30084_v45 = vld [vmem:[%s31076_s9 + $0x2aa0] sm:$0xff]   ;;  %v30087_v56 = vld [vmem:[%s31076_s9 + $0x2a28] sm:$0xff]   ;;  %v30090_v59 = vld [vmem:[%s31076_s9 + $0x2af0] sm:$0xff]  }
 0x5cf   : > { %27654 = vmatpush3.bf16.msra.mxu0 %v30058_v61  ;;  %27676 = vmatpush3.bf16.msra.mxu1 %v30059_v63  ;;  %v30091_v61 = vld [vmem:[%s31076_s9 + $0x2a30] sm:$0xff]  }
 0x5d0   : > { %27655 = vmatprep.subr.bf16.mxu0 %v30060_v1  ;;  %27677 = vmatprep.subr.bf16.mxu1 %v30061_v2  ;;  %v30092_v63 = vld [vmem:[%s31076_s9 + $0x2ab0] sm:$0xff]   ;;  %v30093_v1 = vld [vmem:[%s31076_s9 + $0x2a78] sm:$0xff]   ;;  %v545_v2 = vadd.s32 21760, %v31126_v29 }
 0x5d2   : > { %vm786_vm4 = vcmp.lt.s32.totalorder %v545_v2, %v31134_v36  ;;  %v30126_v2 = vld [vmem:[%s31076_s9 + $0x2b78] sm:$0xff]  }
 0x5d3   : > { %27656 = vmatpush3.bf16.msra.mxu0 %v30062_v3  ;;  %27678 = vmatpush3.bf16.msra.mxu1 %v30063_v4  ;;  %v30094_v3 = vld [vmem:[%s31076_s9 + $0x2af8] sm:$0xff]   ;;  %vm34061_vm7 = vmpackc.low %vm786_vm4, %vm786_vm4 }
 0x5d4   : > { %27685 = vmatprep.subr.bf16.mxu0 %v30065_v11  ;;  %27707 = vmatprep.subr.bf16.mxu1 %v30066_v15  ;;  %v30095_v4 = vld [vmem:[%s31076_s9 + $0x2a38] sm:$0xff]   ;;  %v30098_v11 = vld [vmem:[%s31076_s9 + $0x2b40] sm:$0xff]  }
 0x5d6   : > { %25604 = vmatmul.mubr.msk.bf16.vlgmr.msra.gmra.mrb[164].mxu0 %vm33985_vm14, %v25603_v16  ;;  %25610 = vmatmul.mubr.msk.bf16.vlgmr.msra.gmra.mrb[164].mxu1 %vm33991_vm15, %v25609_v17  ;;  %v30099_v16 = vld [vmem:[%s31076_s9 + $0x2bc0] sm:$0xff]  }
 0x5d7   : > { %27686 = vmatpush3.bf16.msra.mxu0 %v30067_v18  ;;  %27708 = vmatpush3.bf16.msra.mxu1 %v30068_v26  ;;  %v25615_v18 = vpack.c.bf16 %v1697_v8, %v1697_v8  ;;  %v1706_v26 = vcombine.high %v1704_v14, %v1704_v14  ;;  %v30101_v17 = vld [vmem:[%s31076_s9 + $0x2b80] sm:$0xff]   ;;  %v1714_v8 = vrot.slane %v899_v7, %v31145_v47  ;;  %v30162_v7 = vld [vmem:[%s31076_s9 + $0x2cb8] sm:$0xff]  }
 0x5d8   : > { %27687 = vmatprep.subr.bf16.mxu0 %v30069_v21  ;;  %27709 = vmatprep.subr.bf16.mxu1 %v30070_v23  ;;  %v25621_v21 = vpack.c.bf16 %v1704_v14, %v1704_v14  ;;  %v1721_v14 = vrot.slane %v1707_v10, %v31145_v47 }
 0x5d9   : > { %25613 = vmatprep.mubr.msk.bf16.mxu0 %vm34045_vm3, %v25612_v25  ;;  %v25618_v23 = vpack.c.bf16 %v1706_v26, %v1706_v26  ;;  %v1722_v13 = vcombine.high %v1714_v8, %v1714_v8 }
 0x5da   : > { %v1723_v26 = vcombine.high %v1721_v14, %v1721_v14 }
 0x5db   : > { %27688 = vmatpush3.bf16.msra.mxu0 %v30071_v24  ;;  %27710 = vmatpush3.bf16.msra.mxu1 %v30072_v31  ;;  %v30103_v24 = vld [vmem:[%s31076_s9 + $0x2bc8] sm:$0xff]   ;;  %v25624_v25 = vpack.c.bf16 %v1722_v13, %v1722_v13 }
 0x5dc   : > { %27689 = vmatprep.subr.bf16.mxu0 %v30073_v20  ;;  %27711 = vmatprep.subr.bf16.mxu1 %v30074_v28  ;;  %v30104_v31 = vld [vmem:[%s31076_s9 + $0x2b08] sm:$0xff]   ;;  %v30106_v28 = vld [vmem:[%s31076_s9 + $0x2b50] sm:$0xff]  }
 0x5dd   : > { %25619 = vmatprep.mubr.msk.bf16.mxu1 %vm34051_vm5, %v25618_v23  ;;  %v30105_v20 = vld [vmem:[%s31076_s9 + $0x2b88] sm:$0xff]   ;;  %v25630_v23 = vpack.c.bf16 %v1723_v26, %v1723_v26  ;;  %v30166_v26 = vld [vmem:[%s31076_s9 + $0x2d00] sm:$0xff]  }
 0x5df   : > { %27690 = vmatpush3.bf16.msra.mxu0 %v30075_v34  ;;  %27712 = vmatpush3.bf16.msra.mxu1 %v30076_v30  ;;  %v30107_v34 = vld [vmem:[%s31076_s9 + $0x2bd0] sm:$0xff]  }
 0x5e0   : > { %27691 = vmatprep.subr.bf16.mxu0 %v30077_v32  ;;  %27713 = vmatprep.subr.bf16.mxu1 %v30078_v38  ;;  %v30108_v30 = vld [vmem:[%s31076_s9 + $0x2b10] sm:$0xff]   ;;  %v30110_v38 = vld [vmem:[%s31076_s9 + $0x2b58] sm:$0xff]  }
 0x5e1   : > { %v30109_v32 = vld [vmem:[%s31076_s9 + $0x2b90] sm:$0xff]  }
 0x5e3   : > { %27692 = vmatpush3.bf16.msra.mxu0 %v30079_v33  ;;  %27714 = vmatpush3.bf16.msra.mxu1 %v30080_v35  ;;  %v30111_v33 = vld [vmem:[%s31076_s9 + $0x2bd8] sm:$0xff]  }
 0x5e4   : > { %27693 = vmatprep.subr.bf16.mxu0 %v30081_v37  ;;  %27715 = vmatprep.subr.bf16.mxu1 %v30082_v44  ;;  %v30112_v35 = vld [vmem:[%s31076_s9 + $0x2b18] sm:$0xff]  }
 0x5e6   : > { %v27393_v41 = vpop.f32.mrb[140].mxu0  ;;  %v27415_v40 = vpop.f32.mrb[140].mxu1 }
 0x5e7   : > { %v27394_v39 = vpop.f32.mrb[141].mxu0  ;;  %v27416_v43 = vpop.f32.mrb[141].mxu1  ;;  %27694 = vmatpush3.bf16.msra.mxu0 %v30083_v48  ;;  %27716 = vmatpush3.bf16.msra.mxu1 %v30084_v45 }
 0x5e8   : > { %v27395_v42 = vadd.f32 %v27394_v39, %v27393_v41  ;;  %v27417_v46 = vadd.f32 %v27416_v43, %v27415_v40  ;;  %v27396_v49 = vpop.f32.mrb[142].mxu0  ;;  %v27418_v50 = vpop.f32.mrb[142].mxu1  ;;  %27695 = vmatprep.subr.bf16.mxu0 %v30085_v54  ;;  %27717 = vmatprep.subr.bf16.mxu1 %v30086_v52  ;;  %v30113_v41 = vld [vmem:[%s31076_s9 + $0x2b98] sm:$0xff]   ;;  %v30114_v39 = vld [vmem:[%s31076_s9 + $0x2b60] sm:$0xff]  }
 0x5e9   : > { %v27397_v22 = vpop.f32.mrb[143].mxu0  ;;  %v27419_v57 = vpop.f32.mrb[143].mxu1  ;;  %v30115_v40 = vld [vmem:[%s31076_s9 + $0x2be0] sm:$0xff]   ;;  %v30118_v50 = vld [vmem:[%s31076_s9 + $0x2b68] sm:$0xff]  }
 0x5ea   : > { %v20912_v51 = vadd.f32 %v27395_v42, %v33953_v53  ;;  %v30088_v53 = vld [vmem:[%s31076_s9 + $0x2aa8] sm:$0xff]   ;;  %v30116_v43 = vld [vmem:[%s31076_s9 + $0x2b20] sm:$0xff]  }
 0x5eb   : > { %27696 = vmatpush3.bf16.msra.mxu0 %v30087_v56  ;;  %27718 = vmatpush3.bf16.msra.mxu1 %v30088_v53  ;;  %v30119_v56 = vld [vmem:[%s31076_s9 + $0x2be8] sm:$0xff]  }
 0x5ec   : > { %v34024_v55 = vadd.f32 %v27417_v46, %v20912_v51  ;;  %27697 = vmatprep.subr.bf16.mxu0 %v30089_v58  ;;  %27719 = vmatprep.subr.bf16.mxu1 %v30090_v59  ;;  %v30117_v51 = vld [vmem:[%s31076_s9 + $0x2ba0] sm:$0xff]   ;;  %v30120_v53 = vld [vmem:[%s31076_s9 + $0x2b28] sm:$0xff]   ;;  %v30122_v59 = vld [vmem:[%s31076_s9 + $0x2b70] sm:$0xff]  }
 0x5ef   : > { %27698 = vmatpush3.bf16.msra.mxu0 %v30091_v61  ;;  %27720 = vmatpush3.bf16.msra.mxu1 %v30092_v63  ;;  %v548_v61 = vadd.s32 22144, %v31126_v29  ;;  %v550_v63 = vadd.s32 22400, %v31126_v29 }
 0x5f0   : > { %27699 = vmatprep.subr.bf16.mxu0 %v30093_v1  ;;  %27721 = vmatprep.subr.bf16.mxu1 %v30094_v3  ;;  %v547_v1 = vadd.s32 22016, %v31126_v29  ;;  %v549_v3 = vadd.s32 22272, %v31126_v29 }
 0x5f1   : > { %vm789_vm8 = vcmp.lt.s32.totalorder %v548_v61, %v31134_v36  ;;  %vm791_vm9 = vcmp.lt.s32.totalorder %v550_v63, %v31134_v36  ;;  %v552_v61 = vadd.s32 22656, %v31126_v29  ;;  %v554_v63 = vadd.s32 22912, %v31126_v29 }
 0x5f2   : > { %vm788_vm10 = vcmp.lt.s32.totalorder %v547_v1, %v31134_v36  ;;  %vm34116_vm11 = vmpackc.low %vm789_vm8, %vm789_vm8  ;;  %vm790_vm12 = vcmp.lt.s32.totalorder %v549_v3, %v31134_v36  ;;  %v551_v1 = vadd.s32 22528, %v31126_v29  ;;  %v553_v3 = vadd.s32 22784, %v31126_v29 }
 0x5f3   : > { %27700 = vmatpush3.bf16.msra.mxu0 %v30095_v4  ;;  %27722 = vmatpush3.bf16.msra.mxu1 %v30096_v5  ;;  %v30127_v4 = vld [vmem:[%s31076_s9 + $0x2bf8] sm:$0xff]   ;;  %vm34121_vm13 = vmpackc.low %vm791_vm9, %vm791_vm9  ;;  %vm793_vm0 = vcmp.lt.s32.totalorder %v552_v61, %v31134_v36  ;;  %vm795_vm1 = vcmp.lt.s32.totalorder %v554_v63, %v31134_v36  ;;  %v30188_v61 = vld [vmem:[%s31076_s9 + $0x2d70] sm:$0xff]   ;;  %v556_v63 = vadd.s32 23168, %v31126_v29 }
 0x5f4   : > { %27729 = vmatprep.subr.bf16.mxu0 %v30098_v11  ;;  %27751 = vmatprep.subr.bf16.mxu1 %v30099_v16  ;;  %v30128_v5 = vld [vmem:[%s31076_s9 + $0x2b38] sm:$0xff]   ;;  %vm34127_vm14 = vmpackc.low %vm788_vm10, %vm788_vm10  ;;  %v30132_v16 = vld [vmem:[%s31076_s9 + $0x2cc0] sm:$0xff]   ;;  %vm792_vm2 = vcmp.lt.s32.totalorder %v551_v1, %v31134_v36  ;;  %vm794_vm4 = vcmp.lt.s32.totalorder %v553_v3, %v31134_v36  ;;  %v558_v1 = vadd.s32 23424, %v31126_v29  ;;  %v555_v3 = vadd.s32 23040, %v31126_v29 }
 0x5f5   : > { %vm34132_vm15 = vmpackc.low %vm790_vm12, %vm790_vm12  ;;  %vm797_vm8 = vcmp.lt.s32.totalorder %v556_v63, %v31134_v36  ;;  %v30222_v63 = vld [vmem:[%s31076_s9 + $0x2ef0] sm:$0xff]  }
 0x5f6   : > { %25616 = vmatmul.mubr.msk.bf16.vlgmr.msra.gmra.mrb[168].mxu0 %vm34056_vm6, %v25615_v18  ;;  %25622 = vmatmul.mubr.msk.bf16.vlgmr.msra.gmra.mrb[168].mxu1 %vm34061_vm7, %v25621_v21  ;;  %v25627_v18 = vpack.c.bf16 %v1714_v8, %v1714_v8  ;;  %v25633_v21 = vpack.c.bf16 %v1721_v14, %v1721_v14  ;;  %v900_v8 = vld [vmem:[%s31094_s18 + $0x160] sm:$0xff]  ;;  %vm34185_vm3 = vmpackc.low %vm793_vm0, %vm793_vm0  ;;  %vm799_vm9 = vcmp.lt.s32.totalorder %v558_v1, %v31134_v36  ;;  %v30223_v1 = vld [vmem:[%s31076_s9 + $0x2e30] sm:$0xff]  }
 0x5f7   : > { %27730 = vmatpush3.bf16.msra.mxu0 %v30100_v19  ;;  %27752 = vmatpush3.bf16.msra.mxu1 %v30101_v17  ;;  %v30133_v17 = vld [vmem:[%s31076_s9 + $0x2c00] sm:$0xff]   ;;  %v1731_v10 = vrot.slane %v900_v8, %v31145_v47  ;;  %v1724_v11 = vcombine.high %v900_v8, %v900_v8  ;;  %vm34191_vm5 = vmpackc.low %vm795_vm1, %vm795_vm1  ;;  %v30195_v8 = vld [vmem:[%s31076_s9 + $0x2db8] sm:$0xff]   ;;  %vm796_vm10 = vcmp.lt.s32.totalorder %v555_v3, %v31134_v36 }
 0x5f8   : > { %27731 = vmatprep.subr.bf16.mxu0 %v30102_v27  ;;  %27753 = vmatprep.subr.bf16.mxu1 %v30103_v24  ;;  %v30134_v27 = vld [vmem:[%s31076_s9 + $0x2c80] sm:$0xff]   ;;  %v30135_v24 = vld [vmem:[%s31076_s9 + $0x2c48] sm:$0xff]   ;;  %vm34195_vm6 = vmpackc.low %vm792_vm2, %vm792_vm2 }
 0x5f9   : > { %25625 = vmatprep.mubr.msk.bf16.mxu0 %vm34116_vm11, %v25624_v25  ;;  %25631 = vmatprep.mubr.msk.bf16.mxu1 %vm34121_vm13, %v25630_v23  ;;  %v30164_v14 = vld [vmem:[%s31076_s9 + $0x2d40] sm:$0xff]   ;;  %v1739_v15 = vcombine.high %v1731_v10, %v1731_v10  ;;  %vm34201_vm7 = vmpackc.low %vm794_vm4, %vm794_vm4  ;;  %v25639_v25 = vpack.c.bf16 %v1731_v10, %v1731_v10  ;;  %v30224_v3 = vld [vmem:[%s31076_s9 + $0x2eb0] sm:$0xff]  }
 0x5fa   : > { %v30165_v19 = vld [vmem:[%s31076_s9 + $0x2dc0] sm:$0xff]   ;;  %vm34255_vm11 = vmpackc.low %vm797_vm8, %vm797_vm8  ;;  %v902_v10 = vld [vmem:[%s31094_s18 + $0x170] sm:$0xff] }
 0x5fb   : > { %27732 = vmatpush3.bf16.msra.mxu0 %v30104_v31  ;;  %27754 = vmatpush3.bf16.msra.mxu1 %v30105_v20  ;;  %v30136_v31 = vld [vmem:[%s31076_s9 + $0x2cc8] sm:$0xff]   ;;  %vm34261_vm13 = vmpackc.low %vm799_vm9, %vm799_vm9  ;;  %v1758_v13 = vcombine.high %v902_v10, %v902_v10 }
 0x5fc   : > { %27733 = vmatprep.subr.bf16.mxu0 %v30106_v28  ;;  %27755 = vmatprep.subr.bf16.mxu1 %v30107_v34  ;;  %v30137_v20 = vld [vmem:[%s31076_s9 + $0x2c08] sm:$0xff]   ;;  %v30139_v34 = vld [vmem:[%s31076_s9 + $0x2c50] sm:$0xff]  }
 0x5fd   : > { %v30138_v28 = vld [vmem:[%s31076_s9 + $0x2c88] sm:$0xff]  }
 0x5ff   : > { %27734 = vmatpush3.bf16.msra.mxu0 %v30108_v30  ;;  %27756 = vmatpush3.bf16.msra.mxu1 %v30109_v32  ;;  %v30140_v30 = vld [vmem:[%s31076_s9 + $0x2cd0] sm:$0xff]  }
 0x600   : > { %27735 = vmatprep.subr.bf16.mxu0 %v30110_v38  ;;  %27757 = vmatprep.subr.bf16.mxu1 %v30111_v33  ;;  %v30141_v32 = vld [vmem:[%s31076_s9 + $0x2c10] sm:$0xff]   ;;  %v30143_v33 = vld [vmem:[%s31076_s9 + $0x2c58] sm:$0xff]  }
 0x601   : > { %v30142_v38 = vld [vmem:[%s31076_s9 + $0x2c90] sm:$0xff]  }
 0x603   : > { %27736 = vmatpush3.bf16.msra.mxu0 %v30112_v35  ;;  %27758 = vmatpush3.bf16.msra.mxu1 %v30113_v41  ;;  %v30144_v35 = vld [vmem:[%s31076_s9 + $0x2cd8] sm:$0xff]  }
 0x604   : > { %27737 = vmatprep.subr.bf16.mxu0 %v30114_v39  ;;  %27759 = vmatprep.subr.bf16.mxu1 %v30115_v40  ;;  %v30145_v41 = vld [vmem:[%s31076_s9 + $0x2c18] sm:$0xff]   ;;  %v30147_v40 = vld [vmem:[%s31076_s9 + $0x2c60] sm:$0xff]  }
 0x605   : > { %v30146_v39 = vld [vmem:[%s31076_s9 + $0x2c98] sm:$0xff]  }
 0x606   : > { %v27437_v37 = vpop.f32.mrb[144].mxu0 }
 0x607   : > { %v27438_v44 = vpop.f32.mrb[145].mxu0  ;;  %27738 = vmatpush3.bf16.msra.mxu0 %v30116_v43  ;;  %27760 = vmatpush3.bf16.msra.mxu1 %v30117_v51  ;;  %v30148_v43 = vld [vmem:[%s31076_s9 + $0x2ce0] sm:$0xff]  }
 0x608   : > { %v27439_v48 = vadd.f32 %v27438_v44, %v27437_v37  ;;  %v27440_v54 = vpop.f32.mrb[146].mxu0  ;;  %27739 = vmatprep.subr.bf16.mxu0 %v30118_v50  ;;  %27761 = vmatprep.subr.bf16.mxu1 %v30119_v56  ;;  %v30149_v51 = vld [vmem:[%s31076_s9 + $0x2c20] sm:$0xff]  }
 0x609   : > { %v27459_v42 = vpop.f32.mrb[144].mxu1  ;;  %v27441_v57 = vpop.f32.mrb[147].mxu0  ;;  %v30150_v50 = vld [vmem:[%s31076_s9 + $0x2ca0] sm:$0xff]  }
 0x60a   : > { %v27460_v45 = vpop.f32.mrb[145].mxu1  ;;  %v20992_v46 = vadd.f32 %v27439_v48, %v34024_v55  ;;  %v30121_v55 = vld [vmem:[%s31076_s9 + $0x2ba8] sm:$0xff]  }
 0x60b   : > { %v27461_v49 = vadd.f32 %v27460_v45, %v27459_v42  ;;  %v27462_v52 = vpop.f32.mrb[146].mxu1  ;;  %27740 = vmatpush3.bf16.msra.mxu0 %v30120_v53  ;;  %27762 = vmatpush3.bf16.msra.mxu1 %v30121_v55  ;;  %v30151_v57 = vld [vmem:[%s31076_s9 + $0x2c68] sm:$0xff]  }
 0x60c   : > { %v27463_v58 = vpop.f32.mrb[147].mxu1  ;;  %27741 = vmatprep.subr.bf16.mxu0 %v30122_v59  ;;  %27763 = vmatprep.subr.bf16.mxu1 %v30123_v60  ;;  %v30154_v59 = vld [vmem:[%s31076_s9 + $0x2ca8] sm:$0xff]   ;;  %v30155_v60 = vld [vmem:[%s31076_s9 + $0x2c70] sm:$0xff]  }
 0x60d   : > { %v34094_v22 = vadd.f32 %v27461_v49, %v20992_v46  ;;  %v30152_v58 = vld [vmem:[%s31076_s9 + $0x2ce8] sm:$0xff]  }
 0x60f   : > { %27742 = vmatpush3.bf16.msra.mxu0 %v30124_v62  ;;  %27764 = vmatpush3.bf16.msra.mxu1 %v30125_v0  ;;  %v30156_v62 = vld [vmem:[%s31076_s9 + $0x2cf0] sm:$0xff]  }
 0x610   : > { %27743 = vmatprep.subr.bf16.mxu0 %v30126_v2  ;;  %27765 = vmatprep.subr.bf16.mxu1 %v30127_v4  ;;  %v30157_v0 = vld [vmem:[%s31076_s9 + $0x2c30] sm:$0xff]   ;;  %v30159_v4 = vld [vmem:[%s31076_s9 + $0x2c78] sm:$0xff]  }
 0x611   : > { %v30158_v2 = vld [vmem:[%s31076_s9 + $0x2cb0] sm:$0xff]  }
 0x613   : > { %27744 = vmatpush3.bf16.msra.mxu0 %v30128_v5  ;;  %27766 = vmatpush3.bf16.msra.mxu1 %v30129_v6  ;;  %v30160_v5 = vld [vmem:[%s31076_s9 + $0x2cf8] sm:$0xff]  }
 0x614   : > { %27773 = vmatprep.subr.bf16.mxu0 %v30131_v12  ;;  %27795 = vmatprep.subr.bf16.mxu1 %v30132_v16  ;;  %v30161_v6 = vld [vmem:[%s31076_s9 + $0x2c38] sm:$0xff]   ;;  %v1738_v16 = vrot.slane %v1724_v11, %v31145_v47  ;;  %v1748_v11 = vrot.slane %v901_v9, %v31145_v47  ;;  %v1741_v12 = vcombine.high %v901_v9, %v901_v9 }
 0x615   : > { %v30228_v9 = vld [vmem:[%s31076_s9 + $0x2eb8] sm:$0xff]  }
 0x616   : > { %25628 = vmatmul.mubr.msk.bf16.vlgmr.msra.gmra.mrb[172].mxu0 %vm34127_vm14, %v25627_v18  ;;  %25634 = vmatmul.mubr.msk.bf16.vlgmr.msra.gmra.mrb[172].mxu1 %vm34132_vm15, %v25633_v21  ;;  %v1740_v21 = vcombine.high %v1738_v16, %v1738_v16  ;;  %v25645_v23 = vpack.c.bf16 %v1738_v16, %v1738_v16  ;;  %vm34266_vm14 = vmpackc.low %vm796_vm10, %vm796_vm10  ;;  %v1756_v16 = vcombine.high %v1748_v11, %v1748_v11 }
 0x617   : > { %27774 = vmatpush3.bf16.msra.mxu0 %v30133_v17  ;;  %27796 = vmatpush3.bf16.msra.mxu1 %v30134_v27  ;;  %v25636_v17 = vpack.c.bf16 %v1739_v15, %v1739_v15  ;;  %v30167_v27 = vld [vmem:[%s31076_s9 + $0x2d80] sm:$0xff]   ;;  %v1755_v18 = vrot.slane %v1741_v12, %v31145_v47 }
 0x618   : > { %27775 = vmatprep.subr.bf16.mxu0 %v30135_v24  ;;  %27797 = vmatprep.subr.bf16.mxu1 %v30136_v31  ;;  %v30168_v24 = vld [vmem:[%s31076_s9 + $0x2d48] sm:$0xff]   ;;  %v25642_v31 = vpack.c.bf16 %v1740_v21, %v1740_v21  ;;  %v25648_v21 = vpack.c.bf16 %v1756_v16, %v1756_v16  ;;  %v30230_v15 = vld [vmem:[%s31076_s9 + $0x2f40] sm:$0xff]  }
 0x619   : > { %25637 = vmatprep.mubr.msk.bf16.mxu0 %vm34185_vm3, %v25636_v17  ;;  %v30199_v17 = vld [vmem:[%s31076_s9 + $0x2e00] sm:$0xff]  }
 0x61a   : > { %25643 = vmatprep.mubr.msk.bf16.mxu1 %vm34191_vm5, %v25642_v31  ;;  %v30201_v31 = vld [vmem:[%s31076_s9 + $0x2e48] sm:$0xff]   ;;  %v904_v12 = vld [vmem:[%s31094_s18 + $0x180] sm:$0xff] }
 0x61b   : > { %27776 = vmatpush3.bf16.msra.mxu0 %v30137_v20  ;;  %27798 = vmatpush3.bf16.msra.mxu1 %v30138_v28  ;;  %v30169_v20 = vld [vmem:[%s31076_s9 + $0x2dc8] sm:$0xff]  }
 0x61c   : > { %27777 = vmatprep.subr.bf16.mxu0 %v30139_v34  ;;  %27799 = vmatprep.subr.bf16.mxu1 %v30140_v30  ;;  %v30170_v28 = vld [vmem:[%s31076_s9 + $0x2d08] sm:$0xff]   ;;  %v30172_v30 = vld [vmem:[%s31076_s9 + $0x2d50] sm:$0xff]  }
 0x61d   : > { %v30171_v34 = vld [vmem:[%s31076_s9 + $0x2d88] sm:$0xff]  }
 0x61f   : > { %27778 = vmatpush3.bf16.msra.mxu0 %v30141_v32  ;;  %27800 = vmatpush3.bf16.msra.mxu1 %v30142_v38  ;;  %v30173_v32 = vld [vmem:[%s31076_s9 + $0x2dd0] sm:$0xff]  }
 0x620   : > { %27779 = vmatprep.subr.bf16.mxu0 %v30143_v33  ;;  %27801 = vmatprep.subr.bf16.mxu1 %v30144_v35  ;;  %v30174_v38 = vld [vmem:[%s31076_s9 + $0x2d10] sm:$0xff]   ;;  %v30176_v35 = vld [vmem:[%s31076_s9 + $0x2d58] sm:$0xff]  }
 0x621   : > { %v30175_v33 = vld [vmem:[%s31076_s9 + $0x2d90] sm:$0xff]  }
 0x623   : > { %27780 = vmatpush3.bf16.msra.mxu0 %v30145_v41  ;;  %27802 = vmatpush3.bf16.msra.mxu1 %v30146_v39  ;;  %v30177_v41 = vld [vmem:[%s31076_s9 + $0x2dd8] sm:$0xff]  }
 0x624   : > { %27781 = vmatprep.subr.bf16.mxu0 %v30147_v40  ;;  %27803 = vmatprep.subr.bf16.mxu1 %v30148_v43  ;;  %v30179_v39 = vld [vmem:[%s31076_s9 + $0x2d98] sm:$0xff]   ;;  %v30180_v40 = vld [vmem:[%s31076_s9 + $0x2d60] sm:$0xff]  }
 0x626   : > { %v27481_v37 = vpop.f32.mrb[148].mxu0 }
 0x627   : > { %v27482_v44 = vpop.f32.mrb[149].mxu0  ;;  %27782 = vmatpush3.bf16.msra.mxu0 %v30149_v51  ;;  %27804 = vmatpush3.bf16.msra.mxu1 %v30150_v50  ;;  %v30182_v51 = vld [vmem:[%s31076_s9 + $0x2d20] sm:$0xff]  }
 0x628   : > { %v27483_v48 = vadd.f32 %v27482_v44, %v27481_v37  ;;  %v27484_v54 = vpop.f32.mrb[150].mxu0  ;;  %27783 = vmatprep.subr.bf16.mxu0 %v30151_v57  ;;  %27805 = vmatprep.subr.bf16.mxu1 %v30152_v58  ;;  %v30178_v37 = vld [vmem:[%s31076_s9 + $0x2d18] sm:$0xff]   ;;  %v30184_v57 = vld [vmem:[%s31076_s9 + $0x2d68] sm:$0xff]  }
 0x629   : > { %v27503_v42 = vpop.f32.mrb[148].mxu1  ;;  %v27485_v53 = vpop.f32.mrb[151].mxu0 }
 0x62a   : > { %v27504_v45 = vpop.f32.mrb[149].mxu1  ;;  %v21072_v46 = vadd.f32 %v27483_v48, %v34094_v22  ;;  %v30153_v22 = vld [vmem:[%s31076_s9 + $0x2c28] sm:$0xff]   ;;  %v30181_v48 = vld [vmem:[%s31076_s9 + $0x2de0] sm:$0xff]  }
 0x62b   : > { %v27505_v49 = vadd.f32 %v27504_v45, %v27503_v42  ;;  %v27506_v52 = vpop.f32.mrb[150].mxu1  ;;  %27784 = vmatpush3.bf16.msra.mxu0 %v30153_v22  ;;  %27806 = vmatpush3.bf16.msra.mxu1 %v30154_v59  ;;  %v30186_v59 = vld [vmem:[%s31076_s9 + $0x2d28] sm:$0xff]  }
 0x62c   : > { %v27507_v55 = vpop.f32.mrb[151].mxu1  ;;  %27785 = vmatprep.subr.bf16.mxu0 %v30155_v60  ;;  %27807 = vmatprep.subr.bf16.mxu1 %v30156_v62  ;;  %v30189_v62 = vld [vmem:[%s31076_s9 + $0x2df0] sm:$0xff]  }
 0x62d   : > { %v34163_v56 = vadd.f32 %v27505_v49, %v21072_v46  ;;  %v30183_v49 = vld [vmem:[%s31076_s9 + $0x2da0] sm:$0xff]   ;;  %v30185_v55 = vld [vmem:[%s31076_s9 + $0x2de8] sm:$0xff]  }
 0x62f   : > { %27786 = vmatpush3.bf16.msra.mxu0 %v30157_v0  ;;  %27808 = vmatpush3.bf16.msra.mxu1 %v30158_v2  ;;  %v30190_v0 = vld [vmem:[%s31076_s9 + $0x2d30] sm:$0xff]  }
 0x630   : > { %27787 = vmatprep.subr.bf16.mxu0 %v30159_v4  ;;  %27809 = vmatprep.subr.bf16.mxu1 %v30160_v5  ;;  %v30191_v2 = vld [vmem:[%s31076_s9 + $0x2db0] sm:$0xff]   ;;  %v30192_v4 = vld [vmem:[%s31076_s9 + $0x2d78] sm:$0xff]   ;;  %v557_v5 = vadd.s32 23296, %v31126_v29 }
 0x632   : > { %vm798_vm12 = vcmp.lt.s32.totalorder %v557_v5, %v31134_v36  ;;  %v30225_v5 = vld [vmem:[%s31076_s9 + $0x2e78] sm:$0xff]  }
 0x633   : > { %27788 = vmatpush3.bf16.msra.mxu0 %v30161_v6  ;;  %27810 = vmatpush3.bf16.msra.mxu1 %v30162_v7  ;;  %v30193_v6 = vld [vmem:[%s31076_s9 + $0x2df8] sm:$0xff]   ;;  %vm34271_vm15 = vmpackc.low %vm798_vm12, %vm798_vm12 }
 0x634   : > { %27817 = vmatprep.subr.bf16.mxu0 %v30164_v14  ;;  %27839 = vmatprep.subr.bf16.mxu1 %v30165_v19  ;;  %v30194_v7 = vld [vmem:[%s31076_s9 + $0x2d38] sm:$0xff]   ;;  %v30197_v14 = vld [vmem:[%s31076_s9 + $0x2e40] sm:$0xff]  }
 0x636   : > { %25640 = vmatmul.mubr.msk.bf16.vlgmr.msra.gmra.mrb[176].mxu0 %vm34195_vm6, %v25639_v25  ;;  %25646 = vmatmul.mubr.msk.bf16.vlgmr.msra.gmra.mrb[176].mxu1 %vm34201_vm7, %v25645_v23  ;;  %v30198_v25 = vld [vmem:[%s31076_s9 + $0x2ec0] sm:$0xff]  }
 0x637   : > { %27818 = vmatpush3.bf16.msra.mxu0 %v30166_v26  ;;  %27840 = vmatpush3.bf16.msra.mxu1 %v30167_v27  ;;  %v25651_v26 = vpack.c.bf16 %v1748_v11, %v1748_v11  ;;  %v1757_v27 = vcombine.high %v1755_v18, %v1755_v18  ;;  %v30200_v23 = vld [vmem:[%s31076_s9 + $0x2e80] sm:$0xff]   ;;  %v1765_v11 = vrot.slane %v902_v10, %v31145_v47  ;;  %v30261_v10 = vld [vmem:[%s31076_s9 + $0x2fb8] sm:$0xff]  }
 0x638   : > { %27819 = vmatprep.subr.bf16.mxu0 %v30168_v24  ;;  %27841 = vmatprep.subr.bf16.mxu1 %v30169_v20  ;;  %v25657_v24 = vpack.c.bf16 %v1755_v18, %v1755_v18  ;;  %v1772_v18 = vrot.slane %v1758_v13, %v31145_v47 }
 0x639   : > { %25649 = vmatprep.mubr.msk.bf16.mxu0 %vm34255_vm11, %v25648_v21  ;;  %v25654_v20 = vpack.c.bf16 %v1757_v27, %v1757_v27  ;;  %v1773_v16 = vcombine.high %v1765_v11, %v1765_v11 }
 0x63a   : > { %v1774_v27 = vcombine.high %v1772_v18, %v1772_v18 }
 0x63b   : > { %27820 = vmatpush3.bf16.msra.mxu0 %v30170_v28  ;;  %27842 = vmatpush3.bf16.msra.mxu1 %v30171_v34  ;;  %v30202_v28 = vld [vmem:[%s31076_s9 + $0x2ec8] sm:$0xff]   ;;  %v25660_v21 = vpack.c.bf16 %v1773_v16, %v1773_v16 }
 0x63c   : > { %27821 = vmatprep.subr.bf16.mxu0 %v30172_v30  ;;  %27843 = vmatprep.subr.bf16.mxu1 %v30173_v32  ;;  %v30203_v34 = vld [vmem:[%s31076_s9 + $0x2e08] sm:$0xff]   ;;  %v30205_v32 = vld [vmem:[%s31076_s9 + $0x2e50] sm:$0xff]  }
 0x63d   : > { %25655 = vmatprep.mubr.msk.bf16.mxu1 %vm34261_vm13, %v25654_v20  ;;  %v30204_v30 = vld [vmem:[%s31076_s9 + $0x2e88] sm:$0xff]   ;;  %v25666_v20 = vpack.c.bf16 %v1774_v27, %v1774_v27  ;;  %v30265_v27 = vld [vmem:[%s31076_s9 + $0x3000] sm:$0xff]  }
 0x63f   : > { %27822 = vmatpush3.bf16.msra.mxu0 %v30174_v38  ;;  %27844 = vmatpush3.bf16.msra.mxu1 %v30175_v33  ;;  %v30206_v38 = vld [vmem:[%s31076_s9 + $0x2ed0] sm:$0xff]  }
 0x640   : > { %27823 = vmatprep.subr.bf16.mxu0 %v30176_v35  ;;  %27845 = vmatprep.subr.bf16.mxu1 %v30177_v41  ;;  %v30207_v33 = vld [vmem:[%s31076_s9 + $0x2e10] sm:$0xff]   ;;  %v30209_v41 = vld [vmem:[%s31076_s9 + $0x2e58] sm:$0xff]  }
 0x641   : > { %v30208_v35 = vld [vmem:[%s31076_s9 + $0x2e90] sm:$0xff]  }
 0x643   : > { %27824 = vmatpush3.bf16.msra.mxu0 %v30178_v37  ;;  %27846 = vmatpush3.bf16.msra.mxu1 %v30179_v39  ;;  %v30210_v37 = vld [vmem:[%s31076_s9 + $0x2ed8] sm:$0xff]  }
 0x644   : > { %27825 = vmatprep.subr.bf16.mxu0 %v30180_v40  ;;  %27847 = vmatprep.subr.bf16.mxu1 %v30181_v48  ;;  %v30211_v39 = vld [vmem:[%s31076_s9 + $0x2e18] sm:$0xff]  }
 0x647   : > { %27826 = vmatpush3.bf16.msra.mxu0 %v30182_v51  ;;  %27848 = vmatpush3.bf16.msra.mxu1 %v30183_v49 }
 0x648   : > { %27827 = vmatprep.subr.bf16.mxu0 %v30184_v57  ;;  %27849 = vmatprep.subr.bf16.mxu1 %v30185_v55 }
 0x649   : > { %v27525_v44 = vpop.f32.mrb[152].mxu0  ;;  %v27547_v43 = vpop.f32.mrb[152].mxu1 }
 0x64a   : > { %v27526_v42 = vpop.f32.mrb[153].mxu0  ;;  %v27548_v46 = vpop.f32.mrb[153].mxu1 }
 0x64b   : > { %v27527_v45 = vadd.f32 %v27526_v42, %v27525_v44  ;;  %v27549_v50 = vadd.f32 %v27548_v46, %v27547_v43  ;;  %v27528_v52 = vpop.f32.mrb[154].mxu0  ;;  %v27550_v53 = vpop.f32.mrb[154].mxu1  ;;  %27828 = vmatpush3.bf16.msra.mxu0 %v30186_v59  ;;  %v30212_v44 = vld [vmem:[%s31076_s9 + $0x2e98] sm:$0xff]   ;;  %v30213_v42 = vld [vmem:[%s31076_s9 + $0x2e60] sm:$0xff]   ;;  %v30218_v59 = vld [vmem:[%s31076_s9 + $0x2ee8] sm:$0xff]  }
 0x64c   : > { %v27529_v22 = vpop.f32.mrb[155].mxu0  ;;  %v27551_v60 = vpop.f32.mrb[155].mxu1  ;;  %27829 = vmatprep.subr.bf16.mxu0 %v30188_v61  ;;  %v30214_v43 = vld [vmem:[%s31076_s9 + $0x2ee0] sm:$0xff]   ;;  %v30217_v53 = vld [vmem:[%s31076_s9 + $0x2e68] sm:$0xff]  }
 0x64d   : > { %v21152_v54 = vadd.f32 %v27527_v45, %v34163_v56  ;;  %v30187_v56 = vld [vmem:[%s31076_s9 + $0x2da8] sm:$0xff]   ;;  %v30215_v46 = vld [vmem:[%s31076_s9 + $0x2e20] sm:$0xff]  }
 0x64e   : > { %27850 = vmatpush3.bf16.msra.mxu1 %v30187_v56  ;;  %v30219_v56 = vld [vmem:[%s31076_s9 + $0x2e28] sm:$0xff]  }
 0x64f   : > { %v34234_v58 = vadd.f32 %v27549_v50, %v21152_v54  ;;  %27851 = vmatprep.subr.bf16.mxu1 %v30189_v62  ;;  %27830 = vmatpush3.bf16.msra.mxu0 %v30190_v0  ;;  %v30216_v54 = vld [vmem:[%s31076_s9 + $0x2ea0] sm:$0xff]   ;;  %v30221_v62 = vld [vmem:[%s31076_s9 + $0x2e70] sm:$0xff]   ;;  %v560_v0 = vadd.s32 23680, %v31126_v29 }
 0x650   : > { %27831 = vmatprep.subr.bf16.mxu0 %v30192_v4  ;;  %v559_v4 = vadd.s32 23552, %v31126_v29 }
 0x651   : > { %vm801_vm0 = vcmp.lt.s32.totalorder %v560_v0, %v31134_v36  ;;  %v564_v0 = vadd.s32 24192, %v31126_v29 }
 0x652   : > { %27852 = vmatpush3.bf16.msra.mxu1 %v30191_v2  ;;  %v562_v2 = vadd.s32 23936, %v31126_v29  ;;  %vm800_vm2 = vcmp.lt.s32.totalorder %v559_v4, %v31134_v36  ;;  %vm34326_vm3 = vmpackc.low %vm801_vm0, %vm801_vm0  ;;  %v563_v4 = vadd.s32 24064, %v31126_v29 }
 0x653   : > { %27853 = vmatprep.subr.bf16.mxu1 %v30193_v6  ;;  %27832 = vmatpush3.bf16.msra.mxu0 %v30194_v7  ;;  %v561_v6 = vadd.s32 23808, %v31126_v29  ;;  %v30226_v7 = vld [vmem:[%s31076_s9 + $0x2ef8] sm:$0xff]   ;;  %vm34337_vm6 = vmpackc.low %vm800_vm2, %vm800_vm2  ;;  %vm805_vm8 = vcmp.lt.s32.totalorder %v564_v0, %v31134_v36  ;;  %v30287_v0 = vld [vmem:[%s31076_s9 + $0x3070] sm:$0xff]  }
 0x654   : > { %27861 = vmatprep.subr.bf16.mxu0 %v30197_v14  ;;  %vm803_vm1 = vcmp.lt.s32.totalorder %v562_v2, %v31134_v36  ;;  %v566_v2 = vadd.s32 24448, %v31126_v29  ;;  %vm804_vm10 = vcmp.lt.s32.totalorder %v563_v4, %v31134_v36  ;;  %vm34395_vm11 = vmpackc.low %vm805_vm8, %vm805_vm8  ;;  %v570_v4 = vadd.s32 24960, %v31126_v29 }
 0x655   : > { %vm802_vm4 = vcmp.lt.s32.totalorder %v561_v6, %v31134_v36  ;;  %vm34331_vm5 = vmpackc.low %vm803_vm1, %vm803_vm1  ;;  %v565_v6 = vadd.s32 24320, %v31126_v29 }
 0x656   : > { %27854 = vmatpush3.bf16.msra.mxu1 %v30195_v8  ;;  %25652 = vmatmul.mubr.msk.bf16.vlgmr.msra.gmra.mrb[180].mxu0 %vm34266_vm14, %v25651_v26  ;;  %v30227_v8 = vld [vmem:[%s31076_s9 + $0x2e38] sm:$0xff]   ;;  %v25663_v26 = vpack.c.bf16 %v1765_v11, %v1765_v11  ;;  %vm34342_vm7 = vmpackc.low %vm802_vm4, %vm802_vm4  ;;  %vm807_vm9 = vcmp.lt.s32.totalorder %v566_v2, %v31134_v36  ;;  %v568_v2 = vadd.s32 24704, %v31126_v29  ;;  %vm811_vm1 = vcmp.lt.s32.totalorder %v570_v4, %v31134_v36  ;;  %v30322_v4 = vld [vmem:[%s31076_s9 + $0x3130] sm:$0xff]  }
 0x657   : > { %27883 = vmatprep.subr.bf16.mxu1 %v30198_v25  ;;  %27862 = vmatpush3.bf16.msra.mxu0 %v30199_v17  ;;  %v30231_v25 = vld [vmem:[%s31076_s9 + $0x2fc0] sm:$0xff]   ;;  %v903_v11 = vld [vmem:[%s31094_s18 + $0x178] sm:$0xff]  ;;  %vm806_vm12 = vcmp.lt.s32.totalorder %v565_v6, %v31134_v36  ;;  %vm34401_vm13 = vmpackc.low %vm807_vm9, %vm807_vm9  ;;  %v567_v6 = vadd.s32 24576, %v31126_v29 }
 0x658   : > { %27863 = vmatprep.subr.bf16.mxu0 %v30201_v31  ;;  %v30233_v31 = vld [vmem:[%s31076_s9 + $0x2f80] sm:$0xff]   ;;  %25661 = vmatprep.mubr.msk.bf16.mxu0 %vm34326_vm3, %v25660_v21  ;;  %v1782_v13 = vrot.slane %v903_v11, %v31145_v47  ;;  %v1775_v14 = vcombine.high %v903_v11, %v903_v11  ;;  %vm34405_vm14 = vmpackc.low %vm804_vm10, %vm804_vm10  ;;  %vm809_vm0 = vcmp.lt.s32.totalorder %v568_v2, %v31134_v36  ;;  %v30294_v11 = vld [vmem:[%s31076_s9 + $0x30b8] sm:$0xff]  }
 0x659   : > { %25658 = vmatmul.mubr.msk.bf16.vlgmr.msra.gmra.mrb[180].mxu1 %vm34271_vm15, %v25657_v24  ;;  %v25669_v24 = vpack.c.bf16 %v1772_v18, %v1772_v18  ;;  %v30263_v18 = vld [vmem:[%s31076_s9 + $0x3040] sm:$0xff]   ;;  %vm34411_vm15 = vmpackc.low %vm806_vm12, %vm806_vm12  ;;  %vm808_vm2 = vcmp.lt.s32.totalorder %v567_v6, %v31134_v36  ;;  %v30321_v2 = vld [vmem:[%s31076_s9 + $0x31f0] sm:$0xff]  }
 0x65a   : > { %27884 = vmatpush3.bf16.msra.mxu1 %v30200_v23  ;;  %v30232_v23 = vld [vmem:[%s31076_s9 + $0x2f00] sm:$0xff]   ;;  %25667 = vmatprep.mubr.msk.bf16.mxu1 %vm34331_vm5, %v25666_v20  ;;  %v1790_v19 = vcombine.high %v1782_v13, %v1782_v13  ;;  %v25675_v21 = vpack.c.bf16 %v1782_v13, %v1782_v13  ;;  %vm34465_vm3 = vmpackc.low %vm809_vm0, %vm809_vm0  ;;  %v30323_v6 = vld [vmem:[%s31076_s9 + $0x31b0] sm:$0xff]  }
 0x65b   : > { %27885 = vmatprep.subr.bf16.mxu1 %v30202_v28  ;;  %27864 = vmatpush3.bf16.msra.mxu0 %v30203_v34  ;;  %v30234_v28 = vld [vmem:[%s31076_s9 + $0x2f48] sm:$0xff]   ;;  %v30264_v17 = vld [vmem:[%s31076_s9 + $0x30c0] sm:$0xff]   ;;  %vm34471_vm5 = vmpackc.low %vm811_vm1, %vm811_vm1 }
 0x65c   : > { %27865 = vmatprep.subr.bf16.mxu0 %v30205_v32  ;;  %v30235_v34 = vld [vmem:[%s31076_s9 + $0x2fc8] sm:$0xff]  }
 0x65d   : > { %v30237_v32 = vld [vmem:[%s31076_s9 + $0x2f88] sm:$0xff]  }
 0x65e   : > { %27886 = vmatpush3.bf16.msra.mxu1 %v30204_v30  ;;  %v30236_v30 = vld [vmem:[%s31076_s9 + $0x2f08] sm:$0xff]  }
 0x65f   : > { %27887 = vmatprep.subr.bf16.mxu1 %v30206_v38  ;;  %27866 = vmatpush3.bf16.msra.mxu0 %v30207_v33  ;;  %v30238_v38 = vld [vmem:[%s31076_s9 + $0x2f50] sm:$0xff]   ;;  %v905_v13 = vld [vmem:[%s31094_s18 + $0x188] sm:$0xff] }
 0x660   : > { %27867 = vmatprep.subr.bf16.mxu0 %v30209_v41  ;;  %v30239_v33 = vld [vmem:[%s31076_s9 + $0x2fd0] sm:$0xff]   ;;  %v1809_v16 = vcombine.high %v905_v13, %v905_v13 }
 0x661   : > { %v30241_v41 = vld [vmem:[%s31076_s9 + $0x2f90] sm:$0xff]  }
 0x662   : > { %27888 = vmatpush3.bf16.msra.mxu1 %v30208_v35  ;;  %v30240_v35 = vld [vmem:[%s31076_s9 + $0x2f10] sm:$0xff]  }
 0x663   : > { %27889 = vmatprep.subr.bf16.mxu1 %v30210_v37  ;;  %27868 = vmatpush3.bf16.msra.mxu0 %v30211_v39  ;;  %v30242_v37 = vld [vmem:[%s31076_s9 + $0x2f58] sm:$0xff]  }
 0x664   : > { %27869 = vmatprep.subr.bf16.mxu0 %v30213_v42  ;;  %v30243_v39 = vld [vmem:[%s31076_s9 + $0x2fd8] sm:$0xff]  }
 0x665   : > { %v30245_v42 = vld [vmem:[%s31076_s9 + $0x2f98] sm:$0xff]  }
 0x666   : > { %27890 = vmatpush3.bf16.msra.mxu1 %v30212_v44  ;;  %v30244_v44 = vld [vmem:[%s31076_s9 + $0x2f18] sm:$0xff]  }
 0x667   : > { %27891 = vmatprep.subr.bf16.mxu1 %v30214_v43  ;;  %27870 = vmatpush3.bf16.msra.mxu0 %v30215_v46  ;;  %v30246_v43 = vld [vmem:[%s31076_s9 + $0x2f60] sm:$0xff]  }
 0x668   : > { %27871 = vmatprep.subr.bf16.mxu0 %v30217_v53  ;;  %v30247_v46 = vld [vmem:[%s31076_s9 + $0x2fe0] sm:$0xff]  }
 0x669   : > { %v27569_v40 = vpop.f32.mrb[156].mxu0  ;;  %v27591_v45 = vpop.f32.mrb[156].mxu1  ;;  %v30249_v53 = vld [vmem:[%s31076_s9 + $0x2fa0] sm:$0xff]  }
 0x66a   : > { %v27570_v48 = vpop.f32.mrb[157].mxu0  ;;  %v27592_v49 = vpop.f32.mrb[157].mxu1  ;;  %27892 = vmatpush3.bf16.msra.mxu1 %v30216_v54  ;;  %v30248_v54 = vld [vmem:[%s31076_s9 + $0x2f20] sm:$0xff]  }
 0x66b   : > { %v27571_v51 = vadd.f32 %v27570_v48, %v27569_v40  ;;  %v27593_v52 = vadd.f32 %v27592_v49, %v27591_v45  ;;  %v27572_v57 = vpop.f32.mrb[158].mxu0  ;;  %v27594_v55 = vpop.f32.mrb[158].mxu1  ;;  %27893 = vmatprep.subr.bf16.mxu1 %v30218_v59  ;;  %27872 = vmatpush3.bf16.msra.mxu0 %v30219_v56 }
 0x66c   : > { %v27573_v60 = vpop.f32.mrb[159].mxu0  ;;  %v27595_v61 = vpop.f32.mrb[159].mxu1  ;;  %27873 = vmatprep.subr.bf16.mxu0 %v30221_v62  ;;  %v30253_v62 = vld [vmem:[%s31076_s9 + $0x2fa8] sm:$0xff]  }
 0x66d   : > { %v21232_v50 = vadd.f32 %v27571_v51, %v34234_v58  ;;  %v30220_v58 = vld [vmem:[%s31076_s9 + $0x2ea8] sm:$0xff]  }
 0x66e   : > { %27894 = vmatpush3.bf16.msra.mxu1 %v30220_v58  ;;  %v30250_v60 = vld [vmem:[%s31076_s9 + $0x2f68] sm:$0xff]  }
 0x66f   : > { %v34304_v22 = vadd.f32 %v27593_v52, %v21232_v50  ;;  %27895 = vmatprep.subr.bf16.mxu1 %v30222_v63  ;;  %27874 = vmatpush3.bf16.msra.mxu0 %v30223_v1  ;;  %v30251_v61 = vld [vmem:[%s31076_s9 + $0x2fe8] sm:$0xff]   ;;  %v30254_v63 = vld [vmem:[%s31076_s9 + $0x2f70] sm:$0xff]  }
 0x670   : > { %27875 = vmatprep.subr.bf16.mxu0 %v30225_v5  ;;  %v30255_v1 = vld [vmem:[%s31076_s9 + $0x2ff0] sm:$0xff]  }
 0x671   : > { %v30257_v5 = vld [vmem:[%s31076_s9 + $0x2fb0] sm:$0xff]  }
 0x672   : > { %27896 = vmatpush3.bf16.msra.mxu1 %v30224_v3  ;;  %v30256_v3 = vld [vmem:[%s31076_s9 + $0x2f30] sm:$0xff]  }
 0x673   : > { %27897 = vmatprep.subr.bf16.mxu1 %v30226_v7  ;;  %27876 = vmatpush3.bf16.msra.mxu0 %v30227_v8  ;;  %v30258_v7 = vld [vmem:[%s31076_s9 + $0x2f78] sm:$0xff]  }
 0x674   : > { %27905 = vmatprep.subr.bf16.mxu0 %v30230_v15  ;;  %v30259_v8 = vld [vmem:[%s31076_s9 + $0x2ff8] sm:$0xff]   ;;  %v1792_v15 = vcombine.high %v904_v12, %v904_v12 }
 0x676   : > { %27898 = vmatpush3.bf16.msra.mxu1 %v30228_v9  ;;  %25664 = vmatmul.mubr.msk.bf16.vlgmr.msra.gmra.mrb[184].mxu0 %vm34337_vm6, %v25663_v26  ;;  %v30260_v9 = vld [vmem:[%s31076_s9 + $0x2f38] sm:$0xff]   ;;  %vm34476_vm6 = vmpackc.low %vm808_vm2, %vm808_vm2  ;;  %v1806_v26 = vrot.slane %v1792_v15, %v31145_v47 }
 0x677   : > { %27927 = vmatprep.subr.bf16.mxu1 %v30231_v25  ;;  %27906 = vmatpush3.bf16.msra.mxu0 %v30232_v23  ;;  %v1789_v25 = vrot.slane %v1775_v14, %v31145_v47  ;;  %v25672_v23 = vpack.c.bf16 %v1790_v19, %v1790_v19  ;;  %v1799_v14 = vrot.slane %v904_v12, %v31145_v47  ;;  %v30327_v12 = vld [vmem:[%s31076_s9 + $0x31b8] sm:$0xff]   ;;  %v30329_v19 = vld [vmem:[%s31076_s9 + $0x3240] sm:$0xff]  }
 0x678   : > { %27907 = vmatprep.subr.bf16.mxu0 %v30234_v28  ;;  %v30267_v28 = vld [vmem:[%s31076_s9 + $0x3048] sm:$0xff]   ;;  %v907_v15 = vld [vmem:[%s31094_s18 + $0x198] sm:$0xff] }
 0x679   : > { %25670 = vmatmul.mubr.msk.bf16.vlgmr.msra.gmra.mrb[184].mxu1 %vm34342_vm7, %v25669_v24  ;;  %v1791_v24 = vcombine.high %v1789_v25, %v1789_v25  ;;  %v25681_v20 = vpack.c.bf16 %v1789_v25, %v1789_v25  ;;  %25673 = vmatprep.mubr.msk.bf16.mxu0 %vm34395_vm11, %v25672_v23  ;;  %v1807_v25 = vcombine.high %v1799_v14, %v1799_v14  ;;  %v30298_v23 = vld [vmem:[%s31076_s9 + $0x3100] sm:$0xff]  }
 0x67a   : > { %27928 = vmatpush3.bf16.msra.mxu1 %v30233_v31  ;;  %v30266_v31 = vld [vmem:[%s31076_s9 + $0x3080] sm:$0xff]  }
 0x67b   : > { %27929 = vmatprep.subr.bf16.mxu1 %v30235_v34  ;;  %27908 = vmatpush3.bf16.msra.mxu0 %v30236_v30  ;;  %v25678_v34 = vpack.c.bf16 %v1791_v24, %v1791_v24  ;;  %v30268_v30 = vld [vmem:[%s31076_s9 + $0x30c8] sm:$0xff]   ;;  %v25684_v24 = vpack.c.bf16 %v1807_v25, %v1807_v25 }
 0x67c   : > { %27909 = vmatprep.subr.bf16.mxu0 %v30238_v38  ;;  %v30270_v38 = vld [vmem:[%s31076_s9 + $0x3088] sm:$0xff]  }
 0x67d   : > { %25679 = vmatprep.mubr.msk.bf16.mxu1 %vm34401_vm13, %v25678_v34  ;;  %v30300_v34 = vld [vmem:[%s31076_s9 + $0x3148] sm:$0xff]  }
 0x67e   : > { %27930 = vmatpush3.bf16.msra.mxu1 %v30237_v32  ;;  %v30269_v32 = vld [vmem:[%s31076_s9 + $0x3008] sm:$0xff]  }
 0x67f   : > { %27931 = vmatprep.subr.bf16.mxu1 %v30239_v33  ;;  %27910 = vmatpush3.bf16.msra.mxu0 %v30240_v35  ;;  %v30271_v33 = vld [vmem:[%s31076_s9 + $0x3050] sm:$0xff]  }
 0x680   : > { %27911 = vmatprep.subr.bf16.mxu0 %v30242_v37  ;;  %v30272_v35 = vld [vmem:[%s31076_s9 + $0x30d0] sm:$0xff]  }
 0x681   : > { %v30274_v37 = vld [vmem:[%s31076_s9 + $0x3090] sm:$0xff]  }
 0x682   : > { %27932 = vmatpush3.bf16.msra.mxu1 %v30241_v41  ;;  %v30273_v41 = vld [vmem:[%s31076_s9 + $0x3010] sm:$0xff]  }
 0x683   : > { %27933 = vmatprep.subr.bf16.mxu1 %v30243_v39  ;;  %27912 = vmatpush3.bf16.msra.mxu0 %v30244_v44  ;;  %v30275_v39 = vld [vmem:[%s31076_s9 + $0x3058] sm:$0xff]  }
 0x684   : > { %27913 = vmatprep.subr.bf16.mxu0 %v30246_v43  ;;  %v30276_v44 = vld [vmem:[%s31076_s9 + $0x30d8] sm:$0xff]   ;;  %v30279_v43 = vld [vmem:[%s31076_s9 + $0x3060] sm:$0xff]  }
 0x686   : > { %27934 = vmatpush3.bf16.msra.mxu1 %v30245_v42  ;;  %v30278_v42 = vld [vmem:[%s31076_s9 + $0x3098] sm:$0xff]  }
 0x687   : > { %27935 = vmatprep.subr.bf16.mxu1 %v30247_v46  ;;  %27914 = vmatpush3.bf16.msra.mxu0 %v30248_v54  ;;  %v30281_v54 = vld [vmem:[%s31076_s9 + $0x3020] sm:$0xff]  }
 0x688   : > { %27915 = vmatprep.subr.bf16.mxu0 %v30250_v60  ;;  %v30283_v60 = vld [vmem:[%s31076_s9 + $0x3068] sm:$0xff]  }
 0x689   : > { %v27613_v40 = vpop.f32.mrb[160].mxu0  ;;  %v27635_v45 = vpop.f32.mrb[160].mxu1 }
 0x68a   : > { %v27614_v48 = vpop.f32.mrb[161].mxu0  ;;  %v27636_v49 = vpop.f32.mrb[161].mxu1  ;;  %27936 = vmatpush3.bf16.msra.mxu1 %v30249_v53 }
 0x68b   : > { %v27615_v51 = vadd.f32 %v27614_v48, %v27613_v40  ;;  %v27637_v52 = vadd.f32 %v27636_v49, %v27635_v45  ;;  %v27616_v57 = vpop.f32.mrb[162].mxu0  ;;  %v27638_v55 = vpop.f32.mrb[162].mxu1  ;;  %27937 = vmatprep.subr.bf16.mxu1 %v30251_v61  ;;  %v30277_v40 = vld [vmem:[%s31076_s9 + $0x3018] sm:$0xff]  }
 0x68c   : > { %v27617_v56 = vpop.f32.mrb[163].mxu0  ;;  %v27639_v58 = vpop.f32.mrb[163].mxu1 }
 0x68d   : > { %v21312_v50 = vadd.f32 %v27615_v51, %v34304_v22  ;;  %v30252_v22 = vld [vmem:[%s31076_s9 + $0x2f28] sm:$0xff]   ;;  %v30280_v51 = vld [vmem:[%s31076_s9 + $0x30e0] sm:$0xff]  }
 0x68e   : > { %27916 = vmatpush3.bf16.msra.mxu0 %v30252_v22  ;;  %27938 = vmatpush3.bf16.msra.mxu1 %v30253_v62  ;;  %v30284_v58 = vld [vmem:[%s31076_s9 + $0x30e8] sm:$0xff]  }
 0x68f   : > { %v34373_v59 = vadd.f32 %v27637_v52, %v21312_v50  ;;  %27917 = vmatprep.subr.bf16.mxu0 %v30254_v63  ;;  %27939 = vmatprep.subr.bf16.mxu1 %v30255_v1  ;;  %v30282_v52 = vld [vmem:[%s31076_s9 + $0x30a0] sm:$0xff]   ;;  %v30285_v62 = vld [vmem:[%s31076_s9 + $0x3028] sm:$0xff]   ;;  %v30288_v1 = vld [vmem:[%s31076_s9 + $0x30f0] sm:$0xff]  }
 0x692   : > { %27918 = vmatpush3.bf16.msra.mxu0 %v30256_v3  ;;  %27940 = vmatpush3.bf16.msra.mxu1 %v30257_v5  ;;  %v30289_v3 = vld [vmem:[%s31076_s9 + $0x3030] sm:$0xff]  }
 0x693   : > { %27919 = vmatprep.subr.bf16.mxu0 %v30258_v7  ;;  %27941 = vmatprep.subr.bf16.mxu1 %v30259_v8  ;;  %v30290_v5 = vld [vmem:[%s31076_s9 + $0x30b0] sm:$0xff]   ;;  %v30291_v7 = vld [vmem:[%s31076_s9 + $0x3078] sm:$0xff]   ;;  %v569_v8 = vadd.s32 24832, %v31126_v29 }
 0x695   : > { %vm810_vm4 = vcmp.lt.s32.totalorder %v569_v8, %v31134_v36  ;;  %v30324_v8 = vld [vmem:[%s31076_s9 + $0x3178] sm:$0xff]  }
 0x696   : > { %27920 = vmatpush3.bf16.msra.mxu0 %v30260_v9  ;;  %27942 = vmatpush3.bf16.msra.mxu1 %v30261_v10  ;;  %v30292_v9 = vld [vmem:[%s31076_s9 + $0x30f8] sm:$0xff]   ;;  %vm34481_vm7 = vmpackc.low %vm810_vm4, %vm810_vm4 }
 0x697   : > { %27949 = vmatprep.subr.bf16.mxu0 %v30263_v18  ;;  %27971 = vmatprep.subr.bf16.mxu1 %v30264_v17  ;;  %v30293_v10 = vld [vmem:[%s31076_s9 + $0x3038] sm:$0xff]   ;;  %v30296_v18 = vld [vmem:[%s31076_s9 + $0x3140] sm:$0xff]  }
 0x699   : > { %25676 = vmatmul.mubr.msk.bf16.vlgmr.msra.gmra.mrb[188].mxu0 %vm34405_vm14, %v25675_v21  ;;  %25682 = vmatmul.mubr.msk.bf16.vlgmr.msra.gmra.mrb[188].mxu1 %vm34411_vm15, %v25681_v20  ;;  %v30297_v21 = vld [vmem:[%s31076_s9 + $0x31c0] sm:$0xff]  }
 0x69a   : > { %27950 = vmatpush3.bf16.msra.mxu0 %v30265_v27  ;;  %27972 = vmatpush3.bf16.msra.mxu1 %v30266_v31  ;;  %v25687_v27 = vpack.c.bf16 %v1799_v14, %v1799_v14  ;;  %v1808_v31 = vcombine.high %v1806_v26, %v1806_v26  ;;  %v30299_v20 = vld [vmem:[%s31076_s9 + $0x3180] sm:$0xff]   ;;  %v1816_v14 = vrot.slane %v905_v13, %v31145_v47  ;;  %v30360_v13 = vld [vmem:[%s31076_s9 + $0x32b8] sm:$0xff]  }
 0x69b   : > { %27951 = vmatprep.subr.bf16.mxu0 %v30267_v28  ;;  %27973 = vmatprep.subr.bf16.mxu1 %v30268_v30  ;;  %v25693_v28 = vpack.c.bf16 %v1806_v26, %v1806_v26  ;;  %v1823_v26 = vrot.slane %v1809_v16, %v31145_v47 }
 0x69c   : > { %25685 = vmatprep.mubr.msk.bf16.mxu0 %vm34465_vm3, %v25684_v24  ;;  %v25690_v30 = vpack.c.bf16 %v1808_v31, %v1808_v31  ;;  %v1824_v25 = vcombine.high %v1816_v14, %v1816_v14 }
 0x69d   : > { %v1825_v31 = vcombine.high %v1823_v26, %v1823_v26 }
 0x69e   : > { %27952 = vmatpush3.bf16.msra.mxu0 %v30269_v32  ;;  %27974 = vmatpush3.bf16.msra.mxu1 %v30270_v38  ;;  %v30301_v32 = vld [vmem:[%s31076_s9 + $0x31c8] sm:$0xff]   ;;  %v25696_v24 = vpack.c.bf16 %v1824_v25, %v1824_v25 }
 0x69f   : > { %27953 = vmatprep.subr.bf16.mxu0 %v30271_v33  ;;  %27975 = vmatprep.subr.bf16.mxu1 %v30272_v35  ;;  %v30302_v38 = vld [vmem:[%s31076_s9 + $0x3108] sm:$0xff]   ;;  %v30304_v35 = vld [vmem:[%s31076_s9 + $0x3150] sm:$0xff]  }
 0x6a0   : > { %25691 = vmatprep.mubr.msk.bf16.mxu1 %vm34471_vm5, %v25690_v30  ;;  %v30303_v33 = vld [vmem:[%s31076_s9 + $0x3188] sm:$0xff]   ;;  %v25702_v30 = vpack.c.bf16 %v1825_v31, %v1825_v31  ;;  %v30364_v31 = vld [vmem:[%s31076_s9 + $0x3300] sm:$0xff]  }
 0x6a2   : > { %27954 = vmatpush3.bf16.msra.mxu0 %v30273_v41  ;;  %27976 = vmatpush3.bf16.msra.mxu1 %v30274_v37  ;;  %v30305_v41 = vld [vmem:[%s31076_s9 + $0x31d0] sm:$0xff]  }
 0x6a3   : > { %27955 = vmatprep.subr.bf16.mxu0 %v30275_v39  ;;  %27977 = vmatprep.subr.bf16.mxu1 %v30276_v44  ;;  %v30306_v37 = vld [vmem:[%s31076_s9 + $0x3110] sm:$0xff]   ;;  %v30308_v44 = vld [vmem:[%s31076_s9 + $0x3158] sm:$0xff]  }
 0x6a4   : > { %v30307_v39 = vld [vmem:[%s31076_s9 + $0x3190] sm:$0xff]  }
 0x6a6   : > { %27956 = vmatpush3.bf16.msra.mxu0 %v30277_v40  ;;  %27978 = vmatpush3.bf16.msra.mxu1 %v30278_v42  ;;  %v30309_v40 = vld [vmem:[%s31076_s9 + $0x31d8] sm:$0xff]  }
 0x6a7   : > { %27957 = vmatprep.subr.bf16.mxu0 %v30279_v43  ;;  %27979 = vmatprep.subr.bf16.mxu1 %v30280_v51  ;;  %v30310_v42 = vld [vmem:[%s31076_s9 + $0x3118] sm:$0xff]  }
 0x6a9   : > { %v27657_v48 = vpop.f32.mrb[164].mxu0  ;;  %v27679_v46 = vpop.f32.mrb[164].mxu1 }
 0x6aa   : > { %v27658_v45 = vpop.f32.mrb[165].mxu0  ;;  %v27680_v50 = vpop.f32.mrb[165].mxu1  ;;  %27958 = vmatpush3.bf16.msra.mxu0 %v30281_v54  ;;  %27980 = vmatpush3.bf16.msra.mxu1 %v30282_v52 }
 0x6ab   : > { %v27659_v49 = vadd.f32 %v27658_v45, %v27657_v48  ;;  %v27681_v53 = vadd.f32 %v27680_v50, %v27679_v46  ;;  %v27660_v55 = vpop.f32.mrb[166].mxu0  ;;  %v27682_v56 = vpop.f32.mrb[166].mxu1  ;;  %27959 = vmatprep.subr.bf16.mxu0 %v30283_v60  ;;  %27981 = vmatprep.subr.bf16.mxu1 %v30284_v58  ;;  %v30311_v48 = vld [vmem:[%s31076_s9 + $0x3198] sm:$0xff]   ;;  %v30312_v45 = vld [vmem:[%s31076_s9 + $0x3160] sm:$0xff]  }
 0x6ac   : > { %v27661_v22 = vpop.f32.mrb[167].mxu0  ;;  %v27683_v63 = vpop.f32.mrb[167].mxu1  ;;  %v30313_v46 = vld [vmem:[%s31076_s9 + $0x31e0] sm:$0xff]   ;;  %v30316_v56 = vld [vmem:[%s31076_s9 + $0x3168] sm:$0xff]  }
 0x6ad   : > { %v21392_v57 = vadd.f32 %v27659_v49, %v34373_v59  ;;  %v30286_v59 = vld [vmem:[%s31076_s9 + $0x30a8] sm:$0xff]   ;;  %v30314_v50 = vld [vmem:[%s31076_s9 + $0x3120] sm:$0xff]  }
 0x6ae   : > { %27960 = vmatpush3.bf16.msra.mxu0 %v30285_v62  ;;  %27982 = vmatpush3.bf16.msra.mxu1 %v30286_v59  ;;  %v30317_v62 = vld [vmem:[%s31076_s9 + $0x31e8] sm:$0xff]  }
 0x6af   : > { %v34444_v61 = vadd.f32 %v27681_v53, %v21392_v57  ;;  %27961 = vmatprep.subr.bf16.mxu0 %v30287_v0  ;;  %27983 = vmatprep.subr.bf16.mxu1 %v30288_v1  ;;  %v30315_v57 = vld [vmem:[%s31076_s9 + $0x31a0] sm:$0xff]   ;;  %v30318_v59 = vld [vmem:[%s31076_s9 + $0x3128] sm:$0xff]   ;;  %v30320_v1 = vld [vmem:[%s31076_s9 + $0x3170] sm:$0xff]  }
 0x6b2   : > { %27962 = vmatpush3.bf16.msra.mxu0 %v30289_v3  ;;  %27984 = vmatpush3.bf16.msra.mxu1 %v30290_v5  ;;  %v572_v3 = vadd.s32 25216, %v31126_v29  ;;  %v574_v5 = vadd.s32 25472, %v31126_v29 }
 0x6b3   : > { %27963 = vmatprep.subr.bf16.mxu0 %v30291_v7  ;;  %27985 = vmatprep.subr.bf16.mxu1 %v30292_v9  ;;  %v571_v7 = vadd.s32 25088, %v31126_v29  ;;  %v573_v9 = vadd.s32 25344, %v31126_v29 }
 0x6b4   : > { %vm813_vm8 = vcmp.lt.s32.totalorder %v572_v3, %v31134_v36  ;;  %vm815_vm9 = vcmp.lt.s32.totalorder %v574_v5, %v31134_v36  ;;  %v576_v3 = vadd.s32 25728, %v31126_v29  ;;  %v578_v5 = vadd.s32 25984, %v31126_v29 }
 0x6b5   : > { %vm812_vm10 = vcmp.lt.s32.totalorder %v571_v7, %v31134_v36  ;;  %vm34536_vm11 = vmpackc.low %vm813_vm8, %vm813_vm8  ;;  %vm814_vm12 = vcmp.lt.s32.totalorder %v573_v9, %v31134_v36  ;;  %v575_v7 = vadd.s32 25600, %v31126_v29  ;;  %v577_v9 = vadd.s32 25856, %v31126_v29 }
 0x6b6   : > { %27964 = vmatpush3.bf16.msra.mxu0 %v30293_v10  ;;  %27986 = vmatpush3.bf16.msra.mxu1 %v30294_v11  ;;  %v30325_v10 = vld [vmem:[%s31076_s9 + $0x31f8] sm:$0xff]   ;;  %vm34541_vm13 = vmpackc.low %vm815_vm9, %vm815_vm9  ;;  %vm817_vm0 = vcmp.lt.s32.totalorder %v576_v3, %v31134_v36  ;;  %vm819_vm1 = vcmp.lt.s32.totalorder %v578_v5, %v31134_v36  ;;  %v30386_v3 = vld [vmem:[%s31076_s9 + $0x3370] sm:$0xff]   ;;  %v580_v5 = vadd.s32 26240, %v31126_v29 }
 0x6b7   : > { %27993 = vmatprep.subr.bf16.mxu0 %v30296_v18  ;;  %28015 = vmatprep.subr.bf16.mxu1 %v30297_v21  ;;  %v30326_v11 = vld [vmem:[%s31076_s9 + $0x3138] sm:$0xff]   ;;  %vm34547_vm14 = vmpackc.low %vm812_vm10, %vm812_vm10  ;;  %v30330_v21 = vld [vmem:[%s31076_s9 + $0x32c0] sm:$0xff]   ;;  %vm816_vm2 = vcmp.lt.s32.totalorder %v575_v7, %v31134_v36  ;;  %vm818_vm4 = vcmp.lt.s32.totalorder %v577_v9, %v31134_v36  ;;  %v582_v7 = vadd.s32 26496, %v31126_v29  ;;  %v579_v9 = vadd.s32 26112, %v31126_v29 }
 0x6b8   : > { %vm34552_vm15 = vmpackc.low %vm814_vm12, %vm814_vm12  ;;  %vm821_vm8 = vcmp.lt.s32.totalorder %v580_v5, %v31134_v36  ;;  %v30420_v5 = vld [vmem:[%s31076_s9 + $0x34f0] sm:$0xff]  }
 0x6b9   : > { %25688 = vmatmul.mubr.msk.bf16.vlgmr.msra.gmra.mrb[192].mxu0 %vm34476_vm6, %v25687_v27  ;;  %25694 = vmatmul.mubr.msk.bf16.vlgmr.msra.gmra.mrb[192].mxu1 %vm34481_vm7, %v25693_v28  ;;  %v25699_v27 = vpack.c.bf16 %v1816_v14, %v1816_v14  ;;  %v25705_v28 = vpack.c.bf16 %v1823_v26, %v1823_v26  ;;  %v906_v14 = vld [vmem:[%s31094_s18 + $0x190] sm:$0xff]  ;;  %vm34605_vm3 = vmpackc.low %vm817_vm0, %vm817_vm0  ;;  %v30362_v26 = vld [vmem:[%s31076_s9 + $0x3340] sm:$0xff]   ;;  %vm823_vm9 = vcmp.lt.s32.totalorder %v582_v7, %v31134_v36 }
 0x6ba   : > { %27994 = vmatpush3.bf16.msra.mxu0 %v30298_v23  ;;  %28016 = vmatpush3.bf16.msra.mxu1 %v30299_v20  ;;  %v30331_v20 = vld [vmem:[%s31076_s9 + $0x3200] sm:$0xff]   ;;  %v1833_v16 = vrot.slane %v906_v14, %v31145_v47  ;;  %v1826_v18 = vcombine.high %v906_v14, %v906_v14  ;;  %vm34611_vm5 = vmpackc.low %vm819_vm1, %vm819_vm1  ;;  %v30393_v14 = vld [vmem:[%s31076_s9 + $0x33b8] sm:$0xff]   ;;  %vm820_vm10 = vcmp.lt.s32.totalorder %v579_v9, %v31134_v36 }
 0x6bb   : > { %27995 = vmatprep.subr.bf16.mxu0 %v30300_v34  ;;  %28017 = vmatprep.subr.bf16.mxu1 %v30301_v32  ;;  %v30332_v34 = vld [vmem:[%s31076_s9 + $0x3280] sm:$0xff]   ;;  %v30333_v32 = vld [vmem:[%s31076_s9 + $0x3248] sm:$0xff]   ;;  %vm34615_vm6 = vmpackc.low %vm816_vm2, %vm816_vm2 }
 0x6bc   : > { %25697 = vmatprep.mubr.msk.bf16.mxu0 %vm34536_vm11, %v25696_v24  ;;  %25703 = vmatprep.mubr.msk.bf16.mxu1 %vm34541_vm13, %v25702_v30  ;;  %v1841_v17 = vcombine.high %v1833_v16, %v1833_v16  ;;  %vm34621_vm7 = vmpackc.low %vm818_vm4, %vm818_vm4  ;;  %v30363_v23 = vld [vmem:[%s31076_s9 + $0x33c0] sm:$0xff]   ;;  %v25711_v24 = vpack.c.bf16 %v1833_v16, %v1833_v16  ;;  %v30421_v7 = vld [vmem:[%s31076_s9 + $0x3430] sm:$0xff]  }
 0x6bd   : > { %vm34675_vm11 = vmpackc.low %vm821_vm8, %vm821_vm8  ;;  %v30422_v9 = vld [vmem:[%s31076_s9 + $0x34b0] sm:$0xff]   ;;  %v908_v16 = vld [vmem:[%s31094_s18 + $0x1a0] sm:$0xff] }
 0x6be   : > { %27996 = vmatpush3.bf16.msra.mxu0 %v30302_v38  ;;  %28018 = vmatpush3.bf16.msra.mxu1 %v30303_v33  ;;  %v30334_v38 = vld [vmem:[%s31076_s9 + $0x32c8] sm:$0xff]   ;;  %vm34681_vm13 = vmpackc.low %vm823_vm9, %vm823_vm9  ;;  %v1860_v25 = vcombine.high %v908_v16, %v908_v16 }
 0x6bf   : > { %27997 = vmatprep.subr.bf16.mxu0 %v30304_v35  ;;  %28019 = vmatprep.subr.bf16.mxu1 %v30305_v41  ;;  %v30335_v33 = vld [vmem:[%s31076_s9 + $0x3208] sm:$0xff]   ;;  %v30337_v41 = vld [vmem:[%s31076_s9 + $0x3250] sm:$0xff]  }
 0x6c0   : > { %v30336_v35 = vld [vmem:[%s31076_s9 + $0x3288] sm:$0xff]  }
 0x6c2   : > { %27998 = vmatpush3.bf16.msra.mxu0 %v30306_v37  ;;  %28020 = vmatpush3.bf16.msra.mxu1 %v30307_v39  ;;  %v30338_v37 = vld [vmem:[%s31076_s9 + $0x32d0] sm:$0xff]  }
 0x6c3   : > { %27999 = vmatprep.subr.bf16.mxu0 %v30308_v44  ;;  %28021 = vmatprep.subr.bf16.mxu1 %v30309_v40  ;;  %v30339_v39 = vld [vmem:[%s31076_s9 + $0x3210] sm:$0xff]   ;;  %v30341_v40 = vld [vmem:[%s31076_s9 + $0x3258] sm:$0xff]  }
 0x6c4   : > { %v30340_v44 = vld [vmem:[%s31076_s9 + $0x3290] sm:$0xff]  }
 0x6c6   : > { %28000 = vmatpush3.bf16.msra.mxu0 %v30310_v42  ;;  %28022 = vmatpush3.bf16.msra.mxu1 %v30311_v48  ;;  %v30342_v42 = vld [vmem:[%s31076_s9 + $0x32d8] sm:$0xff]  }
 0x6c7   : > { %28001 = vmatprep.subr.bf16.mxu0 %v30312_v45  ;;  %28023 = vmatprep.subr.bf16.mxu1 %v30313_v46  ;;  %v30343_v48 = vld [vmem:[%s31076_s9 + $0x3218] sm:$0xff]   ;;  %v30345_v46 = vld [vmem:[%s31076_s9 + $0x3260] sm:$0xff]  }
 0x6c8   : > { %v30344_v45 = vld [vmem:[%s31076_s9 + $0x3298] sm:$0xff]  }
 0x6c9   : > { %v27701_v43 = vpop.f32.mrb[168].mxu0  ;;  %v27723_v49 = vpop.f32.mrb[168].mxu1 }
 0x6ca   : > { %v27702_v51 = vpop.f32.mrb[169].mxu0  ;;  %v27724_v52 = vpop.f32.mrb[169].mxu1  ;;  %28002 = vmatpush3.bf16.msra.mxu0 %v30314_v50  ;;  %28024 = vmatpush3.bf16.msra.mxu1 %v30315_v57  ;;  %v30346_v50 = vld [vmem:[%s31076_s9 + $0x32e0] sm:$0xff]  }
 0x6cb   : > { %v27703_v54 = vadd.f32 %v27702_v51, %v27701_v43  ;;  %v27725_v55 = vadd.f32 %v27724_v52, %v27723_v49  ;;  %v27704_v60 = vpop.f32.mrb[170].mxu0  ;;  %v27726_v58 = vpop.f32.mrb[170].mxu1  ;;  %28003 = vmatprep.subr.bf16.mxu0 %v30316_v56  ;;  %28025 = vmatprep.subr.bf16.mxu1 %v30317_v62  ;;  %v30347_v57 = vld [vmem:[%s31076_s9 + $0x3220] sm:$0xff]  }
 0x6cc   : > { %v27705_v63 = vpop.f32.mrb[171].mxu0  ;;  %v27727_v0 = vpop.f32.mrb[171].mxu1  ;;  %v30348_v56 = vld [vmem:[%s31076_s9 + $0x32a0] sm:$0xff]  }
 0x6cd   : > { %v21472_v53 = vadd.f32 %v27703_v54, %v34444_v61  ;;  %v30319_v61 = vld [vmem:[%s31076_s9 + $0x31a8] sm:$0xff]  }
 0x6ce   : > { %28004 = vmatpush3.bf16.msra.mxu0 %v30318_v59  ;;  %28026 = vmatpush3.bf16.msra.mxu1 %v30319_v61  ;;  %v30349_v63 = vld [vmem:[%s31076_s9 + $0x3268] sm:$0xff]  }
 0x6cf   : > { %v34514_v22 = vadd.f32 %v27725_v55, %v21472_v53  ;;  %28005 = vmatprep.subr.bf16.mxu0 %v30320_v1  ;;  %28027 = vmatprep.subr.bf16.mxu1 %v30321_v2  ;;  %v30350_v0 = vld [vmem:[%s31076_s9 + $0x32e8] sm:$0xff]   ;;  %v30353_v2 = vld [vmem:[%s31076_s9 + $0x3270] sm:$0xff]  }
 0x6d0   : > { %v30352_v1 = vld [vmem:[%s31076_s9 + $0x32a8] sm:$0xff]  }
 0x6d2   : > { %28006 = vmatpush3.bf16.msra.mxu0 %v30322_v4  ;;  %28028 = vmatpush3.bf16.msra.mxu1 %v30323_v6  ;;  %v30354_v4 = vld [vmem:[%s31076_s9 + $0x32f0] sm:$0xff]  }
 0x6d3   : > { %28007 = vmatprep.subr.bf16.mxu0 %v30324_v8  ;;  %28029 = vmatprep.subr.bf16.mxu1 %v30325_v10  ;;  %v30355_v6 = vld [vmem:[%s31076_s9 + $0x3230] sm:$0xff]   ;;  %v30357_v10 = vld [vmem:[%s31076_s9 + $0x3278] sm:$0xff]  }
 0x6d4   : > { %v30356_v8 = vld [vmem:[%s31076_s9 + $0x32b0] sm:$0xff]  }
 0x6d6   : > { %28008 = vmatpush3.bf16.msra.mxu0 %v30326_v11  ;;  %28030 = vmatpush3.bf16.msra.mxu1 %v30327_v12  ;;  %v30358_v11 = vld [vmem:[%s31076_s9 + $0x32f8] sm:$0xff]  }
 0x6d7   : > { %28037 = vmatprep.subr.bf16.mxu0 %v30329_v19  ;;  %28059 = vmatprep.subr.bf16.mxu1 %v30330_v21  ;;  %v30359_v12 = vld [vmem:[%s31076_s9 + $0x3238] sm:$0xff]   ;;  %v1840_v21 = vrot.slane %v1826_v18, %v31145_v47  ;;  %v1850_v18 = vrot.slane %v907_v15, %v31145_v47  ;;  %v1843_v19 = vcombine.high %v907_v15, %v907_v15 }
 0x6d8   : > { %v30426_v15 = vld [vmem:[%s31076_s9 + $0x34b8] sm:$0xff]  }
 0x6d9   : > { %25700 = vmatmul.mubr.msk.bf16.vlgmr.msra.gmra.mrb[196].mxu0 %vm34547_vm14, %v25699_v27  ;;  %25706 = vmatmul.mubr.msk.bf16.vlgmr.msra.gmra.mrb[196].mxu1 %vm34552_vm15, %v25705_v28  ;;  %v1842_v28 = vcombine.high %v1840_v21, %v1840_v21  ;;  %v25717_v30 = vpack.c.bf16 %v1840_v21, %v1840_v21  ;;  %vm34686_vm14 = vmpackc.low %vm820_vm10, %vm820_vm10  ;;  %v1858_v21 = vcombine.high %v1850_v18, %v1850_v18 }
 0x6da   : > { %28038 = vmatpush3.bf16.msra.mxu0 %v30331_v20  ;;  %28060 = vmatpush3.bf16.msra.mxu1 %v30332_v34  ;;  %v25708_v20 = vpack.c.bf16 %v1841_v17, %v1841_v17  ;;  %v30365_v34 = vld [vmem:[%s31076_s9 + $0x3380] sm:$0xff]   ;;  %v1857_v27 = vrot.slane %v1843_v19, %v31145_v47  ;;  %v910_v19 = vld [vmem:[%s31094_s18 + $0x1b0] sm:$0xff] }
 0x6db   : > { %28039 = vmatprep.subr.bf16.mxu0 %v30333_v32  ;;  %28061 = vmatprep.subr.bf16.mxu1 %v30334_v38  ;;  %v30366_v32 = vld [vmem:[%s31076_s9 + $0x3348] sm:$0xff]   ;;  %v25714_v38 = vpack.c.bf16 %v1842_v28, %v1842_v28  ;;  %v25720_v28 = vpack.c.bf16 %v1858_v21, %v1858_v21  ;;  %v30428_v17 = vld [vmem:[%s31076_s9 + $0x3540] sm:$0xff]  }
 0x6dc   : > { %25709 = vmatprep.mubr.msk.bf16.mxu0 %vm34605_vm3, %v25708_v20  ;;  %v30397_v20 = vld [vmem:[%s31076_s9 + $0x3400] sm:$0xff]  }
 0x6dd   : > { %25715 = vmatprep.mubr.msk.bf16.mxu1 %vm34611_vm5, %v25714_v38  ;;  %v30399_v38 = vld [vmem:[%s31076_s9 + $0x3448] sm:$0xff]  }
 0x6de   : > { %28040 = vmatpush3.bf16.msra.mxu0 %v30335_v33  ;;  %28062 = vmatpush3.bf16.msra.mxu1 %v30336_v35  ;;  %v30367_v33 = vld [vmem:[%s31076_s9 + $0x33c8] sm:$0xff]  }
 0x6df   : > { %28041 = vmatprep.subr.bf16.mxu0 %v30337_v41  ;;  %28063 = vmatprep.subr.bf16.mxu1 %v30338_v37  ;;  %v30368_v35 = vld [vmem:[%s31076_s9 + $0x3308] sm:$0xff]   ;;  %v30370_v37 = vld [vmem:[%s31076_s9 + $0x3350] sm:$0xff]  }
 0x6e0   : > { %v30369_v41 = vld [vmem:[%s31076_s9 + $0x3388] sm:$0xff]  }
 0x6e2   : > { %28042 = vmatpush3.bf16.msra.mxu0 %v30339_v39  ;;  %28064 = vmatpush3.bf16.msra.mxu1 %v30340_v44  ;;  %v30371_v39 = vld [vmem:[%s31076_s9 + $0x33d0] sm:$0xff]  }
 0x6e3   : > { %28043 = vmatprep.subr.bf16.mxu0 %v30341_v40  ;;  %28065 = vmatprep.subr.bf16.mxu1 %v30342_v42  ;;  %v30372_v44 = vld [vmem:[%s31076_s9 + $0x3310] sm:$0xff]   ;;  %v30374_v42 = vld [vmem:[%s31076_s9 + $0x3358] sm:$0xff]  }
 0x6e4   : > { %v30373_v40 = vld [vmem:[%s31076_s9 + $0x3390] sm:$0xff]  }
 0x6e6   : > { %28044 = vmatpush3.bf16.msra.mxu0 %v30343_v48  ;;  %28066 = vmatpush3.bf16.msra.mxu1 %v30344_v45  ;;  %v30375_v48 = vld [vmem:[%s31076_s9 + $0x33d8] sm:$0xff]  }
 0x6e7   : > { %28045 = vmatprep.subr.bf16.mxu0 %v30345_v46  ;;  %28067 = vmatprep.subr.bf16.mxu1 %v30346_v50  ;;  %v30377_v45 = vld [vmem:[%s31076_s9 + $0x3398] sm:$0xff]   ;;  %v30378_v46 = vld [vmem:[%s31076_s9 + $0x3360] sm:$0xff]  }
 0x6e9   : > { %v27745_v43 = vpop.f32.mrb[172].mxu0  ;;  %v27767_v49 = vpop.f32.mrb[172].mxu1 }
 0x6ea   : > { %v27746_v51 = vpop.f32.mrb[173].mxu0  ;;  %v27768_v52 = vpop.f32.mrb[173].mxu1  ;;  %28046 = vmatpush3.bf16.msra.mxu0 %v30347_v57  ;;  %28068 = vmatpush3.bf16.msra.mxu1 %v30348_v56  ;;  %v30380_v57 = vld [vmem:[%s31076_s9 + $0x3320] sm:$0xff]  }
 0x6eb   : > { %v27747_v54 = vadd.f32 %v27746_v51, %v27745_v43  ;;  %v27769_v55 = vadd.f32 %v27768_v52, %v27767_v49  ;;  %v27748_v60 = vpop.f32.mrb[174].mxu0  ;;  %v27770_v58 = vpop.f32.mrb[174].mxu1  ;;  %28047 = vmatprep.subr.bf16.mxu0 %v30349_v63  ;;  %28069 = vmatprep.subr.bf16.mxu1 %v30350_v0  ;;  %v30376_v43 = vld [vmem:[%s31076_s9 + $0x3318] sm:$0xff]   ;;  %v30382_v63 = vld [vmem:[%s31076_s9 + $0x3368] sm:$0xff]  }
 0x6ec   : > { %v27749_v59 = vpop.f32.mrb[175].mxu0  ;;  %v27771_v61 = vpop.f32.mrb[175].mxu1 }
 0x6ed   : > { %v21552_v53 = vadd.f32 %v27747_v54, %v34514_v22  ;;  %v30351_v22 = vld [vmem:[%s31076_s9 + $0x3228] sm:$0xff]   ;;  %v30379_v54 = vld [vmem:[%s31076_s9 + $0x33e0] sm:$0xff]  }
 0x6ee   : > { %28048 = vmatpush3.bf16.msra.mxu0 %v30351_v22  ;;  %28070 = vmatpush3.bf16.msra.mxu1 %v30352_v1  ;;  %v30383_v61 = vld [vmem:[%s31076_s9 + $0x33e8] sm:$0xff]  }
 0x6ef   : > { %v34583_v62 = vadd.f32 %v27769_v55, %v21552_v53  ;;  %28049 = vmatprep.subr.bf16.mxu0 %v30353_v2  ;;  %28071 = vmatprep.subr.bf16.mxu1 %v30354_v4  ;;  %v30381_v55 = vld [vmem:[%s31076_s9 + $0x33a0] sm:$0xff]   ;;  %v30384_v1 = vld [vmem:[%s31076_s9 + $0x3328] sm:$0xff]   ;;  %v30387_v4 = vld [vmem:[%s31076_s9 + $0x33f0] sm:$0xff]  }
 0x6f2   : > { %28050 = vmatpush3.bf16.msra.mxu0 %v30355_v6  ;;  %28072 = vmatpush3.bf16.msra.mxu1 %v30356_v8  ;;  %v30388_v6 = vld [vmem:[%s31076_s9 + $0x3330] sm:$0xff]  }
 0x6f3   : > { %28051 = vmatprep.subr.bf16.mxu0 %v30357_v10  ;;  %28073 = vmatprep.subr.bf16.mxu1 %v30358_v11  ;;  %v30389_v8 = vld [vmem:[%s31076_s9 + $0x33b0] sm:$0xff]   ;;  %v30390_v10 = vld [vmem:[%s31076_s9 + $0x3378] sm:$0xff]   ;;  %v581_v11 = vadd.s32 26368, %v31126_v29 }
 0x6f5   : > { %vm822_vm12 = vcmp.lt.s32.totalorder %v581_v11, %v31134_v36  ;;  %v30423_v11 = vld [vmem:[%s31076_s9 + $0x3478] sm:$0xff]  }
 0x6f6   : > { %28052 = vmatpush3.bf16.msra.mxu0 %v30359_v12  ;;  %28074 = vmatpush3.bf16.msra.mxu1 %v30360_v13  ;;  %v30391_v12 = vld [vmem:[%s31076_s9 + $0x33f8] sm:$0xff]   ;;  %vm34691_vm15 = vmpackc.low %vm822_vm12, %vm822_vm12 }
 0x6f7   : > { %28081 = vmatprep.subr.bf16.mxu0 %v30362_v26  ;;  %28103 = vmatprep.subr.bf16.mxu1 %v30363_v23  ;;  %v30392_v13 = vld [vmem:[%s31076_s9 + $0x3338] sm:$0xff]   ;;  %v30395_v26 = vld [vmem:[%s31076_s9 + $0x3440] sm:$0xff]  }
 0x6f9   : > { %25712 = vmatmul.mubr.msk.bf16.vlgmr.msra.gmra.mrb[200].mxu0 %vm34615_vm6, %v25711_v24  ;;  %25718 = vmatmul.mubr.msk.bf16.vlgmr.msra.gmra.mrb[200].mxu1 %vm34621_vm7, %v25717_v30  ;;  %v30396_v24 = vld [vmem:[%s31076_s9 + $0x34c0] sm:$0xff]  }
 0x6fa   : > { %28082 = vmatpush3.bf16.msra.mxu0 %v30364_v31  ;;  %28104 = vmatpush3.bf16.msra.mxu1 %v30365_v34  ;;  %v25723_v31 = vpack.c.bf16 %v1850_v18, %v1850_v18  ;;  %v1859_v34 = vcombine.high %v1857_v27, %v1857_v27  ;;  %v30398_v30 = vld [vmem:[%s31076_s9 + $0x3480] sm:$0xff]   ;;  %v1867_v18 = vrot.slane %v908_v16, %v31145_v47  ;;  %v30459_v16 = vld [vmem:[%s31076_s9 + $0x35b8] sm:$0xff]  }
 0x6fb   : > { %28083 = vmatprep.subr.bf16.mxu0 %v30366_v32  ;;  %28105 = vmatprep.subr.bf16.mxu1 %v30367_v33  ;;  %v25729_v32 = vpack.c.bf16 %v1857_v27, %v1857_v27  ;;  %v1874_v27 = vrot.slane %v1860_v25, %v31145_v47 }
 0x6fc   : > { %25721 = vmatprep.mubr.msk.bf16.mxu0 %vm34675_vm11, %v25720_v28  ;;  %v25726_v33 = vpack.c.bf16 %v1859_v34, %v1859_v34  ;;  %v1875_v21 = vcombine.high %v1867_v18, %v1867_v18 }
 0x6fd   : > { %v1876_v34 = vcombine.high %v1874_v27, %v1874_v27 }
 0x6fe   : > { %28084 = vmatpush3.bf16.msra.mxu0 %v30368_v35  ;;  %28106 = vmatpush3.bf16.msra.mxu1 %v30369_v41  ;;  %v30400_v35 = vld [vmem:[%s31076_s9 + $0x34c8] sm:$0xff]   ;;  %v25732_v28 = vpack.c.bf16 %v1875_v21, %v1875_v21 }
 0x6ff   : > { %28085 = vmatprep.subr.bf16.mxu0 %v30370_v37  ;;  %28107 = vmatprep.subr.bf16.mxu1 %v30371_v39  ;;  %v30401_v41 = vld [vmem:[%s31076_s9 + $0x3408] sm:$0xff]   ;;  %v30403_v39 = vld [vmem:[%s31076_s9 + $0x3450] sm:$0xff]  }
 0x700   : > { %25727 = vmatprep.mubr.msk.bf16.mxu1 %vm34681_vm13, %v25726_v33  ;;  %v30402_v37 = vld [vmem:[%s31076_s9 + $0x3488] sm:$0xff]   ;;  %v25738_v33 = vpack.c.bf16 %v1876_v34, %v1876_v34  ;;  %v30463_v34 = vld [vmem:[%s31076_s9 + $0x3600] sm:$0xff]  }
 0x702   : > { %28086 = vmatpush3.bf16.msra.mxu0 %v30372_v44  ;;  %28108 = vmatpush3.bf16.msra.mxu1 %v30373_v40  ;;  %v30404_v44 = vld [vmem:[%s31076_s9 + $0x34d0] sm:$0xff]  }
 0x703   : > { %28087 = vmatprep.subr.bf16.mxu0 %v30374_v42  ;;  %28109 = vmatprep.subr.bf16.mxu1 %v30375_v48  ;;  %v30405_v40 = vld [vmem:[%s31076_s9 + $0x3410] sm:$0xff]   ;;  %v30407_v48 = vld [vmem:[%s31076_s9 + $0x3458] sm:$0xff]  }
 0x704   : > { %v30406_v42 = vld [vmem:[%s31076_s9 + $0x3490] sm:$0xff]  }
 0x706   : > { %28088 = vmatpush3.bf16.msra.mxu0 %v30376_v43  ;;  %28110 = vmatpush3.bf16.msra.mxu1 %v30377_v45  ;;  %v30408_v43 = vld [vmem:[%s31076_s9 + $0x34d8] sm:$0xff]  }
 0x707   : > { %28089 = vmatprep.subr.bf16.mxu0 %v30378_v46  ;;  %28111 = vmatprep.subr.bf16.mxu1 %v30379_v54  ;;  %v30409_v45 = vld [vmem:[%s31076_s9 + $0x3418] sm:$0xff]  }
 0x709   : > { %v27789_v51 = vpop.f32.mrb[176].mxu0  ;;  %v27811_v50 = vpop.f32.mrb[176].mxu1 }
 0x70a   : > { %v27790_v49 = vpop.f32.mrb[177].mxu0  ;;  %v27812_v53 = vpop.f32.mrb[177].mxu1  ;;  %28090 = vmatpush3.bf16.msra.mxu0 %v30380_v57  ;;  %28112 = vmatpush3.bf16.msra.mxu1 %v30381_v55 }
 0x70b   : > { %v27791_v52 = vadd.f32 %v27790_v49, %v27789_v51  ;;  %v27813_v56 = vadd.f32 %v27812_v53, %v27811_v50  ;;  %v27792_v58 = vpop.f32.mrb[178].mxu0  ;;  %v27814_v59 = vpop.f32.mrb[178].mxu1  ;;  %28091 = vmatprep.subr.bf16.mxu0 %v30382_v63  ;;  %28113 = vmatprep.subr.bf16.mxu1 %v30383_v61  ;;  %v30410_v51 = vld [vmem:[%s31076_s9 + $0x3498] sm:$0xff]   ;;  %v30411_v49 = vld [vmem:[%s31076_s9 + $0x3460] sm:$0xff]  }
 0x70c   : > { %v27793_v22 = vpop.f32.mrb[179].mxu0  ;;  %v27815_v2 = vpop.f32.mrb[179].mxu1  ;;  %v30412_v50 = vld [vmem:[%s31076_s9 + $0x34e0] sm:$0xff]   ;;  %v30415_v59 = vld [vmem:[%s31076_s9 + $0x3468] sm:$0xff]  }
 0x70d   : > { %v21632_v60 = vadd.f32 %v27791_v52, %v34583_v62  ;;  %v30385_v62 = vld [vmem:[%s31076_s9 + $0x33a8] sm:$0xff]   ;;  %v30413_v53 = vld [vmem:[%s31076_s9 + $0x3420] sm:$0xff]  }
 0x70e   : > { %28092 = vmatpush3.bf16.msra.mxu0 %v30384_v1  ;;  %28114 = vmatpush3.bf16.msra.mxu1 %v30385_v62  ;;  %v30416_v1 = vld [vmem:[%s31076_s9 + $0x34e8] sm:$0xff]  }
 0x70f   : > { %v34654_v0 = vadd.f32 %v27813_v56, %v21632_v60  ;;  %28093 = vmatprep.subr.bf16.mxu0 %v30386_v3  ;;  %28115 = vmatprep.subr.bf16.mxu1 %v30387_v4  ;;  %v30414_v60 = vld [vmem:[%s31076_s9 + $0x34a0] sm:$0xff]   ;;  %v30417_v62 = vld [vmem:[%s31076_s9 + $0x3428] sm:$0xff]   ;;  %v30419_v4 = vld [vmem:[%s31076_s9 + $0x3470] sm:$0xff]  }
 0x712   : > { %28094 = vmatpush3.bf16.msra.mxu0 %v30388_v6  ;;  %28116 = vmatpush3.bf16.msra.mxu1 %v30389_v8  ;;  %v584_v6 = vadd.s32 26752, %v31126_v29  ;;  %v586_v8 = vadd.s32 27008, %v31126_v29 }
 0x713   : > { %28095 = vmatprep.subr.bf16.mxu0 %v30390_v10  ;;  %28117 = vmatprep.subr.bf16.mxu1 %v30391_v12  ;;  %v583_v10 = vadd.s32 26624, %v31126_v29  ;;  %v585_v12 = vadd.s32 26880, %v31126_v29 }
 0x714   : > { %vm825_vm0 = vcmp.lt.s32.totalorder %v584_v6, %v31134_v36  ;;  %vm827_vm1 = vcmp.lt.s32.totalorder %v586_v8, %v31134_v36  ;;  %v588_v6 = vadd.s32 27264, %v31126_v29  ;;  %v590_v8 = vadd.s32 27520, %v31126_v29 }
 0x715   : > { %vm824_vm2 = vcmp.lt.s32.totalorder %v583_v10, %v31134_v36  ;;  %vm34746_vm3 = vmpackc.low %vm825_vm0, %vm825_vm0  ;;  %vm826_vm4 = vcmp.lt.s32.totalorder %v585_v12, %v31134_v36  ;;  %v587_v10 = vadd.s32 27136, %v31126_v29  ;;  %v589_v12 = vadd.s32 27392, %v31126_v29 }
 0x716   : > { %28096 = vmatpush3.bf16.msra.mxu0 %v30392_v13  ;;  %28118 = vmatpush3.bf16.msra.mxu1 %v30393_v14  ;;  %v30424_v13 = vld [vmem:[%s31076_s9 + $0x34f8] sm:$0xff]   ;;  %vm34751_vm5 = vmpackc.low %vm827_vm1, %vm827_vm1  ;;  %vm829_vm8 = vcmp.lt.s32.totalorder %v588_v6, %v31134_v36  ;;  %vm831_vm9 = vcmp.lt.s32.totalorder %v590_v8, %v31134_v36  ;;  %v30485_v6 = vld [vmem:[%s31076_s9 + $0x3670] sm:$0xff]   ;;  %v592_v8 = vadd.s32 27776, %v31126_v29 }
 0x717   : > { %28125 = vmatprep.subr.bf16.mxu0 %v30395_v26  ;;  %28147 = vmatprep.subr.bf16.mxu1 %v30396_v24  ;;  %v30425_v14 = vld [vmem:[%s31076_s9 + $0x3438] sm:$0xff]   ;;  %vm34757_vm6 = vmpackc.low %vm824_vm2, %vm824_vm2  ;;  %v30429_v24 = vld [vmem:[%s31076_s9 + $0x35c0] sm:$0xff]   ;;  %vm828_vm10 = vcmp.lt.s32.totalorder %v587_v10, %v31134_v36  ;;  %vm830_vm12 = vcmp.lt.s32.totalorder %v589_v12, %v31134_v36  ;;  %v594_v10 = vadd.s32 28032, %v31126_v29  ;;  %v591_v12 = vadd.s32 27648, %v31126_v29 }
 0x718   : > { %vm34762_vm7 = vmpackc.low %vm826_vm4, %vm826_vm4  ;;  %vm833_vm0 = vcmp.lt.s32.totalorder %v592_v8, %v31134_v36  ;;  %v30519_v8 = vld [vmem:[%s31076_s9 + $0x37f0] sm:$0xff]  }
 0x719   : > { %25724 = vmatmul.mubr.msk.bf16.vlgmr.msra.gmra.mrb[204].mxu0 %vm34686_vm14, %v25723_v31  ;;  %25730 = vmatmul.mubr.msk.bf16.vlgmr.msra.gmra.mrb[204].mxu1 %vm34691_vm15, %v25729_v32  ;;  %v25735_v31 = vpack.c.bf16 %v1867_v18, %v1867_v18  ;;  %v25741_v32 = vpack.c.bf16 %v1874_v27, %v1874_v27  ;;  %v909_v18 = vld [vmem:[%s31094_s18 + $0x1a8] sm:$0xff]  ;;  %vm34815_vm11 = vmpackc.low %vm829_vm8, %vm829_vm8  ;;  %vm835_vm1 = vcmp.lt.s32.totalorder %v594_v10, %v31134_v36  ;;  %v30520_v10 = vld [vmem:[%s31076_s9 + $0x3730] sm:$0xff]  }
 0x71a   : > { %28126 = vmatpush3.bf16.msra.mxu0 %v30397_v20  ;;  %28148 = vmatpush3.bf16.msra.mxu1 %v30398_v30  ;;  %v30430_v30 = vld [vmem:[%s31076_s9 + $0x3500] sm:$0xff]   ;;  %v1884_v25 = vrot.slane %v909_v18, %v31145_v47  ;;  %v1877_v26 = vcombine.high %v909_v18, %v909_v18  ;;  %vm34821_vm13 = vmpackc.low %vm831_vm9, %vm831_vm9  ;;  %v30492_v18 = vld [vmem:[%s31076_s9 + $0x36b8] sm:$0xff]   ;;  %vm832_vm2 = vcmp.lt.s32.totalorder %v591_v12, %v31134_v36 }
 0x71b   : > { %28127 = vmatprep.subr.bf16.mxu0 %v30399_v38  ;;  %28149 = vmatprep.subr.bf16.mxu1 %v30400_v35  ;;  %v30431_v38 = vld [vmem:[%s31076_s9 + $0x3580] sm:$0xff]   ;;  %v30432_v35 = vld [vmem:[%s31076_s9 + $0x3548] sm:$0xff]   ;;  %vm34825_vm14 = vmpackc.low %vm828_vm10, %vm828_vm10 }
 0x71c   : > { %25733 = vmatprep.mubr.msk.bf16.mxu0 %vm34746_vm3, %v25732_v28  ;;  %25739 = vmatprep.mubr.msk.bf16.mxu1 %vm34751_vm5, %v25738_v33  ;;  %v30461_v27 = vld [vmem:[%s31076_s9 + $0x3640] sm:$0xff]   ;;  %v1892_v23 = vcombine.high %v1884_v25, %v1884_v25  ;;  %vm34831_vm15 = vmpackc.low %vm830_vm12, %vm830_vm12  ;;  %v25747_v28 = vpack.c.bf16 %v1884_v25, %v1884_v25  ;;  %v30521_v12 = vld [vmem:[%s31076_s9 + $0x37b0] sm:$0xff]  }
 0x71d   : > { %v30462_v20 = vld [vmem:[%s31076_s9 + $0x36c0] sm:$0xff]   ;;  %vm34885_vm3 = vmpackc.low %vm833_vm0, %vm833_vm0  ;;  %v911_v25 = vld [vmem:[%s31094_s18 + $0x1b8] sm:$0xff] }
 0x71e   : > { %28128 = vmatpush3.bf16.msra.mxu0 %v30401_v41  ;;  %28150 = vmatpush3.bf16.msra.mxu1 %v30402_v37  ;;  %v30433_v41 = vld [vmem:[%s31076_s9 + $0x35c8] sm:$0xff]   ;;  %vm34891_vm5 = vmpackc.low %vm835_vm1, %vm835_vm1  ;;  %v1911_v21 = vcombine.high %v911_v25, %v911_v25 }
 0x71f   : > { %28129 = vmatprep.subr.bf16.mxu0 %v30403_v39  ;;  %28151 = vmatprep.subr.bf16.mxu1 %v30404_v44  ;;  %v30434_v37 = vld [vmem:[%s31076_s9 + $0x3508] sm:$0xff]   ;;  %v30436_v44 = vld [vmem:[%s31076_s9 + $0x3550] sm:$0xff]  }
 0x720   : > { %v30435_v39 = vld [vmem:[%s31076_s9 + $0x3588] sm:$0xff]  }
 0x722   : > { %28130 = vmatpush3.bf16.msra.mxu0 %v30405_v40  ;;  %28152 = vmatpush3.bf16.msra.mxu1 %v30406_v42  ;;  %v30437_v40 = vld [vmem:[%s31076_s9 + $0x35d0] sm:$0xff]  }
 0x723   : > { %28131 = vmatprep.subr.bf16.mxu0 %v30407_v48  ;;  %28153 = vmatprep.subr.bf16.mxu1 %v30408_v43  ;;  %v30438_v42 = vld [vmem:[%s31076_s9 + $0x3510] sm:$0xff]   ;;  %v30440_v43 = vld [vmem:[%s31076_s9 + $0x3558] sm:$0xff]  }
 0x724   : > { %v30439_v48 = vld [vmem:[%s31076_s9 + $0x3590] sm:$0xff]  }
 0x726   : > { %28132 = vmatpush3.bf16.msra.mxu0 %v30409_v45  ;;  %28154 = vmatpush3.bf16.msra.mxu1 %v30410_v51  ;;  %v30441_v45 = vld [vmem:[%s31076_s9 + $0x35d8] sm:$0xff]  }
 0x727   : > { %28133 = vmatprep.subr.bf16.mxu0 %v30411_v49  ;;  %28155 = vmatprep.subr.bf16.mxu1 %v30412_v50  ;;  %v30442_v51 = vld [vmem:[%s31076_s9 + $0x3518] sm:$0xff]   ;;  %v30444_v50 = vld [vmem:[%s31076_s9 + $0x3560] sm:$0xff]  }
 0x728   : > { %v30443_v49 = vld [vmem:[%s31076_s9 + $0x3598] sm:$0xff]  }
 0x729   : > { %v27833_v46 = vpop.f32.mrb[180].mxu0 }
 0x72a   : > { %v27834_v54 = vpop.f32.mrb[181].mxu0  ;;  %28134 = vmatpush3.bf16.msra.mxu0 %v30413_v53  ;;  %28156 = vmatpush3.bf16.msra.mxu1 %v30414_v60  ;;  %v30445_v53 = vld [vmem:[%s31076_s9 + $0x35e0] sm:$0xff]  }
 0x72b   : > { %v27835_v57 = vadd.f32 %v27834_v54, %v27833_v46  ;;  %v27836_v63 = vpop.f32.mrb[182].mxu0  ;;  %28135 = vmatprep.subr.bf16.mxu0 %v30415_v59  ;;  %28157 = vmatprep.subr.bf16.mxu1 %v30416_v1  ;;  %v30446_v60 = vld [vmem:[%s31076_s9 + $0x3520] sm:$0xff]  }
 0x72c   : > { %v27855_v52 = vpop.f32.mrb[180].mxu1  ;;  %v27837_v2 = vpop.f32.mrb[183].mxu0  ;;  %v30447_v59 = vld [vmem:[%s31076_s9 + $0x35a0] sm:$0xff]  }
 0x72d   : > { %v27856_v55 = vpop.f32.mrb[181].mxu1  ;;  %v21712_v56 = vadd.f32 %v27835_v57, %v34654_v0  ;;  %v30418_v0 = vld [vmem:[%s31076_s9 + $0x34a8] sm:$0xff]  }
 0x72e   : > { %v27857_v58 = vadd.f32 %v27856_v55, %v27855_v52  ;;  %v27858_v61 = vpop.f32.mrb[182].mxu1  ;;  %28136 = vmatpush3.bf16.msra.mxu0 %v30417_v62  ;;  %28158 = vmatpush3.bf16.msra.mxu1 %v30418_v0  ;;  %v30448_v2 = vld [vmem:[%s31076_s9 + $0x3568] sm:$0xff]  }
 0x72f   : > { %v27859_v3 = vpop.f32.mrb[183].mxu1  ;;  %28137 = vmatprep.subr.bf16.mxu0 %v30419_v4  ;;  %28159 = vmatprep.subr.bf16.mxu1 %v30420_v5  ;;  %v30451_v4 = vld [vmem:[%s31076_s9 + $0x35a8] sm:$0xff]   ;;  %v30452_v5 = vld [vmem:[%s31076_s9 + $0x3570] sm:$0xff]  }
 0x730   : > { %v34724_v22 = vadd.f32 %v27857_v58, %v21712_v56  ;;  %v30449_v3 = vld [vmem:[%s31076_s9 + $0x35e8] sm:$0xff]  }
 0x732   : > { %28138 = vmatpush3.bf16.msra.mxu0 %v30421_v7  ;;  %28160 = vmatpush3.bf16.msra.mxu1 %v30422_v9  ;;  %v30453_v7 = vld [vmem:[%s31076_s9 + $0x35f0] sm:$0xff]  }
 0x733   : > { %28139 = vmatprep.subr.bf16.mxu0 %v30423_v11  ;;  %28161 = vmatprep.subr.bf16.mxu1 %v30424_v13  ;;  %v30454_v9 = vld [vmem:[%s31076_s9 + $0x3530] sm:$0xff]   ;;  %v30456_v13 = vld [vmem:[%s31076_s9 + $0x3578] sm:$0xff]  }
 0x734   : > { %v30455_v11 = vld [vmem:[%s31076_s9 + $0x35b0] sm:$0xff]  }
 0x736   : > { %28140 = vmatpush3.bf16.msra.mxu0 %v30425_v14  ;;  %28162 = vmatpush3.bf16.msra.mxu1 %v30426_v15  ;;  %v30457_v14 = vld [vmem:[%s31076_s9 + $0x35f8] sm:$0xff]  }
 0x737   : > { %28169 = vmatprep.subr.bf16.mxu0 %v30428_v17  ;;  %28191 = vmatprep.subr.bf16.mxu1 %v30429_v24  ;;  %v30458_v15 = vld [vmem:[%s31076_s9 + $0x3538] sm:$0xff]   ;;  %v1891_v24 = vrot.slane %v1877_v26, %v31145_v47  ;;  %v1901_v26 = vrot.slane %v910_v19, %v31145_v47  ;;  %v1894_v17 = vcombine.high %v910_v19, %v910_v19 }
 0x738   : > { %v30525_v19 = vld [vmem:[%s31076_s9 + $0x37b8] sm:$0xff]  }
 0x739   : > { %25736 = vmatmul.mubr.msk.bf16.vlgmr.msra.gmra.mrb[208].mxu0 %vm34757_vm6, %v25735_v31  ;;  %25742 = vmatmul.mubr.msk.bf16.vlgmr.msra.gmra.mrb[208].mxu1 %vm34762_vm7, %v25741_v32  ;;  %v1893_v32 = vcombine.high %v1891_v24, %v1891_v24  ;;  %v25753_v33 = vpack.c.bf16 %v1891_v24, %v1891_v24  ;;  %vm34896_vm6 = vmpackc.low %vm832_vm2, %vm832_vm2  ;;  %v1909_v24 = vcombine.high %v1901_v26, %v1901_v26 }
 0x73a   : > { %28170 = vmatpush3.bf16.msra.mxu0 %v30430_v30  ;;  %28192 = vmatpush3.bf16.msra.mxu1 %v30431_v38  ;;  %v25744_v30 = vpack.c.bf16 %v1892_v23, %v1892_v23  ;;  %v30464_v38 = vld [vmem:[%s31076_s9 + $0x3680] sm:$0xff]   ;;  %v1908_v31 = vrot.slane %v1894_v17, %v31145_v47 }
 0x73b   : > { %28171 = vmatprep.subr.bf16.mxu0 %v30432_v35  ;;  %28193 = vmatprep.subr.bf16.mxu1 %v30433_v41  ;;  %v30465_v35 = vld [vmem:[%s31076_s9 + $0x3648] sm:$0xff]   ;;  %v25750_v41 = vpack.c.bf16 %v1893_v32, %v1893_v32  ;;  %v25756_v32 = vpack.c.bf16 %v1909_v24, %v1909_v24  ;;  %v30527_v23 = vld [vmem:[%s31076_s9 + $0x3840] sm:$0xff]  }
 0x73c   : > { %25745 = vmatprep.mubr.msk.bf16.mxu0 %vm34815_vm11, %v25744_v30  ;;  %v30496_v30 = vld [vmem:[%s31076_s9 + $0x3700] sm:$0xff]  }
 0x73d   : > { %25751 = vmatprep.mubr.msk.bf16.mxu1 %vm34821_vm13, %v25750_v41  ;;  %v30498_v41 = vld [vmem:[%s31076_s9 + $0x3748] sm:$0xff]  }
 0x73e   : > { %28172 = vmatpush3.bf16.msra.mxu0 %v30434_v37  ;;  %28194 = vmatpush3.bf16.msra.mxu1 %v30435_v39  ;;  %v30466_v37 = vld [vmem:[%s31076_s9 + $0x36c8] sm:$0xff]  }
 0x73f   : > { %28173 = vmatprep.subr.bf16.mxu0 %v30436_v44  ;;  %28195 = vmatprep.subr.bf16.mxu1 %v30437_v40  ;;  %v30467_v39 = vld [vmem:[%s31076_s9 + $0x3608] sm:$0xff]   ;;  %v30469_v40 = vld [vmem:[%s31076_s9 + $0x3650] sm:$0xff]  }
 0x740   : > { %v30468_v44 = vld [vmem:[%s31076_s9 + $0x3688] sm:$0xff]  }
 0x741   : > { %v913_v17 = vld [vmem:[%s31094_s18 + $0x1c8] sm:$0xff] }
 0x742   : > { %28174 = vmatpush3.bf16.msra.mxu0 %v30438_v42  ;;  %28196 = vmatpush3.bf16.msra.mxu1 %v30439_v48  ;;  %v30470_v42 = vld [vmem:[%s31076_s9 + $0x36d0] sm:$0xff]  }
 0x743   : > { %28175 = vmatprep.subr.bf16.mxu0 %v30440_v43  ;;  %28197 = vmatprep.subr.bf16.mxu1 %v30441_v45  ;;  %v30471_v48 = vld [vmem:[%s31076_s9 + $0x3610] sm:$0xff]   ;;  %v30473_v45 = vld [vmem:[%s31076_s9 + $0x3658] sm:$0xff]  }
 0x744   : > { %v30472_v43 = vld [vmem:[%s31076_s9 + $0x3690] sm:$0xff]  }
 0x746   : > { %28176 = vmatpush3.bf16.msra.mxu0 %v30442_v51  ;;  %28198 = vmatpush3.bf16.msra.mxu1 %v30443_v49  ;;  %v30474_v51 = vld [vmem:[%s31076_s9 + $0x36d8] sm:$0xff]  }
 0x747   : > { %28177 = vmatprep.subr.bf16.mxu0 %v30444_v50  ;;  %28199 = vmatprep.subr.bf16.mxu1 %v30445_v53  ;;  %v30476_v49 = vld [vmem:[%s31076_s9 + $0x3698] sm:$0xff]   ;;  %v30477_v50 = vld [vmem:[%s31076_s9 + $0x3660] sm:$0xff]  }
 0x749   : > { %v27877_v46 = vpop.f32.mrb[184].mxu0 }
 0x74a   : > { %v27878_v54 = vpop.f32.mrb[185].mxu0  ;;  %28178 = vmatpush3.bf16.msra.mxu0 %v30446_v60  ;;  %28200 = vmatpush3.bf16.msra.mxu1 %v30447_v59  ;;  %v30479_v60 = vld [vmem:[%s31076_s9 + $0x3620] sm:$0xff]  }
 0x74b   : > { %v27879_v57 = vadd.f32 %v27878_v54, %v27877_v46  ;;  %v27880_v63 = vpop.f32.mrb[186].mxu0  ;;  %28179 = vmatprep.subr.bf16.mxu0 %v30448_v2  ;;  %28201 = vmatprep.subr.bf16.mxu1 %v30449_v3  ;;  %v30475_v46 = vld [vmem:[%s31076_s9 + $0x3618] sm:$0xff]   ;;  %v30481_v2 = vld [vmem:[%s31076_s9 + $0x3668] sm:$0xff]  }
 0x74c   : > { %v27899_v52 = vpop.f32.mrb[184].mxu1  ;;  %v27881_v62 = vpop.f32.mrb[187].mxu0 }
 0x74d   : > { %v27900_v55 = vpop.f32.mrb[185].mxu1  ;;  %v21792_v56 = vadd.f32 %v27879_v57, %v34724_v22  ;;  %v30450_v22 = vld [vmem:[%s31076_s9 + $0x3528] sm:$0xff]   ;;  %v30478_v57 = vld [vmem:[%s31076_s9 + $0x36e0] sm:$0xff]  }
 0x74e   : > { %v27901_v58 = vadd.f32 %v27900_v55, %v27899_v52  ;;  %v27902_v61 = vpop.f32.mrb[186].mxu1  ;;  %28180 = vmatpush3.bf16.msra.mxu0 %v30450_v22  ;;  %28202 = vmatpush3.bf16.msra.mxu1 %v30451_v4  ;;  %v30483_v4 = vld [vmem:[%s31076_s9 + $0x3628] sm:$0xff]  }
 0x74f   : > { %v27903_v0 = vpop.f32.mrb[187].mxu1  ;;  %28181 = vmatprep.subr.bf16.mxu0 %v30452_v5  ;;  %28203 = vmatprep.subr.bf16.mxu1 %v30453_v7  ;;  %v30486_v7 = vld [vmem:[%s31076_s9 + $0x36f0] sm:$0xff]  }
 0x750   : > { %v34793_v1 = vadd.f32 %v27901_v58, %v21792_v56  ;;  %v30480_v58 = vld [vmem:[%s31076_s9 + $0x36a0] sm:$0xff]   ;;  %v30482_v0 = vld [vmem:[%s31076_s9 + $0x36e8] sm:$0xff]  }
 0x752   : > { %28182 = vmatpush3.bf16.msra.mxu0 %v30454_v9  ;;  %28204 = vmatpush3.bf16.msra.mxu1 %v30455_v11  ;;  %v30487_v9 = vld [vmem:[%s31076_s9 + $0x3630] sm:$0xff]  }
 0x753   : > { %28183 = vmatprep.subr.bf16.mxu0 %v30456_v13  ;;  %28205 = vmatprep.subr.bf16.mxu1 %v30457_v14  ;;  %v30488_v11 = vld [vmem:[%s31076_s9 + $0x36b0] sm:$0xff]   ;;  %v30489_v13 = vld [vmem:[%s31076_s9 + $0x3678] sm:$0xff]   ;;  %v593_v14 = vadd.s32 27904, %v31126_v29 }
 0x755   : > { %vm834_vm4 = vcmp.lt.s32.totalorder %v593_v14, %v31134_v36  ;;  %v30522_v14 = vld [vmem:[%s31076_s9 + $0x3778] sm:$0xff]  }
 0x756   : > { %28184 = vmatpush3.bf16.msra.mxu0 %v30458_v15  ;;  %28206 = vmatpush3.bf16.msra.mxu1 %v30459_v16  ;;  %v30490_v15 = vld [vmem:[%s31076_s9 + $0x36f8] sm:$0xff]   ;;  %vm34901_vm7 = vmpackc.low %vm834_vm4, %vm834_vm4 }
 0x757   : > { %28213 = vmatprep.subr.bf16.mxu0 %v30461_v27  ;;  %28235 = vmatprep.subr.bf16.mxu1 %v30462_v20  ;;  %v30491_v16 = vld [vmem:[%s31076_s9 + $0x3638] sm:$0xff]   ;;  %v30494_v27 = vld [vmem:[%s31076_s9 + $0x3740] sm:$0xff]  }
 0x759   : > { %25748 = vmatmul.mubr.msk.bf16.vlgmr.msra.gmra.mrb[212].mxu0 %vm34825_vm14, %v25747_v28  ;;  %25754 = vmatmul.mubr.msk.bf16.vlgmr.msra.gmra.mrb[212].mxu1 %vm34831_vm15, %v25753_v33  ;;  %v30495_v28 = vld [vmem:[%s31076_s9 + $0x37c0] sm:$0xff]  }
 0x75a   : > { %28214 = vmatpush3.bf16.msra.mxu0 %v30463_v34  ;;  %28236 = vmatpush3.bf16.msra.mxu1 %v30464_v38  ;;  %v25759_v34 = vpack.c.bf16 %v1901_v26, %v1901_v26  ;;  %v1910_v38 = vcombine.high %v1908_v31, %v1908_v31  ;;  %v30497_v33 = vld [vmem:[%s31076_s9 + $0x3780] sm:$0xff]   ;;  %v1918_v26 = vrot.slane %v911_v25, %v31145_v47  ;;  %v30558_v25 = vld [vmem:[%s31076_s9 + $0x38b8] sm:$0xff]  }
 0x75b   : > { %28215 = vmatprep.subr.bf16.mxu0 %v30465_v35  ;;  %28237 = vmatprep.subr.bf16.mxu1 %v30466_v37  ;;  %v25765_v35 = vpack.c.bf16 %v1908_v31, %v1908_v31  ;;  %v1925_v31 = vrot.slane %v1911_v21, %v31145_v47 }
 0x75c   : > { %25757 = vmatprep.mubr.msk.bf16.mxu0 %vm34885_vm3, %v25756_v32  ;;  %v25762_v37 = vpack.c.bf16 %v1910_v38, %v1910_v38  ;;  %v1926_v24 = vcombine.high %v1918_v26, %v1918_v26 }
 0x75d   : > { %v1927_v38 = vcombine.high %v1925_v31, %v1925_v31 }
 0x75e   : > { %28216 = vmatpush3.bf16.msra.mxu0 %v30467_v39  ;;  %28238 = vmatpush3.bf16.msra.mxu1 %v30468_v44  ;;  %v30499_v39 = vld [vmem:[%s31076_s9 + $0x37c8] sm:$0xff]   ;;  %v25768_v32 = vpack.c.bf16 %v1926_v24, %v1926_v24 }
 0x75f   : > { %28217 = vmatprep.subr.bf16.mxu0 %v30469_v40  ;;  %28239 = vmatprep.subr.bf16.mxu1 %v30470_v42  ;;  %v30500_v44 = vld [vmem:[%s31076_s9 + $0x3708] sm:$0xff]   ;;  %v30502_v42 = vld [vmem:[%s31076_s9 + $0x3750] sm:$0xff]  }
 0x760   : > { %25763 = vmatprep.mubr.msk.bf16.mxu1 %vm34891_vm5, %v25762_v37  ;;  %v30501_v40 = vld [vmem:[%s31076_s9 + $0x3788] sm:$0xff]   ;;  %v25774_v37 = vpack.c.bf16 %v1927_v38, %v1927_v38  ;;  %v30562_v38 = vld [vmem:[%s31076_s9 + $0x3900] sm:$0xff]  }
 0x762   : > { %28218 = vmatpush3.bf16.msra.mxu0 %v30471_v48  ;;  %28240 = vmatpush3.bf16.msra.mxu1 %v30472_v43  ;;  %v30503_v48 = vld [vmem:[%s31076_s9 + $0x37d0] sm:$0xff]  }
 0x763   : > { %28219 = vmatprep.subr.bf16.mxu0 %v30473_v45  ;;  %28241 = vmatprep.subr.bf16.mxu1 %v30474_v51  ;;  %v30504_v43 = vld [vmem:[%s31076_s9 + $0x3710] sm:$0xff]   ;;  %v30506_v51 = vld [vmem:[%s31076_s9 + $0x3758] sm:$0xff]  }
 0x764   : > { %v30505_v45 = vld [vmem:[%s31076_s9 + $0x3790] sm:$0xff]  }
 0x766   : > { %28220 = vmatpush3.bf16.msra.mxu0 %v30475_v46  ;;  %28242 = vmatpush3.bf16.msra.mxu1 %v30476_v49  ;;  %v30507_v46 = vld [vmem:[%s31076_s9 + $0x37d8] sm:$0xff]  }
 0x767   : > { %28221 = vmatprep.subr.bf16.mxu0 %v30477_v50  ;;  %28243 = vmatprep.subr.bf16.mxu1 %v30478_v57  ;;  %v30508_v49 = vld [vmem:[%s31076_s9 + $0x3718] sm:$0xff]  }
 0x76a   : > { %28222 = vmatpush3.bf16.msra.mxu0 %v30479_v60  ;;  %28244 = vmatpush3.bf16.msra.mxu1 %v30480_v58 }
 0x76b   : > { %28223 = vmatprep.subr.bf16.mxu0 %v30481_v2  ;;  %28245 = vmatprep.subr.bf16.mxu1 %v30482_v0 }
 0x76c   : > { %v27921_v54 = vpop.f32.mrb[188].mxu0  ;;  %v27943_v53 = vpop.f32.mrb[188].mxu1 }
 0x76d   : > { %v27922_v52 = vpop.f32.mrb[189].mxu0  ;;  %v27944_v56 = vpop.f32.mrb[189].mxu1 }
 0x76e   : > { %v27923_v55 = vadd.f32 %v27922_v52, %v27921_v54  ;;  %v27945_v59 = vadd.f32 %v27944_v56, %v27943_v53  ;;  %v27924_v61 = vpop.f32.mrb[190].mxu0  ;;  %v27946_v62 = vpop.f32.mrb[190].mxu1  ;;  %28224 = vmatpush3.bf16.msra.mxu0 %v30483_v4  ;;  %v30509_v54 = vld [vmem:[%s31076_s9 + $0x3798] sm:$0xff]   ;;  %v30510_v52 = vld [vmem:[%s31076_s9 + $0x3760] sm:$0xff]   ;;  %v30515_v4 = vld [vmem:[%s31076_s9 + $0x37e8] sm:$0xff]  }
 0x76f   : > { %v27925_v22 = vpop.f32.mrb[191].mxu0  ;;  %v27947_v5 = vpop.f32.mrb[191].mxu1  ;;  %28225 = vmatprep.subr.bf16.mxu0 %v30485_v6  ;;  %v30511_v53 = vld [vmem:[%s31076_s9 + $0x37e0] sm:$0xff]   ;;  %v30514_v62 = vld [vmem:[%s31076_s9 + $0x3768] sm:$0xff]  }
 0x770   : > { %v21872_v63 = vadd.f32 %v27923_v55, %v34793_v1  ;;  %v30484_v1 = vld [vmem:[%s31076_s9 + $0x36a8] sm:$0xff]   ;;  %v30512_v56 = vld [vmem:[%s31076_s9 + $0x3720] sm:$0xff]  }
 0x771   : > { %28246 = vmatpush3.bf16.msra.mxu1 %v30484_v1  ;;  %v30516_v1 = vld [vmem:[%s31076_s9 + $0x3728] sm:$0xff]  }
 0x772   : > { %v34864_v3 = vadd.f32 %v27945_v59, %v21872_v63  ;;  %28247 = vmatprep.subr.bf16.mxu1 %v30486_v7  ;;  %28226 = vmatpush3.bf16.msra.mxu0 %v30487_v9  ;;  %v30513_v63 = vld [vmem:[%s31076_s9 + $0x37a0] sm:$0xff]   ;;  %v30518_v7 = vld [vmem:[%s31076_s9 + $0x3770] sm:$0xff]   ;;  %v596_v9 = vadd.s32 28288, %v31126_v29 }
 0x773   : > { %28227 = vmatprep.subr.bf16.mxu0 %v30489_v13  ;;  %v595_v13 = vadd.s32 28160, %v31126_v29 }
 0x774   : > { %vm837_vm8 = vcmp.lt.s32.totalorder %v596_v9, %v31134_v36  ;;  %v600_v9 = vadd.s32 28800, %v31126_v29 }
 0x775   : > { %28248 = vmatpush3.bf16.msra.mxu1 %v30488_v11  ;;  %v598_v11 = vadd.s32 28544, %v31126_v29  ;;  %vm836_vm10 = vcmp.lt.s32.totalorder %v595_v13, %v31134_v36  ;;  %vm34956_vm11 = vmpackc.low %vm837_vm8, %vm837_vm8  ;;  %v599_v13 = vadd.s32 28672, %v31126_v29 }
 0x776   : > { %28249 = vmatprep.subr.bf16.mxu1 %v30490_v15  ;;  %28228 = vmatpush3.bf16.msra.mxu0 %v30491_v16  ;;  %v597_v15 = vadd.s32 28416, %v31126_v29  ;;  %v30523_v16 = vld [vmem:[%s31076_s9 + $0x37f8] sm:$0xff]   ;;  %vm34967_vm14 = vmpackc.low %vm836_vm10, %vm836_vm10  ;;  %vm841_vm0 = vcmp.lt.s32.totalorder %v600_v9, %v31134_v36  ;;  %v30584_v9 = vld [vmem:[%s31076_s9 + $0x3970] sm:$0xff]  }
 0x777   : > { %28257 = vmatprep.subr.bf16.mxu0 %v30494_v27  ;;  %vm839_vm9 = vcmp.lt.s32.totalorder %v598_v11, %v31134_v36  ;;  %v602_v11 = vadd.s32 29056, %v31126_v29  ;;  %vm840_vm2 = vcmp.lt.s32.totalorder %v599_v13, %v31134_v36  ;;  %vm35025_vm3 = vmpackc.low %vm841_vm0, %vm841_vm0  ;;  %v606_v13 = vadd.s32 29568, %v31126_v29 }
 0x778   : > { %vm838_vm12 = vcmp.lt.s32.totalorder %v597_v15, %v31134_v36  ;;  %vm34961_vm13 = vmpackc.low %vm839_vm9, %vm839_vm9  ;;  %v601_v15 = vadd.s32 28928, %v31126_v29 }
 0x779   : > { %28250 = vmatpush3.bf16.msra.mxu1 %v30492_v18  ;;  %25760 = vmatmul.mubr.msk.bf16.vlgmr.msra.gmra.mrb[216].mxu0 %vm34896_vm6, %v25759_v34  ;;  %v30524_v18 = vld [vmem:[%s31076_s9 + $0x3738] sm:$0xff]   ;;  %v25771_v34 = vpack.c.bf16 %v1918_v26, %v1918_v26  ;;  %vm34972_vm15 = vmpackc.low %vm838_vm12, %vm838_vm12  ;;  %vm843_vm1 = vcmp.lt.s32.totalorder %v602_v11, %v31134_v36  ;;  %v604_v11 = vadd.s32 29312, %v31126_v29  ;;  %vm847_vm9 = vcmp.lt.s32.totalorder %v606_v13, %v31134_v36  ;;  %v30619_v13 = vld [vmem:[%s31076_s9 + $0x3a30] sm:$0xff]  }
 0x77a   : > { %28279 = vmatprep.subr.bf16.mxu1 %v30495_v28  ;;  %28258 = vmatpush3.bf16.msra.mxu0 %v30496_v30  ;;  %v30528_v28 = vld [vmem:[%s31076_s9 + $0x38c0] sm:$0xff]   ;;  %vm842_vm4 = vcmp.lt.s32.totalorder %v601_v15, %v31134_v36  ;;  %vm35031_vm5 = vmpackc.low %vm843_vm1, %vm843_vm1  ;;  %v603_v15 = vadd.s32 29184, %v31126_v29 }
 0x77b   : > { %28259 = vmatprep.subr.bf16.mxu0 %v30498_v41  ;;  %v30530_v41 = vld [vmem:[%s31076_s9 + $0x3880] sm:$0xff]   ;;  %25769 = vmatprep.mubr.msk.bf16.mxu0 %vm34956_vm11, %v25768_v32  ;;  %vm35035_vm6 = vmpackc.low %vm840_vm2, %vm840_vm2  ;;  %vm845_vm8 = vcmp.lt.s32.totalorder %v604_v11, %v31134_v36  ;;  %v30618_v11 = vld [vmem:[%s31076_s9 + $0x3af0] sm:$0xff]  }
 0x77c   : > { %25766 = vmatmul.mubr.msk.bf16.vlgmr.msra.gmra.mrb[216].mxu1 %vm34901_vm7, %v25765_v35  ;;  %v25777_v35 = vpack.c.bf16 %v1925_v31, %v1925_v31  ;;  %v912_v26 = vld [vmem:[%s31094_s18 + $0x1c0] sm:$0xff]  ;;  %vm35041_vm7 = vmpackc.low %vm842_vm4, %vm842_vm4  ;;  %vm844_vm10 = vcmp.lt.s32.totalorder %v603_v15, %v31134_v36  ;;  %v30620_v15 = vld [vmem:[%s31076_s9 + $0x3ab0] sm:$0xff]  }
 0x77d   : > { %28280 = vmatpush3.bf16.msra.mxu1 %v30497_v33  ;;  %v30529_v33 = vld [vmem:[%s31076_s9 + $0x3800] sm:$0xff]   ;;  %25775 = vmatprep.mubr.msk.bf16.mxu1 %vm34961_vm13, %v25774_v37  ;;  %v1935_v21 = vrot.slane %v912_v26, %v31145_v47  ;;  %v1928_v27 = vcombine.high %v912_v26, %v912_v26  ;;  %v30591_v26 = vld [vmem:[%s31076_s9 + $0x39b8] sm:$0xff]   ;;  %vm35095_vm11 = vmpackc.low %vm845_vm8, %vm845_vm8 }
 0x77e   : > { %28281 = vmatprep.subr.bf16.mxu1 %v30499_v39  ;;  %28260 = vmatpush3.bf16.msra.mxu0 %v30500_v44  ;;  %v30531_v39 = vld [vmem:[%s31076_s9 + $0x3848] sm:$0xff]   ;;  %v30560_v31 = vld [vmem:[%s31076_s9 + $0x3940] sm:$0xff]   ;;  %vm35101_vm13 = vmpackc.low %vm847_vm9, %vm847_vm9 }
 0x77f   : > { %28261 = vmatprep.subr.bf16.mxu0 %v30502_v42  ;;  %v30532_v44 = vld [vmem:[%s31076_s9 + $0x38c8] sm:$0xff]   ;;  %v1943_v20 = vcombine.high %v1935_v21, %v1935_v21  ;;  %v30561_v30 = vld [vmem:[%s31076_s9 + $0x39c0] sm:$0xff]   ;;  %v25783_v32 = vpack.c.bf16 %v1935_v21, %v1935_v21 }
 0x780   : > { %v30534_v42 = vld [vmem:[%s31076_s9 + $0x3888] sm:$0xff]  }
 0x781   : > { %28282 = vmatpush3.bf16.msra.mxu1 %v30501_v40  ;;  %v30533_v40 = vld [vmem:[%s31076_s9 + $0x3808] sm:$0xff]  }
 0x782   : > { %28283 = vmatprep.subr.bf16.mxu1 %v30503_v48  ;;  %28262 = vmatpush3.bf16.msra.mxu0 %v30504_v43  ;;  %v30535_v48 = vld [vmem:[%s31076_s9 + $0x3850] sm:$0xff]  }
 0x783   : > { %28263 = vmatprep.subr.bf16.mxu0 %v30506_v51  ;;  %v30536_v43 = vld [vmem:[%s31076_s9 + $0x38d0] sm:$0xff]  }
 0x784   : > { %v30538_v51 = vld [vmem:[%s31076_s9 + $0x3890] sm:$0xff]  }
 0x785   : > { %28284 = vmatpush3.bf16.msra.mxu1 %v30505_v45  ;;  %v30537_v45 = vld [vmem:[%s31076_s9 + $0x3810] sm:$0xff]  }
 0x786   : > { %28285 = vmatprep.subr.bf16.mxu1 %v30507_v46  ;;  %28264 = vmatpush3.bf16.msra.mxu0 %v30508_v49  ;;  %v30539_v46 = vld [vmem:[%s31076_s9 + $0x3858] sm:$0xff]   ;;  %v914_v21 = vld [vmem:[%s31094_s18 + $0x1d0] sm:$0xff] }
 0x787   : > { %28265 = vmatprep.subr.bf16.mxu0 %v30510_v52  ;;  %v30540_v49 = vld [vmem:[%s31076_s9 + $0x38d8] sm:$0xff]   ;;  %v1962_v24 = vcombine.high %v914_v21, %v914_v21 }
 0x788   : > { %v30542_v52 = vld [vmem:[%s31076_s9 + $0x3898] sm:$0xff]  }
 0x789   : > { %28286 = vmatpush3.bf16.msra.mxu1 %v30509_v54  ;;  %v30541_v54 = vld [vmem:[%s31076_s9 + $0x3818] sm:$0xff]  }
 0x78a   : > { %28287 = vmatprep.subr.bf16.mxu1 %v30511_v53  ;;  %28266 = vmatpush3.bf16.msra.mxu0 %v30512_v56  ;;  %v30543_v53 = vld [vmem:[%s31076_s9 + $0x3860] sm:$0xff]  }
 0x78b   : > { %28267 = vmatprep.subr.bf16.mxu0 %v30514_v62  ;;  %v30544_v56 = vld [vmem:[%s31076_s9 + $0x38e0] sm:$0xff]  }
 0x78c   : > { %v27965_v50 = vpop.f32.mrb[192].mxu0  ;;  %v27987_v55 = vpop.f32.mrb[192].mxu1  ;;  %v30546_v62 = vld [vmem:[%s31076_s9 + $0x38a0] sm:$0xff]  }
 0x78d   : > { %v27966_v57 = vpop.f32.mrb[193].mxu0  ;;  %v27988_v58 = vpop.f32.mrb[193].mxu1  ;;  %28288 = vmatpush3.bf16.msra.mxu1 %v30513_v63  ;;  %v30545_v63 = vld [vmem:[%s31076_s9 + $0x3820] sm:$0xff]  }
 0x78e   : > { %v27967_v60 = vadd.f32 %v27966_v57, %v27965_v50  ;;  %v27989_v61 = vadd.f32 %v27988_v58, %v27987_v55  ;;  %v27968_v2 = vpop.f32.mrb[194].mxu0  ;;  %v27990_v0 = vpop.f32.mrb[194].mxu1  ;;  %28289 = vmatprep.subr.bf16.mxu1 %v30515_v4  ;;  %28268 = vmatpush3.bf16.msra.mxu0 %v30516_v1 }
 0x78f   : > { %v27969_v5 = vpop.f32.mrb[195].mxu0  ;;  %v27991_v6 = vpop.f32.mrb[195].mxu1  ;;  %28269 = vmatprep.subr.bf16.mxu0 %v30518_v7  ;;  %v30550_v7 = vld [vmem:[%s31076_s9 + $0x38a8] sm:$0xff]  }
 0x790   : > { %v21952_v59 = vadd.f32 %v27967_v60, %v34864_v3  ;;  %v30517_v3 = vld [vmem:[%s31076_s9 + $0x37a8] sm:$0xff]  }
 0x791   : > { %28290 = vmatpush3.bf16.msra.mxu1 %v30517_v3  ;;  %v30547_v5 = vld [vmem:[%s31076_s9 + $0x3868] sm:$0xff]  }
 0x792   : > { %v34934_v22 = vadd.f32 %v27989_v61, %v21952_v59  ;;  %28291 = vmatprep.subr.bf16.mxu1 %v30519_v8  ;;  %28270 = vmatpush3.bf16.msra.mxu0 %v30520_v10  ;;  %v30548_v6 = vld [vmem:[%s31076_s9 + $0x38e8] sm:$0xff]   ;;  %v30551_v8 = vld [vmem:[%s31076_s9 + $0x3870] sm:$0xff]  }
 0x793   : > { %28271 = vmatprep.subr.bf16.mxu0 %v30522_v14  ;;  %v30552_v10 = vld [vmem:[%s31076_s9 + $0x38f0] sm:$0xff]  }
 0x794   : > { %v30554_v14 = vld [vmem:[%s31076_s9 + $0x38b0] sm:$0xff]  }
 0x795   : > { %28292 = vmatpush3.bf16.msra.mxu1 %v30521_v12  ;;  %v30553_v12 = vld [vmem:[%s31076_s9 + $0x3830] sm:$0xff]  }
 0x796   : > { %28293 = vmatprep.subr.bf16.mxu1 %v30523_v16  ;;  %28272 = vmatpush3.bf16.msra.mxu0 %v30524_v18  ;;  %v30555_v16 = vld [vmem:[%s31076_s9 + $0x3878] sm:$0xff]  }
 0x797   : > { %28301 = vmatprep.subr.bf16.mxu0 %v30527_v23  ;;  %v30556_v18 = vld [vmem:[%s31076_s9 + $0x38f8] sm:$0xff]   ;;  %v1945_v23 = vcombine.high %v913_v17, %v913_v17 }
 0x799   : > { %28294 = vmatpush3.bf16.msra.mxu1 %v30525_v19  ;;  %25772 = vmatmul.mubr.msk.bf16.vlgmr.msra.gmra.mrb[220].mxu0 %vm34967_vm14, %v25771_v34  ;;  %v30557_v19 = vld [vmem:[%s31076_s9 + $0x3838] sm:$0xff]   ;;  %vm35106_vm14 = vmpackc.low %vm844_vm10, %vm844_vm10  ;;  %v1959_v34 = vrot.slane %v1945_v23, %v31145_v47 }
 0x79a   : > { %28323 = vmatprep.subr.bf16.mxu1 %v30528_v28  ;;  %28302 = vmatpush3.bf16.msra.mxu0 %v30529_v33  ;;  %v1942_v28 = vrot.slane %v1928_v27, %v31145_v47  ;;  %v25780_v33 = vpack.c.bf16 %v1943_v20, %v1943_v20  ;;  %v1952_v27 = vrot.slane %v913_v17, %v31145_v47  ;;  %v30624_v17 = vld [vmem:[%s31076_s9 + $0x3ab8] sm:$0xff]   ;;  %v30626_v20 = vld [vmem:[%s31076_s9 + $0x3b40] sm:$0xff]  }
 0x79b   : > { %28303 = vmatprep.subr.bf16.mxu0 %v30531_v39  ;;  %v30564_v39 = vld [vmem:[%s31076_s9 + $0x3948] sm:$0xff]  }
 0x79c   : > { %25778 = vmatmul.mubr.msk.bf16.vlgmr.msra.gmra.mrb[220].mxu1 %vm34972_vm15, %v25777_v35  ;;  %v1944_v35 = vcombine.high %v1942_v28, %v1942_v28  ;;  %v25789_v37 = vpack.c.bf16 %v1942_v28, %v1942_v28  ;;  %25781 = vmatprep.mubr.msk.bf16.mxu0 %vm35025_vm3, %v25780_v33  ;;  %v1960_v28 = vcombine.high %v1952_v27, %v1952_v27  ;;  %v30595_v33 = vld [vmem:[%s31076_s9 + $0x3a00] sm:$0xff]  }
 0x79d   : > { %28324 = vmatpush3.bf16.msra.mxu1 %v30530_v41  ;;  %v30563_v41 = vld [vmem:[%s31076_s9 + $0x3980] sm:$0xff]  }
 0x79e   : > { %28325 = vmatprep.subr.bf16.mxu1 %v30532_v44  ;;  %28304 = vmatpush3.bf16.msra.mxu0 %v30533_v40  ;;  %v25786_v44 = vpack.c.bf16 %v1944_v35, %v1944_v35  ;;  %v30565_v40 = vld [vmem:[%s31076_s9 + $0x39c8] sm:$0xff]   ;;  %v25792_v35 = vpack.c.bf16 %v1960_v28, %v1960_v28 }
 0x79f   : > { %28305 = vmatprep.subr.bf16.mxu0 %v30535_v48  ;;  %v30567_v48 = vld [vmem:[%s31076_s9 + $0x3988] sm:$0xff]  }
 0x7a0   : > { %25787 = vmatprep.mubr.msk.bf16.mxu1 %vm35031_vm5, %v25786_v44  ;;  %v30597_v44 = vld [vmem:[%s31076_s9 + $0x3a48] sm:$0xff]  }
 0x7a1   : > { %28326 = vmatpush3.bf16.msra.mxu1 %v30534_v42  ;;  %v30566_v42 = vld [vmem:[%s31076_s9 + $0x3908] sm:$0xff]  }
 0x7a2   : > { %28327 = vmatprep.subr.bf16.mxu1 %v30536_v43  ;;  %28306 = vmatpush3.bf16.msra.mxu0 %v30537_v45  ;;  %v30568_v43 = vld [vmem:[%s31076_s9 + $0x3950] sm:$0xff]  }
 0x7a3   : > { %28307 = vmatprep.subr.bf16.mxu0 %v30539_v46  ;;  %v30569_v45 = vld [vmem:[%s31076_s9 + $0x39d0] sm:$0xff]  }
 0x7a4   : > { %v30571_v46 = vld [vmem:[%s31076_s9 + $0x3990] sm:$0xff]  }
 0x7a5   : > { %28328 = vmatpush3.bf16.msra.mxu1 %v30538_v51  ;;  %v30570_v51 = vld [vmem:[%s31076_s9 + $0x3910] sm:$0xff]  }
 0x7a6   : > { %28329 = vmatprep.subr.bf16.mxu1 %v30540_v49  ;;  %28308 = vmatpush3.bf16.msra.mxu0 %v30541_v54  ;;  %v30572_v49 = vld [vmem:[%s31076_s9 + $0x3958] sm:$0xff]  }
 0x7a7   : > { %28309 = vmatprep.subr.bf16.mxu0 %v30543_v53  ;;  %v30573_v54 = vld [vmem:[%s31076_s9 + $0x39d8] sm:$0xff]   ;;  %v30576_v53 = vld [vmem:[%s31076_s9 + $0x3960] sm:$0xff]  }
 0x7a9   : > { %28330 = vmatpush3.bf16.msra.mxu1 %v30542_v52  ;;  %v30575_v52 = vld [vmem:[%s31076_s9 + $0x3998] sm:$0xff]  }
 0x7aa   : > { %28331 = vmatprep.subr.bf16.mxu1 %v30544_v56  ;;  %28310 = vmatpush3.bf16.msra.mxu0 %v30545_v63  ;;  %v30578_v63 = vld [vmem:[%s31076_s9 + $0x3920] sm:$0xff]  }
 0x7ab   : > { %28311 = vmatprep.subr.bf16.mxu0 %v30547_v5  ;;  %v30580_v5 = vld [vmem:[%s31076_s9 + $0x3968] sm:$0xff]  }
 0x7ac   : > { %v28009_v50 = vpop.f32.mrb[196].mxu0  ;;  %v28031_v55 = vpop.f32.mrb[196].mxu1 }
 0x7ad   : > { %v28010_v57 = vpop.f32.mrb[197].mxu0  ;;  %v28032_v58 = vpop.f32.mrb[197].mxu1  ;;  %28332 = vmatpush3.bf16.msra.mxu1 %v30546_v62 }
 0x7ae   : > { %v28011_v60 = vadd.f32 %v28010_v57, %v28009_v50  ;;  %v28033_v61 = vadd.f32 %v28032_v58, %v28031_v55  ;;  %v28012_v2 = vpop.f32.mrb[198].mxu0  ;;  %v28034_v0 = vpop.f32.mrb[198].mxu1  ;;  %28333 = vmatprep.subr.bf16.mxu1 %v30548_v6  ;;  %v30574_v50 = vld [vmem:[%s31076_s9 + $0x3918] sm:$0xff]  }
 0x7af   : > { %v28013_v1 = vpop.f32.mrb[199].mxu0  ;;  %v28035_v3 = vpop.f32.mrb[199].mxu1 }
 0x7b0   : > { %v22032_v59 = vadd.f32 %v28011_v60, %v34934_v22  ;;  %v30549_v22 = vld [vmem:[%s31076_s9 + $0x3828] sm:$0xff]   ;;  %v30577_v60 = vld [vmem:[%s31076_s9 + $0x39e0] sm:$0xff]  }
 0x7b1   : > { %28312 = vmatpush3.bf16.msra.mxu0 %v30549_v22  ;;  %28334 = vmatpush3.bf16.msra.mxu1 %v30550_v7  ;;  %v30581_v3 = vld [vmem:[%s31076_s9 + $0x39e8] sm:$0xff]  }
 0x7b2   : > { %v35003_v4 = vadd.f32 %v28033_v61, %v22032_v59  ;;  %28313 = vmatprep.subr.bf16.mxu0 %v30551_v8  ;;  %28335 = vmatprep.subr.bf16.mxu1 %v30552_v10  ;;  %v30579_v61 = vld [vmem:[%s31076_s9 + $0x39a0] sm:$0xff]   ;;  %v30582_v7 = vld [vmem:[%s31076_s9 + $0x3928] sm:$0xff]   ;;  %v30585_v10 = vld [vmem:[%s31076_s9 + $0x39f0] sm:$0xff]  }
 0x7b5   : > { %28314 = vmatpush3.bf16.msra.mxu0 %v30553_v12  ;;  %28336 = vmatpush3.bf16.msra.mxu1 %v30554_v14  ;;  %v30586_v12 = vld [vmem:[%s31076_s9 + $0x3930] sm:$0xff]  }
 0x7b6   : > { %28315 = vmatprep.subr.bf16.mxu0 %v30555_v16  ;;  %28337 = vmatprep.subr.bf16.mxu1 %v30556_v18  ;;  %v30587_v14 = vld [vmem:[%s31076_s9 + $0x39b0] sm:$0xff]   ;;  %v30588_v16 = vld [vmem:[%s31076_s9 + $0x3978] sm:$0xff]   ;;  %v605_v18 = vadd.s32 29440, %v31126_v29 }
 0x7b8   : > { %vm846_vm12 = vcmp.lt.s32.totalorder %v605_v18, %v31134_v36  ;;  %v30621_v18 = vld [vmem:[%s31076_s9 + $0x3a78] sm:$0xff]  }
 0x7b9   : > { %28316 = vmatpush3.bf16.msra.mxu0 %v30557_v19  ;;  %28338 = vmatpush3.bf16.msra.mxu1 %v30558_v25  ;;  %v30589_v19 = vld [vmem:[%s31076_s9 + $0x39f8] sm:$0xff]   ;;  %vm35111_vm15 = vmpackc.low %vm846_vm12, %vm846_vm12 }
 0x7ba   : > { %28345 = vmatprep.subr.bf16.mxu0 %v30560_v31  ;;  %28367 = vmatprep.subr.bf16.mxu1 %v30561_v30  ;;  %v30590_v25 = vld [vmem:[%s31076_s9 + $0x3938] sm:$0xff]   ;;  %v30593_v31 = vld [vmem:[%s31076_s9 + $0x3a40] sm:$0xff]  }
 0x7bc   : > { %25784 = vmatmul.mubr.msk.bf16.vlgmr.msra.gmra.mrb[224].mxu0 %vm35035_vm6, %v25783_v32  ;;  %25790 = vmatmul.mubr.msk.bf16.vlgmr.msra.gmra.mrb[224].mxu1 %vm35041_vm7, %v25789_v37  ;;  %v30594_v32 = vld [vmem:[%s31076_s9 + $0x3ac0] sm:$0xff]  }
 0x7bd   : > { %28346 = vmatpush3.bf16.msra.mxu0 %v30562_v38  ;;  %28368 = vmatpush3.bf16.msra.mxu1 %v30563_v41  ;;  %v25795_v38 = vpack.c.bf16 %v1952_v27, %v1952_v27  ;;  %v1961_v41 = vcombine.high %v1959_v34, %v1959_v34  ;;  %v30596_v37 = vld [vmem:[%s31076_s9 + $0x3a80] sm:$0xff]   ;;  %v1969_v27 = vrot.slane %v914_v21, %v31145_v47  ;;  %v613_v21 = vadd.s32 30464, %v31126_v29 }
 0x7be   : > { %28347 = vmatprep.subr.bf16.mxu0 %v30564_v39  ;;  %28369 = vmatprep.subr.bf16.mxu1 %v30565_v40  ;;  %v25801_v39 = vpack.c.bf16 %v1959_v34, %v1959_v34  ;;  %v1976_v34 = vrot.slane %v1962_v24, %v31145_v47 }
 0x7bf   : > { %25793 = vmatprep.mubr.msk.bf16.mxu0 %vm35095_vm11, %v25792_v35  ;;  %v25798_v40 = vpack.c.bf16 %v1961_v41, %v1961_v41  ;;  %v1977_v28 = vcombine.high %v1969_v27, %v1969_v27  ;;  %vm854_vm12 = vcmp.lt.s32.totalorder %v613_v21, %v31134_v36 }
 0x7c0   : > { %v1978_v41 = vcombine.high %v1976_v34, %v1976_v34 }
 0x7c1   : > { %28348 = vmatpush3.bf16.msra.mxu0 %v30566_v42  ;;  %28370 = vmatpush3.bf16.msra.mxu1 %v30567_v48  ;;  %v30598_v42 = vld [vmem:[%s31076_s9 + $0x3ac8] sm:$0xff]   ;;  %v25804_v35 = vpack.c.bf16 %v1977_v28, %v1977_v28 }
 0x7c2   : > { %28349 = vmatprep.subr.bf16.mxu0 %v30568_v43  ;;  %28371 = vmatprep.subr.bf16.mxu1 %v30569_v45  ;;  %v30599_v48 = vld [vmem:[%s31076_s9 + $0x3a08] sm:$0xff]   ;;  %v30601_v45 = vld [vmem:[%s31076_s9 + $0x3a50] sm:$0xff]  }
 0x7c3   : > { %25799 = vmatprep.mubr.msk.bf16.mxu1 %vm35101_vm13, %v25798_v40  ;;  %v30600_v43 = vld [vmem:[%s31076_s9 + $0x3a88] sm:$0xff]   ;;  %v25810_v40 = vpack.c.bf16 %v1978_v41, %v1978_v41 }
 0x7c5   : > { %28350 = vmatpush3.bf16.msra.mxu0 %v30570_v51  ;;  %28372 = vmatpush3.bf16.msra.mxu1 %v30571_v46  ;;  %v30602_v51 = vld [vmem:[%s31076_s9 + $0x3ad0] sm:$0xff]  }
 0x7c6   : > { %28351 = vmatprep.subr.bf16.mxu0 %v30572_v49  ;;  %28373 = vmatprep.subr.bf16.mxu1 %v30573_v54  ;;  %v30603_v46 = vld [vmem:[%s31076_s9 + $0x3a10] sm:$0xff]   ;;  %v30605_v54 = vld [vmem:[%s31076_s9 + $0x3a58] sm:$0xff]  }
 0x7c7   : > { %v30604_v49 = vld [vmem:[%s31076_s9 + $0x3a90] sm:$0xff]  }
 0x7c9   : > { %28352 = vmatpush3.bf16.msra.mxu0 %v30574_v50  ;;  %28374 = vmatpush3.bf16.msra.mxu1 %v30575_v52  ;;  %v30606_v50 = vld [vmem:[%s31076_s9 + $0x3ad8] sm:$0xff]  }
 0x7ca   : > { %28353 = vmatprep.subr.bf16.mxu0 %v30576_v53  ;;  %28375 = vmatprep.subr.bf16.mxu1 %v30577_v60  ;;  %v30607_v52 = vld [vmem:[%s31076_s9 + $0x3a18] sm:$0xff]  }
 0x7cc   : > { %v28053_v57 = vpop.f32.mrb[200].mxu0  ;;  %v28075_v56 = vpop.f32.mrb[200].mxu1 }
 0x7cd   : > { %v28054_v55 = vpop.f32.mrb[201].mxu0  ;;  %v28076_v59 = vpop.f32.mrb[201].mxu1  ;;  %28354 = vmatpush3.bf16.msra.mxu0 %v30578_v63  ;;  %28376 = vmatpush3.bf16.msra.mxu1 %v30579_v61 }
 0x7ce   : > { %v28055_v58 = vadd.f32 %v28054_v55, %v28053_v57  ;;  %v28077_v62 = vadd.f32 %v28076_v59, %v28075_v56  ;;  %v28056_v0 = vpop.f32.mrb[202].mxu0  ;;  %v28078_v1 = vpop.f32.mrb[202].mxu1  ;;  %28355 = vmatprep.subr.bf16.mxu0 %v30580_v5  ;;  %28377 = vmatprep.subr.bf16.mxu1 %v30581_v3  ;;  %v30608_v57 = vld [vmem:[%s31076_s9 + $0x3a98] sm:$0xff]   ;;  %v30609_v55 = vld [vmem:[%s31076_s9 + $0x3a60] sm:$0xff]  }
 0x7cf   : > { %v28057_v22 = vpop.f32.mrb[203].mxu0  ;;  %v28079_v8 = vpop.f32.mrb[203].mxu1  ;;  %v30610_v56 = vld [vmem:[%s31076_s9 + $0x3ae0] sm:$0xff]   ;;  %v30613_v1 = vld [vmem:[%s31076_s9 + $0x3a68] sm:$0xff]  }
 0x7d0   : > { %v22112_v2 = vadd.f32 %v28055_v58, %v35003_v4  ;;  %v30583_v4 = vld [vmem:[%s31076_s9 + $0x39a8] sm:$0xff]   ;;  %v30611_v59 = vld [vmem:[%s31076_s9 + $0x3a20] sm:$0xff]  }
 0x7d1   : > { %28356 = vmatpush3.bf16.msra.mxu0 %v30582_v7  ;;  %28378 = vmatpush3.bf16.msra.mxu1 %v30583_v4  ;;  %v30614_v7 = vld [vmem:[%s31076_s9 + $0x3ae8] sm:$0xff]  }
 0x7d2   : > { %v35074_v6 = vadd.f32 %v28077_v62, %v22112_v2  ;;  %28357 = vmatprep.subr.bf16.mxu0 %v30584_v9  ;;  %28379 = vmatprep.subr.bf16.mxu1 %v30585_v10  ;;  %v30612_v2 = vld [vmem:[%s31076_s9 + $0x3aa0] sm:$0xff]   ;;  %v30615_v4 = vld [vmem:[%s31076_s9 + $0x3a28] sm:$0xff]   ;;  %v30617_v10 = vld [vmem:[%s31076_s9 + $0x3a70] sm:$0xff]  }
 0x7d5   : > { %28358 = vmatpush3.bf16.msra.mxu0 %v30586_v12  ;;  %28380 = vmatpush3.bf16.msra.mxu1 %v30587_v14  ;;  %v608_v12 = vadd.s32 29824, %v31126_v29  ;;  %v610_v14 = vadd.s32 30080, %v31126_v29 }
 0x7d6   : > { %28359 = vmatprep.subr.bf16.mxu0 %v30588_v16  ;;  %28381 = vmatprep.subr.bf16.mxu1 %v30589_v19  ;;  %v607_v16 = vadd.s32 29696, %v31126_v29  ;;  %v609_v19 = vadd.s32 29952, %v31126_v29 }
 0x7d7   : > { %vm849_vm0 = vcmp.lt.s32.totalorder %v608_v12, %v31134_v36  ;;  %vm851_vm1 = vcmp.lt.s32.totalorder %v610_v14, %v31134_v36  ;;  %v30651_v12 = vld [vmem:[%s31076_s9 + $0x3bf0] sm:$0xff]  }
 0x7d8   : > { %vm848_vm2 = vcmp.lt.s32.totalorder %v607_v16, %v31134_v36  ;;  %vm35166_vm3 = vmpackc.low %vm849_vm0, %vm849_vm0  ;;  %vm850_vm4 = vcmp.lt.s32.totalorder %v609_v19, %v31134_v36  ;;  %v30653_v14 = vld [vmem:[%s31076_s9 + $0x3bb0] sm:$0xff]   ;;  %v612_v16 = vadd.s32 30336, %v31126_v29  ;;  %v611_v19 = vadd.s32 30208, %v31126_v29 }
 0x7d9   : > { %28360 = vmatpush3.bf16.msra.mxu0 %v30590_v25  ;;  %28382 = vmatpush3.bf16.msra.mxu1 %v30591_v26  ;;  %v30622_v25 = vld [vmem:[%s31076_s9 + $0x3af8] sm:$0xff]   ;;  %vm35171_vm5 = vmpackc.low %vm851_vm1, %vm851_vm1  ;;  %vm30856_vm0 = vmmov (!%p25827_p1), 0   ;;  %vm23000_vm1 = vcmask (!%p25827_p1), 523264  }
 0x7da   : > { %28389 = vmatprep.subr.bf16.mxu0 %v30593_v31  ;;  %28411 = vmatprep.subr.bf16.mxu1 %v30594_v32  ;;  %v30623_v26 = vld [vmem:[%s31076_s9 + $0x3a38] sm:$0xff]   ;;  %vm35177_vm6 = vmpackc.low %vm848_vm2, %vm848_vm2  ;;  %v30627_v32 = vld [vmem:[%s31076_s9 + $0x3bc0] sm:$0xff]   ;;  %vm853_vm8 = vcmp.lt.s32.totalorder %v612_v16, %v31134_v36  ;;  %vm852_vm9 = vcmp.lt.s32.totalorder %v611_v19, %v31134_v36  ;;  %vm23074_vm2 = vcmask (!%p25827_p1), 33792  }
 0x7db   : > { %vm35182_vm7 = vmpackc.low %vm850_vm4, %vm850_vm4 }
 0x7dc   : > { %25796 = vmatmul.mubr.msk.bf16.vlgmr.msra.gmra.mrb[228].mxu0 %vm35106_vm14, %v25795_v38  ;;  %25802 = vmatmul.mubr.msk.bf16.vlgmr.msra.gmra.mrb[228].mxu1 %vm35111_vm15, %v25801_v39  ;;  %v25807_v38 = vpack.c.bf16 %v1969_v27, %v1969_v27  ;;  %v25813_v39 = vpack.c.bf16 %v1976_v34, %v1976_v34  ;;  %v30657_v27 = vld [vmem:[%s31076_s9 + $0x3bb8] sm:$0xff]   ;;  %vm25815_vm11 = vmpackc.low %vm853_vm8, %vm853_vm8 }
 0x7dd   : > { %28390 = vmatpush3.bf16.msra.mxu0 %v30595_v33  ;;  %28412 = vmatpush3.bf16.msra.mxu1 %v30596_v37  ;;  %v30628_v37 = vld [vmem:[%s31076_s9 + $0x3b00] sm:$0xff]   ;;  %vm25818_vm13 = vmpackc.low %vm852_vm9, %vm852_vm9 }
 0x7de   : > { %28391 = vmatprep.subr.bf16.mxu0 %v30597_v44  ;;  %28413 = vmatprep.subr.bf16.mxu1 %v30598_v42  ;;  %v30629_v44 = vld [vmem:[%s31076_s9 + $0x3b80] sm:$0xff]   ;;  %v30630_v42 = vld [vmem:[%s31076_s9 + $0x3b48] sm:$0xff]   ;;  %vm25824_vm15 = vmpackc.low %vm854_vm12, %vm854_vm12 }
 0x7df   : > { %25805 = vmatprep.mubr.msk.bf16.mxu0 %vm35166_vm3, %v25804_v35  ;;  %25811 = vmatprep.mubr.msk.bf16.mxu1 %vm35171_vm5, %v25810_v40 }
 0x7e1   : > { %28392 = vmatpush3.bf16.msra.mxu0 %v30599_v48  ;;  %28414 = vmatpush3.bf16.msra.mxu1 %v30600_v43  ;;  %v30631_v48 = vld [vmem:[%s31076_s9 + $0x3bc8] sm:$0xff]  }
 0x7e2   : > { %28393 = vmatprep.subr.bf16.mxu0 %v30601_v45  ;;  %28415 = vmatprep.subr.bf16.mxu1 %v30602_v51  ;;  %v30632_v43 = vld [vmem:[%s31076_s9 + $0x3b08] sm:$0xff]   ;;  %v30634_v51 = vld [vmem:[%s31076_s9 + $0x3b50] sm:$0xff]  }
 0x7e3   : > { %v30633_v45 = vld [vmem:[%s31076_s9 + $0x3b88] sm:$0xff]  }
 0x7e5   : > { %28394 = vmatpush3.bf16.msra.mxu0 %v30603_v46  ;;  %28416 = vmatpush3.bf16.msra.mxu1 %v30604_v49  ;;  %v30635_v46 = vld [vmem:[%s31076_s9 + $0x3bd0] sm:$0xff]  }
 0x7e6   : > { %28395 = vmatprep.subr.bf16.mxu0 %v30605_v54  ;;  %28417 = vmatprep.subr.bf16.mxu1 %v30606_v50  ;;  %v30636_v49 = vld [vmem:[%s31076_s9 + $0x3b10] sm:$0xff]   ;;  %v30638_v50 = vld [vmem:[%s31076_s9 + $0x3b58] sm:$0xff]  }
 0x7e7   : > { %v30637_v54 = vld [vmem:[%s31076_s9 + $0x3b90] sm:$0xff]  }
 0x7e9   : > { %28396 = vmatpush3.bf16.msra.mxu0 %v30607_v52  ;;  %28418 = vmatpush3.bf16.msra.mxu1 %v30608_v57  ;;  %v30639_v52 = vld [vmem:[%s31076_s9 + $0x3bd8] sm:$0xff]  }
 0x7ea   : > { %28397 = vmatprep.subr.bf16.mxu0 %v30609_v55  ;;  %28419 = vmatprep.subr.bf16.mxu1 %v30610_v56  ;;  %v30640_v57 = vld [vmem:[%s31076_s9 + $0x3b18] sm:$0xff]   ;;  %v30642_v56 = vld [vmem:[%s31076_s9 + $0x3b60] sm:$0xff]  }
 0x7eb   : > { %v30641_v55 = vld [vmem:[%s31076_s9 + $0x3b98] sm:$0xff]  }
 0x7ec   : > { %v28097_v53 = vpop.f32.mrb[204].mxu0  ;;  %v28119_v58 = vpop.f32.mrb[204].mxu1 }
 0x7ed   : > { %v28098_v60 = vpop.f32.mrb[205].mxu0  ;;  %v28120_v61 = vpop.f32.mrb[205].mxu1  ;;  %28398 = vmatpush3.bf16.msra.mxu0 %v30611_v59  ;;  %28420 = vmatpush3.bf16.msra.mxu1 %v30612_v2  ;;  %v30643_v59 = vld [vmem:[%s31076_s9 + $0x3be0] sm:$0xff]  }
 0x7ee   : > { %v28099_v63 = vadd.f32 %v28098_v60, %v28097_v53  ;;  %v28121_v0 = vadd.f32 %v28120_v61, %v28119_v58  ;;  %v28100_v5 = vpop.f32.mrb[206].mxu0  ;;  %v28122_v3 = vpop.f32.mrb[206].mxu1  ;;  %28399 = vmatprep.subr.bf16.mxu0 %v30613_v1  ;;  %28421 = vmatprep.subr.bf16.mxu1 %v30614_v7  ;;  %v30644_v2 = vld [vmem:[%s31076_s9 + $0x3b20] sm:$0xff]  }
 0x7ef   : > { %v28101_v8 = vpop.f32.mrb[207].mxu0  ;;  %v28123_v9 = vpop.f32.mrb[207].mxu1  ;;  %v30645_v1 = vld [vmem:[%s31076_s9 + $0x3ba0] sm:$0xff]  }
 0x7f0   : > { %v22192_v62 = vadd.f32 %v28099_v63, %v35074_v6  ;;  %v30616_v6 = vld [vmem:[%s31076_s9 + $0x3aa8] sm:$0xff]  }
 0x7f1   : > { %28400 = vmatpush3.bf16.msra.mxu0 %v30615_v4  ;;  %28422 = vmatpush3.bf16.msra.mxu1 %v30616_v6  ;;  %v30646_v8 = vld [vmem:[%s31076_s9 + $0x3b68] sm:$0xff]  }
 0x7f2   : > { %v35144_v22 = vadd.f32 %v28121_v0, %v22192_v62  ;;  %28401 = vmatprep.subr.bf16.mxu0 %v30617_v10  ;;  %28423 = vmatprep.subr.bf16.mxu1 %v30618_v11  ;;  %v30647_v9 = vld [vmem:[%s31076_s9 + $0x3be8] sm:$0xff]   ;;  %v30650_v11 = vld [vmem:[%s31076_s9 + $0x3b70] sm:$0xff]  }
 0x7f3   : > { %v30649_v10 = vld [vmem:[%s31076_s9 + $0x3ba8] sm:$0xff]  }
 0x7f5   : > { %28402 = vmatpush3.bf16.msra.mxu0 %v30619_v13  ;;  %28424 = vmatpush3.bf16.msra.mxu1 %v30620_v15  ;;  %v30652_v13 = vld [vmem:[%s31076_s9 + $0x3b30] sm:$0xff]   ;;  %v30654_v15 = vld [vmem:[%s31076_s9 + $0x3b78] sm:$0xff]  }
 0x7f6   : > { %28403 = vmatprep.subr.bf16.mxu0 %v30621_v18  ;;  %28425 = vmatprep.subr.bf16.mxu1 %v30622_v25  ;;  %v30655_v18 = vld [vmem:[%s31076_s9 + $0x3bf8] sm:$0xff]  }
 0x7f7   : > { %v30656_v25 = vld [vmem:[%s31076_s9 + $0x3b38] sm:$0xff]  }
 0x7f9   : > { %28404 = vmatpush3.bf16.msra.mxu0 %v30623_v26  ;;  %28426 = vmatpush3.bf16.msra.mxu1 %v30624_v17  ;;  %v614_v26 = vadd.s32 30592, %v31126_v29  ;;  %v915_v17 = vld [vmem:[%s31094_s18 + $0x1d8] sm:$0xff] }
 0x7fa   : > { %28433 = vmatprep.subr.bf16.mxu0 %v30626_v20  ;;  %28455 = vmatprep.subr.bf16.mxu1 %v30627_v32  ;;  %v1986_v23 = vrot.slane %v915_v17, %v31145_v47  ;;  %v1979_v24 = vcombine.high %v915_v17, %v915_v17 }
 0x7fb   : > { %vm855_vm10 = vcmp.lt.s32.totalorder %v614_v26, %v31134_v36 }
 0x7fc   : > { %25808 = vmatmul.mubr.msk.bf16.vlgmr.msra.gmra.mrb[232].mxu0 %vm35177_vm6, %v25807_v38  ;;  %25814 = vmatmul.mubr.msk.bf16.vlgmr.msra.gmra.mrb[232].mxu1 %vm35182_vm7, %v25813_v39  ;;  %v1994_v31 = vcombine.high %v1986_v23, %v1986_v23  ;;  %v1993_v20 = vrot.slane %v1979_v24, %v31145_v47  ;;  %v25819_v28 = vpack.c.bf16 %v1986_v23, %v1986_v23  ;;  %vm25821_vm14 = vmpackc.low %vm855_vm10, %vm855_vm10 }
 0x7fd   : > { %28434 = vmatpush3.bf16.msra.mxu0 %v30628_v37  ;;  %28456 = vmatpush3.bf16.msra.mxu1 %v30629_v44 }
 0x7fe   : > { %28435 = vmatprep.subr.bf16.mxu0 %v30630_v42  ;;  %28457 = vmatprep.subr.bf16.mxu1 %v30631_v48  ;;  %v25816_v29 = vpack.c.bf16 %v1994_v31, %v1994_v31  ;;  %v1995_v34 = vcombine.high %v1993_v20, %v1993_v20  ;;  %v25825_v30 = vpack.c.bf16 %v1993_v20, %v1993_v20 }
 0x800   : > { %25817 = vmatprep.mubr.msk.bf16.mxu0 %vm25815_vm11, %v25816_v29  ;;  %v25822_v32 = vpack.c.bf16 %v1995_v34, %v1995_v34 }
 0x801   : > { %28436 = vmatpush3.bf16.msra.mxu0 %v30632_v43  ;;  %28458 = vmatpush3.bf16.msra.mxu1 %v30633_v45 }
 0x802   : > { %28437 = vmatprep.subr.bf16.mxu0 %v30634_v51  ;;  %28459 = vmatprep.subr.bf16.mxu1 %v30635_v46 }
 0x803   : > { %25823 = vmatprep.mubr.msk.bf16.mxu1 %vm25821_vm14, %v25822_v32 }
 0x805   : > { %28438 = vmatpush3.bf16.msra.mxu0 %v30636_v49  ;;  %28460 = vmatpush3.bf16.msra.mxu1 %v30637_v54 }
 0x806   : > { %28439 = vmatprep.subr.bf16.mxu0 %v30638_v50  ;;  %28461 = vmatprep.subr.bf16.mxu1 %v30639_v52 }
 0x809   : > { %28440 = vmatpush3.bf16.msra.mxu0 %v30640_v57  ;;  %28462 = vmatpush3.bf16.msra.mxu1 %v30641_v55 }
 0x80a   : > { %28441 = vmatprep.subr.bf16.mxu0 %v30642_v56  ;;  %28463 = vmatprep.subr.bf16.mxu1 %v30643_v59 }
 0x80c   : > { %v28141_v53 = vpop.f32.mrb[208].mxu0  ;;  %v28163_v58 = vpop.f32.mrb[208].mxu1 }
 0x80d   : > { %v28142_v60 = vpop.f32.mrb[209].mxu0  ;;  %v28164_v61 = vpop.f32.mrb[209].mxu1  ;;  %28442 = vmatpush3.bf16.msra.mxu0 %v30644_v2  ;;  %28464 = vmatpush3.bf16.msra.mxu1 %v30645_v1 }
 0x80e   : > { %v28143_v63 = vadd.f32 %v28142_v60, %v28141_v53  ;;  %v28165_v0 = vadd.f32 %v28164_v61, %v28163_v58  ;;  %v28144_v5 = vpop.f32.mrb[210].mxu0  ;;  %v28166_v3 = vpop.f32.mrb[210].mxu1  ;;  %28443 = vmatprep.subr.bf16.mxu0 %v30646_v8  ;;  %28465 = vmatprep.subr.bf16.mxu1 %v30647_v9 }
 0x80f   : > { %v28145_v4 = vpop.f32.mrb[211].mxu0  ;;  %v28167_v6 = vpop.f32.mrb[211].mxu1 }
 0x810   : > { %v22272_v62 = vadd.f32 %v28143_v63, %v35144_v22  ;;  %v30648_v22 = vld [vmem:[%s31076_s9 + $0x3b28] sm:$0xff]  }
 0x811   : > { %28444 = vmatpush3.bf16.msra.mxu0 %v30648_v22  ;;  %28466 = vmatpush3.bf16.msra.mxu1 %v30649_v10 }
 0x812   : > { %v35213_v7 = vadd.f32 %v28165_v0, %v22272_v62  ;;  %28445 = vmatprep.subr.bf16.mxu0 %v30650_v11  ;;  %28467 = vmatprep.subr.bf16.mxu1 %v30651_v12 }
 0x815   : > { %28446 = vmatpush3.bf16.msra.mxu0 %v30652_v13  ;;  %28468 = vmatpush3.bf16.msra.mxu1 %v30653_v14 }
 0x816   : > { %28447 = vmatprep.subr.bf16.mxu0 %v30654_v15  ;;  %28469 = vmatprep.subr.bf16.mxu1 %v30655_v18 }
 0x819   : > { %28448 = vmatpush3.bf16.msra.mxu0 %v30656_v25  ;;  %28470 = vmatpush3.bf16.msra.mxu1 %v30657_v27 }
 0x81c   : > { %25820 = vmatmul.mubr.msk.bf16.vlgmr.msra.gmra.mrb[236].mxu0 %vm25818_vm13, %v25819_v28  ;;  %25826 = vmatmul.mubr.msk.bf16.vlgmr.msra.gmra.mrb[236].mxu1 %vm25824_vm15, %v25825_v30 }
 0x82c   : > { %v28185_v38 = vpop.f32.mrb[212].mxu0  ;;  %v28207_v35 = vpop.f32.mrb[212].mxu1 }
 0x82d   : > { %v28186_v33 = vpop.f32.mrb[213].mxu0  ;;  %v28208_v37 = vpop.f32.mrb[213].mxu1 }
 0x82e   : > { %v28187_v47 = vadd.f32 %v28186_v33, %v28185_v38  ;;  %v28188_v41 = vpop.f32.mrb[214].mxu0  ;;  %v28209_v44 = vadd.f32 %v28208_v37, %v28207_v35  ;;  %v28210_v40 = vpop.f32.mrb[214].mxu1 }
 0x82f   : > { %v28189_v39 = vpop.f32.mrb[215].mxu0  ;;  %v28211_v42 = vpop.f32.mrb[215].mxu1 }
 0x830   : > { %v22352_v36 = vadd.f32 %v28187_v47, %v35213_v7 }
 0x832   : > { %v22392_v48 = vadd.f32 %v28209_v44, %v22352_v36 }
 0x84c   : > { %v28229_v43 = vpop.f32.mrb[216].mxu0 }
 0x84d   : > { %v28230_v45 = vpop.f32.mrb[217].mxu0 }
 0x84e   : > { %v28231_v46 = vadd.f32 %v28230_v45, %v28229_v43  ;;  %v28232_v49 = vpop.f32.mrb[218].mxu0 }
 0x84f   : > { %v28251_v51 = vpop.f32.mrb[216].mxu1  ;;  %v28233_v50 = vpop.f32.mrb[219].mxu0 }
 0x850   : > { %v28252_v54 = vpop.f32.mrb[217].mxu1  ;;  %v22432_v52 = vadd.f32 %v28231_v46, %v22392_v48  ;;  %v2716_v50 = vld [vmem:[#allocation2] sm:$0x3] }
 0x851   : > { %v28253_v57 = vadd.f32 %v28252_v54, %v28251_v51  ;;  %v28254_v53 = vpop.f32.mrb[218].mxu1 }
 0x852   : > { %v28255_v55 = vpop.f32.mrb[219].mxu1 }
 0x853   : > { %v22472_v60 = vadd.f32 %v28253_v57, %v22432_v52  ;;  %v22892_v55 = vld [vmem:[%s35351_s3] sm:$0xff] (!%p25827_p1) }
 0x86c   : > { %v28273_v56 = vpop.f32.mrb[220].mxu0 }
 0x86d   : > { %v28274_v58 = vpop.f32.mrb[221].mxu0 }
 0x86e   : > { %v28275_v59 = vadd.f32 %v28274_v58, %v28273_v56  ;;  %v28276_v61 = vpop.f32.mrb[222].mxu0  ;;  %v22894_v56 = vld [vmem:[%s35351_s3 + $0x10] sm:$0xff] (!%p25827_p1)  ;;  %v30855_v58 = vmov (!%p25827_p1), 0.0|0.0  }
 0x86f   : > { %v28295_v63 = vpop.f32.mrb[220].mxu1  ;;  %v28277_v62 = vpop.f32.mrb[223].mxu0  ;;  %28557 = vmatprep.subr.bf16.mxu0 (!%p25827_p1), %v30855_v58  ;;  %v30857_v61 = vmov (!%p25827_p1), 0.0   ;;  %28581 = vmatprep.subr.bf16.mxu1 (!%p25827_p1), %v30855_v58 }
 0x870   : > { %v28296_v2 = vpop.f32.mrb[221].mxu1  ;;  %v22512_v0 = vadd.f32 %v28275_v59, %v22472_v60  ;;  %v22893_v60 = vld [vmem:[%s35351_s3 + $0x8] sm:$0xff] (!%p25827_p1)  ;;  %v22895_v59 = vld [vmem:[%s35351_s3 + $0x18] sm:$0xff] (!%p25827_p1)  ;;  %28535 = vmatprep.mubr.msk.f32.mxu0 (!%p25827_p1), %vm30856_vm0, %v30857_v61  ;;  %28554 = vmatprep.mubr.msk.f32.mxu1 (!%p25827_p1), %vm30856_vm0, %v30857_v61  ;;  %v22896_v62 = vld [vmem:[%s35351_s3 + $0x20] sm:$0xff] (!%p25827_p1) }
 0x871   : > { %v28297_v5 = vadd.f32 %v28296_v2, %v28295_v63  ;;  %v28298_v1 = vpop.f32.mrb[222].mxu1  ;;  %v28558_v63 = vpack.c.bf16 (!%p25827_p1), %v22893_v60, %v22892_v55  ;;  %v28561_v2 = vpack.c.bf16 (!%p25827_p1), %v22895_v59, %v22894_v56 }
 0x872   : > { %v28299_v3 = vpop.f32.mrb[223].mxu1  ;;  %v22986_v1 = vld [vmem:[%s35353_s5 + $0x8] sm:$0xff] (!%p25827_p1) }
 0x873   : > { %v22552_v7 = vadd.f32 %v28297_v5, %v22512_v0  ;;  %28559 = vmatpush3.bf16.msra.mxu0 (!%p25827_p1), %v28558_v63  ;;  %v22897_v0 = vld [vmem:[%s35351_s3 + $0x28] sm:$0xff] (!%p25827_p1)  ;;  %v22985_v5 = vld [vmem:[%s35353_s5] sm:$0xff] (!%p25827_p1)  ;;  %v22987_v3 = vld [vmem:[%s35353_s5 + $0x10] sm:$0xff] (!%p25827_p1) }
 0x874   : > { %28560 = vmatprep.subr.bf16.mxu0 (!%p25827_p1), %v30855_v58 }
 0x877   : > { %28562 = vmatpush3.bf16.msra.mxu0 (!%p25827_p1), %v28561_v2 }
 0x878   : > { %28563 = vmatprep.subr.bf16.mxu0 (!%p25827_p1), %v30855_v58 }
 0x88f   : > { %v28317_v8 = vpop.f32.mrb[224].mxu0  ;;  %v28339_v9 = vpop.f32.mrb[224].mxu1 }
 0x890   : > { %v28318_v4 = vpop.f32.mrb[225].mxu0  ;;  %v28340_v10 = vpop.f32.mrb[225].mxu1 }
 0x891   : > { %v28319_v6 = vadd.f32 %v28318_v4, %v28317_v8  ;;  %v28320_v22 = vpop.f32.mrb[226].mxu0  ;;  %v28341_v13 = vadd.f32 %v28340_v10, %v28339_v9  ;;  %v28342_v14 = vpop.f32.mrb[226].mxu1  ;;  %v28582_v8 = vpack.c.bf16 (!%p25827_p1), %v22986_v1, %v22985_v5  ;;  %v22988_v4 = vld [vmem:[%s35353_s5 + $0x18] sm:$0xff] (!%p25827_p1)  ;;  %v22898_v9 = vld [vmem:[%s35351_s3 + $0x30] sm:$0xff] (!%p25827_p1)  ;;  %v22989_v10 = vld [vmem:[%s35353_s5 + $0x20] sm:$0xff] (!%p25827_p1) }
 0x892   : > { %v28321_v11 = vpop.f32.mrb[227].mxu0  ;;  %v28343_v15 = vpop.f32.mrb[227].mxu1  ;;  %v28585_v22 = vpack.c.bf16 (!%p25827_p1), %v22988_v4, %v22987_v3  ;;  %v22901_v14 = vld [vmem:[%s35351_s3 + $0x48] sm:$0xff] (!%p25827_p1) }
 0x893   : > { %v22592_v12 = vadd.f32 %v28319_v6, %v22552_v7  ;;  %v28564_v7 = vpack.c.bf16 (!%p25827_p1), %v22897_v0, %v22896_v62  ;;  %v22899_v6 = vld [vmem:[%s35351_s3 + $0x38] sm:$0xff] (!%p25827_p1)  ;;  %28583 = vmatpush3.bf16.msra.mxu1 (!%p25827_p1), %v28582_v8  ;;  %v22990_v11 = vld [vmem:[%s35353_s5 + $0x28] sm:$0xff] (!%p25827_p1) }
 0x894   : > { %28584 = vmatprep.subr.bf16.mxu1 (!%p25827_p1), %v30855_v58  ;;  %v28588_v15 = vpack.c.bf16 (!%p25827_p1), %v22990_v11, %v22989_v10 }
 0x895   : > { %v22632_v16 = vadd.f32 %v28341_v13, %v22592_v12  ;;  %28565 = vmatpush3.bf16.msra.mxu0 (!%p25827_p1), %v28564_v7  ;;  %v28567_v12 = vpack.c.bf16 (!%p25827_p1), %v22899_v6, %v22898_v9  ;;  %v22900_v13 = vld [vmem:[%s35351_s3 + $0x40] sm:$0xff] (!%p25827_p1) }
 0x896   : > { %28566 = vmatprep.subr.bf16.mxu0 (!%p25827_p1), %v30855_v58 }
 0x897   : > { %28586 = vmatpush3.bf16.msra.mxu1 (!%p25827_p1), %v28585_v22 }
 0x898   : > { %28587 = vmatprep.subr.bf16.mxu1 (!%p25827_p1), %v30855_v58 }
 0x899   : > { %28568 = vmatpush3.bf16.msra.mxu0 (!%p25827_p1), %v28567_v12 }
 0x89a   : > { %28569 = vmatprep.subr.bf16.mxu0 (!%p25827_p1), %v30855_v58 }
 0x89b   : > { %28589 = vmatpush3.bf16.msra.mxu1 (!%p25827_p1), %v28588_v15 }
 0x89c   : > { %28590 = vmatprep.subr.bf16.mxu1 (!%p25827_p1), %v30855_v58 }
 0x8af   : > { %v28361_v18 = vpop.f32.mrb[228].mxu0  ;;  %v28383_v25 = vpop.f32.mrb[228].mxu1 }
 0x8b0   : > { %v28362_v19 = vpop.f32.mrb[229].mxu0  ;;  %v28384_v21 = vpop.f32.mrb[229].mxu1 }
 0x8b1   : > { %v28363_v26 = vadd.f32 %v28362_v19, %v28361_v18  ;;  %v28364_v17 = vpop.f32.mrb[230].mxu0  ;;  %v28385_v24 = vadd.f32 %v28384_v21, %v28383_v25  ;;  %v28386_v31 = vpop.f32.mrb[230].mxu1  ;;  %v22902_v18 = vld [vmem:[%s35351_s3 + $0x50] sm:$0xff] (!%p25827_p1)  ;;  %v22903_v19 = vld [vmem:[%s35351_s3 + $0x58] sm:$0xff] (!%p25827_p1) }
 0x8b2   : > { %v28365_v27 = vpop.f32.mrb[231].mxu0  ;;  %v28387_v20 = vpop.f32.mrb[231].mxu1  ;;  %v28573_v25 = vpack.c.bf16 (!%p25827_p1), %v22903_v19, %v22902_v18  ;;  %v22905_v17 = vld [vmem:[%s35351_s3 + $0x68] sm:$0xff] (!%p25827_p1) }
 0x8b3   : > { %v22672_v23 = vadd.f32 %v28363_v26, %v22632_v16  ;;  %v28570_v16 = vpack.c.bf16 (!%p25827_p1), %v22901_v14, %v22900_v13  ;;  %v22904_v26 = vld [vmem:[%s35351_s3 + $0x60] sm:$0xff] (!%p25827_p1)  ;;  %v22906_v27 = vld [vmem:[%s35351_s3 + $0x70] sm:$0xff] (!%p25827_p1) }
 0x8b4   : > { %v28576_v21 = vpack.c.bf16 (!%p25827_p1), %v22905_v17, %v22904_v26  ;;  %v25828_v20 = vld [vmem:[#allocation6] ss:$0 sm:$0xff] (!%p25827_p1) }
 0x8b5   : > { %v22712_v28 = vadd.f32 %v28385_v24, %v22672_v23  ;;  %28571 = vmatpush3.bf16.msra.mxu0 (!%p25827_p1), %v28570_v16  ;;  %v22907_v23 = vld [vmem:[%s35351_s3 + $0x78] sm:$0xff] (!%p25827_p1) }
 0x8b6   : > { %28572 = vmatprep.subr.bf16.mxu0 (!%p25827_p1), %v30855_v58  ;;  %v28579_v24 = vpack.c.bf16 (!%p25827_p1), %v22907_v23, %v22906_v27 }
 0x8b9   : > { %28574 = vmatpush3.bf16.msra.mxu0 (!%p25827_p1), %v28573_v25 }
 0x8ba   : > { %28575 = vmatprep.subr.bf16.mxu0 (!%p25827_p1), %v30855_v58 }
 0x8bd   : > { %28577 = vmatpush3.bf16.msra.mxu0 (!%p25827_p1), %v28576_v21 }
 0x8be   : > { %28578 = vmatprep.subr.bf16.mxu0 (!%p25827_p1), %v30855_v58 }
 0x8c1   : > { %28580 = vmatpush3.bf16.msra.mxu0 (!%p25827_p1), %v28579_v24 }
 0x8cf   : > { %v28405_v29 = vpop.f32.mrb[232].mxu0  ;;  %v28427_v30 = vpop.f32.mrb[232].mxu1 }
 0x8d0   : > { %v28406_v34 = vpop.f32.mrb[233].mxu0  ;;  %v28428_v33 = vpop.f32.mrb[233].mxu1 }
 0x8d1   : > { %v28407_v32 = vadd.f32 %v28406_v34, %v28405_v29  ;;  %v28408_v38 = vpop.f32.mrb[234].mxu0  ;;  %v28429_v41 = vadd.f32 %v28428_v33, %v28427_v30  ;;  %v28430_v37 = vpop.f32.mrb[234].mxu1  ;;  %v22991_v29 = vld [vmem:[%s35353_s5 + $0x30] sm:$0xff] (!%p25827_p1)  ;;  %v22992_v34 = vld [vmem:[%s35353_s5 + $0x38] sm:$0xff] (!%p25827_p1) }
 0x8d2   : > { %v28409_v35 = vpop.f32.mrb[235].mxu0  ;;  %v28431_v39 = vpop.f32.mrb[235].mxu1  ;;  %v28591_v30 = vpack.c.bf16 (!%p25827_p1), %v22992_v34, %v22991_v29 }
 0x8d3   : > { %v22752_v47 = vadd.f32 %v28407_v32, %v22712_v28  ;;  %v25829_v32 = vld [vmem:[#allocation8] ss:$0 sm:$0xff] (!%p25827_p1) }
 0x8d4   : > { %28592 = vmatpush3.bf16.msra.mxu1 (!%p25827_p1), %v28591_v30 }
 0x8d5   : > { %v22792_v36 = vadd.f32 %v28429_v41, %v22752_v47  ;;  %v25830_v47 = vld [vmem:[#allocation9] ss:$0 sm:$0xff] (!%p25827_p1) }
 0x8ef   : > { %v28449_v44 = vpop.f32.mrb[236].mxu0  ;;  %v28471_v42 = vpop.f32.mrb[236].mxu1 }
 0x8f0   : > { %v28450_v40 = vpop.f32.mrb[237].mxu0  ;;  %v28472_v45 = vpop.f32.mrb[237].mxu1 }
 0x8f1   : > { %v28451_v48 = vadd.f32 %v28450_v40, %v28449_v44  ;;  %v28452_v43 = vpop.f32.mrb[238].mxu0  ;;  %v28473_v49 = vadd.f32 %v28472_v45, %v28471_v42  ;;  %v28474_v54 = vpop.f32.mrb[238].mxu1 }
 0x8f2   : > { %v28453_v51 = vpop.f32.mrb[239].mxu0  ;;  %v28475_v52 = vpop.f32.mrb[239].mxu1 }
 0x8f3   : > { %v22832_v46 = vadd.f32 %v28451_v48, %v22792_v36  ;;  %22882 = sbr.rel (%p25827_p1) target bundleno = 2736 (0xab0), region = 72 }
 0x8f5   : > { %v22872_v57 = vadd.f32 %v28473_v49, %v22832_v46 }
 0x8f7   : > { %v22877_v53 = vadd.f32 %v22872_v57, %v2716_v50 }
 0x8f9   : > { %22878 = vst [vmem:[#allocation2] sm:$0x3] %v22877_v53 }
 0x900   : > { %v22883_v31 = vld [vmem:[#allocation2] sm:$0x3] }
 0x901   : > { %v22891_v28 = vadd.f32 %v25828_v20, %v22883_v31 }
 0x903   : > { %28536 = vmatmul.mubr.f32.vlgmr.msra.gmra.mrb[0].mxu0 %v22891_v28 }
 0x9d6   : > { %v22981_v38 = vpop.f32.mrb[0].mxu0 }
 0x9d7   : > { %v22982_v33 = vadd.f32 %v25829_v32, %v22981_v38  ;;  %v28537_v35 = vpop.f32.mrb[1].mxu0 }
 0x9d9   : > { %28555 = vmatmul.mubr.msk.f32.vlgmr.msra.gmra.mrb[0].mxu1 %vm23000_vm1, %v22982_v33 }
 0xaac   : > { %v23070_v41 = vpop.f32.mrb[0].mxu1 }
 0xaad   : > { %v23071_v37 = vadd.f32 %v25830_v47, %v23070_v41  ;;  %v28556_v39 = vpop.f32.mrb[1].mxu1 }
 0xaaf   : > { %23075 = vst.msk [vmem:[#allocation11] sm:$0x3] %vm23074_vm2, %v23071_v37 }
 0xab0 PF: > { %p28634_p4 = scmp.eq.s32.totalorder %s30918_s28, 3  ;;  %s30858_s13 = smov [#allocation11]  }
 0xab1   : > { %s23083_s16 = sshll.u32 %s30858_s13, 4  ;;  %s23084_s16 = int_to_ptr.vmem [resolvable:$true] %s23083_s16 }
 0xab2   : > { %s30773_s29 = scalar_lea.vmem %s23084_s16, 32  ;;  %p30780_p2 = scmp.lt.s32.totalorder %s23084_s16, %s23084_s16 }
 0xab3   : > { %p30774_p8 = scmp.ne.s32.totalorder %s23084_s16, %s30773_s29  ;;  %p30781_p6 = scmp.lt.s32.totalorder %s30773_s29, %s30773_s29 }
 0xab5   : > { %p30775_p12 = pnand %p30774_p8, %p28634_p4  ;;  %p30782_p13 = por %p30781_p6, %p30780_p2 }
 0xab7   : > { %p30776_p0 = pneg %p30775_p12 }
 0xab9   : > { %p30783_p3 = pnand %p30782_p13, %p30776_p0 }
 0xabb   : > { %30786 = shalt.err (!%p30783_p3)
}
 0xabc   : > { %s30787_s22 = scalar_lea.hbm %s35355_s7, 32 }
 0xabd   : > { %p30788_p5 = scmp.ne.s32.totalorder %s35355_s7, %s30787_s22  ;;  %p30793_p9 = scmp.lt.u32.totalorder %s30787_s22, %s35355_s7 }
 0xabf   : > { %p30789_p7 = pnand %p30788_p5, %p28634_p4 }
 0xac1   : > { %p30790_p10 = pneg %p30789_p7 }
 0xac3   : > { %p30795_p11 = pnand %p30793_p9, %p30790_p10 }
 0xac5   : > { %30798 = shalt.err (!%p30795_p11)
}
 0xac6   : > { %28610 = dma.vmem_to_hbm [thread:$0]  (%p28634_p4), %s23084_s16, 32, %s35355_s7, [#allocation5]  }
 0xac7   : > { %30828 = dma.done.wait (%p28634_p4), [#allocation5], 32  }
 0xac8   : > { %30830 = vsyncadd (%p28634_p4), [#allocation5], 4294967264 }
 0xac9 PF: > { %p20_p1 = scmp.ge.s32.totalorder %s31020_s20, 6   ;;  %s35835_s24 = smov %s30837_s25 }
 0xaca   : > { %s35836_s25 = smov %s30841_s26  ;;  %s35837_s26 = smov %s31030_s23 }
 0xacb   : > { %s35838_s27 = smov %s31020_s20  ;;  %22 = sbr.rel (!%p20_p1) target bundleno = 6 (0x6), region = 108 }
 0xad2   :  { %23096 = vsyncpa [#allocation4], 1 }
 0xad3   :  { %23098 = vsyncpa [#allocation4 + $0x1], 1 }
 0xad4   :  { %23099 = vsyncpa [#allocation7], 1 }
 0xad5   :  { %23100 = vsyncpa [#allocation10], 1 }
 0xad6   :  { %23101 = vsyncpa [#allocation5], 1 }
 0xad7   :  { %23103 = vsyncpa [#allocation5 + $0x1], 1 }

</bundles_post_ra>
